<compile_context>
chip_gen: v6e
topology: v6e:2x2x1
jax: 0.10.0
libtpu: 0.0.40
codegen_flags: <defaults>
</compile_context>

<pallas_src>
import functools

import jax
import jax.numpy as jnp
from jax import lax
from jax.experimental import pallas as pl
from jax.experimental.pallas import tpu as pltpu

_GUARD = 8  # guard rows at each end of the padded-image scratch (kw-1 shift room)


def _residual_block_kernel(x_ref, w1_ref, w2_ref, o_ref,
                           pad_ref, xcol02_ref, xcol1_ref,
                           *, H, W, Wp, Nb):
    C = x_ref.shape[1]
    HW = H * W
    P = (H + 2) * Wp                 # flat rows of one zero-padded image
    Lx = Nb * P                      # rows of the kw-im2col strip for kh in {0, 2}
    L = Lx - 2 * Wp                  # matmul M: rows that can hold real output pixels
    f32 = jnp.float32
    bf16 = jnp.bfloat16

    # Zero the padded scratch every step (cheap, ~100 KB of stores).  Pad rows /
    # columns then stay zero; interiors are overwritten below.  Re-zeroing each
    # step keeps the kernel correct when the "parallel" grid axis is split
    # across TensorCores (each core has its own scratch instance).
    pad_ref[...] = jnp.zeros_like(pad_ref)

    # ---- stage input image(s) into the padded scratch (f32, aligned stores) ---
    x_f32 = x_ref[...].astype(f32)                     # (Nb, C, H*W) lane-dense load
    zl = jnp.zeros((H, 1, C), f32)
    zr = jnp.zeros((H, Wp - W - 1, C), f32)
    for b in range(Nb):                                # Nb is a small static int
        x_hwc = x_f32[b].T.reshape(H, W, C)            # (H, W, C)
        xw = jnp.concatenate([zl, x_hwc, zr], axis=1).reshape(H * Wp, C)
        off = _GUARD + b * P + Wp                      # multiple of 8
        pad_ref[off:off + H * Wp, :] = xw

    def conv3x3(w_ref):
        # Build kw-merged im2col strips in bf16 (halves staging stores, native
        # bf16 x bf16 MXU).  Two strips so every matmul operand slice below is
        # sublane-aligned for the packed bf16 layout:
        #   xcol02[i, kw*C:+C] = padflat[i + kw - 1]        (kh=0 -> rows [0, L),
        #                                                    kh=2 -> rows [2*Wp, 2*Wp+L))
        #   xcol1 [i, kw*C:+C] = padflat[i + Wp + kw - 1]   (kh=1 -> rows [0, L))
        for kw in range(3):
            s = _GUARD - 1 + kw
            xcol02_ref[:, kw * C:(kw + 1) * C] = pad_ref[s:s + Lx, :].astype(bf16)
            xcol1_ref[:, kw * C:(kw + 1) * C] = pad_ref[s + Wp:s + Wp + L, :].astype(bf16)
        # 3 MXU matmuls with K = 3*C, bf16 operands, f32 accumulate.
        acc = jnp.dot(xcol02_ref[0:L, :], w_ref[0], preferred_element_type=f32)
        acc = acc + jnp.dot(xcol1_ref[...], w_ref[1], preferred_element_type=f32)
        acc = acc + jnp.dot(xcol02_ref[2 * Wp:2 * Wp + L, :], w_ref[2],
                            preferred_element_type=f32)
        return acc                                     # (L, C) f32

    # Rows/cols holding real output pixels; the ring columns (and, for Nb > 1,
    # the inter-image pad rows) of the Wp-wide padded layout are garbage and
    # must be zeroed so the conv1 result doubles as conv2's zero padding.
    row = lax.broadcasted_iota(jnp.int32, (L, 1), 0)
    col = row % Wp
    keep = (col >= 1) & (col <= W)
    if Nb > 1:
        keep &= (row % P) < H * Wp

    # ---- conv1 + ReLU; masked result becomes conv2's zero-padded input --------
    acc1 = conv3x3(w1_ref)
    h = jnp.where(keep, jnp.maximum(acc1, 0.0), 0.0)
    pad_ref[_GUARD + Wp:_GUARD + Wp + L, :] = h        # aligned full-interior store

    # ---- conv2 + residual add --------------------------------------------------
    acc2 = conv3x3(w2_ref)
    for b in range(Nb):
        out_hwc = acc2[b * P:b * P + H * Wp, :].reshape(H, Wp, C)[:, 1:W + 1, :]
        out = out_hwc.reshape(HW, C).T + x_f32[b]      # (C, H*W) lane-dense
        o_ref[b] = out.astype(o_ref.dtype)


def residual_block_forward(x_nchw, w1_hwio, w2_hwio, *, images_per_step=None):
    """out = conv2(relu(conv1(x))) + x ; both convs 3x3 / stride 1 / pad 1, no bias."""
    N, C, H, W = x_nchw.shape
    HW = H * W
    Wp = ((W + 2 + 7) // 8) * 8                 # padded width, multiple of 8 sublanes
    assert Wp >= W + 2, "kw shifts of the flattened image must not wrap across rows"
    P = (H + 2) * Wp

    # Fold images into the matmul M dimension, but keep >= 2 grid steps whenever
    # possible so v7x's two TensorCores both get work.
    if images_per_step is None:
        images_per_step = N // 2 if (N % 2 == 0 and N >= 2) else 1
    Nb = images_per_step
    assert N % Nb == 0
    steps = N // Nb

    Lx = Nb * P
    L = Lx - 2 * Wp

    x_flat = x_nchw.reshape(N, C, HW)           # free reshape (stays NCHW order)
    # (kh, kw*C + cin, cout), pre-cast to bf16 -> half the weight DMA / VMEM.
    wm1 = w1_hwio.reshape(3, 3 * C, C).astype(jnp.bfloat16)
    wm2 = w2_hwio.reshape(3, 3 * C, C).astype(jnp.bfloat16)

    kernel = functools.partial(_residual_block_kernel, H=H, W=W, Wp=Wp, Nb=Nb)
    out_flat = pl.pallas_call(
        kernel,
        out_shape=jax.ShapeDtypeStruct((N, C, HW), x_nchw.dtype),
        grid=(steps,),
        in_specs=[
            pl.BlockSpec((Nb, C, HW), lambda g: (g, 0, 0)),
            pl.BlockSpec((3, 3 * C, C), lambda g: (0, 0, 0)),
            pl.BlockSpec((3, 3 * C, C), lambda g: (0, 0, 0)),
        ],
        out_specs=pl.BlockSpec((Nb, C, HW), lambda g: (g, 0, 0)),
        scratch_shapes=[
            pltpu.VMEM((_GUARD + Nb * P + _GUARD, C), jnp.float32),  # padded image(s)
            pltpu.VMEM((Lx, 3 * C), jnp.bfloat16),                   # im2col, kh in {0, 2}
            pltpu.VMEM((L, 3 * C), jnp.bfloat16),                    # im2col, kh = 1
        ],
        compiler_params=pltpu.CompilerParams(dimension_semantics=("parallel",)),
    )(x_flat, wm1, wm2)
    return out_flat.reshape(N, C, H, W)


def reference_forward(x, w1, w2):
    """Pure-JAX reference (lax conv, highest precision) for correctness check."""
    dn = ("NCHW", "HWIO", "NCHW")
    y = lax.conv_general_dilated(x, w1, (1, 1), ((1, 1), (1, 1)),
                                 dimension_numbers=dn,
                                 precision=lax.Precision.HIGHEST)
    y = jnp.maximum(y, 0.0)
    y = lax.conv_general_dilated(y, w2, (1, 1), ((1, 1), (1, 1)),
                                 dimension_numbers=dn,
                                 precision=lax.Precision.HIGHEST)
    return y + x


if __name__ == "__main__":
    key = jax.random.PRNGKey(0)
    kx, k1, k2 = jax.random.split(key, 3)

    # ResidualBlock(channels=64) on 16x16 images (NCHW like PyTorch).
    C, H, W = 64, 16, 16
    lim = 1.0 / jnp.sqrt(jnp.float32(C * 3 * 3))   # nn.Conv2d default init range
    w1 = jax.random.uniform(k1, (3, 3, C, C), jnp.float32, -lim, lim)   # HWIO
    w2 = jax.random.uniform(k2, (3, 3, C, C), jnp.float32, -lim, lim)   # HWIO

    # batch 2 -> 2 parallel grid steps of 1 image each (keeps both v7x TCs busy).
    x = jax.random.normal(kx, (2, C, H, W), jnp.float32)
    out = jax.block_until_ready(residual_block_forward(x, w1, w2))
    ref = jax.block_until_ready(reference_forward(x, w1, w2))
    assert out.shape == (2, C, H, W), out.shape
    err = float(jnp.max(jnp.abs(out - ref)))
    assert jnp.allclose(out, ref, atol=3e-2, rtol=3e-2), err   # bf16 MXU inputs

    # batch 4 -> 2 parallel grid steps, 2 images folded into the matmul M each.
    x4 = jax.random.normal(kx, (4, C, H, W), jnp.float32)
    out4 = jax.block_until_ready(residual_block_forward(x4, w1, w2))
    ref4 = jax.block_until_ready(reference_forward(x4, w1, w2))
    err4 = float(jnp.max(jnp.abs(out4 - ref4)))
    assert jnp.allclose(out4, ref4, atol=3e-2, rtol=3e-2), err4

    print("KERNEL_OK")
</pallas_src>

<mosaic_0001>
module attributes {stable_mosaic.version = 11 : i64} {
  func.func @_residual_block_kernel(%arg0: i32, %arg1: memref<1x64x256xf32, #tpu.memory_space<vmem>>, %arg2: memref<3x192x64xbf16, #tpu.memory_space<vmem>>, %arg3: memref<3x192x64xbf16, #tpu.memory_space<vmem>>, %arg4: memref<1x64x256xf32, #tpu.memory_space<vmem>>, %arg5: memref<448x64xf32, #tpu.memory_space<vmem>>, %arg6: memref<432x192xbf16, #tpu.memory_space<vmem>>, %arg7: memref<384x192xbf16, #tpu.memory_space<vmem>>) attributes {dimension_semantics = [#tpu.dimension_semantics<parallel>], iteration_bounds = array<i64: 2>, scalar_prefetch = 0 : i64, scratch_operands = 3 : i64, tpu.core_type = #tpu.core_type<tc>, window_params = [{transform_indices = @transform_0, window_bounds = array<i64: 1, 64, 256>}, {pipeline_mode = #tpu.pipeline_mode<synchronous>, transform_indices = @transform_1, window_bounds = array<i64: 3, 192, 64>}, {pipeline_mode = #tpu.pipeline_mode<synchronous>, transform_indices = @transform_2, window_bounds = array<i64: 3, 192, 64>}, {transform_indices = @transform_3, window_bounds = array<i64: 1, 64, 256>}]} {
    %cst = arith.constant 0.000000e+00 : f32
    %0 = vector.broadcast %cst : f32 to vector<448x64xf32>
    %c0 = arith.constant 0 : index
    %c0_0 = arith.constant 0 : index
    %1 = vector.load %arg5[%c0, %c0_0] : memref<448x64xf32, #tpu.memory_space<vmem>>, vector<448x64xf32>
    tpu.vector_store %arg5[%c0, %c0_0], %0 {strides = array<i32>} : memref<448x64xf32, #tpu.memory_space<vmem>>, vector<448x64xf32>,
    %c0_1 = arith.constant 0 : index
    %c0_2 = arith.constant 0 : index
    %c0_3 = arith.constant 0 : index
    %2 = vector.load %arg1[%c0_1, %c0_2, %c0_3] : memref<1x64x256xf32, #tpu.memory_space<vmem>>, vector<1x64x256xf32>
    %cst_4 = arith.constant 0.000000e+00 : f32
    %3 = vector.broadcast %cst_4 : f32 to vector<16x1x64xf32>
    %cst_5 = arith.constant 0.000000e+00 : f32
    %4 = vector.broadcast %cst_5 : f32 to vector<16x7x64xf32>
    %5 = vector.shape_cast %2 : vector<1x64x256xf32> to vector<64x256xf32>
    %6 = tpu.transpose %5, [1, 0] : vector<64x256xf32> -> vector<256x64xf32>
    %7 = vector.shape_cast %6 : vector<256x64xf32> to vector<16x16x64xf32>
    %8 = tpu.concatenate %3, %7, %4 in 1 : vector<16x1x64xf32>, vector<16x16x64xf32>, vector<16x7x64xf32> -> vector<16x24x64xf32>
    %9 = vector.shape_cast %8 : vector<16x24x64xf32> to vector<384x64xf32>
    %c32 = arith.constant 32 : index
    %c0_6 = arith.constant 0 : index
    %10 = vector.load %arg5[%c32, %c0_6] : memref<448x64xf32, #tpu.memory_space<vmem>>, vector<384x64xf32>
    tpu.vector_store %arg5[%c32, %c0_6], %9 {strides = array<i32>} : memref<448x64xf32, #tpu.memory_space<vmem>>, vector<384x64xf32>,
    %11 = tpu.iota {dimensions = array<i32: 0>} : vector<384x1xi32>
    %c24_i32 = arith.constant 24 : i32
    %c0_i32 = arith.constant 0 : i32
    %12 = arith.cmpi eq, %c24_i32, %c0_i32 : i32
    %c1_i32 = arith.constant 1 : i32
    %13 = arith.select %12, %c1_i32, %c24_i32 : i32
    %14 = vector.broadcast %13 : i32 to vector<384x1xi32>
    %15 = arith.remsi %11, %14 : vector<384x1xi32>
    %c0_i32_7 = arith.constant 0 : i32
    %16 = vector.broadcast %c0_i32_7 : i32 to vector<384x1xi32>
    %17 = arith.cmpi ne, %15, %16 : vector<384x1xi32>
    %c0_i32_8 = arith.constant 0 : i32
    %18 = vector.broadcast %c0_i32_8 : i32 to vector<384x1xi32>
    %19 = arith.cmpi slt, %15, %18 : vector<384x1xi32>
    %c0_i32_9 = arith.constant 0 : i32
    %20 = arith.cmpi slt, %13, %c0_i32_9 : i32
    %21 = vector.broadcast %20 : i1 to vector<384x1xi1>
    %22 = vector.broadcast %21 : vector<384x1xi1> to vector<384x1xi1>
    %23 = arith.xori %19, %22 : vector<384x1xi1>
    %24 = arith.andi %23, %17 : vector<384x1xi1>
    %25 = vector.broadcast %13 : i32 to vector<384x1xi32>
    %26 = arith.addi %15, %25 : vector<384x1xi32>
    %27 = arith.select %24, %26, %15 : vector<384x1xi1>, vector<384x1xi32>
    %c1_i32_10 = arith.constant 1 : i32
    %28 = vector.broadcast %c1_i32_10 : i32 to vector<384x1xi32>
    %29 = arith.cmpi sge, %27, %28 : vector<384x1xi32>
    %c16_i32 = arith.constant 16 : i32
    %30 = vector.broadcast %c16_i32 : i32 to vector<384x1xi32>
    %31 = arith.cmpi sle, %27, %30 : vector<384x1xi32>
    %32 = arith.andi %29, %31 : vector<384x1xi1>
    %c7 = arith.constant 7 : index
    %c0_11 = arith.constant 0 : index
    %33 = vector.load %arg5[%c7, %c0_11] : memref<448x64xf32, #tpu.memory_space<vmem>>, vector<432x64xf32>
    %34 = arith.truncf %33 : vector<432x64xf32> to vector<432x64xbf16>
    %c0_12 = arith.constant 0 : index
    %c0_13 = arith.constant 0 : index
    %35 = vector.load %arg6[%c0_12, %c0_13] : memref<432x192xbf16, #tpu.memory_space<vmem>>, vector<432x64xbf16>
    tpu.vector_store %arg6[%c0_12, %c0_13], %34 {strides = array<i32>} : memref<432x192xbf16, #tpu.memory_space<vmem>>, vector<432x64xbf16>,
    %c31 = arith.constant 31 : index
    %c0_14 = arith.constant 0 : index
    %36 = vector.load %arg5[%c31, %c0_14] : memref<448x64xf32, #tpu.memory_space<vmem>>, vector<384x64xf32>
    %37 = arith.truncf %36 : vector<384x64xf32> to vector<384x64xbf16>
    %c0_15 = arith.constant 0 : index
    %c0_16 = arith.constant 0 : index
    %38 = vector.load %arg7[%c0_15, %c0_16] : memref<384x192xbf16, #tpu.memory_space<vmem>>, vector<384x64xbf16>
    tpu.vector_store %arg7[%c0_15, %c0_16], %37 {strides = array<i32>} : memref<384x192xbf16, #tpu.memory_space<vmem>>, vector<384x64xbf16>,
    %c8 = arith.constant 8 : index
    %c0_17 = arith.constant 0 : index
    %39 = vector.load %arg5[%c8, %c0_17] : memref<448x64xf32, #tpu.memory_space<vmem>>, vector<432x64xf32>
    %40 = arith.truncf %39 : vector<432x64xf32> to vector<432x64xbf16>
    %c0_18 = arith.constant 0 : index
    %c64 = arith.constant 64 : index
    %41 = vector.load %arg6[%c0_18, %c64] : memref<432x192xbf16, #tpu.memory_space<vmem>>, vector<432x64xbf16>
    tpu.vector_store %arg6[%c0_18, %c64], %40 {strides = array<i32>} : memref<432x192xbf16, #tpu.memory_space<vmem>>, vector<432x64xbf16>,
    %c32_19 = arith.constant 32 : index
    %c0_20 = arith.constant 0 : index
    %42 = vector.load %arg5[%c32_19, %c0_20] : memref<448x64xf32, #tpu.memory_space<vmem>>, vector<384x64xf32>
    %43 = arith.truncf %42 : vector<384x64xf32> to vector<384x64xbf16>
    %c0_21 = arith.constant 0 : index
    %c64_22 = arith.constant 64 : index
    %44 = vector.load %arg7[%c0_21, %c64_22] : memref<384x192xbf16, #tpu.memory_space<vmem>>, vector<384x64xbf16>
    tpu.vector_store %arg7[%c0_21, %c64_22], %43 {strides = array<i32>} : memref<384x192xbf16, #tpu.memory_space<vmem>>, vector<384x64xbf16>,
    %c9 = arith.constant 9 : index
    %c0_23 = arith.constant 0 : index
    %45 = vector.load %arg5[%c9, %c0_23] : memref<448x64xf32, #tpu.memory_space<vmem>>, vector<432x64xf32>
    %46 = arith.truncf %45 : vector<432x64xf32> to vector<432x64xbf16>
    %c0_24 = arith.constant 0 : index
    %c128 = arith.constant 128 : index
    %47 = vector.load %arg6[%c0_24, %c128] : memref<432x192xbf16, #tpu.memory_space<vmem>>, vector<432x64xbf16>
    tpu.vector_store %arg6[%c0_24, %c128], %46 {strides = array<i32>} : memref<432x192xbf16, #tpu.memory_space<vmem>>, vector<432x64xbf16>,
    %c33 = arith.constant 33 : index
    %c0_25 = arith.constant 0 : index
    %48 = vector.load %arg5[%c33, %c0_25] : memref<448x64xf32, #tpu.memory_space<vmem>>, vector<384x64xf32>
    %49 = arith.truncf %48 : vector<384x64xf32> to vector<384x64xbf16>
    %c0_26 = arith.constant 0 : index
    %c128_27 = arith.constant 128 : index
    %50 = vector.load %arg7[%c0_26, %c128_27] : memref<384x192xbf16, #tpu.memory_space<vmem>>, vector<384x64xbf16>
    tpu.vector_store %arg7[%c0_26, %c128_27], %49 {strides = array<i32>} : memref<384x192xbf16, #tpu.memory_space<vmem>>, vector<384x64xbf16>,
    %c0_28 = arith.constant 0 : index
    %c0_29 = arith.constant 0 : index
    %51 = vector.load %arg6[%c0_28, %c0_29] : memref<432x192xbf16, #tpu.memory_space<vmem>>, vector<384x192xbf16>
    %c0_30 = arith.constant 0 : index
    %c0_31 = arith.constant 0 : index
    %c0_32 = arith.constant 0 : index
    %52 = vector.load %arg2[%c0_30, %c0_31, %c0_32] : memref<3x192x64xbf16, #tpu.memory_space<vmem>>, vector<1x192x64xbf16>
    %53 = vector.shape_cast %52 : vector<1x192x64xbf16> to vector<192x64xbf16>
    %cst_33 = arith.constant dense<0.000000e+00> : vector<384x64xf32>
    %54 = tpu.matmul %51, %53, %cst_33 {dimension_numbers = #tpu.dot_dimension_numbers<[1], [0], [0], [1], [0, 0, 1, 1], [], []>} : vector<384x192xbf16>, vector<192x64xbf16>, vector<384x64xf32> -> vector<384x64xf32>
    %c0_34 = arith.constant 0 : index
    %c0_35 = arith.constant 0 : index
    %55 = vector.load %arg7[%c0_34, %c0_35] : memref<384x192xbf16, #tpu.memory_space<vmem>>, vector<384x192xbf16>
    %c1 = arith.constant 1 : index
    %c0_36 = arith.constant 0 : index
    %c0_37 = arith.constant 0 : index
    %56 = vector.load %arg2[%c1, %c0_36, %c0_37] : memref<3x192x64xbf16, #tpu.memory_space<vmem>>, vector<1x192x64xbf16>
    %57 = vector.shape_cast %56 : vector<1x192x64xbf16> to vector<192x64xbf16>
    %cst_38 = arith.constant dense<0.000000e+00> : vector<384x64xf32>
    %58 = tpu.matmul %55, %57, %cst_38 {dimension_numbers = #tpu.dot_dimension_numbers<[1], [0], [0], [1], [0, 0, 1, 1], [], []>} : vector<384x192xbf16>, vector<192x64xbf16>, vector<384x64xf32> -> vector<384x64xf32>
    %59 = arith.addf %54, %58 : vector<384x64xf32>
    %c48 = arith.constant 48 : index
    %c0_39 = arith.constant 0 : index
    %60 = vector.load %arg6[%c48, %c0_39] : memref<432x192xbf16, #tpu.memory_space<vmem>>, vector<384x192xbf16>
    %c2 = arith.constant 2 : index
    %c0_40 = arith.constant 0 : index
    %c0_41 = arith.constant 0 : index
    %61 = vector.load %arg2[%c2, %c0_40, %c0_41] : memref<3x192x64xbf16, #tpu.memory_space<vmem>>, vector<1x192x64xbf16>
    %62 = vector.shape_cast %61 : vector<1x192x64xbf16> to vector<192x64xbf16>
    %cst_42 = arith.constant dense<0.000000e+00> : vector<384x64xf32>
    %63 = tpu.matmul %60, %62, %cst_42 {dimension_numbers = #tpu.dot_dimension_numbers<[1], [0], [0], [1], [0, 0, 1, 1], [], []>} : vector<384x192xbf16>, vector<192x64xbf16>, vector<384x64xf32> -> vector<384x64xf32>
    %64 = arith.addf %59, %63 : vector<384x64xf32>
    %cst_43 = arith.constant 0.000000e+00 : f32
    %65 = vector.broadcast %cst_43 : f32 to vector<384x64xf32>
    %66 = arith.maximumf %64, %65 : vector<384x64xf32>
    %cst_44 = arith.constant 0.000000e+00 : f32
    %67 = vector.shape_cast %32 : vector<384x1xi1> to vector<384x1xi1>
    %68 = vector.broadcast %67 : vector<384x1xi1> to vector<384x64xi1>
    %69 = vector.broadcast %cst_44 : f32 to vector<384x64xf32>
    %70 = arith.select %68, %66, %69 : vector<384x64xi1>, vector<384x64xf32>
    %c32_45 = arith.constant 32 : index
    %c0_46 = arith.constant 0 : index
    %71 = vector.load %arg5[%c32_45, %c0_46] : memref<448x64xf32, #tpu.memory_space<vmem>>, vector<384x64xf32>
    tpu.vector_store %arg5[%c32_45, %c0_46], %70 {strides = array<i32>} : memref<448x64xf32, #tpu.memory_space<vmem>>, vector<384x64xf32>,
    %c7_47 = arith.constant 7 : index
    %c0_48 = arith.constant 0 : index
    %72 = vector.load %arg5[%c7_47, %c0_48] : memref<448x64xf32, #tpu.memory_space<vmem>>, vector<432x64xf32>
    %73 = arith.truncf %72 : vector<432x64xf32> to vector<432x64xbf16>
    %c0_49 = arith.constant 0 : index
    %c0_50 = arith.constant 0 : index
    %74 = vector.load %arg6[%c0_49, %c0_50] : memref<432x192xbf16, #tpu.memory_space<vmem>>, vector<432x64xbf16>
    tpu.vector_store %arg6[%c0_49, %c0_50], %73 {strides = array<i32>} : memref<432x192xbf16, #tpu.memory_space<vmem>>, vector<432x64xbf16>,
    %c31_51 = arith.constant 31 : index
    %c0_52 = arith.constant 0 : index
    %75 = vector.load %arg5[%c31_51, %c0_52] : memref<448x64xf32, #tpu.memory_space<vmem>>, vector<384x64xf32>
    %76 = arith.truncf %75 : vector<384x64xf32> to vector<384x64xbf16>
    %c0_53 = arith.constant 0 : index
    %c0_54 = arith.constant 0 : index
    %77 = vector.load %arg7[%c0_53, %c0_54] : memref<384x192xbf16, #tpu.memory_space<vmem>>, vector<384x64xbf16>
    tpu.vector_store %arg7[%c0_53, %c0_54], %76 {strides = array<i32>} : memref<384x192xbf16, #tpu.memory_space<vmem>>, vector<384x64xbf16>,
    %c8_55 = arith.constant 8 : index
    %c0_56 = arith.constant 0 : index
    %78 = vector.load %arg5[%c8_55, %c0_56] : memref<448x64xf32, #tpu.memory_space<vmem>>, vector<432x64xf32>
    %79 = arith.truncf %78 : vector<432x64xf32> to vector<432x64xbf16>
    %c0_57 = arith.constant 0 : index
    %c64_58 = arith.constant 64 : index
    %80 = vector.load %arg6[%c0_57, %c64_58] : memref<432x192xbf16, #tpu.memory_space<vmem>>, vector<432x64xbf16>
    tpu.vector_store %arg6[%c0_57, %c64_58], %79 {strides = array<i32>} : memref<432x192xbf16, #tpu.memory_space<vmem>>, vector<432x64xbf16>,
    %c32_59 = arith.constant 32 : index
    %c0_60 = arith.constant 0 : index
    %81 = vector.load %arg5[%c32_59, %c0_60] : memref<448x64xf32, #tpu.memory_space<vmem>>, vector<384x64xf32>
    %82 = arith.truncf %81 : vector<384x64xf32> to vector<384x64xbf16>
    %c0_61 = arith.constant 0 : index
    %c64_62 = arith.constant 64 : index
    %83 = vector.load %arg7[%c0_61, %c64_62] : memref<384x192xbf16, #tpu.memory_space<vmem>>, vector<384x64xbf16>
    tpu.vector_store %arg7[%c0_61, %c64_62], %82 {strides = array<i32>} : memref<384x192xbf16, #tpu.memory_space<vmem>>, vector<384x64xbf16>,
    %c9_63 = arith.constant 9 : index
    %c0_64 = arith.constant 0 : index
    %84 = vector.load %arg5[%c9_63, %c0_64] : memref<448x64xf32, #tpu.memory_space<vmem>>, vector<432x64xf32>
    %85 = arith.truncf %84 : vector<432x64xf32> to vector<432x64xbf16>
    %c0_65 = arith.constant 0 : index
    %c128_66 = arith.constant 128 : index
    %86 = vector.load %arg6[%c0_65, %c128_66] : memref<432x192xbf16, #tpu.memory_space<vmem>>, vector<432x64xbf16>
    tpu.vector_store %arg6[%c0_65, %c128_66], %85 {strides = array<i32>} : memref<432x192xbf16, #tpu.memory_space<vmem>>, vector<432x64xbf16>,
    %c33_67 = arith.constant 33 : index
    %c0_68 = arith.constant 0 : index
    %87 = vector.load %arg5[%c33_67, %c0_68] : memref<448x64xf32, #tpu.memory_space<vmem>>, vector<384x64xf32>
    %88 = arith.truncf %87 : vector<384x64xf32> to vector<384x64xbf16>
    %c0_69 = arith.constant 0 : index
    %c128_70 = arith.constant 128 : index
    %89 = vector.load %arg7[%c0_69, %c128_70] : memref<384x192xbf16, #tpu.memory_space<vmem>>, vector<384x64xbf16>
    tpu.vector_store %arg7[%c0_69, %c128_70], %88 {strides = array<i32>} : memref<384x192xbf16, #tpu.memory_space<vmem>>, vector<384x64xbf16>,
    %c0_71 = arith.constant 0 : index
    %c0_72 = arith.constant 0 : index
    %90 = vector.load %arg6[%c0_71, %c0_72] : memref<432x192xbf16, #tpu.memory_space<vmem>>, vector<384x192xbf16>
    %c0_73 = arith.constant 0 : index
    %c0_74 = arith.constant 0 : index
    %c0_75 = arith.constant 0 : index
    %91 = vector.load %arg3[%c0_73, %c0_74, %c0_75] : memref<3x192x64xbf16, #tpu.memory_space<vmem>>, vector<1x192x64xbf16>
    %92 = vector.shape_cast %91 : vector<1x192x64xbf16> to vector<192x64xbf16>
    %cst_76 = arith.constant dense<0.000000e+00> : vector<384x64xf32>
    %93 = tpu.matmul %90, %92, %cst_76 {dimension_numbers = #tpu.dot_dimension_numbers<[1], [0], [0], [1], [0, 0, 1, 1], [], []>} : vector<384x192xbf16>, vector<192x64xbf16>, vector<384x64xf32> -> vector<384x64xf32>
    %c0_77 = arith.constant 0 : index
    %c0_78 = arith.constant 0 : index
    %94 = vector.load %arg7[%c0_77, %c0_78] : memref<384x192xbf16, #tpu.memory_space<vmem>>, vector<384x192xbf16>
    %c1_79 = arith.constant 1 : index
    %c0_80 = arith.constant 0 : index
    %c0_81 = arith.constant 0 : index
    %95 = vector.load %arg3[%c1_79, %c0_80, %c0_81] : memref<3x192x64xbf16, #tpu.memory_space<vmem>>, vector<1x192x64xbf16>
    %96 = vector.shape_cast %95 : vector<1x192x64xbf16> to vector<192x64xbf16>
    %cst_82 = arith.constant dense<0.000000e+00> : vector<384x64xf32>
    %97 = tpu.matmul %94, %96, %cst_82 {dimension_numbers = #tpu.dot_dimension_numbers<[1], [0], [0], [1], [0, 0, 1, 1], [], []>} : vector<384x192xbf16>, vector<192x64xbf16>, vector<384x64xf32> -> vector<384x64xf32>
    %98 = arith.addf %93, %97 : vector<384x64xf32>
    %c48_83 = arith.constant 48 : index
    %c0_84 = arith.constant 0 : index
    %99 = vector.load %arg6[%c48_83, %c0_84] : memref<432x192xbf16, #tpu.memory_space<vmem>>, vector<384x192xbf16>
    %c2_85 = arith.constant 2 : index
    %c0_86 = arith.constant 0 : index
    %c0_87 = arith.constant 0 : index
    %100 = vector.load %arg3[%c2_85, %c0_86, %c0_87] : memref<3x192x64xbf16, #tpu.memory_space<vmem>>, vector<1x192x64xbf16>
    %101 = vector.shape_cast %100 : vector<1x192x64xbf16> to vector<192x64xbf16>
    %cst_88 = arith.constant dense<0.000000e+00> : vector<384x64xf32>
    %102 = tpu.matmul %99, %101, %cst_88 {dimension_numbers = #tpu.dot_dimension_numbers<[1], [0], [0], [1], [0, 0, 1, 1], [], []>} : vector<384x192xbf16>, vector<192x64xbf16>, vector<384x64xf32> -> vector<384x64xf32>
    %103 = arith.addf %98, %102 : vector<384x64xf32>
    %104 = vector.shape_cast %103 : vector<384x64xf32> to vector<16x24x64xf32>
    %105 = vector.extract_strided_slice %104 {offsets = [0, 1, 0], sizes = [16, 16, 64], strides = [1, 1, 1]} : vector<16x24x64xf32> to vector<16x16x64xf32>
    %106 = vector.shape_cast %105 : vector<16x16x64xf32> to vector<256x64xf32>
    %107 = tpu.transpose %106, [1, 0] : vector<256x64xf32> -> vector<64x256xf32>
    %108 = vector.shape_cast %2 : vector<1x64x256xf32> to vector<64x256xf32>
    %109 = arith.addf %107, %108 : vector<64x256xf32>
    %c0_89 = arith.constant 0 : index
    %c0_90 = arith.constant 0 : index
    %c0_91 = arith.constant 0 : index
    %110 = vector.load %arg4[%c0_89, %c0_90, %c0_91] : memref<1x64x256xf32, #tpu.memory_space<vmem>>, vector<1x64x256xf32>
    %111 = vector.shape_cast %110 : vector<1x64x256xf32> to vector<64x256xf32>
    %112 = vector.shape_cast %109 : vector<64x256xf32> to vector<1x64x256xf32>
    tpu.vector_store %arg4[%c0_89, %c0_90, %c0_91], %112 {strides = array<i32>} : memref<1x64x256xf32, #tpu.memory_space<vmem>>, vector<1x64x256xf32>,
    return
  }
  func.func @transform_0(%arg0: i32) -> (i32, i32, i32) {
    %c0_i32 = arith.constant 0 : i32
    %c0_i32_0 = arith.constant 0 : i32
    %c0_i32_1 = arith.constant 0 : i32
    return %arg0, %c0_i32, %c0_i32_0 : i32, i32, i32
  }
  func.func @transform_1(%arg0: i32) -> (i32, i32, i32) {
    %c0_i32 = arith.constant 0 : i32
    %c0_i32_0 = arith.constant 0 : i32
    %c0_i32_1 = arith.constant 0 : i32
    %c0_i32_2 = arith.constant 0 : i32
    return %c0_i32, %c0_i32_0, %c0_i32_1 : i32, i32, i32
  }
  func.func @transform_2(%arg0: i32) -> (i32, i32, i32) {
    %c0_i32 = arith.constant 0 : i32
    %c0_i32_0 = arith.constant 0 : i32
    %c0_i32_1 = arith.constant 0 : i32
    %c0_i32_2 = arith.constant 0 : i32
    return %c0_i32, %c0_i32_0, %c0_i32_1 : i32, i32, i32
  }
  func.func @transform_3(%arg0: i32) -> (i32, i32, i32) {
    %c0_i32 = arith.constant 0 : i32
    %c0_i32_0 = arith.constant 0 : i32
    %c0_i32_1 = arith.constant 0 : i32
    return %arg0, %c0_i32, %c0_i32_0 : i32, i32, i32
  }
}

</mosaic_0001>

<bundles_post_ra>
// kernel: tpu_custom_call.1
= control target key start
LH: loop header
LB: loop body
LE: loop exit
PB: predicated region body
PF: predicated region fallthrough
CT: control target
= control target key end

     0   :  { %8 = vsyncpa [#allocation6], 0  ;;  %s16820_s0 = inlined_call_operand.vmem [shape: f32[2,64,256], index: 0, kind: input, shape index: {}]   ;;  %s16821_s1 = inlined_call_operand.vmem [shape: bf16[3,192,64], index: 1, kind: input, shape index: {}]   ;;  %s16822_s2 = inlined_call_operand.vmem [shape: bf16[3,192,64], index: 2, kind: input, shape index: {}]   ;;  %s16823_s3 = inlined_call_operand.hbm [shape: f32[2,64,256], index: 3, kind: output, shape index: {}]  }
   0x1   :  { %10 = vsyncpa [#allocation6 + $0x1], 0  ;;  %s12587_s12 = smov 0   ;;  %s12589_s13 = smov 0  }
   0x2   :  { %s12591_s14 = smov 0   ;;  %s12593_s15 = smov 0  }
   0x3 LB: > { %s12608_s16 = sadd.s32 4294967295, %s12559_s15   ;;  %s10174_s17 = sadd.s32 4294967294, %s12559_s15   ;;  %s12559_s15 = sphi %s12593_s15, %s17496_s15   ;;  %s12555_s14 = sphi %s12591_s14, %s17495_s14   ;;  %s12551_s13 = sphi %s12589_s13, %s17494_s13   ;;  %s12547_s12 = sphi %s12587_s12, %s17493_s12  }
   0x4   : > { %s12612_s18 = sadd.s32 1, %s12559_s15   ;;  %s91_s19 = sadd.s32 1, %s12555_s14 }
   0x5   : > { %s88_s20 = ssub.s32 %s12559_s15, %s12612_s18  ;;  %p101_p0 = scmp.ne.s32.totalorder %s12555_s14, %s12551_s13 }
   0x6   : > { %p89_p1 = scmp.eq.s32.totalorder %s88_s20, 0  ;;  %p102_p2 = scmp.eq.s32.totalorder %s12608_s16, 1 }
   0x7   : > { %p107_p3 = scmp.ne.s32.totalorder %s12551_s13, %s12547_s12  ;;  %p108_p4 = scmp.eq.s32.totalorder %s10174_s17, 1 }
   0x8   : > { %s12623_s21 = scalar_select %p89_p1, %s12555_s14, %s91_s19  }
   0x9   : > { %p12625_p5 = por %p102_p2, %p101_p0  ;;  %p12629_p6 = por %p108_p4, %p107_p3 }
   0xa   : > { %p10177_p7 = scmp.ge.s32.totalorder %s12559_s15, 1  ;;  %p140_p8 = scmp.lt.s32.totalorder %s12559_s15, 3 }
   0xc   : > { %p141_p9 = pnand %p10177_p7, %p140_p8 }
   0xe   : > { %144 = sbr.rel (%p141_p9) target bundleno = 1744 (0x6d0), region = 32 }
  0x13   : > { %p164_p10 = scmp.lt.s32.totalorder %s12608_s16, 1  ;;  %vm16828_vm0 = vcmask 523264   ;;  %v12561_v0 = vmov 0.0   ;;  %v12152_v9 = vld [vmem:[%s16821_s1 + $0x98] sm:$0xff]   ;;  %v16824_v10 = vmov 0   ;;  %v12153_v11 = vld [vmem:[%s16821_s1 + $0x90] sm:$0xff]  }
  0x14   : > { %174 = vst.msk [vmem:[#allocation2 + $0x18] sm:$0xff] %vm16828_vm0, %v12561_v0  ;;  %175 = vst.msk [vmem:[#allocation2 + $0x20] sm:$0xff] %vm16828_vm0, %v12561_v0  ;;  %4024 = vmatprep.subr.bf16.mxu0 %v16824_v10  ;;  %4609 = vmatprep.subr.bf16.mxu1 %v16824_v10  ;;  %v12154_v12 = vld [vmem:[%s16821_s1 + $0x88] sm:$0xff]   ;;  %v12155_v13 = vld [vmem:[%s16821_s1 + $0x80] sm:$0xff]   ;;  %vm339_vm1 = vcmask 1040384   ;;  %vm16827_vm2 = vcmask 519168  }
  0x15   : > { %171 = vst.msk [vmem:[#allocation2] sm:$0xff] %vm16828_vm0, %v12561_v0  ;;  %172 = vst.msk [vmem:[#allocation2 + $0x8] sm:$0xff] %vm16828_vm0, %v12561_v0  ;;  %s165_s24 = scalar_select %p164_p10, %s12608_s16, 1  ;;  %4025 = vmatpush1.bf16.msra.mxu0 %v12152_v9  ;;  %v12156_v14 = vld [vmem:[%s16821_s1 + $0x78] sm:$0xff]   ;;  %v12157_v15 = vld [vmem:[%s16821_s1 + $0x70] sm:$0xff]   ;;  %vm16826_vm3 = vcmask 1043968  }
  0x16   : > { %173 = vst.msk [vmem:[#allocation2 + $0x10] sm:$0xff] %vm16828_vm0, %v12561_v0  ;;  %176 = vst.msk [vmem:[#allocation2 + $0x28] sm:$0xff] %vm16828_vm0, %v12561_v0  ;;  %4026 = vmatprep.subr.bf16.mxu0 %v16824_v10  ;;  %v12158_v16 = vld [vmem:[%s16821_s1 + $0x68] sm:$0xff]   ;;  %v12159_v17 = vld [vmem:[%s16821_s1 + $0x60] sm:$0xff]   ;;  %s12563_s9 = smov 64   ;;  %s12011_s30 = sshll.u32 %s12608_s16, 11 }
  0x17   : > { %177 = vst.msk [vmem:[#allocation2 + $0x30] sm:$0xff] %vm16828_vm0, %v12561_v0  ;;  %178 = vst.msk [vmem:[#allocation2 + $0x38] sm:$0xff] %vm16828_vm0, %v12561_v0  ;;  %s11398_s25 = sshll.u32 %s165_s24, 7  ;;  %v12160_v18 = vld [vmem:[%s16821_s1 + $0xb8] sm:$0xff]   ;;  %v12161_v22 = vld [vmem:[%s16821_s1 + $0xb0] sm:$0xff]   ;;  %s16772_s7 = scalar_lea.hbm %s16823_s3, %s12011_s30 }
  0x18   : > { %179 = vst.msk [vmem:[#allocation2 + $0x40] sm:$0xff] %vm16828_vm0, %v12561_v0  ;;  %180 = vst.msk [vmem:[#allocation2 + $0x48] sm:$0xff] %vm16828_vm0, %v12561_v0  ;;  %s12698_s28 = scalar_lea.vmem %s16820_s0, %s11398_s25  ;;  %v12162_v27 = vld [vmem:[%s16821_s1 + $0xa8] sm:$0xff]   ;;  %v12163_v38 = vld [vmem:[%s16821_s1 + $0xa0] sm:$0xff]   ;;  %s12564_s10 = smov [#allocation5]  }
  0x19   : > { %181 = vst.msk [vmem:[#allocation2 + $0x50] sm:$0xff] %vm16828_vm0, %v12561_v0  ;;  %182 = vst.msk [vmem:[#allocation2 + $0x58] sm:$0xff] %vm16828_vm0, %v12561_v0  ;;  %v227_v1 = vld [vmem:[%s12698_s28] sm:$0xff]  ;;  %v229_v2 = vld [vmem:[%s12698_s28 + $0x10] sm:$0xff]  ;;  %4027 = vmatpush1.bf16.msra.mxu0 %v12153_v11  ;;  %s12503_s11 = sshll.u32 %s12564_s10, 4  ;;  %s12504_s11 = int_to_ptr.vmem [resolvable:$false] %s12503_s11 }
  0x1a   : > { %183 = vst.msk [vmem:[#allocation2 + $0x60] sm:$0xff] %vm16828_vm0, %v12561_v0  ;;  %184 = vst.msk [vmem:[#allocation2 + $0x68] sm:$0xff] %vm16828_vm0, %v12561_v0  ;;  %243 = vxpose.xlu0.b32.start [1/8] (short) %v227_v1, 128  ;;  %v231_v3 = vld [vmem:[%s12698_s28 + $0x20] sm:$0xff]  ;;  %v233_v4 = vld [vmem:[%s12698_s28 + $0x30] sm:$0xff]  ;;  %4028 = vmatprep.subr.bf16.mxu0 %v16824_v10  ;;  %s12505_s17 = scalar_lea.vmem %s12504_s11, 4096 }
  0x1b   : > { %185 = vst.msk [vmem:[#allocation2 + $0x70] sm:$0xff] %vm16828_vm0, %v12561_v0  ;;  %186 = vst.msk [vmem:[#allocation2 + $0x78] sm:$0xff] %vm16828_vm0, %v12561_v0  ;;  %v235_v5 = vld [vmem:[%s12698_s28 + $0x40] sm:$0xff]  ;;  %v237_v6 = vld [vmem:[%s12698_s28 + $0x50] sm:$0xff] }
  0x1c   : > { %187 = vst.msk [vmem:[#allocation2 + $0x80] sm:$0xff] %vm16828_vm0, %v12561_v0  ;;  %188 = vst.msk [vmem:[#allocation2 + $0x88] sm:$0xff] %vm16828_vm0, %v12561_v0  ;;  %v239_v7 = vld [vmem:[%s12698_s28 + $0x60] sm:$0xff]  ;;  %v241_v8 = vld [vmem:[%s12698_s28 + $0x70] sm:$0xff] }
  0x1d   : > { %189 = vst.msk [vmem:[#allocation2 + $0x90] sm:$0xff] %vm16828_vm0, %v12561_v0  ;;  %190 = vst.msk [vmem:[#allocation2 + $0x98] sm:$0xff] %vm16828_vm0, %v12561_v0  ;;  %4029 = vmatpush1.bf16.msra.mxu0 %v12154_v12 }
  0x1e   : > { %191 = vst.msk [vmem:[#allocation2 + $0xa0] sm:$0xff] %vm16828_vm0, %v12561_v0  ;;  %192 = vst.msk [vmem:[#allocation2 + $0xa8] sm:$0xff] %vm16828_vm0, %v12561_v0  ;;  %244 = vxpose.xlu0.b32.cont [2/8] (short) %v229_v2, 128  ;;  %4030 = vmatprep.subr.bf16.mxu0 %v16824_v10 }
  0x1f   : > { %193 = vst.msk [vmem:[#allocation2 + $0xb0] sm:$0xff] %vm16828_vm0, %v12561_v0  ;;  %194 = vst.msk [vmem:[#allocation2 + $0xb8] sm:$0xff] %vm16828_vm0, %v12561_v0 }
  0x20   : > { %195 = vst.msk [vmem:[#allocation2 + $0xc0] sm:$0xff] %vm16828_vm0, %v12561_v0  ;;  %196 = vst.msk [vmem:[#allocation2 + $0xc8] sm:$0xff] %vm16828_vm0, %v12561_v0 }
  0x21   : > { %197 = vst.msk [vmem:[#allocation2 + $0xd0] sm:$0xff] %vm16828_vm0, %v12561_v0  ;;  %198 = vst.msk [vmem:[#allocation2 + $0xd8] sm:$0xff] %vm16828_vm0, %v12561_v0  ;;  %4031 = vmatpush1.bf16.msra.mxu0 %v12155_v13 }
  0x22   : > { %199 = vst.msk [vmem:[#allocation2 + $0xe0] sm:$0xff] %vm16828_vm0, %v12561_v0  ;;  %200 = vst.msk [vmem:[#allocation2 + $0xe8] sm:$0xff] %vm16828_vm0, %v12561_v0  ;;  %245 = vxpose.xlu0.b32.cont [3/8] (short) %v231_v3, 128  ;;  %4032 = vmatprep.subr.bf16.mxu0 %v16824_v10 }
  0x23   : > { %201 = vst.msk [vmem:[#allocation2 + $0xf0] sm:$0xff] %vm16828_vm0, %v12561_v0  ;;  %202 = vst.msk [vmem:[#allocation2 + $0xf8] sm:$0xff] %vm16828_vm0, %v12561_v0 }
  0x24   : > { %203 = vst.msk [vmem:[#allocation2 + $0x100] sm:$0xff] %vm16828_vm0, %v12561_v0  ;;  %204 = vst.msk [vmem:[#allocation2 + $0x108] sm:$0xff] %vm16828_vm0, %v12561_v0 }
  0x25   : > { %205 = vst.msk [vmem:[#allocation2 + $0x110] sm:$0xff] %vm16828_vm0, %v12561_v0  ;;  %206 = vst.msk [vmem:[#allocation2 + $0x118] sm:$0xff] %vm16828_vm0, %v12561_v0  ;;  %4033 = vmatpush1.bf16.msra.mxu0 %v12156_v14 }
  0x26   : > { %207 = vst.msk [vmem:[#allocation2 + $0x120] sm:$0xff] %vm16828_vm0, %v12561_v0  ;;  %208 = vst.msk [vmem:[#allocation2 + $0x128] sm:$0xff] %vm16828_vm0, %v12561_v0  ;;  %246 = vxpose.xlu0.b32.cont [4/8] (short) %v233_v4, 128  ;;  %4034 = vmatprep.subr.bf16.mxu0 %v16824_v10 }
  0x27   : > { %209 = vst.msk [vmem:[#allocation2 + $0x130] sm:$0xff] %vm16828_vm0, %v12561_v0  ;;  %210 = vst.msk [vmem:[#allocation2 + $0x138] sm:$0xff] %vm16828_vm0, %v12561_v0 }
  0x28   : > { %211 = vst.msk [vmem:[#allocation2 + $0x140] sm:$0xff] %vm16828_vm0, %v12561_v0  ;;  %212 = vst.msk [vmem:[#allocation2 + $0x148] sm:$0xff] %vm16828_vm0, %v12561_v0 }
  0x29   : > { %213 = vst.msk [vmem:[#allocation2 + $0x150] sm:$0xff] %vm16828_vm0, %v12561_v0  ;;  %214 = vst.msk [vmem:[#allocation2 + $0x158] sm:$0xff] %vm16828_vm0, %v12561_v0  ;;  %4035 = vmatpush1.bf16.msra.mxu0 %v12157_v15 }
  0x2a   : > { %215 = vst.msk [vmem:[#allocation2 + $0x160] sm:$0xff] %vm16828_vm0, %v12561_v0  ;;  %216 = vst.msk [vmem:[#allocation2 + $0x168] sm:$0xff] %vm16828_vm0, %v12561_v0  ;;  %247 = vxpose.xlu0.b32.cont [5/8] (short) %v235_v5, 128  ;;  %4036 = vmatprep.subr.bf16.mxu0 %v16824_v10 }
  0x2b   : > { %217 = vst.msk [vmem:[#allocation2 + $0x170] sm:$0xff] %vm16828_vm0, %v12561_v0  ;;  %218 = vst.msk [vmem:[#allocation2 + $0x178] sm:$0xff] %vm16828_vm0, %v12561_v0 }
  0x2c   : > { %219 = vst.msk [vmem:[#allocation2 + $0x180] sm:$0xff] %vm16828_vm0, %v12561_v0  ;;  %220 = vst.msk [vmem:[#allocation2 + $0x188] sm:$0xff] %vm16828_vm0, %v12561_v0 }
  0x2d   : > { %221 = vst.msk [vmem:[#allocation2 + $0x190] sm:$0xff] %vm16828_vm0, %v12561_v0  ;;  %222 = vst.msk [vmem:[#allocation2 + $0x198] sm:$0xff] %vm16828_vm0, %v12561_v0  ;;  %4037 = vmatpush1.bf16.msra.mxu0 %v12158_v16 }
  0x2e   : > { %223 = vst.msk [vmem:[#allocation2 + $0x1a0] sm:$0xff] %vm16828_vm0, %v12561_v0  ;;  %224 = vst.msk [vmem:[#allocation2 + $0x1a8] sm:$0xff] %vm16828_vm0, %v12561_v0  ;;  %248 = vxpose.xlu0.b32.cont [6/8] (short) %v237_v6, 128  ;;  %4038 = vmatprep.subr.bf16.mxu0 %v16824_v10 }
  0x2f   : > { %225 = vst.msk [vmem:[#allocation2 + $0x1b0] sm:$0xff] %vm16828_vm0, %v12561_v0  ;;  %226 = vst.msk [vmem:[#allocation2 + $0x1b8] sm:$0xff] %vm16828_vm0, %v12561_v0 }
  0x31   : > { %4039 = vmatpush1.bf16.msra.mxu0 %v12159_v17 }
  0x32   : > { %249 = vxpose.xlu0.b32.cont [7/8] (short) %v239_v7, 128  ;;  %4048 = vmatprep.subr.bf16.mxu0 %v16824_v10 }
  0x35   : > { %4049 = vmatpush2.bf16.msra.mxu0 %v12160_v18 }
  0x36   : > { %250 = vxpose.xlu0.b32.end [8/8] (short) %v241_v8, 128  ;;  %4050 = vmatprep.subr.bf16.mxu0 %v16824_v10 }
  0x39   : > { %4051 = vmatpush2.bf16.msra.mxu0 %v12161_v22 }
  0x3a   : > { %4052 = vmatprep.subr.bf16.mxu0 %v16824_v10 }
  0x3d   : > { %4053 = vmatpush2.bf16.msra.mxu0 %v12162_v27 }
  0x3e   : > { %4054 = vmatprep.subr.bf16.mxu0 %v16824_v10 }
  0x41   : > { %4055 = vmatpush2.bf16.msra.mxu0 %v12163_v38 }
  0x42   : > { %5267 = vmatprep.subr.bf16.mxu0 %v16824_v10 }
  0x96   : > { %v259_v19 = vpop.trf.xlu0 }
  0x97   : > { %v340_v20 = vrot.slane %v259_v19, 7 }
  0x99   : > { %v436_v21 = vsel %vm339_vm1, 0.0, %v340_v20 }
  0x9a   : > { %468 = vst.msk [vmem:[#allocation2 + $0x20] sm:$0xff] %vm16828_vm0, %v436_v21  ;;  %v260_v23 = vpop.trf.xlu0 }
  0x9b   : > { %v341_v24 = vrot.slane %v260_v23, 7 }
  0x9d   : > { %v342_v25 = vsel %vm339_vm1, %v340_v20, %v341_v24  ;;  %v452_v26 = vsel %vm339_vm1, %v341_v24, 0.0 }
  0x9e   : > { %469 = vst.msk [vmem:[#allocation2 + $0x28] sm:$0xff] %vm16828_vm0, %v342_v25  ;;  %470 = vst.msk [vmem:[#allocation2 + $0x30] sm:$0xff] %vm16828_vm0, %v452_v26  ;;  %v261_v28 = vpop.trf.xlu0 }
  0x9f   : > { %v343_v29 = vrot.slane %v261_v28, 7 }
  0xa1   : > { %v2909_v30 = vld [vmem:[#allocation2 + $0x19] sm:$0xff]  ;;  %v437_v31 = vsel %vm339_vm1, 0.0, %v343_v29 }
  0xa2   : > { %v2523_v32 = vld [vmem:[#allocation2 + $0x20] sm:$0xff]  ;;  %v11605_v34 = vpack.c.bf16 %v2909_v30, %v2909_v30  ;;  %471 = vst.msk [vmem:[#allocation2 + $0x38] sm:$0xff] %vm16828_vm0, %v437_v31  ;;  %v262_v35 = vpop.trf.xlu0 }
  0xa3   : > { %v1802_v33 = vld [vmem:[#allocation2 + $0x1f] sm:$0xff]  ;;  %v11555_v36 = vpack.c.bf16 %v2523_v32, %v2523_v32  ;;  %v344_v40 = vrot.slane %v262_v35, 7 }
  0xa4   : > { %v11453_v37 = vpack.c.bf16 %v1802_v33, %v1802_v33  ;;  %v1480_v39 = vld [vmem:[#allocation2 + $0x1f] sm:$0xff]  ;;  %3179 = vst.msk [vmem:[#allocation3 + $0x14] sm:$0xf] %vm16827_vm2, %v11605_v34 }
  0xa5   : > { %v11402_v41 = vpack.c.bf16 %v1480_v39, %v1480_v39  ;;  %2715 = vrot.lane.b32.xlu1 %v11555_v36, %s12563_s9  ;;  %v2910_v42 = vld [vmem:[#allocation2 + $0x21] sm:$0xff]  ;;  %v2911_v43 = vld [vmem:[#allocation2 + $0x29] sm:$0xff]  ;;  %v345_v44 = vsel %vm339_vm1, %v343_v29, %v344_v40  ;;  %v453_v45 = vsel %vm339_vm1, %v344_v40, 0.0 }
  0xa6   : > { %2042 = vst.msk [vmem:[#allocation4] sm:$0xf] %vm16827_vm2, %v11453_v37  ;;  %v2524_v46 = vld [vmem:[#allocation2 + $0x28] sm:$0xff]  ;;  %v11606_v47 = vpack.c.bf16 %v2910_v42, %v2910_v42  ;;  %v11607_v48 = vpack.c.bf16 %v2911_v43, %v2911_v43  ;;  %v263_v49 = vpop.trf.xlu0  ;;  %v2525_v54 = vld [vmem:[#allocation2 + $0x30] sm:$0xff] }
  0xa7   : > { %1751 = vst.msk [vmem:[#allocation3 + $0x18] sm:$0xf] %vm16827_vm2, %v11402_v41  ;;  %v11556_v50 = vpack.c.bf16 %v2524_v46, %v2524_v46  ;;  %v1803_v51 = vld [vmem:[#allocation2 + $0x27] sm:$0xff]  ;;  %v1804_v52 = vld [vmem:[#allocation2 + $0x2f] sm:$0xff]  ;;  %v346_v53 = vrot.slane %v263_v49, 7  ;;  %v11557_v3 = vpack.c.bf16 %v2525_v54, %v2525_v54 }
  0xa8   : > { %472 = vst.msk [vmem:[#allocation2 + $0x40] sm:$0xff] %vm16828_vm0, %v345_v44  ;;  %473 = vst.msk [vmem:[#allocation2 + $0x48] sm:$0xff] %vm16828_vm0, %v453_v45  ;;  %v11454_v55 = vpack.c.bf16 %v1803_v51, %v1803_v51  ;;  %v11455_v56 = vpack.c.bf16 %v1804_v52, %v1804_v52  ;;  %v1482_v57 = vld [vmem:[#allocation2 + $0x2f] sm:$0xff]  ;;  %v1481_v59 = vld [vmem:[#allocation2 + $0x27] sm:$0xff] }
  0xa9   : > { %3180 = vst.msk [vmem:[#allocation3 + $0x1c] sm:$0xf] %vm16827_vm2, %v11606_v47  ;;  %3181 = vst.msk [vmem:[#allocation3 + $0x24] sm:$0xf] %vm16827_vm2, %v11607_v48  ;;  %2717 = vrot.lane.b32.xlu1 %v11556_v50, %s12563_s9  ;;  %v11404_v58 = vpack.c.bf16 %v1482_v57, %v1482_v57  ;;  %v2912_v60 = vld [vmem:[#allocation2 + $0x31] sm:$0xff]  ;;  %v438_v61 = vsel %vm339_vm1, 0.0, %v346_v53  ;;  %v11403_v0 = vpack.c.bf16 %v1481_v59, %v1481_v59 }
  0xaa   : > { %3472 = vst.msk [vmem:[#allocation4 + $0xc] sm:$0xf] %vm16827_vm2, %v11607_v48  ;;  %3471 = vst.msk [vmem:[#allocation4 + $0x4] sm:$0xf] %vm16827_vm2, %v11606_v47  ;;  %v2526_v62 = vld [vmem:[#allocation2 + $0x38] sm:$0xff]  ;;  %v11608_v1 = vpack.c.bf16 %v2912_v60, %v2912_v60  ;;  %v264_v2 = vpop.trf.xlu0 }
  0xab   : > { %2043 = vst.msk [vmem:[#allocation4 + $0x8] sm:$0xf] %vm16827_vm2, %v11454_v55  ;;  %2044 = vst.msk [vmem:[#allocation4 + $0x10] sm:$0xf] %vm16827_vm2, %v11455_v56  ;;  %v1805_v63 = vld [vmem:[#allocation2 + $0x37] sm:$0xff]  ;;  %v347_v6 = vrot.slane %v264_v2, 7  ;;  %v11558_v8 = vpack.c.bf16 %v2526_v62, %v2526_v62 }
  0xac   : > { %474 = vst.msk [vmem:[#allocation2 + $0x50] sm:$0xff] %vm16828_vm0, %v438_v61  ;;  %v11456_v4 = vpack.c.bf16 %v1805_v63, %v1805_v63  ;;  %v1483_v5 = vld [vmem:[#allocation2 + $0x37] sm:$0xff] }
  0xad   : > { %1753 = vst.msk [vmem:[#allocation3 + $0x28] sm:$0xf] %vm16827_vm2, %v11404_v58  ;;  %v11405_v7 = vpack.c.bf16 %v1483_v5, %v1483_v5  ;;  %1752 = vst.msk [vmem:[#allocation3 + $0x20] sm:$0xf] %vm16827_vm2, %v11403_v0  ;;  %2719 = vrot.lane.b32.xlu1 %v11557_v3, %s12563_s9  ;;  %v348_v12 = vsel %vm339_vm1, %v346_v53, %v347_v6  ;;  %v454_v13 = vsel %vm339_vm1, %v347_v6, 0.0 }
  0xae   : > { %3182 = vst.msk [vmem:[#allocation3 + $0x2c] sm:$0xf] %vm16827_vm2, %v11608_v1  ;;  %3473 = vst.msk [vmem:[#allocation4 + $0x14] sm:$0xf] %vm16827_vm2, %v11608_v1  ;;  %v265_v16 = vpop.trf.xlu0 }
  0xaf   : > { %2045 = vst.msk [vmem:[#allocation4 + $0x18] sm:$0xf] %vm16827_vm2, %v11456_v4  ;;  %v2913_v9 = vld [vmem:[#allocation2 + $0x39] sm:$0xff]  ;;  %v2914_v11 = vld [vmem:[#allocation2 + $0x41] sm:$0xff]  ;;  %1754 = vst.msk [vmem:[#allocation3 + $0x30] sm:$0xf] %vm16827_vm2, %v11405_v7 }
  0xb0   : > { %v11609_v14 = vpack.c.bf16 %v2913_v9, %v2913_v9  ;;  %v11610_v15 = vpack.c.bf16 %v2914_v11, %v2914_v11  ;;  %475 = vst.msk [vmem:[#allocation2 + $0x58] sm:$0xff] %vm16828_vm0, %v348_v12  ;;  %476 = vst.msk [vmem:[#allocation2 + $0x60] sm:$0xff] %vm16828_vm0, %v454_v13  ;;  %v1806_v17 = vld [vmem:[#allocation2 + $0x3f] sm:$0xff]  ;;  %v1807_v18 = vld [vmem:[#allocation2 + $0x47] sm:$0xff]  ;;  %v349_v19 = vrot.slane %v265_v16, 7 }
  0xb1   : > { %v2527_v20 = vld [vmem:[#allocation2 + $0x40] sm:$0xff]  ;;  %v11457_v21 = vpack.c.bf16 %v1806_v17, %v1806_v17  ;;  %v11458_v22 = vpack.c.bf16 %v1807_v18, %v1807_v18  ;;  %2721 = vrot.lane.b32.xlu1 %v11558_v8, %s12563_s9  ;;  %v2528_v36 = vld [vmem:[#allocation2 + $0x48] sm:$0xff] }
  0xb2   : > { %v1484_v23 = vld [vmem:[#allocation2 + $0x3f] sm:$0xff]  ;;  %3183 = vst.msk [vmem:[#allocation3 + $0x34] sm:$0xf] %vm16827_vm2, %v11609_v14  ;;  %3184 = vst.msk [vmem:[#allocation3 + $0x3c] sm:$0xf] %vm16827_vm2, %v11610_v15  ;;  %v1485_v25 = vld [vmem:[#allocation2 + $0x47] sm:$0xff]  ;;  %v11559_v31 = vpack.c.bf16 %v2527_v20, %v2527_v20  ;;  %v266_v32 = vpop.trf.xlu0  ;;  %v11560_v46 = vpack.c.bf16 %v2528_v36, %v2528_v36 }
  0xb3   : > { %3474 = vst.msk [vmem:[#allocation4 + $0x1c] sm:$0xf] %vm16827_vm2, %v11609_v14  ;;  %3475 = vst.msk [vmem:[#allocation4 + $0x24] sm:$0xf] %vm16827_vm2, %v11610_v15  ;;  %v11406_v24 = vpack.c.bf16 %v1484_v23, %v1484_v23  ;;  %v2915_v26 = vld [vmem:[#allocation2 + $0x49] sm:$0xff]  ;;  %v439_v27 = vsel %vm339_vm1, 0.0, %v349_v19  ;;  %v11407_v29 = vpack.c.bf16 %v1485_v25, %v1485_v25 }
  0xb4   : > { %2046 = vst.msk [vmem:[#allocation4 + $0x20] sm:$0xf] %vm16827_vm2, %v11457_v21  ;;  %2047 = vst.msk [vmem:[#allocation4 + $0x28] sm:$0xf] %vm16827_vm2, %v11458_v22  ;;  %v1808_v28 = vld [vmem:[#allocation2 + $0x4f] sm:$0xff]  ;;  %v11611_v30 = vpack.c.bf16 %v2915_v26, %v2915_v26  ;;  %v350_v35 = vrot.slane %v266_v32, 7 }
  0xb5   : > { %477 = vst.msk [vmem:[#allocation2 + $0x68] sm:$0xff] %vm16828_vm0, %v439_v27  ;;  %v11459_v33 = vpack.c.bf16 %v1808_v28, %v1808_v28  ;;  %v1486_v34 = vld [vmem:[#allocation2 + $0x4f] sm:$0xff]  ;;  %2723 = vrot.lane.b32.xlu1 %v11559_v31, %s12563_s9 }
  0xb6   : > { %1755 = vst.msk [vmem:[#allocation3 + $0x38] sm:$0xf] %vm16827_vm2, %v11406_v24  ;;  %v11408_v37 = vpack.c.bf16 %v1486_v34, %v1486_v34  ;;  %1756 = vst.msk [vmem:[#allocation3 + $0x40] sm:$0xf] %vm16827_vm2, %v11407_v29  ;;  %v2529_v38 = vld [vmem:[#allocation2 + $0x50] sm:$0xff]  ;;  %v351_v41 = vsel %vm339_vm1, %v349_v19, %v350_v35  ;;  %v455_v42 = vsel %vm339_vm1, %v350_v35, 0.0  ;;  %v267_v48 = vpop.trf.xlu0 }
  0xb7   : > { %3185 = vst.msk [vmem:[#allocation3 + $0x44] sm:$0xf] %vm16827_vm2, %v11611_v30  ;;  %3476 = vst.msk [vmem:[#allocation4 + $0x2c] sm:$0xf] %vm16827_vm2, %v11611_v30  ;;  %v2916_v39 = vld [vmem:[#allocation2 + $0x51] sm:$0xff]  ;;  %v2917_v40 = vld [vmem:[#allocation2 + $0x59] sm:$0xff]  ;;  %v11561_v55 = vpack.c.bf16 %v2529_v38, %v2529_v38 }
  0xb8   : > { %2048 = vst.msk [vmem:[#allocation4 + $0x30] sm:$0xf] %vm16827_vm2, %v11459_v33  ;;  %v2531_v43 = vld [vmem:[#allocation2 + $0x60] sm:$0xff]  ;;  %1757 = vst.msk [vmem:[#allocation3 + $0x48] sm:$0xf] %vm16827_vm2, %v11408_v37  ;;  %v11612_v44 = vpack.c.bf16 %v2916_v39, %v2916_v39  ;;  %v11613_v45 = vpack.c.bf16 %v2917_v40, %v2917_v40  ;;  %v1809_v50 = vld [vmem:[#allocation2 + $0x57] sm:$0xff] }
  0xb9   : > { %478 = vst.msk [vmem:[#allocation2 + $0x70] sm:$0xff] %vm16828_vm0, %v351_v41  ;;  %479 = vst.msk [vmem:[#allocation2 + $0x78] sm:$0xff] %vm16828_vm0, %v455_v42  ;;  %v11563_v47 = vpack.c.bf16 %v2531_v43, %v2531_v43  ;;  %v1810_v49 = vld [vmem:[#allocation2 + $0x5f] sm:$0xff]  ;;  %v352_v51 = vrot.slane %v267_v48, 7  ;;  %v11460_v53 = vpack.c.bf16 %v1809_v50, %v1809_v50  ;;  %2725 = vrot.lane.b32.xlu1 %v11560_v46, %s12563_s9  ;;  %v1487_v57 = vld [vmem:[#allocation2 + $0x57] sm:$0xff] }
  0xba   : > { %v11461_v52 = vpack.c.bf16 %v1810_v49, %v1810_v49  ;;  %v1488_v54 = vld [vmem:[#allocation2 + $0x5f] sm:$0xff]  ;;  %3186 = vst.msk [vmem:[#allocation3 + $0x4c] sm:$0xf] %vm16827_vm2, %v11612_v44  ;;  %3187 = vst.msk [vmem:[#allocation3 + $0x54] sm:$0xf] %vm16827_vm2, %v11613_v45  ;;  %v11409_v61 = vpack.c.bf16 %v1487_v57, %v1487_v57  ;;  %v268_v63 = vpop.trf.xlu0 }
  0xbb   : > { %3477 = vst.msk [vmem:[#allocation4 + $0x34] sm:$0xf] %vm16827_vm2, %v11612_v44  ;;  %3478 = vst.msk [vmem:[#allocation4 + $0x3c] sm:$0xf] %vm16827_vm2, %v11613_v45  ;;  %2731 = vrot.lane.b32.xlu0 %v11563_v47, %s12563_s9  ;;  %v11410_v56 = vpack.c.bf16 %v1488_v54, %v1488_v54  ;;  %v440_v59 = vsel %vm339_vm1, 0.0, %v352_v51  ;;  %v2530_v2 = vld [vmem:[#allocation2 + $0x58] sm:$0xff] }
  0xbc   : > { %v2918_v58 = vld [vmem:[#allocation2 + $0x61] sm:$0xff]  ;;  %2050 = vst.msk [vmem:[#allocation4 + $0x40] sm:$0xf] %vm16827_vm2, %v11461_v52  ;;  %2049 = vst.msk [vmem:[#allocation4 + $0x38] sm:$0xf] %vm16827_vm2, %v11460_v53  ;;  %v353_v3 = vrot.slane %v268_v63, 7  ;;  %v11562_v13 = vpack.c.bf16 %v2530_v2, %v2530_v2 }
  0xbd   : > { %v1811_v60 = vld [vmem:[#allocation2 + $0x67] sm:$0xff]  ;;  %v11614_v62 = vpack.c.bf16 %v2918_v58, %v2918_v58  ;;  %480 = vst.msk [vmem:[#allocation2 + $0x80] sm:$0xff] %vm16828_vm0, %v440_v59  ;;  %2727 = vrot.lane.b32.xlu1 %v11561_v55, %s12563_s9 }
  0xbe   : > { %v11462_v0 = vpack.c.bf16 %v1811_v60, %v1811_v60  ;;  %1759 = vst.msk [vmem:[#allocation3 + $0x58] sm:$0xf] %vm16827_vm2, %v11410_v56  ;;  %v1489_v1 = vld [vmem:[#allocation2 + $0x67] sm:$0xff]  ;;  %1758 = vst.msk [vmem:[#allocation3 + $0x50] sm:$0xf] %vm16827_vm2, %v11409_v61  ;;  %v354_v8 = vsel %vm339_vm1, %v352_v51, %v353_v3  ;;  %v456_v9 = vsel %vm339_vm1, %v353_v3, 0.0  ;;  %v269_v14 = vpop.trf.xlu0 }
  0xbf   : > { %v11411_v4 = vpack.c.bf16 %v1489_v1, %v1489_v1  ;;  %3188 = vst.msk [vmem:[#allocation3 + $0x5c] sm:$0xf] %vm16827_vm2, %v11614_v62  ;;  %3479 = vst.msk [vmem:[#allocation4 + $0x44] sm:$0xf] %vm16827_vm2, %v11614_v62  ;;  %v2532_v7 = vld [vmem:[#allocation2 + $0x68] sm:$0xff]  ;;  %v355_v17 = vrot.slane %v269_v14, 7 }
  0xc0   : > { %2051 = vst.msk [vmem:[#allocation4 + $0x48] sm:$0xf] %vm16827_vm2, %v11462_v0  ;;  %v2919_v5 = vld [vmem:[#allocation2 + $0x69] sm:$0xff]  ;;  %v2920_v6 = vld [vmem:[#allocation2 + $0x71] sm:$0xff]  ;;  %v11564_v21 = vpack.c.bf16 %v2532_v7, %v2532_v7 }
  0xc1   : > { %1760 = vst.msk [vmem:[#allocation3 + $0x60] sm:$0xf] %vm16827_vm2, %v11411_v4  ;;  %v11615_v11 = vpack.c.bf16 %v2919_v5, %v2919_v5  ;;  %v11616_v12 = vpack.c.bf16 %v2920_v6, %v2920_v6  ;;  %v1812_v15 = vld [vmem:[#allocation2 + $0x6f] sm:$0xff]  ;;  %v1813_v16 = vld [vmem:[#allocation2 + $0x77] sm:$0xff]  ;;  %2729 = vrot.lane.b32.xlu1 %v11562_v13, %s12563_s9  ;;  %v441_v25 = vsel %vm339_vm1, 0.0, %v355_v17 }
  0xc2   : > { %481 = vst.msk [vmem:[#allocation2 + $0x88] sm:$0xff] %vm16828_vm0, %v354_v8  ;;  %482 = vst.msk [vmem:[#allocation2 + $0x90] sm:$0xff] %vm16828_vm0, %v456_v9  ;;  %v11463_v18 = vpack.c.bf16 %v1812_v15, %v1812_v15  ;;  %v11464_v19 = vpack.c.bf16 %v1813_v16, %v1813_v16  ;;  %v1490_v20 = vld [vmem:[#allocation2 + $0x6f] sm:$0xff]  ;;  %v1491_v23 = vld [vmem:[#allocation2 + $0x77] sm:$0xff]  ;;  %v270_v31 = vpop.trf.xlu0 }
  0xc3   : > { %3189 = vst.msk [vmem:[#allocation3 + $0x64] sm:$0xf] %vm16827_vm2, %v11615_v11  ;;  %3190 = vst.msk [vmem:[#allocation3 + $0x6c] sm:$0xf] %vm16827_vm2, %v11616_v12  ;;  %v11412_v22 = vpack.c.bf16 %v1490_v20, %v1490_v20  ;;  %v11413_v28 = vpack.c.bf16 %v1491_v23, %v1491_v23  ;;  %v2533_v34 = vld [vmem:[#allocation2 + $0x70] sm:$0xff]  ;;  %v356_v35 = vrot.slane %v270_v31, 7 }
  0xc4   : > { %3480 = vst.msk [vmem:[#allocation4 + $0x4c] sm:$0xf] %vm16827_vm2, %v11615_v11  ;;  %3481 = vst.msk [vmem:[#allocation4 + $0x54] sm:$0xf] %vm16827_vm2, %v11616_v12  ;;  %v2921_v24 = vld [vmem:[#allocation2 + $0x79] sm:$0xff]  ;;  %v11565_v42 = vpack.c.bf16 %v2533_v34, %v2533_v34 }
  0xc5   : > { %v2535_v26 = vld [vmem:[#allocation2 + $0x80] sm:$0xff]  ;;  %2052 = vst.msk [vmem:[#allocation4 + $0x50] sm:$0xf] %vm16827_vm2, %v11463_v18  ;;  %2053 = vst.msk [vmem:[#allocation4 + $0x58] sm:$0xf] %vm16827_vm2, %v11464_v19  ;;  %v11617_v29 = vpack.c.bf16 %v2921_v24, %v2921_v24  ;;  %2733 = vrot.lane.b32.xlu1 %v11564_v21, %s12563_s9  ;;  %v357_v39 = vsel %vm339_vm1, %v355_v17, %v356_v35  ;;  %v457_v40 = vsel %vm339_vm1, %v356_v35, 0.0 }
  0xc6   : > { %v1814_v27 = vld [vmem:[#allocation2 + $0x7f] sm:$0xff]  ;;  %483 = vst.msk [vmem:[#allocation2 + $0x98] sm:$0xff] %vm16828_vm0, %v441_v25  ;;  %v11567_v30 = vpack.c.bf16 %v2535_v26, %v2535_v26  ;;  %484 = vst.msk [vmem:[#allocation2 + $0xa0] sm:$0xff] %vm16828_vm0, %v357_v39  ;;  %v271_v46 = vpop.trf.xlu0 }
  0xc7   : > { %v11465_v32 = vpack.c.bf16 %v1814_v27, %v1814_v27  ;;  %1761 = vst.msk [vmem:[#allocation3 + $0x68] sm:$0xf] %vm16827_vm2, %v11412_v22  ;;  %v1492_v33 = vld [vmem:[#allocation2 + $0x7f] sm:$0xff]  ;;  %1762 = vst.msk [vmem:[#allocation3 + $0x70] sm:$0xf] %vm16827_vm2, %v11413_v28  ;;  %v358_v49 = vrot.slane %v271_v46, 7 }
  0xc8   : > { %v11414_v36 = vpack.c.bf16 %v1492_v33, %v1492_v33  ;;  %3191 = vst.msk [vmem:[#allocation3 + $0x74] sm:$0xf] %vm16827_vm2, %v11617_v29  ;;  %3482 = vst.msk [vmem:[#allocation4 + $0x5c] sm:$0xf] %vm16827_vm2, %v11617_v29  ;;  %2739 = vrot.lane.b32.xlu0 %v11567_v30, %s12563_s9  ;;  %v2534_v48 = vld [vmem:[#allocation2 + $0x78] sm:$0xff] }
  0xc9   : > { %2054 = vst.msk [vmem:[#allocation4 + $0x60] sm:$0xf] %vm16827_vm2, %v11465_v32  ;;  %v2922_v37 = vld [vmem:[#allocation2 + $0x81] sm:$0xff]  ;;  %v2923_v38 = vld [vmem:[#allocation2 + $0x89] sm:$0xff]  ;;  %2735 = vrot.lane.b32.xlu1 %v11565_v42, %s12563_s9  ;;  %v442_v53 = vsel %vm339_vm1, 0.0, %v358_v49  ;;  %v11566_v55 = vpack.c.bf16 %v2534_v48, %v2534_v48 }
  0xca   : > { %v2536_v41 = vld [vmem:[#allocation2 + $0x88] sm:$0xff]  ;;  %1763 = vst.msk [vmem:[#allocation3 + $0x78] sm:$0xf] %vm16827_vm2, %v11414_v36  ;;  %v11618_v43 = vpack.c.bf16 %v2922_v37, %v2922_v37  ;;  %v11619_v44 = vpack.c.bf16 %v2923_v38, %v2923_v38  ;;  %v2537_v47 = vld [vmem:[#allocation2 + $0x90] sm:$0xff]  ;;  %v272_v57 = vpop.trf.xlu0 }
  0xcb   : > { %485 = vst.msk [vmem:[#allocation2 + $0xa8] sm:$0xff] %vm16828_vm0, %v457_v40  ;;  %v11568_v45 = vpack.c.bf16 %v2536_v41, %v2536_v41  ;;  %v11569_v50 = vpack.c.bf16 %v2537_v47, %v2537_v47  ;;  %v1815_v51 = vld [vmem:[#allocation2 + $0x87] sm:$0xff]  ;;  %486 = vst.msk [vmem:[#allocation2 + $0xb0] sm:$0xff] %vm16828_vm0, %v442_v53  ;;  %v359_v58 = vrot.slane %v272_v57, 7  ;;  %v1816_v5 = vld [vmem:[#allocation2 + $0x8f] sm:$0xff] }
  0xcc   : > { %3192 = vst.msk [vmem:[#allocation3 + $0x7c] sm:$0xf] %vm16827_vm2, %v11618_v43  ;;  %3193 = vst.msk [vmem:[#allocation3 + $0x84] sm:$0xf] %vm16827_vm2, %v11619_v44  ;;  %v11466_v54 = vpack.c.bf16 %v1815_v51, %v1815_v51  ;;  %v11467_v7 = vpack.c.bf16 %v1816_v5, %v1816_v5  ;;  %v1494_v8 = vld [vmem:[#allocation2 + $0x8f] sm:$0xff]  ;;  %v1493_v12 = vld [vmem:[#allocation2 + $0x87] sm:$0xff] }
  0xcd   : > { %3483 = vst.msk [vmem:[#allocation4 + $0x64] sm:$0xf] %vm16827_vm2, %v11618_v43  ;;  %3484 = vst.msk [vmem:[#allocation4 + $0x6c] sm:$0xf] %vm16827_vm2, %v11619_v44  ;;  %2741 = vrot.lane.b32.xlu0 %v11568_v45, %s12563_s9  ;;  %v2924_v52 = vld [vmem:[#allocation2 + $0x91] sm:$0xff]  ;;  %2737 = vrot.lane.b32.xlu1 %v11566_v55, %s12563_s9  ;;  %v2925_v59 = vld [vmem:[#allocation2 + $0x99] sm:$0xff]  ;;  %v360_v61 = vsel %vm339_vm1, %v358_v49, %v359_v58  ;;  %v11416_v11 = vpack.c.bf16 %v1494_v8, %v1494_v8 }
  0xce   : > { %v11620_v56 = vpack.c.bf16 %v2924_v52, %v2924_v52  ;;  %2055 = vst.msk [vmem:[#allocation4 + $0x68] sm:$0xf] %vm16827_vm2, %v11466_v54  ;;  %v458_v62 = vsel %vm339_vm1, %v359_v58, 0.0  ;;  %v2539_v63 = vld [vmem:[#allocation2 + $0xa0] sm:$0xff]  ;;  %v11621_v0 = vpack.c.bf16 %v2925_v59, %v2925_v59  ;;  %v273_v4 = vpop.trf.xlu0  ;;  %2056 = vst.msk [vmem:[#allocation4 + $0x70] sm:$0xf] %vm16827_vm2, %v11467_v7  ;;  %v11415_v17 = vpack.c.bf16 %v1493_v12, %v1493_v12 }
  0xcf   : > { %487 = vst.msk [vmem:[#allocation2 + $0xb8] sm:$0xff] %vm16828_vm0, %v360_v61  ;;  %488 = vst.msk [vmem:[#allocation2 + $0xc0] sm:$0xff] %vm16828_vm0, %v458_v62  ;;  %v11571_v2 = vpack.c.bf16 %v2539_v63, %v2539_v63  ;;  %v361_v6 = vrot.slane %v273_v4, 7  ;;  %v1817_v16 = vld [vmem:[#allocation2 + $0x97] sm:$0xff]  ;;  %v1818_v32 = vld [vmem:[#allocation2 + $0x9f] sm:$0xff] }
  0xd0   : > { %3194 = vst.msk [vmem:[#allocation3 + $0x8c] sm:$0xf] %vm16827_vm2, %v11620_v56  ;;  %3485 = vst.msk [vmem:[#allocation4 + $0x74] sm:$0xf] %vm16827_vm2, %v11620_v56  ;;  %v11468_v20 = vpack.c.bf16 %v1817_v16, %v1817_v16  ;;  %v1495_v22 = vld [vmem:[#allocation2 + $0x97] sm:$0xff]  ;;  %v11469_v34 = vpack.c.bf16 %v1818_v32, %v1818_v32  ;;  %v1496_v48 = vld [vmem:[#allocation2 + $0x9f] sm:$0xff] }
  0xd1   : > { %2743 = vrot.lane.b32.xlu0 %v11569_v50, %s12563_s9  ;;  %3195 = vst.msk [vmem:[#allocation3 + $0x94] sm:$0xf] %vm16827_vm2, %v11621_v0  ;;  %3486 = vst.msk [vmem:[#allocation4 + $0x7c] sm:$0xf] %vm16827_vm2, %v11621_v0  ;;  %v443_v14 = vsel %vm339_vm1, 0.0, %v361_v6  ;;  %v11417_v24 = vpack.c.bf16 %v1495_v22, %v1495_v22  ;;  %v11418_v51 = vpack.c.bf16 %v1496_v48, %v1496_v48  ;;  %v240_v22 = vld [vmem:[%s12698_s28 + $0x68] sm:$0xff] }
  0xd2   : > { %v2926_v60 = vld [vmem:[#allocation2 + $0xa1] sm:$0xff]  ;;  %v2927_v13 = vld [vmem:[#allocation2 + $0xa9] sm:$0xff]  ;;  %489 = vst.msk [vmem:[#allocation2 + $0xc8] sm:$0xff] %vm16828_vm0, %v443_v14  ;;  %v274_v19 = vpop.trf.xlu0  ;;  %v12176_v48 = vld [vmem:[#allocation4 + $0x44] ss:$8 sps:$4 sm:$0xff]  }
  0xd3   : > { %v11622_v1 = vpack.c.bf16 %v2926_v60, %v2926_v60  ;;  %v2540_v3 = vld [vmem:[#allocation2 + $0xa8] sm:$0xff]  ;;  %v2541_v15 = vld [vmem:[#allocation2 + $0xb0] sm:$0xff]  ;;  %v11623_v18 = vpack.c.bf16 %v2927_v13, %v2927_v13  ;;  %1765 = vst.msk [vmem:[#allocation3 + $0x88] sm:$0xf] %vm16827_vm2, %v11416_v11  ;;  %v362_v21 = vrot.slane %v274_v19, 7  ;;  %v234_v19 = vld [vmem:[%s12698_s28 + $0x38] sm:$0xff] }
  0xd4   : > { %v11572_v9 = vpack.c.bf16 %v2540_v3, %v2540_v3  ;;  %1764 = vst.msk [vmem:[#allocation3 + $0x80] sm:$0xf] %vm16827_vm2, %v11415_v17  ;;  %v11573_v23 = vpack.c.bf16 %v2541_v15, %v2541_v15  ;;  %2057 = vst.msk [vmem:[#allocation4 + $0x78] sm:$0xf] %vm16827_vm2, %v11468_v20  ;;  %v1819_v33 = vld [vmem:[#allocation2 + $0xa7] sm:$0xff]  ;;  %v1820_v36 = vld [vmem:[#allocation2 + $0xaf] sm:$0xff] }
  0xd5   : > { %3196 = vst.msk [vmem:[#allocation3 + $0x9c] sm:$0xf] %vm16827_vm2, %v11622_v1  ;;  %3487 = vst.msk [vmem:[#allocation4 + $0x84] sm:$0xf] %vm16827_vm2, %v11622_v1  ;;  %2747 = vrot.lane.b32.xlu0 %v11571_v2, %s12563_s9  ;;  %v363_v28 = vsel %vm339_vm1, %v361_v6, %v362_v21  ;;  %v459_v29 = vsel %vm339_vm1, %v362_v21, 0.0  ;;  %v11470_v35 = vpack.c.bf16 %v1819_v33, %v1819_v33  ;;  %v1497_v49 = vld [vmem:[#allocation2 + $0xa7] sm:$0xff] }
  0xd6   : > { %3197 = vst.msk [vmem:[#allocation3 + $0xa4] sm:$0xf] %vm16827_vm2, %v11623_v18  ;;  %3488 = vst.msk [vmem:[#allocation4 + $0x8c] sm:$0xf] %vm16827_vm2, %v11623_v18  ;;  %v2928_v25 = vld [vmem:[#allocation2 + $0xb1] sm:$0xff]  ;;  %v2929_v26 = vld [vmem:[#allocation2 + $0xb9] sm:$0xff]  ;;  %v11471_v40 = vpack.c.bf16 %v1820_v36, %v1820_v36  ;;  %v11419_v52 = vpack.c.bf16 %v1497_v49, %v1497_v49 }
  0xd7   : > { %v2542_v27 = vld [vmem:[#allocation2 + $0xb8] sm:$0xff]  ;;  %v11624_v30 = vpack.c.bf16 %v2928_v25, %v2928_v25  ;;  %v11625_v31 = vpack.c.bf16 %v2929_v26, %v2929_v26  ;;  %490 = vst.msk [vmem:[#allocation2 + $0xd0] sm:$0xff] %vm16828_vm0, %v363_v28  ;;  %491 = vst.msk [vmem:[#allocation2 + $0xd8] sm:$0xff] %vm16828_vm0, %v459_v29  ;;  %v2543_v44 = vld [vmem:[#allocation2 + $0xc0] sm:$0xff] }
  0xd8   : > { %1766 = vst.msk [vmem:[#allocation3 + $0x90] sm:$0xf] %vm16827_vm2, %v11417_v24  ;;  %v1821_v37 = vld [vmem:[#allocation2 + $0xb7] sm:$0xff]  ;;  %v1822_v38 = vld [vmem:[#allocation2 + $0xbf] sm:$0xff]  ;;  %v11574_v39 = vpack.c.bf16 %v2542_v27, %v2542_v27  ;;  %2058 = vst.msk [vmem:[#allocation4 + $0x80] sm:$0xf] %vm16827_vm2, %v11469_v34  ;;  %v11575_v50 = vpack.c.bf16 %v2543_v44, %v2543_v44 }
  0xd9   : > { %2749 = vrot.lane.b32.xlu0 %v11572_v9, %s12563_s9  ;;  %3198 = vst.msk [vmem:[#allocation3 + $0xac] sm:$0xf] %vm16827_vm2, %v11624_v30  ;;  %3199 = vst.msk [vmem:[#allocation3 + $0xb4] sm:$0xf] %vm16827_vm2, %v11625_v31  ;;  %v11472_v41 = vpack.c.bf16 %v1821_v37, %v1821_v37  ;;  %v11473_v42 = vpack.c.bf16 %v1822_v38, %v1822_v38  ;;  %v2930_v43 = vld [vmem:[#allocation2 + $0xc1] sm:$0xff]  ;;  %v1498_v58 = vld [vmem:[#allocation2 + $0xaf] sm:$0xff] }
  0xda   : > { %3489 = vst.msk [vmem:[#allocation4 + $0x94] sm:$0xf] %vm16827_vm2, %v11624_v30  ;;  %3490 = vst.msk [vmem:[#allocation4 + $0x9c] sm:$0xf] %vm16827_vm2, %v11625_v31  ;;  %v1823_v45 = vld [vmem:[#allocation2 + $0xc7] sm:$0xff]  ;;  %v11626_v46 = vpack.c.bf16 %v2930_v43, %v2930_v43  ;;  %v11420_v60 = vpack.c.bf16 %v1498_v58, %v1498_v58  ;;  %v1500_v0 = vld [vmem:[#allocation2 + $0xbf] sm:$0xff] }
  0xdb   : > { %2059 = vst.msk [vmem:[#allocation4 + $0x88] sm:$0xf] %vm16827_vm2, %v11470_v35  ;;  %2060 = vst.msk [vmem:[#allocation4 + $0x90] sm:$0xf] %vm16827_vm2, %v11471_v40  ;;  %v11474_v47 = vpack.c.bf16 %v1823_v45, %v1823_v45  ;;  %v2544_v55 = vld [vmem:[#allocation2 + $0xc8] sm:$0xff]  ;;  %v1499_v1 = vld [vmem:[#allocation2 + $0xb7] sm:$0xff]  ;;  %v11422_v3 = vpack.c.bf16 %v1500_v0, %v1500_v0 }
  0xdc   : > { %2061 = vst.msk [vmem:[#allocation4 + $0x98] sm:$0xf] %vm16827_vm2, %v11472_v41  ;;  %2062 = vst.msk [vmem:[#allocation4 + $0xa0] sm:$0xf] %vm16827_vm2, %v11473_v42  ;;  %v11576_v59 = vpack.c.bf16 %v2544_v55, %v2544_v55  ;;  %v11421_v4 = vpack.c.bf16 %v1499_v1, %v1499_v1  ;;  %v1501_v5 = vld [vmem:[#allocation2 + $0xc7] sm:$0xff]  ;;  %v230_v17 = vld [vmem:[%s12698_s28 + $0x18] sm:$0xff] }
  0xdd   : > { %2751 = vrot.lane.b32.xlu0 %v11573_v23, %s12563_s9  ;;  %3200 = vst.msk [vmem:[#allocation3 + $0xbc] sm:$0xf] %vm16827_vm2, %v11626_v46  ;;  %3491 = vst.msk [vmem:[#allocation4 + $0xa4] sm:$0xf] %vm16827_vm2, %v11626_v46  ;;  %v11423_v6 = vpack.c.bf16 %v1501_v5, %v1501_v5  ;;  %v228_v11 = vld [vmem:[%s12698_s28 + $0x8] sm:$0xff]  ;;  %v238_v21 = vld [vmem:[%s12698_s28 + $0x58] sm:$0xff] }
  0xde   : > { %2063 = vst.msk [vmem:[#allocation4 + $0xa8] sm:$0xf] %vm16827_vm2, %v11474_v47  ;;  %v2931_v53 = vld [vmem:[#allocation2 + $0xc9] sm:$0xff]  ;;  %v2932_v54 = vld [vmem:[#allocation2 + $0xd1] sm:$0xff]  ;;  %1767 = vst.msk [vmem:[#allocation3 + $0x98] sm:$0xf] %vm16827_vm2, %v11418_v51 }
  0xdf   : > { %v11627_v56 = vpack.c.bf16 %v2931_v53, %v2931_v53  ;;  %v11628_v57 = vpack.c.bf16 %v2932_v54, %v2932_v54  ;;  %1768 = vst.msk [vmem:[#allocation3 + $0xa0] sm:$0xf] %vm16827_vm2, %v11419_v52  ;;  %v2545_v61 = vld [vmem:[#allocation2 + $0xd0] sm:$0xff]  ;;  %1769 = vst.msk [vmem:[#allocation3 + $0xa8] sm:$0xf] %vm16827_vm2, %v11420_v60  ;;  %v2546_v63 = vld [vmem:[#allocation2 + $0xd8] sm:$0xff] }
  0xe0   : > { %v11577_v62 = vpack.c.bf16 %v2545_v61, %v2545_v61  ;;  %v11578_v2 = vpack.c.bf16 %v2546_v63, %v2546_v63  ;;  %1771 = vst.msk [vmem:[#allocation3 + $0xb8] sm:$0xf] %vm16827_vm2, %v11422_v3  ;;  %1770 = vst.msk [vmem:[#allocation3 + $0xb0] sm:$0xf] %vm16827_vm2, %v11421_v4  ;;  %v1824_v7 = vld [vmem:[#allocation2 + $0xcf] sm:$0xff]  ;;  %v1825_v9 = vld [vmem:[#allocation2 + $0xd7] sm:$0xff] }
  0xe1   : > { %2753 = vrot.lane.b32.xlu0 %v11574_v39, %s12563_s9  ;;  %3201 = vst.msk [vmem:[#allocation3 + $0xc4] sm:$0xf] %vm16827_vm2, %v11627_v56  ;;  %3202 = vst.msk [vmem:[#allocation3 + $0xcc] sm:$0xf] %vm16827_vm2, %v11628_v57  ;;  %v11475_v8 = vpack.c.bf16 %v1824_v7, %v1824_v7  ;;  %v11476_v12 = vpack.c.bf16 %v1825_v9, %v1825_v9  ;;  %v1502_v13 = vld [vmem:[#allocation2 + $0xcf] sm:$0xff]  ;;  %v1503_v14 = vld [vmem:[#allocation2 + $0xd7] sm:$0xff] }
  0xe2   : > { %3492 = vst.msk [vmem:[#allocation4 + $0xac] sm:$0xf] %vm16827_vm2, %v11627_v56  ;;  %3493 = vst.msk [vmem:[#allocation4 + $0xb4] sm:$0xf] %vm16827_vm2, %v11628_v57  ;;  %v11424_v15 = vpack.c.bf16 %v1502_v13, %v1502_v13  ;;  %v11425_v16 = vpack.c.bf16 %v1503_v14, %v1503_v14  ;;  %v232_v18 = vld [vmem:[%s12698_s28 + $0x28] sm:$0xff]  ;;  %v242_v23 = vld [vmem:[%s12698_s28 + $0x78] sm:$0xff] }
  0xe3   : > { %1772 = vst.msk [vmem:[#allocation3 + $0xc0] sm:$0xf] %vm16827_vm2, %v11423_v6  ;;  %2064 = vst.msk [vmem:[#allocation4 + $0xb0] sm:$0xf] %vm16827_vm2, %v11475_v8  ;;  %v236_v20 = vld [vmem:[%s12698_s28 + $0x48] sm:$0xff]  ;;  %v12184_v35 = vld [vmem:[%s16821_s1 + $0xf8] sm:$0xff]  }
  0xe4   : > { %2065 = vst.msk [vmem:[#allocation4 + $0xb8] sm:$0xf] %vm16827_vm2, %v11476_v12  ;;  %1773 = vst.msk [vmem:[#allocation3 + $0xc8] sm:$0xf] %vm16827_vm2, %v11424_v15  ;;  %v12164_v28 = vld [vmem:[#allocation4 + $0x4] ss:$8 sps:$4 sm:$0xff]  }
  0xe5   : > { %2755 = vrot.lane.b32.xlu0 %v11575_v50, %s12563_s9  ;;  %1774 = vst.msk [vmem:[#allocation3 + $0xd0] sm:$0xf] %vm16827_vm2, %v11425_v16  ;;  %10571 = vmatprep.mubr.msk.bf16.mxu0 %vm16828_vm0, %v12164_v28  ;;  %v12167_v33 = vld [vmem:[#allocation4 + $0x14] ss:$8 sps:$4 sm:$0xff]   ;;  %v12170_v38 = vld [vmem:[#allocation4 + $0x24] ss:$8 sps:$4 sm:$0xff]  }
  0xe6   : > { %v12173_v43 = vld [vmem:[#allocation4 + $0x34] ss:$8 sps:$4 sm:$0xff]   ;;  %v12185_v46 = vld [vmem:[%s16821_s1 + $0xf0] sm:$0xff]   ;;  %v2538_v56 = vld [vmem:[#allocation2 + $0x98] sm:$0xff] }
  0xe7   : > { %v12186_v50 = vld [vmem:[%s16821_s1 + $0xe8] sm:$0xff]   ;;  %v12181_v58 = vld [vmem:[#allocation4 + $0x64] ss:$8 sps:$4 sm:$0xff]   ;;  %v12967_v61 = vpack.c.bf16 %v2538_v56, %v2538_v56  ;;  %v12192_v63 = vld [vmem:[%s16821_s1 + $0xe0] sm:$0xff]  }
  0xe8   : > { %v12179_v53 = vld [vmem:[#allocation4 + $0x54] ss:$8 sps:$4 sm:$0xff]   ;;  %v12199_v5 = vld [vmem:[%s16821_s1 + $0xd8] sm:$0xff]   ;;  %v12204_v6 = vld [vmem:[%s16821_s1 + $0xd0] sm:$0xff]  }
  0xe9   : > { %2757 = vrot.lane.b32.xlu0 %v11576_v59, %s12563_s9 }
  0xed   : > { %2759 = vrot.lane.b32.xlu0 %v11577_v62, %s12563_s9 }
  0xf1   : > { %2761 = vrot.lane.b32.xlu0 %v11578_v2, %s12563_s9 }
  0xf6   : > { %275 = vxpose.xlu1.b32.start [1/8] (short) %v228_v11, 128 }
  0xfa   : > { %276 = vxpose.xlu1.b32.cont [2/8] (short) %v230_v17, 128 }
  0xfe   : > { %277 = vxpose.xlu1.b32.cont [3/8] (short) %v232_v18, 128 }
 0x102   : > { %278 = vxpose.xlu1.b32.cont [4/8] (short) %v234_v19, 128 }
 0x106   : > { %279 = vxpose.xlu1.b32.cont [5/8] (short) %v236_v20, 128 }
 0x10a   : > { %280 = vxpose.xlu1.b32.cont [6/8] (short) %v238_v21, 128 }
 0x10e   : > { %281 = vxpose.xlu1.b32.cont [7/8] (short) %v240_v22, 128 }
 0x112   : > { %282 = vxpose.xlu1.b32.end [8/8] (short) %v242_v23, 128 }
 0x117   : > { %v2716_v24 = vpop.permute.xlu1 %2715 }
 0x118   : > { %2859 = vst.msk [vmem:[#allocation4] sm:$0xf] %vm16826_vm3, %v2716_v24 }
 0x11b   : > { %v2718_v25 = vpop.permute.xlu1 %2717 }
 0x11c   : > { %2860 = vst.msk [vmem:[#allocation4 + $0x8] sm:$0xf] %vm16826_vm3, %v2718_v25 }
 0x11f   : > { %v2720_v26 = vpop.permute.xlu1 %2719 }
 0x120   : > { %2861 = vst.msk [vmem:[#allocation4 + $0x10] sm:$0xf] %vm16826_vm3, %v2720_v26 }
 0x123   : > { %v2722_v27 = vpop.permute.xlu1 %2721  ;;  %v12166_v29 = vld [vmem:[#allocation4] ss:$8 sps:$4 sm:$0xff]  }
 0x124   : > { %2862 = vst.msk [vmem:[#allocation4 + $0x18] sm:$0xf] %vm16826_vm3, %v2722_v27  ;;  %4057 = vmatmul.mubr.bf16.vlgmr.msra.gmra.mxu0 %v12166_v29 }
 0x125   : > { %10572 = vmatprep.mubr.msk.bf16.mxu0 %vm16828_vm0, %v12167_v33  ;;  %5268 = vmatpush1.bf16.msra.mxu0 %v12184_v35 }
 0x126   : > { %5269 = vmatprep.subr.bf16.mxu0 %v16824_v10 }
 0x127   : > { %v2724_v30 = vpop.permute.xlu1 %2723 }
 0x128   : > { %2863 = vst.msk [vmem:[#allocation4 + $0x20] sm:$0xf] %vm16826_vm3, %v2724_v30 }
 0x129   : > { %5270 = vmatpush1.bf16.msra.mxu0 %v12185_v46 }
 0x12a   : > { %5271 = vmatprep.subr.bf16.mxu0 %v16824_v10 }
 0x12b   : > { %v2726_v31 = vpop.permute.xlu1 %2725  ;;  %v12169_v34 = vld [vmem:[#allocation4 + $0x10] ss:$8 sps:$4 sm:$0xff]  }
 0x12c   : > { %2864 = vst.msk [vmem:[#allocation4 + $0x28] sm:$0xf] %vm16826_vm3, %v2726_v31  ;;  %4065 = vmatmul.mubr.bf16.gmra.mxu0 %v12169_v34 }
 0x12d   : > { %v2732_v32 = vpop.permute.xlu0 %2731  ;;  %10573 = vmatprep.mubr.msk.bf16.mxu0 %vm16828_vm0, %v12170_v38  ;;  %5272 = vmatpush1.bf16.msra.mxu0 %v12186_v50 }
 0x12e   : > { %2867 = vst.msk [vmem:[#allocation4 + $0x40] sm:$0xf] %vm16826_vm3, %v2732_v32  ;;  %5273 = vmatprep.subr.bf16.mxu0 %v16824_v10 }
 0x12f   : > { %v2728_v36 = vpop.permute.xlu1 %2727 }
 0x130   : > { %2865 = vst.msk [vmem:[#allocation4 + $0x30] sm:$0xf] %vm16826_vm3, %v2728_v36 }
 0x131   : > { %5274 = vmatpush1.bf16.msra.mxu0 %v12192_v63 }
 0x132   : > { %5275 = vmatprep.subr.bf16.mxu0 %v16824_v10 }
 0x133   : > { %v2730_v37 = vpop.permute.xlu1 %2729  ;;  %v12172_v39 = vld [vmem:[#allocation4 + $0x20] ss:$8 sps:$4 sm:$0xff]  }
 0x134   : > { %2866 = vst.msk [vmem:[#allocation4 + $0x38] sm:$0xf] %vm16826_vm3, %v2730_v37  ;;  %4073 = vmatmul.mubr.bf16.gmra.mxu0 %v12172_v39 }
 0x135   : > { %10574 = vmatprep.mubr.msk.bf16.mxu0 %vm16828_vm0, %v12173_v43  ;;  %5276 = vmatpush1.bf16.msra.mxu0 %v12199_v5  ;;  %v12208_v43 = vld [vmem:[%s16821_s1 + $0xc8] sm:$0xff]  }
 0x136   : > { %5277 = vmatprep.subr.bf16.mxu0 %v16824_v10 }
 0x137   : > { %v2734_v40 = vpop.permute.xlu1 %2733 }
 0x138   : > { %2868 = vst.msk [vmem:[#allocation4 + $0x48] sm:$0xf] %vm16826_vm3, %v2734_v40 }
 0x139   : > { %5278 = vmatpush1.bf16.msra.mxu0 %v12204_v6 }
 0x13a   : > { %v2740_v41 = vpop.permute.xlu0 %2739  ;;  %5279 = vmatprep.subr.bf16.mxu0 %v16824_v10 }
 0x13b   : > { %2871 = vst.msk [vmem:[#allocation4 + $0x60] sm:$0xf] %vm16826_vm3, %v2740_v41  ;;  %v2736_v42 = vpop.permute.xlu1 %2735  ;;  %v12175_v44 = vld [vmem:[#allocation4 + $0x30] ss:$8 sps:$4 sm:$0xff]  }
 0x13c   : > { %2869 = vst.msk [vmem:[#allocation4 + $0x50] sm:$0xf] %vm16826_vm3, %v2736_v42  ;;  %4081 = vmatmul.mubr.bf16.gmra.mxu0 %v12175_v44 }
 0x13d   : > { %10575 = vmatprep.mubr.msk.bf16.mxu0 %vm16828_vm0, %v12176_v48  ;;  %5280 = vmatpush1.bf16.msra.mxu0 %v12208_v43 }
 0x13e   : > { %5281 = vmatprep.subr.bf16.mxu0 %v16824_v10 }
 0x13f   : > { %v2742_v45 = vpop.permute.xlu0 %2741  ;;  %v2738_v47 = vpop.permute.xlu1 %2737  ;;  %v12178_v52 = vld [vmem:[#allocation4 + $0x40] ss:$8 sps:$4 sm:$0xff]  }
 0x140   : > { %2872 = vst.msk [vmem:[#allocation4 + $0x68] sm:$0xf] %vm16826_vm3, %v2742_v45  ;;  %2870 = vst.msk [vmem:[#allocation4 + $0x58] sm:$0xf] %vm16826_vm3, %v2738_v47 }
 0x143   : > { %v2744_v49 = vpop.permute.xlu0 %2743  ;;  %v3601_v57 = vld [vmem:[#allocation4 + $0x50] sm:$0xff] }
 0x144   : > { %2873 = vst.msk [vmem:[#allocation4 + $0x70] sm:$0xf] %vm16826_vm3, %v2744_v49  ;;  %4089 = vmatmul.mubr.bf16.gmra.mxu0 %v12178_v52 }
 0x145   : > { %10576 = vmatprep.mubr.msk.bf16.mxu0 %vm16828_vm0, %v12179_v53 }
 0x147   : > { %v2748_v51 = vpop.permute.xlu0 %2747  ;;  %v3602_v55 = vld [vmem:[#allocation4 + $0x58] sm:$0xff]  ;;  %v12183_v0 = vld [vmem:[#allocation4 + $0x60] ss:$8 sps:$4 sm:$0xff]  }
 0x148   : > { %2875 = vst.msk [vmem:[#allocation4 + $0x80] sm:$0xf] %vm16826_vm3, %v2748_v51  ;;  %v10521_v60 = vcombine.low %v3601_v57, %v3602_v55 }
 0x14b   : > { %v2750_v54 = vpop.permute.xlu0 %2749 }
 0x14c   : > { %2876 = vst.msk [vmem:[#allocation4 + $0x88] sm:$0xf] %vm16826_vm3, %v2750_v54  ;;  %4097 = vmatmul.mubr.bf16.gmra.mxu0 %v10521_v60 }
 0x14d   : > { %10577 = vmatprep.mubr.msk.bf16.mxu0 %vm16828_vm0, %v12181_v58 }
 0x14f   : > { %v2752_v59 = vpop.permute.xlu0 %2751 }
 0x150   : > { %2877 = vst.msk [vmem:[#allocation4 + $0x90] sm:$0xf] %vm16826_vm3, %v2752_v59  ;;  %2745 = vrot.lane.b32.xlu1 %v12967_v61, %s12563_s9 }
 0x153   : > { %v2754_v62 = vpop.permute.xlu0 %2753 }
 0x154   : > { %2878 = vst.msk [vmem:[#allocation4 + $0x98] sm:$0xf] %vm16826_vm3, %v2754_v62  ;;  %4105 = vmatmul.mubr.bf16.gmra.mxu0 %v12183_v0 }
 0x157   : > { %v2756_v1 = vpop.permute.xlu0 %2755 }
 0x158   : > { %2879 = vst.msk [vmem:[#allocation4 + $0xa0] sm:$0xf] %vm16826_vm3, %v2756_v1 }
 0x15b   : > { %v2758_v2 = vpop.permute.xlu0 %2757 }
 0x15c   : > { %2880 = vst.msk [vmem:[#allocation4 + $0xa8] sm:$0xf] %vm16826_vm3, %v2758_v2 }
 0x15f   : > { %v2760_v3 = vpop.permute.xlu0 %2759 }
 0x160   : > { %2881 = vst.msk [vmem:[#allocation4 + $0xb0] sm:$0xf] %vm16826_vm3, %v2760_v3 }
 0x163   : > { %v2762_v4 = vpop.permute.xlu0 %2761 }
 0x164   : > { %2882 = vst.msk [vmem:[#allocation4 + $0xb8] sm:$0xf] %vm16826_vm3, %v2762_v4 }
 0x172   : > { %v291_v7 = vpop.trf.xlu1 }
 0x173   : > { %v364_v8 = vrot.slane %v291_v7, 7 }
 0x175   : > { %v444_v9 = vsel %vm339_vm1, 0.0, %v364_v8 }
 0x176   : > { %492 = vst.msk [vmem:[#allocation2 + $0xe0] sm:$0xff] %vm16828_vm0, %v444_v9  ;;  %v292_v11 = vpop.trf.xlu1 }
 0x177   : > { %v365_v12 = vrot.slane %v292_v11, 7 }
 0x179   : > { %v366_v13 = vsel %vm339_vm1, %v364_v8, %v365_v12  ;;  %v460_v14 = vsel %vm339_vm1, %v365_v12, 0.0 }
 0x17a   : > { %493 = vst.msk [vmem:[#allocation2 + $0xe8] sm:$0xff] %vm16828_vm0, %v366_v13  ;;  %494 = vst.msk [vmem:[#allocation2 + $0xf0] sm:$0xff] %vm16828_vm0, %v460_v14  ;;  %v293_v15 = vpop.trf.xlu1 }
 0x17b   : > { %v367_v16 = vrot.slane %v293_v15, 7 }
 0x17d   : > { %v2933_v17 = vld [vmem:[#allocation2 + $0xd9] sm:$0xff]  ;;  %v445_v18 = vsel %vm339_vm1, 0.0, %v367_v16 }
 0x17e   : > { %v2547_v19 = vld [vmem:[#allocation2 + $0xe0] sm:$0xff]  ;;  %v11629_v21 = vpack.c.bf16 %v2933_v17, %v2933_v17  ;;  %495 = vst.msk [vmem:[#allocation2 + $0xf8] sm:$0xff] %vm16828_vm0, %v445_v18  ;;  %v294_v22 = vpop.trf.xlu1 }
 0x17f   : > { %v1826_v20 = vld [vmem:[#allocation2 + $0xdf] sm:$0xff]  ;;  %v12998_v23 = vpack.c.bf16 %v2547_v19, %v2547_v19  ;;  %v368_v26 = vrot.slane %v294_v22, 7 }
 0x180   : > { %v11477_v24 = vpack.c.bf16 %v1826_v20, %v1826_v20  ;;  %v1504_v25 = vld [vmem:[#allocation2 + $0xdf] sm:$0xff]  ;;  %3203 = vst.msk [vmem:[#allocation3 + $0xd4] sm:$0xf] %vm16827_vm2, %v11629_v21  ;;  %3494 = vst.msk [vmem:[#allocation4 + $0xbc] sm:$0xf] %vm16827_vm2, %v11629_v21 }
 0x181   : > { %v11426_v27 = vpack.c.bf16 %v1504_v25, %v1504_v25  ;;  %2763 = vrot.lane.b32.xlu0 %v12998_v23, %s12563_s9  ;;  %v2934_v28 = vld [vmem:[#allocation2 + $0xe1] sm:$0xff]  ;;  %v2935_v29 = vld [vmem:[#allocation2 + $0xe9] sm:$0xff]  ;;  %v369_v30 = vsel %vm339_vm1, %v367_v16, %v368_v26  ;;  %v461_v31 = vsel %vm339_vm1, %v368_v26, 0.0  ;;  %v12211_v26 = vld [vmem:[%s16821_s1 + $0x38] sm:$0xff]  }
 0x182   : > { %2066 = vst.msk [vmem:[#allocation4 + $0xc0] sm:$0xf] %vm16827_vm2, %v11477_v24  ;;  %v2548_v32 = vld [vmem:[#allocation2 + $0xe8] sm:$0xff]  ;;  %v11630_v33 = vpack.c.bf16 %v2934_v28, %v2934_v28  ;;  %v11631_v34 = vpack.c.bf16 %v2935_v29, %v2935_v29  ;;  %v295_v35 = vpop.trf.xlu1  ;;  %v2549_v37 = vld [vmem:[#allocation2 + $0xf0] sm:$0xff]  ;;  %4610 = vmatpush1.bf16.msra.mxu1 %v12211_v26 }
 0x183   : > { %1775 = vst.msk [vmem:[#allocation3 + $0xd8] sm:$0xf] %vm16827_vm2, %v11426_v27  ;;  %v13010_v36 = vpack.c.bf16 %v2548_v32, %v2548_v32  ;;  %v1827_v38 = vld [vmem:[#allocation2 + $0xe7] sm:$0xff]  ;;  %v1828_v39 = vld [vmem:[#allocation2 + $0xef] sm:$0xff]  ;;  %v370_v40 = vrot.slane %v295_v35, 7  ;;  %v13025_v54 = vpack.c.bf16 %v2549_v37, %v2549_v37  ;;  %4611 = vmatprep.subr.bf16.mxu1 %v16824_v10 }
 0x184   : > { %496 = vst.msk [vmem:[#allocation2 + $0x100] sm:$0xff] %vm16828_vm0, %v369_v30  ;;  %497 = vst.msk [vmem:[#allocation2 + $0x108] sm:$0xff] %vm16828_vm0, %v461_v31  ;;  %v11478_v41 = vpack.c.bf16 %v1827_v38, %v1827_v38  ;;  %v11479_v42 = vpack.c.bf16 %v1828_v39, %v1828_v39  ;;  %v1506_v44 = vld [vmem:[#allocation2 + $0xef] sm:$0xff]  ;;  %v1505_v45 = vld [vmem:[#allocation2 + $0xe7] sm:$0xff] }
 0x185   : > { %3204 = vst.msk [vmem:[#allocation3 + $0xdc] sm:$0xf] %vm16827_vm2, %v11630_v33  ;;  %3205 = vst.msk [vmem:[#allocation3 + $0xe4] sm:$0xf] %vm16827_vm2, %v11631_v34  ;;  %2765 = vrot.lane.b32.xlu0 %v13010_v36, %s12563_s9  ;;  %v11428_v46 = vpack.c.bf16 %v1506_v44, %v1506_v44  ;;  %v11427_v47 = vpack.c.bf16 %v1505_v45, %v1505_v45  ;;  %v2936_v48 = vld [vmem:[#allocation2 + $0xf1] sm:$0xff]  ;;  %v446_v49 = vsel %vm339_vm1, 0.0, %v370_v40 }
 0x186   : > { %3495 = vst.msk [vmem:[#allocation4 + $0xc4] sm:$0xf] %vm16827_vm2, %v11630_v33  ;;  %3496 = vst.msk [vmem:[#allocation4 + $0xcc] sm:$0xf] %vm16827_vm2, %v11631_v34  ;;  %v2550_v50 = vld [vmem:[#allocation2 + $0xf8] sm:$0xff]  ;;  %v11632_v52 = vpack.c.bf16 %v2936_v48, %v2936_v48  ;;  %v296_v53 = vpop.trf.xlu1  ;;  %v12215_v45 = vld [vmem:[%s16821_s1 + $0xc0] sm:$0xff]  }
 0x187   : > { %2067 = vst.msk [vmem:[#allocation4 + $0xc8] sm:$0xf] %vm16827_vm2, %v11478_v41  ;;  %2068 = vst.msk [vmem:[#allocation4 + $0xd0] sm:$0xf] %vm16827_vm2, %v11479_v42  ;;  %v1829_v51 = vld [vmem:[#allocation2 + $0xf7] sm:$0xff]  ;;  %v371_v57 = vrot.slane %v296_v53, 7  ;;  %v13034_v59 = vpack.c.bf16 %v2550_v50, %v2550_v50  ;;  %5282 = vmatpush1.bf16.msra.mxu0 %v12215_v45 }
 0x188   : > { %498 = vst.msk [vmem:[#allocation2 + $0x110] sm:$0xff] %vm16828_vm0, %v446_v49  ;;  %v11480_v55 = vpack.c.bf16 %v1829_v51, %v1829_v51  ;;  %v1507_v56 = vld [vmem:[#allocation2 + $0xf7] sm:$0xff]  ;;  %5291 = vmatprep.subr.bf16.mxu0 %v16824_v10 }
 0x189   : > { %1777 = vst.msk [vmem:[#allocation3 + $0xe8] sm:$0xf] %vm16827_vm2, %v11428_v46  ;;  %1776 = vst.msk [vmem:[#allocation3 + $0xe0] sm:$0xf] %vm16827_vm2, %v11427_v47  ;;  %v11429_v58 = vpack.c.bf16 %v1507_v56, %v1507_v56  ;;  %2767 = vrot.lane.b32.xlu0 %v13025_v54, %s12563_s9  ;;  %v372_v63 = vsel %vm339_vm1, %v370_v40, %v371_v57  ;;  %v462_v0 = vsel %vm339_vm1, %v371_v57, 0.0  ;;  %v12216_v46 = vld [vmem:[%s16821_s1 + $0x30] sm:$0xff]  }
 0x18a   : > { %3206 = vst.msk [vmem:[#allocation3 + $0xec] sm:$0xf] %vm16827_vm2, %v11632_v52  ;;  %3497 = vst.msk [vmem:[#allocation4 + $0xd4] sm:$0xf] %vm16827_vm2, %v11632_v52  ;;  %v297_v3 = vpop.trf.xlu1  ;;  %4612 = vmatpush1.bf16.msra.mxu1 %v12216_v46 }
 0x18b   : > { %2069 = vst.msk [vmem:[#allocation4 + $0xd8] sm:$0xf] %vm16827_vm2, %v11480_v55  ;;  %v2937_v60 = vld [vmem:[#allocation2 + $0xf9] sm:$0xff]  ;;  %v2938_v62 = vld [vmem:[#allocation2 + $0x101] sm:$0xff]  ;;  %1778 = vst.msk [vmem:[#allocation3 + $0xf0] sm:$0xf] %vm16827_vm2, %v11429_v58  ;;  %4613 = vmatprep.subr.bf16.mxu1 %v16824_v10 }
 0x18c   : > { %v11633_v1 = vpack.c.bf16 %v2937_v60, %v2937_v60  ;;  %v11634_v2 = vpack.c.bf16 %v2938_v62, %v2938_v62  ;;  %499 = vst.msk [vmem:[#allocation2 + $0x118] sm:$0xff] %vm16828_vm0, %v372_v63  ;;  %500 = vst.msk [vmem:[#allocation2 + $0x120] sm:$0xff] %vm16828_vm0, %v462_v0  ;;  %v1830_v4 = vld [vmem:[#allocation2 + $0xff] sm:$0xff]  ;;  %v1831_v5 = vld [vmem:[#allocation2 + $0x107] sm:$0xff]  ;;  %v373_v6 = vrot.slane %v297_v3, 7 }
 0x18d   : > { %v2551_v7 = vld [vmem:[#allocation2 + $0x100] sm:$0xff]  ;;  %v11481_v8 = vpack.c.bf16 %v1830_v4, %v1830_v4  ;;  %v11482_v9 = vpack.c.bf16 %v1831_v5, %v1831_v5  ;;  %2769 = vrot.lane.b32.xlu0 %v13034_v59, %s12563_s9  ;;  %v2552_v25 = vld [vmem:[#allocation2 + $0x108] sm:$0xff] }
 0x18e   : > { %v1508_v11 = vld [vmem:[#allocation2 + $0xff] sm:$0xff]  ;;  %v1509_v12 = vld [vmem:[#allocation2 + $0x107] sm:$0xff]  ;;  %3207 = vst.msk [vmem:[#allocation3 + $0xf4] sm:$0xf] %vm16827_vm2, %v11633_v1  ;;  %3208 = vst.msk [vmem:[#allocation3 + $0xfc] sm:$0xf] %vm16827_vm2, %v11634_v2  ;;  %v298_v19 = vpop.trf.xlu1  ;;  %v13052_v20 = vpack.c.bf16 %v2551_v7, %v2551_v7  ;;  %v13071_v39 = vpack.c.bf16 %v2552_v25, %v2552_v25 }
 0x18f   : > { %3498 = vst.msk [vmem:[#allocation4 + $0xdc] sm:$0xf] %vm16827_vm2, %v11633_v1  ;;  %3499 = vst.msk [vmem:[#allocation4 + $0xe4] sm:$0xf] %vm16827_vm2, %v11634_v2  ;;  %v11430_v13 = vpack.c.bf16 %v1508_v11, %v1508_v11  ;;  %v11431_v14 = vpack.c.bf16 %v1509_v12, %v1509_v12  ;;  %v2939_v15 = vld [vmem:[#allocation2 + $0x109] sm:$0xff]  ;;  %v447_v16 = vsel %vm339_vm1, 0.0, %v373_v6 }
 0x190   : > { %2070 = vst.msk [vmem:[#allocation4 + $0xe0] sm:$0xf] %vm16827_vm2, %v11481_v8  ;;  %2071 = vst.msk [vmem:[#allocation4 + $0xe8] sm:$0xf] %vm16827_vm2, %v11482_v9  ;;  %v1832_v17 = vld [vmem:[#allocation2 + $0x10f] sm:$0xff]  ;;  %v11635_v18 = vpack.c.bf16 %v2939_v15, %v2939_v15  ;;  %v374_v24 = vrot.slane %v298_v19, 7 }
 0x191   : > { %501 = vst.msk [vmem:[#allocation2 + $0x128] sm:$0xff] %vm16828_vm0, %v447_v16  ;;  %v11483_v21 = vpack.c.bf16 %v1832_v17, %v1832_v17  ;;  %v1510_v22 = vld [vmem:[#allocation2 + $0x10f] sm:$0xff]  ;;  %2771 = vrot.lane.b32.xlu0 %v13052_v20, %s12563_s9 }
 0x192   : > { %1779 = vst.msk [vmem:[#allocation3 + $0xf8] sm:$0xf] %vm16827_vm2, %v11430_v13  ;;  %1780 = vst.msk [vmem:[#allocation3 + $0x100] sm:$0xf] %vm16827_vm2, %v11431_v14  ;;  %v11432_v27 = vpack.c.bf16 %v1510_v22, %v1510_v22  ;;  %v2553_v28 = vld [vmem:[#allocation2 + $0x110] sm:$0xff]  ;;  %v375_v31 = vsel %vm339_vm1, %v373_v6, %v374_v24  ;;  %v463_v32 = vsel %vm339_vm1, %v374_v24, 0.0  ;;  %v299_v37 = vpop.trf.xlu1 }
 0x193   : > { %3209 = vst.msk [vmem:[#allocation3 + $0x104] sm:$0xf] %vm16827_vm2, %v11635_v18  ;;  %3500 = vst.msk [vmem:[#allocation4 + $0xec] sm:$0xf] %vm16827_vm2, %v11635_v18  ;;  %v2940_v29 = vld [vmem:[#allocation2 + $0x111] sm:$0xff]  ;;  %v2941_v30 = vld [vmem:[#allocation2 + $0x119] sm:$0xff]  ;;  %v13088_v48 = vpack.c.bf16 %v2553_v28, %v2553_v28 }
 0x194   : > { %2072 = vst.msk [vmem:[#allocation4 + $0xf0] sm:$0xf] %vm16827_vm2, %v11483_v21  ;;  %v2554_v33 = vld [vmem:[#allocation2 + $0x118] sm:$0xff]  ;;  %1781 = vst.msk [vmem:[#allocation3 + $0x108] sm:$0xf] %vm16827_vm2, %v11432_v27  ;;  %v11636_v34 = vpack.c.bf16 %v2940_v29, %v2940_v29  ;;  %v11637_v35 = vpack.c.bf16 %v2941_v30, %v2941_v30  ;;  %v376_v42 = vrot.slane %v299_v37, 7 }
 0x195   : > { %502 = vst.msk [vmem:[#allocation2 + $0x130] sm:$0xff] %vm16828_vm0, %v375_v31  ;;  %503 = vst.msk [vmem:[#allocation2 + $0x138] sm:$0xff] %vm16828_vm0, %v463_v32  ;;  %v13069_v38 = vpack.c.bf16 %v2554_v33, %v2554_v33  ;;  %v1833_v40 = vld [vmem:[#allocation2 + $0x117] sm:$0xff]  ;;  %v1834_v41 = vld [vmem:[#allocation2 + $0x11f] sm:$0xff]  ;;  %2773 = vrot.lane.b32.xlu0 %v13071_v39, %s12563_s9 }
 0x196   : > { %v11484_v43 = vpack.c.bf16 %v1833_v40, %v1833_v40  ;;  %v11485_v44 = vpack.c.bf16 %v1834_v41, %v1834_v41  ;;  %v1512_v47 = vld [vmem:[#allocation2 + $0x11f] sm:$0xff]  ;;  %3210 = vst.msk [vmem:[#allocation3 + $0x10c] sm:$0xf] %vm16827_vm2, %v11636_v34  ;;  %3211 = vst.msk [vmem:[#allocation3 + $0x114] sm:$0xf] %vm16827_vm2, %v11637_v35  ;;  %v1511_v51 = vld [vmem:[#allocation2 + $0x117] sm:$0xff]  ;;  %v300_v60 = vpop.trf.xlu1 }
 0x197   : > { %3501 = vst.msk [vmem:[#allocation4 + $0xf4] sm:$0xf] %vm16827_vm2, %v11636_v34  ;;  %3502 = vst.msk [vmem:[#allocation4 + $0xfc] sm:$0xf] %vm16827_vm2, %v11637_v35  ;;  %2777 = vrot.lane.b32.xlu1 %v13069_v38, %s12563_s9  ;;  %v2555_v49 = vld [vmem:[#allocation2 + $0x120] sm:$0xff]  ;;  %v11434_v50 = vpack.c.bf16 %v1512_v47, %v1512_v47  ;;  %v448_v53 = vsel %vm339_vm1, 0.0, %v376_v42  ;;  %v11433_v57 = vpack.c.bf16 %v1511_v51, %v1511_v51 }
 0x198   : > { %v2942_v52 = vld [vmem:[#allocation2 + $0x121] sm:$0xff]  ;;  %2073 = vst.msk [vmem:[#allocation4 + $0xf8] sm:$0xf] %vm16827_vm2, %v11484_v43  ;;  %2074 = vst.msk [vmem:[#allocation4 + $0x100] sm:$0xf] %vm16827_vm2, %v11485_v44  ;;  %v377_v1 = vrot.slane %v300_v60, 7  ;;  %v13109_v4 = vpack.c.bf16 %v2555_v49, %v2555_v49 }
 0x199   : > { %v2556_v55 = vld [vmem:[#allocation2 + $0x128] sm:$0xff]  ;;  %v11638_v58 = vpack.c.bf16 %v2942_v52, %v2942_v52  ;;  %504 = vst.msk [vmem:[#allocation2 + $0x140] sm:$0xff] %vm16828_vm0, %v448_v53  ;;  %2775 = vrot.lane.b32.xlu0 %v13088_v48, %s12563_s9  ;;  %v12222_v22 = vld [vmem:[%s16821_s1 + $0x20] sm:$0xff]   ;;  %v12223_v35 = vld [vmem:[%s16821_s1 + $0x18] sm:$0xff]  }
 0x19a   : > { %v1835_v56 = vld [vmem:[#allocation2 + $0x127] sm:$0xff]  ;;  %v13094_v62 = vpack.c.bf16 %v2556_v55, %v2556_v55  ;;  %1783 = vst.msk [vmem:[#allocation3 + $0x118] sm:$0xf] %vm16827_vm2, %v11434_v50  ;;  %1782 = vst.msk [vmem:[#allocation3 + $0x110] sm:$0xf] %vm16827_vm2, %v11433_v57  ;;  %v378_v7 = vsel %vm339_vm1, %v376_v42, %v377_v1  ;;  %v464_v8 = vsel %vm339_vm1, %v377_v1, 0.0  ;;  %v301_v13 = vpop.trf.xlu1 }
 0x19b   : > { %v11486_v63 = vpack.c.bf16 %v1835_v56, %v1835_v56  ;;  %v1513_v0 = vld [vmem:[#allocation2 + $0x127] sm:$0xff]  ;;  %3212 = vst.msk [vmem:[#allocation3 + $0x11c] sm:$0xf] %vm16827_vm2, %v11638_v58  ;;  %3503 = vst.msk [vmem:[#allocation4 + $0x104] sm:$0xf] %vm16827_vm2, %v11638_v58  ;;  %v379_v18 = vrot.slane %v301_v13, 7 }
 0x19c   : > { %v12219_v2 = vld [vmem:[%s16821_s1 + $0x28] sm:$0xff]   ;;  %v11435_v3 = vpack.c.bf16 %v1513_v0, %v1513_v0  ;;  %2781 = vrot.lane.b32.xlu1 %v13094_v62, %s12563_s9  ;;  %v2944_v6 = vld [vmem:[#allocation2 + $0x131] sm:$0xff]  ;;  %505 = vst.msk [vmem:[#allocation2 + $0x148] sm:$0xff] %vm16828_vm0, %v378_v7  ;;  %506 = vst.msk [vmem:[#allocation2 + $0x150] sm:$0xff] %vm16828_vm0, %v464_v8 }
 0x19d   : > { %2075 = vst.msk [vmem:[#allocation4 + $0x108] sm:$0xf] %vm16827_vm2, %v11486_v63  ;;  %v2943_v5 = vld [vmem:[#allocation2 + $0x129] sm:$0xff]  ;;  %v2558_v9 = vld [vmem:[#allocation2 + $0x138] sm:$0xff]  ;;  %4614 = vmatpush1.bf16.msra.mxu1 %v12219_v2  ;;  %v11640_v12 = vpack.c.bf16 %v2944_v6, %v2944_v6  ;;  %2779 = vrot.lane.b32.xlu0 %v13109_v4, %s12563_s9  ;;  %v449_v28 = vsel %vm339_vm1, 0.0, %v379_v18 }
 0x19e   : > { %1784 = vst.msk [vmem:[#allocation3 + $0x120] sm:$0xf] %vm16827_vm2, %v11435_v3  ;;  %v11639_v11 = vpack.c.bf16 %v2943_v5, %v2943_v5  ;;  %v13117_v14 = vpack.c.bf16 %v2558_v9, %v2558_v9  ;;  %v2557_v15 = vld [vmem:[#allocation2 + $0x130] sm:$0xff]  ;;  %4615 = vmatprep.subr.bf16.mxu1 %v16824_v10  ;;  %v302_v32 = vpop.trf.xlu1  ;;  %v12224_v57 = vld [vmem:[%s16821_s1 + $0x118] sm:$0xff]   ;;  %v12228_v13 = vld [vmem:[%s16821_s1 + $0x8] sm:$0xff]  }
 0x19f   : > { %v1837_v16 = vld [vmem:[#allocation2 + $0x137] sm:$0xff]  ;;  %v1836_v17 = vld [vmem:[#allocation2 + $0x12f] sm:$0xff]  ;;  %3214 = vst.msk [vmem:[#allocation3 + $0x12c] sm:$0xf] %vm16827_vm2, %v11640_v12  ;;  %3505 = vst.msk [vmem:[#allocation4 + $0x114] sm:$0xf] %vm16827_vm2, %v11640_v12  ;;  %v13131_v25 = vpack.c.bf16 %v2557_v15, %v2557_v15  ;;  %5292 = vmatpush2.bf16.msra.mxu0 %v12224_v57 }
 0x1a0   : > { %v11488_v19 = vpack.c.bf16 %v1837_v16, %v1837_v16  ;;  %v11487_v21 = vpack.c.bf16 %v1836_v17, %v1836_v17  ;;  %v1515_v24 = vld [vmem:[#allocation2 + $0x137] sm:$0xff]  ;;  %3213 = vst.msk [vmem:[#allocation3 + $0x124] sm:$0xf] %vm16827_vm2, %v11639_v11  ;;  %3504 = vst.msk [vmem:[#allocation4 + $0x10c] sm:$0xf] %vm16827_vm2, %v11639_v11  ;;  %2785 = vrot.lane.b32.xlu1 %v13117_v14, %s12563_s9  ;;  %v2559_v29 = vld [vmem:[#allocation2 + $0x140] sm:$0xff]  ;;  %5293 = vmatprep.subr.bf16.mxu0 %v16824_v10 }
 0x1a1   : > { %v11437_v26 = vpack.c.bf16 %v1515_v24, %v1515_v24  ;;  %v2945_v27 = vld [vmem:[#allocation2 + $0x139] sm:$0xff]  ;;  %4616 = vmatpush1.bf16.msra.mxu1 %v12222_v22  ;;  %507 = vst.msk [vmem:[#allocation2 + $0x158] sm:$0xff] %vm16828_vm0, %v449_v28  ;;  %v380_v34 = vrot.slane %v302_v32, 7  ;;  %2783 = vrot.lane.b32.xlu0 %v13131_v25, %s12563_s9  ;;  %v13147_v37 = vpack.c.bf16 %v2559_v29, %v2559_v29  ;;  %v12227_v58 = vld [vmem:[%s16821_s1 + $0x10] sm:$0xff]  }
 0x1a2   : > { %2077 = vst.msk [vmem:[#allocation4 + $0x118] sm:$0xf] %vm16827_vm2, %v11488_v19  ;;  %2076 = vst.msk [vmem:[#allocation4 + $0x110] sm:$0xf] %vm16827_vm2, %v11487_v21  ;;  %v1838_v30 = vld [vmem:[#allocation2 + $0x13f] sm:$0xff]  ;;  %v11641_v31 = vpack.c.bf16 %v2945_v27, %v2945_v27  ;;  %4617 = vmatprep.subr.bf16.mxu1 %v16824_v10  ;;  %v303_v47 = vpop.trf.xlu1 }
 0x1a3   : > { %1785 = vst.msk [vmem:[#allocation3 + $0x128] sm:$0xf] %vm16827_vm2, %v11487_v21  ;;  %v11489_v33 = vpack.c.bf16 %v1838_v30, %v1838_v30  ;;  %1786 = vst.msk [vmem:[#allocation3 + $0x130] sm:$0xf] %vm16827_vm2, %v11437_v26  ;;  %v2946_v40 = vld [vmem:[#allocation2 + $0x141] sm:$0xff]  ;;  %v2947_v41 = vld [vmem:[#allocation2 + $0x149] sm:$0xff]  ;;  %v381_v42 = vsel %vm339_vm1, %v379_v18, %v380_v34 }
 0x1a4   : > { %3215 = vst.msk [vmem:[#allocation3 + $0x134] sm:$0xf] %vm16827_vm2, %v11641_v31  ;;  %3506 = vst.msk [vmem:[#allocation4 + $0x11c] sm:$0xf] %vm16827_vm2, %v11641_v31  ;;  %v465_v43 = vsel %vm339_vm1, %v380_v34, 0.0  ;;  %v2560_v44 = vld [vmem:[#allocation2 + $0x148] sm:$0xff]  ;;  %v11642_v45 = vpack.c.bf16 %v2946_v40, %v2946_v40  ;;  %v11643_v46 = vpack.c.bf16 %v2947_v41, %v2947_v41 }
 0x1a5   : > { %2078 = vst.msk [vmem:[#allocation4 + $0x120] sm:$0xf] %vm16827_vm2, %v11489_v33  ;;  %1787 = vst.msk [vmem:[#allocation3 + $0x138] sm:$0xf] %vm16827_vm2, %v11489_v33  ;;  %4618 = vmatpush1.bf16.msra.mxu1 %v12223_v35  ;;  %v13155_v49 = vpack.c.bf16 %v2560_v44, %v2560_v44  ;;  %v2561_v50 = vld [vmem:[#allocation2 + $0x150] sm:$0xff]  ;;  %v1839_v51 = vld [vmem:[#allocation2 + $0x147] sm:$0xff]  ;;  %2787 = vrot.lane.b32.xlu0 %v13147_v37, %s12563_s9 }
 0x1a6   : > { %508 = vst.msk [vmem:[#allocation2 + $0x160] sm:$0xff] %vm16828_vm0, %v381_v42  ;;  %509 = vst.msk [vmem:[#allocation2 + $0x168] sm:$0xff] %vm16828_vm0, %v465_v43  ;;  %v1840_v52 = vld [vmem:[#allocation2 + $0x14f] sm:$0xff]  ;;  %4619 = vmatprep.subr.bf16.mxu1 %v16824_v10  ;;  %v382_v53 = vrot.slane %v303_v47, 7  ;;  %v11490_v55 = vpack.c.bf16 %v1839_v51, %v1839_v51  ;;  %v13172_v60 = vpack.c.bf16 %v2561_v50, %v2561_v50  ;;  %v1517_v63 = vld [vmem:[#allocation2 + $0x147] sm:$0xff]  ;;  %v304_v7 = vpop.trf.xlu1 }
 0x1a7   : > { %v11491_v56 = vpack.c.bf16 %v1840_v52, %v1840_v52  ;;  %3216 = vst.msk [vmem:[#allocation3 + $0x13c] sm:$0xf] %vm16827_vm2, %v11642_v45  ;;  %3217 = vst.msk [vmem:[#allocation3 + $0x144] sm:$0xf] %vm16827_vm2, %v11643_v46  ;;  %2789 = vrot.lane.b32.xlu1 %v13155_v49, %s12563_s9  ;;  %v11439_v5 = vpack.c.bf16 %v1517_v63, %v1517_v63  ;;  %v383_v12 = vrot.slane %v304_v7, 7  ;;  %v12231_v35 = vld [vmem:[%s16821_s1] sm:$0xff]  }
 0x1a8   : > { %3507 = vst.msk [vmem:[#allocation4 + $0x124] sm:$0xf] %vm16827_vm2, %v11642_v45  ;;  %3508 = vst.msk [vmem:[#allocation4 + $0x12c] sm:$0xf] %vm16827_vm2, %v11643_v46  ;;  %v2948_v0 = vld [vmem:[#allocation2 + $0x151] sm:$0xff]  ;;  %v450_v1 = vsel %vm339_vm1, 0.0, %v382_v53 }
 0x1a9   : > { %v2562_v2 = vld [vmem:[#allocation2 + $0x158] sm:$0xff]  ;;  %2079 = vst.msk [vmem:[#allocation4 + $0x128] sm:$0xf] %vm16827_vm2, %v11490_v55  ;;  %2080 = vst.msk [vmem:[#allocation4 + $0x130] sm:$0xf] %vm16827_vm2, %v11491_v56  ;;  %4620 = vmatpush1.bf16.msra.mxu1 %v12227_v58  ;;  %v11644_v6 = vpack.c.bf16 %v2948_v0, %v2948_v0  ;;  %2791 = vrot.lane.b32.xlu0 %v13172_v60, %s12563_s9  ;;  %v384_v18 = vsel %vm339_vm1, %v382_v53, %v383_v12  ;;  %v466_v19 = vsel %vm339_vm1, %v383_v12, 0.0 }
 0x1aa   : > { %v1841_v3 = vld [vmem:[#allocation2 + $0x157] sm:$0xff]  ;;  %1789 = vst.msk [vmem:[#allocation3 + $0x148] sm:$0xf] %vm16827_vm2, %v11491_v56  ;;  %v13179_v8 = vpack.c.bf16 %v2562_v2, %v2562_v2  ;;  %4621 = vmatprep.subr.bf16.mxu1 %v16824_v10  ;;  %1788 = vst.msk [vmem:[#allocation3 + $0x140] sm:$0xf] %vm16827_vm2, %v11439_v5  ;;  %v305_v26 = vpop.trf.xlu1  ;;  %v1478_v53 = vld [vmem:[#allocation2 + $0xf] sm:$0xff] }
 0x1ab   : > { %510 = vst.msk [vmem:[#allocation2 + $0x170] sm:$0xff] %vm16828_vm0, %v450_v1  ;;  %v11492_v9 = vpack.c.bf16 %v1841_v3, %v1841_v3  ;;  %v1519_v11 = vld [vmem:[#allocation2 + $0x157] sm:$0xff]  ;;  %511 = vst.msk [vmem:[#allocation2 + $0x178] sm:$0xff] %vm16828_vm0, %v384_v18  ;;  %v385_v31 = vrot.slane %v305_v26, 7  ;;  %v13238_v1 = vpack.c.bf16 %v1478_v53, %v1478_v53 }
 0x1ac   : > { %v11441_v15 = vpack.c.bf16 %v1519_v11, %v1519_v11  ;;  %3218 = vst.msk [vmem:[#allocation3 + $0x14c] sm:$0xf] %vm16827_vm2, %v11644_v6  ;;  %3509 = vst.msk [vmem:[#allocation4 + $0x134] sm:$0xf] %vm16827_vm2, %v11644_v6  ;;  %2793 = vrot.lane.b32.xlu1 %v13179_v8, %s12563_s9  ;;  %v12232_v51 = vld [vmem:[%s16821_s1 + $0x58] sm:$0xff]   ;;  %v12233_v52 = vld [vmem:[%s16821_s1 + $0x110] sm:$0xff]  }
 0x1ad   : > { %2081 = vst.msk [vmem:[#allocation4 + $0x138] sm:$0xf] %vm16827_vm2, %v11492_v9  ;;  %v2949_v16 = vld [vmem:[#allocation2 + $0x159] sm:$0xff]  ;;  %v2950_v17 = vld [vmem:[#allocation2 + $0x161] sm:$0xff]  ;;  %4622 = vmatpush1.bf16.msra.mxu1 %v12228_v13  ;;  %v451_v41 = vsel %vm339_vm1, 0.0, %v385_v31  ;;  %v2908_v55 = vld [vmem:[#allocation2 + $0x11] sm:$0xff]  ;;  %5294 = vmatpush2.bf16.msra.mxu0 %v12233_v52 }
 0x1ae   : > { %v2564_v21 = vld [vmem:[#allocation2 + $0x168] sm:$0xff]  ;;  %1790 = vst.msk [vmem:[#allocation3 + $0x150] sm:$0xf] %vm16827_vm2, %v11441_v15  ;;  %v11645_v22 = vpack.c.bf16 %v2949_v16, %v2949_v16  ;;  %v11646_v24 = vpack.c.bf16 %v2950_v17, %v2950_v17  ;;  %v2563_v28 = vld [vmem:[#allocation2 + $0x160] sm:$0xff]  ;;  %4623 = vmatprep.subr.bf16.mxu1 %v16824_v10  ;;  %v306_v45 = vpop.trf.xlu1  ;;  %v13240_v2 = vpack.c.bf16 %v2908_v55, %v2908_v55  ;;  %1749 = vst.msk [vmem:[#allocation3 + $0x8] sm:$0xf] %vm16827_vm2, %v13238_v1 }
 0x1af   : > { %512 = vst.msk [vmem:[#allocation2 + $0x180] sm:$0xff] %vm16828_vm0, %v466_v19  ;;  %v13199_v27 = vpack.c.bf16 %v2564_v21, %v2564_v21  ;;  %v1843_v29 = vld [vmem:[#allocation2 + $0x167] sm:$0xff]  ;;  %v1842_v30 = vld [vmem:[#allocation2 + $0x15f] sm:$0xff]  ;;  %v13202_v32 = vpack.c.bf16 %v2563_v28, %v2563_v28  ;;  %513 = vst.msk [vmem:[#allocation2 + $0x188] sm:$0xff] %vm16828_vm0, %v451_v41  ;;  %v386_v50 = vrot.slane %v306_v45, 7  ;;  %5295 = vmatprep.subr.bf16.mxu0 %v16824_v10 }
 0x1b0   : > { %v11494_v33 = vpack.c.bf16 %v1843_v29, %v1843_v29  ;;  %v11493_v34 = vpack.c.bf16 %v1842_v30, %v1842_v30  ;;  %3219 = vst.msk [vmem:[#allocation3 + $0x154] sm:$0xf] %vm16827_vm2, %v11645_v22  ;;  %3220 = vst.msk [vmem:[#allocation3 + $0x15c] sm:$0xf] %vm16827_vm2, %v11646_v24  ;;  %v1477_v16 = vld [vmem:[#allocation2 + $0x7] sm:$0xff]  ;;  %v12236_v18 = vld [vmem:[%s16821_s1 + $0x50] sm:$0xff]  }
 0x1b1   : > { %3510 = vst.msk [vmem:[#allocation4 + $0x13c] sm:$0xf] %vm16827_vm2, %v11645_v22  ;;  %3511 = vst.msk [vmem:[#allocation4 + $0x144] sm:$0xf] %vm16827_vm2, %v11646_v24  ;;  %2797 = vrot.lane.b32.xlu1 %v13199_v27, %s12563_s9  ;;  %2795 = vrot.lane.b32.xlu0 %v13202_v32, %s12563_s9  ;;  %v387_v58 = vsel %vm339_vm1, %v385_v31, %v386_v50  ;;  %v467_v63 = vsel %vm339_vm1, %v386_v50, 0.0  ;;  %v2907_v17 = vld [vmem:[#allocation2 + $0x9] sm:$0xff]  ;;  %v13263_v19 = vpack.c.bf16 %v1477_v16, %v1477_v16 }
 0x1b2   : > { %v2951_v40 = vld [vmem:[#allocation2 + $0x169] sm:$0xff]  ;;  %2083 = vst.msk [vmem:[#allocation4 + $0x148] sm:$0xf] %vm16827_vm2, %v11494_v33  ;;  %2082 = vst.msk [vmem:[#allocation4 + $0x140] sm:$0xf] %vm16827_vm2, %v11493_v34  ;;  %4624 = vmatpush1.bf16.msra.mxu1 %v12231_v35  ;;  %v2952_v56 = vld [vmem:[#allocation2 + $0x171] sm:$0xff]  ;;  %v13265_v21 = vpack.c.bf16 %v2907_v17, %v2907_v17 }
 0x1b3   : > { %v2565_v42 = vld [vmem:[#allocation2 + $0x170] sm:$0xff]  ;;  %1791 = vst.msk [vmem:[#allocation3 + $0x158] sm:$0xf] %vm16827_vm2, %v11493_v34  ;;  %1792 = vst.msk [vmem:[#allocation3 + $0x160] sm:$0xf] %vm16827_vm2, %v11494_v33  ;;  %v11647_v44 = vpack.c.bf16 %v2951_v40, %v2951_v40  ;;  %4633 = vmatprep.subr.bf16.mxu1 %v16824_v10  ;;  %v2566_v0 = vld [vmem:[#allocation2 + $0x178] sm:$0xff]  ;;  %v11648_v3 = vpack.c.bf16 %v2952_v56, %v2952_v56 }
 0x1b4   : > { %v1844_v43 = vld [vmem:[#allocation2 + $0x16f] sm:$0xff]  ;;  %v13221_v46 = vpack.c.bf16 %v2565_v42, %v2565_v42  ;;  %514 = vst.msk [vmem:[#allocation2 + $0x190] sm:$0xff] %vm16828_vm0, %v387_v58  ;;  %515 = vst.msk [vmem:[#allocation2 + $0x198] sm:$0xff] %vm16828_vm0, %v467_v63  ;;  %v13244_v6 = vpack.c.bf16 %v2566_v0, %v2566_v0  ;;  %v1845_v9 = vld [vmem:[#allocation2 + $0x177] sm:$0xff] }
 0x1b5   : > { %v11495_v47 = vpack.c.bf16 %v1844_v43, %v1844_v43  ;;  %3221 = vst.msk [vmem:[#allocation3 + $0x164] sm:$0xf] %vm16827_vm2, %v11647_v44  ;;  %3512 = vst.msk [vmem:[#allocation4 + $0x14c] sm:$0xf] %vm16827_vm2, %v11647_v44  ;;  %v11496_v13 = vpack.c.bf16 %v1845_v9, %v1845_v9  ;;  %v12237_v31 = vld [vmem:[%s16821_s1 + $0x48] sm:$0xff]   ;;  %v2091_v33 = vld [vmem:[#allocation2 + $0x10] sm:$0xff] }
 0x1b6   : > { %v2953_v57 = vld [vmem:[#allocation2 + $0x179] sm:$0xff]  ;;  %2799 = vrot.lane.b32.xlu0 %v13221_v46, %s12563_s9  ;;  %4634 = vmatpush2.bf16.msra.mxu1 %v12232_v51  ;;  %3178 = vst.msk [vmem:[#allocation3 + $0xc] sm:$0xf] %vm16827_vm2, %v13240_v2  ;;  %3222 = vst.msk [vmem:[#allocation3 + $0x16c] sm:$0xf] %vm16827_vm2, %v11648_v3  ;;  %v2954_v22 = vld [vmem:[#allocation2 + $0x181] sm:$0xff] }
 0x1b7   : > { %2084 = vst.msk [vmem:[#allocation4 + $0x150] sm:$0xf] %vm16827_vm2, %v11495_v47  ;;  %1793 = vst.msk [vmem:[#allocation3 + $0x168] sm:$0xf] %vm16827_vm2, %v11495_v47  ;;  %v11649_v5 = vpack.c.bf16 %v2953_v57, %v2953_v57  ;;  %v2567_v7 = vld [vmem:[#allocation2 + $0x180] sm:$0xff]  ;;  %4635 = vmatprep.subr.bf16.mxu1 %v16824_v10  ;;  %2801 = vrot.lane.b32.xlu1 %v13244_v6, %s12563_s9  ;;  %v2568_v24 = vld [vmem:[#allocation2 + $0x188] sm:$0xff]  ;;  %v11650_v28 = vpack.c.bf16 %v2954_v22, %v2954_v22 }
 0x1b8   : > { %v1846_v11 = vld [vmem:[#allocation2 + $0x17f] sm:$0xff]  ;;  %v13247_v12 = vpack.c.bf16 %v2567_v7, %v2567_v7  ;;  %3513 = vst.msk [vmem:[#allocation4 + $0x154] sm:$0xf] %vm16827_vm2, %v11648_v3  ;;  %2085 = vst.msk [vmem:[#allocation4 + $0x158] sm:$0xf] %vm16827_vm2, %v11496_v13  ;;  %v1847_v26 = vld [vmem:[#allocation2 + $0x187] sm:$0xff]  ;;  %v13273_v29 = vpack.c.bf16 %v2568_v24, %v2568_v24  ;;  %v11502_v3 = vpack.c.bf16 %v2091_v33, %v2091_v33 }
 0x1b9   : > { %v11497_v15 = vpack.c.bf16 %v1846_v11, %v1846_v11  ;;  %3223 = vst.msk [vmem:[#allocation3 + $0x174] sm:$0xf] %vm16827_vm2, %v11649_v5  ;;  %3514 = vst.msk [vmem:[#allocation4 + $0x15c] sm:$0xf] %vm16827_vm2, %v11649_v5  ;;  %v11498_v30 = vpack.c.bf16 %v1847_v26, %v1847_v26  ;;  %v2090_v34 = vld [vmem:[#allocation2 + $0x8] sm:$0xff]  ;;  %v1479_v56 = vld [vmem:[#allocation2 + $0x17] sm:$0xff] }
 0x1ba   : > { %2803 = vrot.lane.b32.xlu0 %v13247_v12, %s12563_s9  ;;  %4636 = vmatpush2.bf16.msra.mxu1 %v12236_v18  ;;  %1794 = vst.msk [vmem:[#allocation3 + $0x170] sm:$0xf] %vm16827_vm2, %v11496_v13  ;;  %1748 = vst.msk [vmem:[#allocation3] sm:$0xf] %vm16827_vm2, %v13263_v19  ;;  %v12240_v57 = vld [vmem:[%s16821_s1 + $0x40] sm:$0xff]   ;;  %v13303_v63 = vpack.c.bf16 %v1479_v56, %v1479_v56  ;;  %v11501_v5 = vpack.c.bf16 %v2090_v34, %v2090_v34  ;;  %v2096_v11 = vld [vmem:[#allocation2 + $0x38] sm:$0xff] }
 0x1bb   : > { %2086 = vst.msk [vmem:[#allocation4 + $0x160] sm:$0xf] %vm16827_vm2, %v11497_v15  ;;  %1795 = vst.msk [vmem:[#allocation3 + $0x178] sm:$0xf] %vm16827_vm2, %v11497_v15  ;;  %4637 = vmatprep.subr.bf16.mxu1 %v16824_v10  ;;  %2805 = vrot.lane.b32.xlu1 %v13273_v29, %s12563_s9  ;;  %v2955_v35 = vld [vmem:[#allocation2 + $0x189] sm:$0xff]  ;;  %v2956_v40 = vld [vmem:[#allocation2 + $0x191] sm:$0xff]  ;;  %v11507_v17 = vpack.c.bf16 %v2096_v11, %v2096_v11 }
 0x1bc   : > { %3177 = vst.msk [vmem:[#allocation3 + $0x4] sm:$0xf] %vm16827_vm2, %v13265_v21  ;;  %3224 = vst.msk [vmem:[#allocation3 + $0x17c] sm:$0xf] %vm16827_vm2, %v11650_v28  ;;  %v2957_v41 = vld [vmem:[#allocation2 + $0x199] sm:$0xff]  ;;  %v11651_v42 = vpack.c.bf16 %v2955_v35, %v2955_v35  ;;  %v11652_v43 = vpack.c.bf16 %v2956_v40, %v2956_v40  ;;  %v2569_v47 = vld [vmem:[#allocation2 + $0x190] sm:$0xff] }
 0x1bd   : > { %3515 = vst.msk [vmem:[#allocation4 + $0x164] sm:$0xf] %vm16827_vm2, %v11650_v28  ;;  %2087 = vst.msk [vmem:[#allocation4 + $0x168] sm:$0xf] %vm16827_vm2, %v11498_v30  ;;  %v11653_v44 = vpack.c.bf16 %v2957_v41, %v2957_v41  ;;  %v2570_v45 = vld [vmem:[#allocation2 + $0x198] sm:$0xff]  ;;  %v13292_v52 = vpack.c.bf16 %v2569_v47, %v2569_v47  ;;  %v1848_v55 = vld [vmem:[#allocation2 + $0x18f] sm:$0xff] }
 0x1be   : > { %1796 = vst.msk [vmem:[#allocation3 + $0x180] sm:$0xf] %vm16827_vm2, %v11498_v30  ;;  %4638 = vmatpush2.bf16.msra.mxu1 %v12237_v31  ;;  %v1849_v50 = vld [vmem:[#allocation2 + $0x197] sm:$0xff]  ;;  %v13290_v51 = vpack.c.bf16 %v2570_v45, %v2570_v45  ;;  %3225 = vst.msk [vmem:[#allocation3 + $0x184] sm:$0xf] %vm16827_vm2, %v11651_v42  ;;  %v11499_v58 = vpack.c.bf16 %v1848_v55, %v1848_v55  ;;  %v1528_v0 = vld [vmem:[#allocation2 + $0x19f] sm:$0xff] }
 0x1bf   : > { %4639 = vmatprep.subr.bf16.mxu1 %v16824_v10  ;;  %v11500_v53 = vpack.c.bf16 %v1849_v50, %v1849_v50  ;;  %3226 = vst.msk [vmem:[#allocation3 + $0x18c] sm:$0xf] %vm16827_vm2, %v11652_v43  ;;  %3227 = vst.msk [vmem:[#allocation3 + $0x194] sm:$0xf] %vm16827_vm2, %v11653_v44  ;;  %2807 = vrot.lane.b32.xlu0 %v13292_v52, %s12563_s9  ;;  %v11450_v7 = vpack.c.bf16 %v1528_v0, %v1528_v0  ;;  %v2097_v9 = vld [vmem:[#allocation2 + $0x40] sm:$0xff]  ;;  %v2092_v15 = vld [vmem:[#allocation2 + $0x18] sm:$0xff] }
 0x1c0   : > { %3516 = vst.msk [vmem:[#allocation4 + $0x16c] sm:$0xf] %vm16827_vm2, %v11651_v42  ;;  %3517 = vst.msk [vmem:[#allocation4 + $0x174] sm:$0xf] %vm16827_vm2, %v11652_v43  ;;  %2809 = vrot.lane.b32.xlu1 %v13290_v51, %s12563_s9  ;;  %v11508_v16 = vpack.c.bf16 %v2097_v9, %v2097_v9  ;;  %v2093_v18 = vld [vmem:[#allocation2 + $0x20] sm:$0xff]  ;;  %v12241_v22 = vld [vmem:[%s16821_s1 + $0x108] sm:$0xff]   ;;  %v11503_v24 = vpack.c.bf16 %v2092_v15, %v2092_v15 }
 0x1c1   : > { %3518 = vst.msk [vmem:[#allocation4 + $0x17c] sm:$0xf] %vm16827_vm2, %v11653_v44  ;;  %2089 = vst.msk [vmem:[#allocation4 + $0x178] sm:$0xf] %vm16827_vm2, %v11500_v53  ;;  %5296 = vmatpush2.bf16.msra.mxu0 %v12241_v22  ;;  %v11504_v26 = vpack.c.bf16 %v2093_v18, %v2093_v18  ;;  %v2099_v28 = vld [vmem:[#allocation2 + $0x50] sm:$0xff]  ;;  %v2098_v30 = vld [vmem:[#allocation2 + $0x48] sm:$0xff] }
 0x1c2   : > { %1798 = vst.msk [vmem:[#allocation3 + $0x190] sm:$0xf] %vm16827_vm2, %v11500_v53  ;;  %2088 = vst.msk [vmem:[#allocation4 + $0x170] sm:$0xf] %vm16827_vm2, %v11499_v58  ;;  %4640 = vmatpush2.bf16.msra.mxu1 %v12240_v57  ;;  %v2746_v13 = vpop.permute.xlu1 %2745  ;;  %5297 = vmatprep.subr.bf16.mxu0 %v16824_v10  ;;  %v12187_v31 = vld [vmem:[#allocation4 + $0x74] ss:$8 sps:$4 sm:$0xff]   ;;  %v11510_v34 = vpack.c.bf16 %v2099_v28, %v2099_v28  ;;  %v11509_v35 = vpack.c.bf16 %v2098_v30, %v2098_v30 }
 0x1c3   : > { %1750 = vst.msk [vmem:[#allocation3 + $0x10] sm:$0xf] %vm16827_vm2, %v13303_v63  ;;  %1797 = vst.msk [vmem:[#allocation3 + $0x188] sm:$0xf] %vm16827_vm2, %v11499_v58  ;;  %8325 = vmatprep.subr.bf16.mxu1 %v16824_v10  ;;  %2306 = vrot.lane.b32.xlu0 %v11501_v5, %s12563_s9  ;;  %v2095_v40 = vld [vmem:[#allocation2 + $0x30] sm:$0xff]  ;;  %v2094_v41 = vld [vmem:[#allocation2 + $0x28] sm:$0xff] }
 0x1c4   : > { %1799 = vst.msk [vmem:[#allocation3 + $0x198] sm:$0xf] %vm16827_vm2, %v11450_v7  ;;  %2308 = vrot.lane.b32.xlu1 %v11502_v3, %s12563_s9  ;;  %10578 = vmatprep.mubr.msk.bf16.mxu0 %vm16828_vm0, %v12187_v31  ;;  %v12190_v42 = vld [vmem:[#allocation4 + $0x84] ss:$8 sps:$4 sm:$0xff]   ;;  %v11506_v43 = vpack.c.bf16 %v2095_v40, %v2095_v40  ;;  %v11505_v44 = vpack.c.bf16 %v2094_v41, %v2094_v41  ;;  %v2101_v45 = vld [vmem:[#allocation2 + $0x60] sm:$0xff]  ;;  %v2102_v58 = vld [vmem:[#allocation2 + $0x68] sm:$0xff] }
 0x1c5   : > { %2874 = vst.msk [vmem:[#allocation4 + $0x78] sm:$0xf] %vm16826_vm3, %v2746_v13  ;;  %v2100_v47 = vld [vmem:[#allocation2 + $0x58] sm:$0xff]  ;;  %v12250_v50 = vld [vmem:[%s16821_s1 + $0x100] sm:$0xff]   ;;  %v11512_v53 = vpack.c.bf16 %v2101_v45, %v2101_v45  ;;  %v2103_v57 = vld [vmem:[#allocation2 + $0x70] sm:$0xff]  ;;  %v11513_v5 = vpack.c.bf16 %v2102_v58, %v2102_v58 }
 0x1c6   : > { %5298 = vmatpush2.bf16.msra.mxu0 %v12250_v50  ;;  %v11511_v55 = vpack.c.bf16 %v2100_v47, %v2100_v47  ;;  %v12193_v56 = vld [vmem:[#allocation4 + $0x80] ss:$8 sps:$4 sm:$0xff]   ;;  %v12194_v0 = vld [vmem:[#allocation4 + $0x94] ss:$8 sps:$4 sm:$0xff]   ;;  %v11514_v3 = vpack.c.bf16 %v2103_v57, %v2103_v57  ;;  %v12196_v15 = vld [vmem:[#allocation4 + $0x90] ss:$8 sps:$4 sm:$0xff]  }
 0x1c7   : > { %2318 = vrot.lane.b32.xlu0 %v11507_v17, %s12563_s9  ;;  %8910 = vmatprep.subr.bf16.mxu0 %v16824_v10  ;;  %v2105_v7 = vld [vmem:[#allocation2 + $0x80] sm:$0xff]  ;;  %v2104_v9 = vld [vmem:[#allocation2 + $0x78] sm:$0xff]  ;;  %v2106_v17 = vld [vmem:[#allocation2 + $0x88] sm:$0xff] }
 0x1c8   : > { %2320 = vrot.lane.b32.xlu1 %v11508_v16, %s12563_s9  ;;  %v11516_v11 = vpack.c.bf16 %v2105_v7, %v2105_v7  ;;  %v11515_v13 = vpack.c.bf16 %v2104_v9, %v2104_v9  ;;  %v2107_v16 = vld [vmem:[#allocation2 + $0x90] sm:$0xff] }
 0x1c9   : > { %v12197_v18 = vld [vmem:[#allocation4 + $0xa4] ss:$8 sps:$4 sm:$0xff]   ;;  %v11518_v22 = vpack.c.bf16 %v2107_v16, %v2107_v16  ;;  %v12200_v30 = vld [vmem:[#allocation4 + $0xa0] ss:$8 sps:$4 sm:$0xff]  }
 0x1ca   : > { %v2111_v31 = vld [vmem:[#allocation2 + $0xb0] sm:$0xff] }
 0x1cb   : > { %2310 = vrot.lane.b32.xlu0 %v11503_v24, %s12563_s9  ;;  %v11517_v24 = vpack.c.bf16 %v2106_v17, %v2106_v17  ;;  %v11522_v40 = vpack.c.bf16 %v2111_v31, %v2111_v31 }
 0x1cc   : > { %2312 = vrot.lane.b32.xlu1 %v11504_v26, %s12563_s9  ;;  %v12189_v33 = vld [vmem:[#allocation4 + $0x70] ss:$8 sps:$4 sm:$0xff]  }
 0x1cd   : > { %4113 = vmatmul.mubr.bf16.gmra.mxu0 %v12189_v33  ;;  %v2109_v26 = vld [vmem:[#allocation2 + $0xa0] sm:$0xff]  ;;  %v2110_v33 = vld [vmem:[#allocation2 + $0xa8] sm:$0xff] }
 0x1ce   : > { %10579 = vmatprep.mubr.msk.bf16.mxu0 %vm16828_vm0, %v12190_v42  ;;  %v11520_v28 = vpack.c.bf16 %v2109_v26, %v2109_v26  ;;  %v11521_v41 = vpack.c.bf16 %v2110_v33, %v2110_v33 }
 0x1cf   : > { %2322 = vrot.lane.b32.xlu0 %v11509_v35, %s12563_s9 }
 0x1d0   : > { %2324 = vrot.lane.b32.xlu1 %v11510_v34, %s12563_s9  ;;  %v12201_v34 = vld [vmem:[#allocation4 + $0xb4] ss:$8 sps:$4 sm:$0xff]  }
 0x1d3   : > { %2314 = vrot.lane.b32.xlu0 %v11505_v44, %s12563_s9  ;;  %v2112_v44 = vld [vmem:[#allocation2 + $0xb8] sm:$0xff] }
 0x1d4   : > { %2316 = vrot.lane.b32.xlu1 %v11506_v43, %s12563_s9  ;;  %v2113_v43 = vld [vmem:[#allocation2 + $0xc0] sm:$0xff]  ;;  %v11523_v50 = vpack.c.bf16 %v2112_v44, %v2112_v44 }
 0x1d5   : > { %4121 = vmatmul.mubr.bf16.gmra.mxu0 %v12193_v56  ;;  %v11524_v47 = vpack.c.bf16 %v2113_v43, %v2113_v43  ;;  %v2115_v56 = vld [vmem:[#allocation2 + $0xd0] sm:$0xff] }
 0x1d6   : > { %10580 = vmatprep.mubr.msk.bf16.mxu0 %vm16828_vm0, %v12194_v0  ;;  %v11526_v0 = vpack.c.bf16 %v2115_v56, %v2115_v56 }
 0x1d7   : > { %2326 = vrot.lane.b32.xlu0 %v11511_v55, %s12563_s9  ;;  %v2114_v55 = vld [vmem:[#allocation2 + $0xc8] sm:$0xff] }
 0x1d8   : > { %2328 = vrot.lane.b32.xlu1 %v11512_v53, %s12563_s9  ;;  %v12203_v53 = vld [vmem:[#allocation4 + $0xb0] ss:$8 sps:$4 sm:$0xff]   ;;  %v11525_v58 = vpack.c.bf16 %v2114_v55, %v2114_v55 }
 0x1db   : > { %2330 = vrot.lane.b32.xlu0 %v11513_v5, %s12563_s9  ;;  %v2116_v5 = vld [vmem:[#allocation2 + $0xd8] sm:$0xff] }
 0x1dc   : > { %2332 = vrot.lane.b32.xlu1 %v11514_v3, %s12563_s9 }
 0x1dd   : > { %4129 = vmatmul.mubr.bf16.gmra.mxu0 %v12196_v15 }
 0x1de   : > { %10581 = vmatprep.mubr.msk.bf16.mxu0 %vm16828_vm0, %v12197_v18 }
 0x1df   : > { %2334 = vrot.lane.b32.xlu0 %v11515_v13, %s12563_s9 }
 0x1e0   : > { %2336 = vrot.lane.b32.xlu1 %v11516_v11, %s12563_s9  ;;  %v11527_v11 = vpack.c.bf16 %v2116_v5, %v2116_v5  ;;  %v2958_v5 = vld [vmem:[#allocation2 + $0x1a1] sm:$0xff] }
 0x1e3   : > { %2338 = vrot.lane.b32.xlu0 %v11517_v24, %s12563_s9 }
 0x1e4   : > { %2340 = vrot.lane.b32.xlu1 %v11518_v22, %s12563_s9  ;;  %v13351_v35 = vpop.f32.mrf.mxu0 }
 0x1e5   : > { %4137 = vmatmul.mubr.bf16.gmra.mxu0 %v12200_v30 }
 0x1e6   : > { %10582 = vmatprep.mubr.msk.bf16.mxu0 %vm16828_vm0, %v12201_v34  ;;  %v4060_v42 = vpop.f32.mrf.mxu0 }
 0x1e7   : > { %2342 = vrot.lane.b32.xlu0 %v12967_v61, %s12563_s9 }
 0x1e8   : > { %2344 = vrot.lane.b32.xlu1 %v11520_v28, %s12563_s9  ;;  %v13356_v45 = vpop.f32.mrf.mxu0  ;;  %v12205_v28 = vld [vmem:[#allocation4 + $0xc4] ss:$8 sps:$4 sm:$0xff]  }
 0x1ea   : > { %v4063_v61 = vpop.f32.mrf.mxu0 }
 0x1eb   : > { %2346 = vrot.lane.b32.xlu0 %v11521_v41, %s12563_s9 }
 0x1ec   : > { %2348 = vrot.lane.b32.xlu1 %v11522_v40, %s12563_s9  ;;  %v13360_v57 = vpop.f32.mrf.mxu0  ;;  %v12209_v40 = vld [vmem:[#allocation4 + $0xd4] ss:$8 sps:$4 sm:$0xff]  }
 0x1ed   : > { %4145 = vmatmul.mubr.bf16.gmra.mxu0 %v12203_v53  ;;  %v12217_v53 = vld [vmem:[#allocation4 + $0xf4] ss:$8 sps:$4 sm:$0xff]  }
 0x1ee   : > { %v4068_v3 = vpop.f32.mrf.mxu0  ;;  %10583 = vmatprep.mubr.msk.bf16.mxu0 %vm16828_vm0, %v12205_v28 }
 0x1ef   : > { %2350 = vrot.lane.b32.xlu0 %v11523_v50, %s12563_s9 }
 0x1f0   : > { %2352 = vrot.lane.b32.xlu1 %v11524_v47, %s12563_s9  ;;  %v13364_v9 = vpop.f32.mrf.mxu0 }
 0x1f2   : > { %v4071_v13 = vpop.f32.mrf.mxu0 }
 0x1f3   : > { %2354 = vrot.lane.b32.xlu0 %v11525_v58, %s12563_s9  ;;  %v2764_v7 = vpop.permute.xlu0 %2763 }
 0x1f4   : > { %2356 = vrot.lane.b32.xlu1 %v11526_v0, %s12563_s9  ;;  %2883 = vst.msk [vmem:[#allocation4 + $0xc0] sm:$0xf] %vm16826_vm3, %v2764_v7  ;;  %v13370_v16 = vpop.f32.mrf.mxu0 }
 0x1f6   : > { %v4076_v17 = vpop.f32.mrf.mxu0 }
 0x1f7   : > { %2358 = vrot.lane.b32.xlu0 %v11527_v11, %s12563_s9  ;;  %v2766_v15 = vpop.permute.xlu0 %2765  ;;  %v13437_v11 = vpack.c.bf16 %v2958_v5, %v2958_v5 }
 0x1f8   : > { %2360 = vrot.lane.b32.xlu1 %v12998_v23, %s12563_s9  ;;  %2884 = vst.msk [vmem:[#allocation4 + $0xc8] sm:$0xf] %vm16826_vm3, %v2766_v15  ;;  %v13377_v22 = vpop.f32.mrf.mxu0 }
 0x1f9   : > { %3228 = vst.msk [vmem:[#allocation3 + $0x19c] sm:$0xf] %vm16827_vm2, %v13437_v11 }
 0x1fa   : > { %v4079_v24 = vpop.f32.mrf.mxu0 }
 0x1fb   : > { %2362 = vrot.lane.b32.xlu0 %v13010_v36, %s12563_s9  ;;  %v2768_v18 = vpop.permute.xlu0 %2767  ;;  %v2141_v24 = vld [vmem:[#allocation2 + $0x1a0] sm:$0xff] }
 0x1fc   : > { %2364 = vrot.lane.b32.xlu1 %v13025_v54, %s12563_s9  ;;  %2885 = vst.msk [vmem:[#allocation4 + $0xd0] sm:$0xf] %vm16826_vm3, %v2768_v18  ;;  %v13384_v26 = vpop.f32.mrf.mxu0 }
 0x1fe   : > { %v4084_v54 = vpop.f32.mrf.mxu0 }
 0x1ff   : > { %2366 = vrot.lane.b32.xlu0 %v13034_v59, %s12563_s9  ;;  %v2770_v23 = vpop.permute.xlu0 %2769  ;;  %v12207_v36 = vld [vmem:[#allocation4 + $0xc0] ss:$8 sps:$4 sm:$0xff]   ;;  %v11552_v54 = vpack.c.bf16 %v2141_v24, %v2141_v24 }
 0x200   : > { %2368 = vrot.lane.b32.xlu1 %v13052_v20, %s12563_s9  ;;  %2886 = vst.msk [vmem:[#allocation4 + $0xd8] sm:$0xf] %vm16826_vm3, %v2770_v23  ;;  %4153 = vmatmul.mubr.bf16.gmra.mxu0 %v12207_v36  ;;  %v13392_v30 = vpop.f32.mrf.mxu0 }
 0x201   : > { %10584 = vmatprep.mubr.msk.bf16.mxu0 %vm16828_vm0, %v12209_v40 }
 0x202   : > { %v4087_v20 = vpop.f32.mrf.mxu0 }
 0x203   : > { %2370 = vrot.lane.b32.xlu0 %v13071_v39, %s12563_s9  ;;  %v2772_v59 = vpop.permute.xlu0 %2771  ;;  %v3617_v34 = vld [vmem:[#allocation4 + $0xd0] sm:$0xff] }
 0x204   : > { %2372 = vrot.lane.b32.xlu1 %v13088_v48, %s12563_s9  ;;  %2887 = vst.msk [vmem:[#allocation4 + $0xe0] sm:$0xf] %vm16826_vm3, %v2772_v59  ;;  %v13401_v48 = vpop.f32.mrf.mxu0  ;;  %v2142_v59 = vld [vmem:[#allocation2 + $0x1a8] sm:$0xff] }
 0x207   : > { %2374 = vrot.lane.b32.xlu0 %v13069_v38, %s12563_s9  ;;  %v2774_v33 = vpop.permute.xlu0 %2773  ;;  %v3618_v39 = vld [vmem:[#allocation4 + $0xd8] sm:$0xff]  ;;  %v4092_v38 = vpop.f32.mrf.mxu0 }
 0x208   : > { %2376 = vrot.lane.b32.xlu1 %v13109_v4, %s12563_s9  ;;  %2888 = vst.msk [vmem:[#allocation4 + $0xe8] sm:$0xf] %vm16826_vm3, %v2774_v33  ;;  %v10537_v41 = vcombine.low %v3617_v34, %v3618_v39  ;;  %v11553_v33 = vpack.c.bf16 %v2142_v59, %v2142_v59 }
 0x209   : > { %v2778_v31 = vpop.permute.xlu1 %2777  ;;  %v13410_v43 = vpop.f32.mrf.mxu0 }
 0x20a   : > { %2890 = vst.msk [vmem:[#allocation4 + $0xf8] sm:$0xf] %vm16826_vm3, %v2778_v31  ;;  %4161 = vmatmul.mubr.bf16.gmra.mxu0 %v10537_v41  ;;  %v12229_v41 = vld [vmem:[#allocation4 + $0x124] ss:$8 sps:$4 sm:$0xff]  }
 0x20b   : > { %2378 = vrot.lane.b32.xlu0 %v13094_v62, %s12563_s9  ;;  %v2776_v42 = vpop.permute.xlu0 %2775  ;;  %v4095_v62 = vpop.f32.mrf.mxu0 }
 0x20c   : > { %2380 = vrot.lane.b32.xlu1 %v13131_v25, %s12563_s9  ;;  %2889 = vst.msk [vmem:[#allocation4 + $0xf0] sm:$0xf] %vm16826_vm3, %v2776_v42  ;;  %v12212_v25 = vld [vmem:[#allocation4 + $0xe4] ss:$8 sps:$4 sm:$0xff]  }
 0x20d   : > { %v13418_v61 = vpop.f32.mrf.mxu0  ;;  %10585 = vmatprep.mubr.msk.bf16.mxu0 %vm16828_vm0, %v12212_v25 }
 0x20e   : > { %v2782_v4 = vpop.permute.xlu1 %2781  ;;  %16831 = vst [vmem:[#allocation8_spill] sm:$0xff] %v13418_v61 }
 0x20f   : > { %2892 = vst.msk [vmem:[#allocation4 + $0x108] sm:$0xf] %vm16826_vm3, %v2782_v4  ;;  %2382 = vrot.lane.b32.xlu0 %v13117_v14, %s12563_s9  ;;  %v2780_v47 = vpop.permute.xlu0 %2779  ;;  %v12214_v50 = vld [vmem:[#allocation4 + $0xe0] ss:$8 sps:$4 sm:$0xff]   ;;  %v4100_v14 = vpop.f32.mrf.mxu0 }
 0x210   : > { %2384 = vrot.lane.b32.xlu1 %v13147_v37, %s12563_s9  ;;  %2891 = vst.msk [vmem:[#allocation4 + $0x100] sm:$0xf] %vm16826_vm3, %v2780_v47  ;;  %v12234_v47 = vld [vmem:[#allocation4 + $0x134] ss:$8 sps:$4 sm:$0xff]  }
 0x211   : > { %v13426_v55 = vpop.f32.mrf.mxu0  ;;  %v3622_v0 = vld [vmem:[#allocation4 + $0xf8] sm:$0xff] }
 0x212   : > { %v2786_v44 = vpop.permute.xlu1 %2785  ;;  %4169 = vmatmul.mubr.bf16.gmra.mxu0 %v12214_v50  ;;  %16832 = vst [vmem:[#allocation9_spill] sm:$0xff] %v13426_v55 }
 0x213   : > { %2894 = vst.msk [vmem:[#allocation4 + $0x118] sm:$0xf] %vm16826_vm3, %v2786_v44  ;;  %2386 = vrot.lane.b32.xlu0 %v13155_v49, %s12563_s9  ;;  %v2784_v37 = vpop.permute.xlu0 %2783  ;;  %10586 = vmatprep.mubr.msk.bf16.mxu0 %vm16828_vm0, %v12217_v53  ;;  %v4103_v49 = vpop.f32.mrf.mxu0  ;;  %v3621_v56 = vld [vmem:[#allocation4 + $0xf0] sm:$0xff] }
 0x214   : > { %2388 = vrot.lane.b32.xlu1 %v13172_v60, %s12563_s9  ;;  %2893 = vst.msk [vmem:[#allocation4 + $0x110] sm:$0xf] %vm16826_vm3, %v2784_v37  ;;  %v10541_v7 = vcombine.low %v3621_v56, %v3622_v0 }
 0x215   : > { %v13435_v3 = vpop.f32.mrf.mxu0 }
 0x216   : > { %16833 = vst [vmem:[#allocation10_spill] sm:$0xff] %v13435_v3  ;;  %v3624_v23 = vld [vmem:[#allocation4 + $0x108] sm:$0xff] }
 0x217   : > { %2390 = vrot.lane.b32.xlu0 %v13179_v8, %s12563_s9  ;;  %v2788_v60 = vpop.permute.xlu0 %2787  ;;  %v4108_v8 = vpop.f32.mrf.mxu0 }
 0x218   : > { %2392 = vrot.lane.b32.xlu1 %v13202_v32, %s12563_s9  ;;  %2895 = vst.msk [vmem:[#allocation4 + $0x120] sm:$0xf] %vm16826_vm3, %v2788_v60  ;;  %v12220_v32 = vld [vmem:[#allocation4 + $0x104] ss:$8 sps:$4 sm:$0xff]  }
 0x219   : > { %v2790_v58 = vpop.permute.xlu1 %2789  ;;  %v13447_v17 = vpop.f32.mrf.mxu0 }
 0x21a   : > { %2896 = vst.msk [vmem:[#allocation4 + $0x128] sm:$0xf] %vm16826_vm3, %v2790_v58  ;;  %4177 = vmatmul.mubr.bf16.gmra.mxu0 %v10541_v7  ;;  %16834 = vst [vmem:[#allocation11_spill] sm:$0xff] %v13447_v17  ;;  %v12238_v58 = vld [vmem:[#allocation4 + $0x144] ss:$8 sps:$4 sm:$0xff]  }
 0x21b   : > { %2394 = vrot.lane.b32.xlu0 %v13199_v27, %s12563_s9  ;;  %v2792_v15 = vpop.permute.xlu0 %2791  ;;  %10587 = vmatprep.mubr.msk.bf16.mxu0 %vm16828_vm0, %v12220_v32  ;;  %v4111_v27 = vpop.f32.mrf.mxu0  ;;  %v3625_v31 = vld [vmem:[#allocation4 + $0x110] sm:$0xff] }
 0x21c   : > { %2396 = vrot.lane.b32.xlu1 %v13221_v46, %s12563_s9  ;;  %2897 = vst.msk [vmem:[#allocation4 + $0x130] sm:$0xf] %vm16826_vm3, %v2792_v15  ;;  %v3623_v46 = vld [vmem:[#allocation4 + $0x100] sm:$0xff] }
 0x21d   : > { %v10543_v36 = vcombine.low %v3623_v46, %v3624_v23 }
 0x21e   : > { %v2794_v13 = vpop.permute.xlu1 %2793 }
 0x21f   : > { %2898 = vst.msk [vmem:[#allocation4 + $0x138] sm:$0xf] %vm16826_vm3, %v2794_v13  ;;  %2398 = vrot.lane.b32.xlu0 %v13244_v6, %s12563_s9  ;;  %v2143_v6 = vld [vmem:[#allocation2 + $0x1b0] sm:$0xff] }
 0x220   : > { %2400 = vrot.lane.b32.xlu1 %v13247_v12, %s12563_s9  ;;  %v12225_v12 = vld [vmem:[#allocation4 + $0x114] ss:$8 sps:$4 sm:$0xff]  }
 0x221   : > { %v3628_v4 = vld [vmem:[#allocation4 + $0x128] sm:$0xff] }
 0x222   : > { %4185 = vmatmul.mubr.bf16.gmra.mxu0 %v10543_v36 }
 0x223   : > { %v2798_v18 = vpop.permute.xlu1 %2797  ;;  %v2796_v28 = vpop.permute.xlu0 %2795  ;;  %2402 = vrot.lane.b32.xlu0 %v13273_v29, %s12563_s9  ;;  %10588 = vmatprep.mubr.msk.bf16.mxu0 %vm16828_vm0, %v12225_v12  ;;  %v3626_v29 = vld [vmem:[#allocation4 + $0x118] sm:$0xff]  ;;  %v3629_v14 = vld [vmem:[#allocation4 + $0x130] sm:$0xff] }
 0x224   : > { %2900 = vst.msk [vmem:[#allocation4 + $0x148] sm:$0xf] %vm16826_vm3, %v2798_v18  ;;  %2899 = vst.msk [vmem:[#allocation4 + $0x140] sm:$0xf] %vm16826_vm3, %v2796_v28  ;;  %2404 = vrot.lane.b32.xlu1 %v13292_v52, %s12563_s9  ;;  %v11554_v52 = vpack.c.bf16 %v2143_v6, %v2143_v6  ;;  %v10545_v40 = vcombine.low %v3625_v31, %v3626_v29 }
 0x226   : > { %v3630_v37 = vld [vmem:[#allocation4 + $0x138] sm:$0xff] }
 0x227   : > { %2406 = vrot.lane.b32.xlu0 %v13290_v51, %s12563_s9  ;;  %v3627_v51 = vld [vmem:[#allocation4 + $0x120] sm:$0xff]  ;;  %v10549_v56 = vcombine.low %v3629_v14, %v3630_v37 }
 0x228   : > { %v2800_v20 = vpop.permute.xlu0 %2799  ;;  %2408 = vrot.lane.b32.xlu1 %v11552_v54, %s12563_s9  ;;  %v10547_v44 = vcombine.low %v3627_v51, %v3628_v4 }
 0x229   : > { %2901 = vst.msk [vmem:[#allocation4 + $0x150] sm:$0xf] %vm16826_vm3, %v2800_v20  ;;  %v2802_v34 = vpop.permute.xlu1 %2801  ;;  %v12244_v20 = vld [vmem:[#allocation4 + $0x164] ss:$8 sps:$4 sm:$0xff]  }
 0x22a   : > { %2902 = vst.msk [vmem:[#allocation4 + $0x158] sm:$0xf] %vm16826_vm3, %v2802_v34  ;;  %4193 = vmatmul.mubr.bf16.gmra.mxu0 %v10545_v40  ;;  %v12246_v34 = vld [vmem:[#allocation3 + $0x24] ss:$8 sps:$4 sm:$0xff]   ;;  %v12248_v40 = vld [vmem:[#allocation3 + $0x34] ss:$8 sps:$4 sm:$0xff]  }
 0x22b   : > { %2410 = vrot.lane.b32.xlu0 %v11553_v33, %s12563_s9  ;;  %10589 = vmatprep.mubr.msk.bf16.mxu0 %vm16828_vm0, %v12229_v41  ;;  %v3631_v13 = vld [vmem:[#allocation4 + $0x140] sm:$0xff]  ;;  %v3632_v15 = vld [vmem:[#allocation4 + $0x148] sm:$0xff] }
 0x22c   : > { %v2804_v39 = vpop.permute.xlu0 %2803  ;;  %2412 = vrot.lane.b32.xlu1 %v11554_v52, %s12563_s9 }
 0x22d   : > { %2903 = vst.msk [vmem:[#allocation4 + $0x160] sm:$0xf] %vm16826_vm3, %v2804_v39  ;;  %v2806_v38 = vpop.permute.xlu1 %2805 }
 0x22e   : > { %2904 = vst.msk [vmem:[#allocation4 + $0x168] sm:$0xf] %vm16826_vm3, %v2806_v38 }
 0x230   : > { %v3633_v12 = vld [vmem:[#allocation4 + $0x150] sm:$0xff] }
 0x231   : > { %v2808_v62 = vpop.permute.xlu0 %2807  ;;  %v3634_v36 = vld [vmem:[#allocation4 + $0x158] sm:$0xff] }
 0x232   : > { %v2810_v42 = vpop.permute.xlu1 %2809  ;;  %2905 = vst.msk [vmem:[#allocation4 + $0x170] sm:$0xf] %vm16826_vm3, %v2808_v62  ;;  %4201 = vmatmul.mubr.bf16.gmra.mxu0 %v10547_v44  ;;  %v10553_v59 = vcombine.low %v3633_v12, %v3634_v36 }
 0x233   : > { %2906 = vst.msk [vmem:[#allocation4 + $0x178] sm:$0xf] %vm16826_vm3, %v2810_v42  ;;  %10590 = vmatprep.mubr.msk.bf16.mxu0 %vm16828_vm0, %v12234_v47  ;;  %v12251_v42 = vld [vmem:[#allocation4 + $0x174] ss:$8 sps:$4 sm:$0xff]  }
 0x234   : > { %v3635_v41 = vld [vmem:[#allocation4 + $0x160] sm:$0xff] }
 0x235   : > { %v2307_v50 = vpop.permute.xlu0 %2306  ;;  %v3636_v39 = vld [vmem:[#allocation4 + $0x168] sm:$0xff] }
 0x236   : > { %v2309_v25 = vpop.permute.xlu1 %2308  ;;  %2469 = vst.msk [vmem:[#allocation3] sm:$0xf] %vm16826_vm3, %v2307_v50  ;;  %v10555_v4 = vcombine.low %v3635_v41, %v3636_v39  ;;  %v12261_v39 = vld [vmem:[#allocation3 + $0x84] ss:$8 sps:$4 sm:$0xff]  }
 0x237   : > { %2470 = vst.msk [vmem:[#allocation3 + $0x8] sm:$0xf] %vm16826_vm3, %v2309_v25 }
 0x239   : > { %v2319_v49 = vpop.permute.xlu0 %2318  ;;  %v3637_v50 = vld [vmem:[#allocation4 + $0x170] sm:$0xff] }
 0x23a   : > { %v2321_v53 = vpop.permute.xlu1 %2320  ;;  %2475 = vst.msk [vmem:[#allocation3 + $0x30] sm:$0xf] %vm16826_vm3, %v2319_v49  ;;  %4209 = vmatmul.mubr.bf16.gmra.mxu0 %v10549_v56  ;;  %v3638_v14 = vld [vmem:[#allocation4 + $0x178] sm:$0xff] }
 0x23b   : > { %2476 = vst.msk [vmem:[#allocation3 + $0x38] sm:$0xf] %vm16826_vm3, %v2321_v53  ;;  %10591 = vmatprep.mubr.msk.bf16.mxu0 %vm16828_vm0, %v12238_v58  ;;  %v12253_v53 = vld [vmem:[#allocation3 + $0x44] ss:$8 sps:$4 sm:$0xff]   ;;  %v10557_v58 = vcombine.low %v3637_v50, %v3638_v14 }
 0x23d   : > { %v3519_v0 = vld [vmem:[#allocation3] sm:$0xff]  ;;  %v2311_v7 = vpop.permute.xlu0 %2310 }
 0x23e   : > { %v3520_v60 = vld [vmem:[#allocation3 + $0x8] sm:$0xff]  ;;  %v2313_v5 = vpop.permute.xlu1 %2312  ;;  %6050 = vst.msk [vmem:[#allocation3] sm:$0xf] %vm16827_vm2, %v13263_v19  ;;  %7478 = vst.msk [vmem:[#allocation3 + $0x4] sm:$0xf] %vm16827_vm2, %v13265_v21 }
 0x23f   : > { %6051 = vst.msk [vmem:[#allocation3 + $0x8] sm:$0xf] %vm16827_vm2, %v13238_v1  ;;  %7479 = vst.msk [vmem:[#allocation3 + $0xc] sm:$0xf] %vm16827_vm2, %v13240_v2  ;;  %v10596_v8 = vcombine.high %v3519_v0, %v3520_v60  ;;  %v10595_v32 = vcombine.low %v3519_v0, %v3520_v60  ;;  %v10551_v2 = vcombine.low %v3631_v13, %v3632_v15  ;;  %v12242_v19 = vld [vmem:[#allocation4 + $0x154] ss:$8 sps:$4 sm:$0xff]  }
 0x240   : > { %2472 = vst.msk [vmem:[#allocation3 + $0x18] sm:$0xf] %vm16826_vm3, %v2313_v5  ;;  %2471 = vst.msk [vmem:[#allocation3 + $0x10] sm:$0xf] %vm16826_vm3, %v2311_v7 }
 0x241   : > { %10655 = vmatprep.mubr.msk.bf16.mxu1 %vm16828_vm0, %v10596_v8  ;;  %v2323_v46 = vpop.permute.xlu0 %2322  ;;  %v3525_v62 = vld [vmem:[#allocation3 + $0x30] sm:$0xff] }
 0x242   : > { %v2325_v1 = vpop.permute.xlu1 %2324  ;;  %4642 = vmatmul.mubr.bf16.vlgmr.msra.gmra.mxu1 %v10595_v32  ;;  %2477 = vst.msk [vmem:[#allocation3 + $0x40] sm:$0xf] %vm16826_vm3, %v2323_v46  ;;  %4217 = vmatmul.mubr.bf16.gmra.mxu0 %v10551_v2  ;;  %v3526_v44 = vld [vmem:[#allocation3 + $0x38] sm:$0xff] }
 0x243   : > { %2478 = vst.msk [vmem:[#allocation3 + $0x48] sm:$0xf] %vm16826_vm3, %v2325_v1  ;;  %10592 = vmatprep.mubr.msk.bf16.mxu0 %vm16828_vm0, %v12242_v19  ;;  %v10601_v37 = vcombine.low %v3525_v62, %v3526_v44  ;;  %v12255_v32 = vld [vmem:[#allocation3 + $0x54] ss:$8 sps:$4 sm:$0xff]  }
 0x244   : > { %v12263_v44 = vld [vmem:[#allocation3 + $0x94] ss:$8 sps:$4 sm:$0xff]  }
 0x245   : > { %v2315_v18 = vpop.permute.xlu0 %2314 }
 0x246   : > { %v2317_v27 = vpop.permute.xlu1 %2316  ;;  %2473 = vst.msk [vmem:[#allocation3 + $0x20] sm:$0xf] %vm16826_vm3, %v2315_v18 }
 0x247   : > { %v3521_v21 = vld [vmem:[#allocation3 + $0x10] sm:$0xff]  ;;  %v3522_v24 = vld [vmem:[#allocation3 + $0x18] sm:$0xff]  ;;  %2474 = vst.msk [vmem:[#allocation3 + $0x28] sm:$0xf] %vm16826_vm3, %v2317_v27  ;;  %v12257_v27 = vld [vmem:[#allocation3 + $0x64] ss:$8 sps:$4 sm:$0xff]  }
 0x248   : > { %6052 = vst.msk [vmem:[#allocation3 + $0x10] sm:$0xf] %vm16827_vm2, %v13303_v63  ;;  %v10598_v23 = vcombine.high %v3521_v21, %v3522_v24  ;;  %v10597_v28 = vcombine.low %v3521_v21, %v3522_v24 }
 0x249   : > { %v2327_v6 = vpop.permute.xlu0 %2326  ;;  %v3527_v60 = vld [vmem:[#allocation3 + $0x40] sm:$0xff] }
 0x24a   : > { %10656 = vmatprep.mubr.msk.bf16.mxu1 %vm16828_vm0, %v10598_v23  ;;  %v2329_v54 = vpop.permute.xlu1 %2328  ;;  %2479 = vst.msk [vmem:[#allocation3 + $0x50] sm:$0xf] %vm16826_vm3, %v2327_v6  ;;  %4225 = vmatmul.mubr.bf16.gmra.mxu0 %v10553_v59  ;;  %v3528_v0 = vld [vmem:[#allocation3 + $0x48] sm:$0xff]  ;;  %v12259_v6 = vld [vmem:[#allocation3 + $0x74] ss:$8 sps:$4 sm:$0xff]  }
 0x24b   : > { %4650 = vmatmul.mubr.bf16.gmra.mxu1 %v10597_v28  ;;  %2480 = vst.msk [vmem:[#allocation3 + $0x58] sm:$0xf] %vm16826_vm3, %v2329_v54  ;;  %10593 = vmatprep.mubr.msk.bf16.mxu0 %vm16828_vm0, %v12244_v20  ;;  %v10603_v8 = vcombine.low %v3527_v60, %v3528_v0 }
 0x24c   : > { %10657 = vmatprep.mubr.msk.bf16.mxu1 %vm16828_vm0, %v12246_v34  ;;  %v12304_v34 = vld [vmem:[%s16822_s2 + $0x98] sm:$0xff]  }
 0x24d   : > { %v2331_v31 = vpop.permute.xlu0 %2330  ;;  %v3523_v52 = vld [vmem:[#allocation3 + $0x20] sm:$0xff]  ;;  %8326 = vmatpush1.bf16.msra.mxu1 %v12304_v34 }
 0x24e   : > { %v2333_v63 = vpop.permute.xlu1 %2332  ;;  %v3524_v33 = vld [vmem:[#allocation3 + $0x28] sm:$0xff]  ;;  %2481 = vst.msk [vmem:[#allocation3 + $0x60] sm:$0xf] %vm16826_vm3, %v2331_v31  ;;  %8327 = vmatprep.subr.bf16.mxu1 %v16824_v10 }
 0x24f   : > { %2482 = vst.msk [vmem:[#allocation3 + $0x68] sm:$0xf] %vm16826_vm3, %v2333_v63  ;;  %v10599_v29 = vcombine.low %v3523_v52, %v3524_v33 }
 0x251   : > { %v2335_v51 = vpop.permute.xlu0 %2334  ;;  %v3529_v1 = vld [vmem:[#allocation3 + $0x50] sm:$0xff] }
 0x252   : > { %v2337_v38 = vpop.permute.xlu1 %2336  ;;  %2483 = vst.msk [vmem:[#allocation3 + $0x70] sm:$0xf] %vm16826_vm3, %v2335_v51  ;;  %4233 = vmatmul.mubr.bf16.gmra.mxu0 %v10555_v4  ;;  %v3530_v46 = vld [vmem:[#allocation3 + $0x58] sm:$0xff] }
 0x253   : > { %4658 = vmatmul.mubr.bf16.gmra.mxu1 %v10599_v29  ;;  %2484 = vst.msk [vmem:[#allocation3 + $0x78] sm:$0xf] %vm16826_vm3, %v2337_v38  ;;  %10594 = vmatprep.mubr.msk.bf16.mxu0 %vm16828_vm0, %v12251_v42  ;;  %v10605_v21 = vcombine.low %v3529_v1, %v3530_v46  ;;  %v2960_v1 = vld [vmem:[#allocation2 + $0x1b1] sm:$0xff]  ;;  %v1529_v46 = vld [vmem:[#allocation2 + $0x1a7] sm:$0xff] }
 0x254   : > { %10658 = vmatprep.mubr.msk.bf16.mxu1 %vm16828_vm0, %v12248_v40 }
 0x255   : > { %v2339_v25 = vpop.permute.xlu0 %2338  ;;  %v3531_v23 = vld [vmem:[#allocation3 + $0x60] sm:$0xff] }
 0x256   : > { %v2341_v47 = vpop.permute.xlu1 %2340  ;;  %2485 = vst.msk [vmem:[#allocation3 + $0x80] sm:$0xf] %vm16826_vm3, %v2339_v25  ;;  %v3532_v28 = vld [vmem:[#allocation3 + $0x68] sm:$0xff] }
 0x257   : > { %2486 = vst.msk [vmem:[#allocation3 + $0x88] sm:$0xf] %vm16826_vm3, %v2341_v47  ;;  %v10607_v54 = vcombine.low %v3531_v23, %v3532_v28 }
 0x259   : > { %v2343_v56 = vpop.permute.xlu0 %2342  ;;  %v3533_v63 = vld [vmem:[#allocation3 + $0x70] sm:$0xff] }
 0x25a   : > { %v2345_v49 = vpop.permute.xlu1 %2344  ;;  %2487 = vst.msk [vmem:[#allocation3 + $0x90] sm:$0xf] %vm16826_vm3, %v2343_v56  ;;  %4241 = vmatmul.mubr.bf16.gmra.mxu0 %v10557_v58  ;;  %v3534_v31 = vld [vmem:[#allocation3 + $0x78] sm:$0xff]  ;;  %v12308_v56 = vld [vmem:[%s16822_s2 + $0x90] sm:$0xff]   ;;  %v12265_v58 = vld [vmem:[#allocation3 + $0xa4] ss:$8 sps:$4 sm:$0xff]  }
 0x25b   : > { %4666 = vmatmul.mubr.bf16.gmra.mxu1 %v10601_v37  ;;  %2488 = vst.msk [vmem:[#allocation3 + $0x98] sm:$0xf] %vm16826_vm3, %v2345_v49  ;;  %10763 = vmatprep.mubr.msk.bf16.mxu0 %vm16828_vm0, %v12248_v40  ;;  %v10609_v29 = vcombine.low %v3533_v63, %v3534_v31 }
 0x25c   : > { %10659 = vmatprep.mubr.msk.bf16.mxu1 %vm16828_vm0, %v12253_v53  ;;  %8328 = vmatpush1.bf16.msra.mxu1 %v12308_v56 }
 0x25d   : > { %v2347_v7 = vpop.permute.xlu0 %2346  ;;  %v3535_v38 = vld [vmem:[#allocation3 + $0x80] sm:$0xff]  ;;  %8329 = vmatprep.subr.bf16.mxu1 %v16824_v10 }
 0x25e   : > { %v2349_v5 = vpop.permute.xlu1 %2348  ;;  %2489 = vst.msk [vmem:[#allocation3 + $0xa0] sm:$0xf] %vm16826_vm3, %v2347_v7  ;;  %v3536_v51 = vld [vmem:[#allocation3 + $0x88] sm:$0xff] }
 0x25f   : > { %2490 = vst.msk [vmem:[#allocation3 + $0xa8] sm:$0xf] %vm16826_vm3, %v2349_v5  ;;  %v10611_v62 = vcombine.low %v3535_v38, %v3536_v51 }
 0x261   : > { %v2351_v15 = vpop.permute.xlu0 %2350  ;;  %v3537_v50 = vld [vmem:[#allocation3 + $0x90] sm:$0xff] }
 0x262   : > { %v2353_v13 = vpop.permute.xlu1 %2352  ;;  %2491 = vst.msk [vmem:[#allocation3 + $0xb0] sm:$0xf] %vm16826_vm3, %v2351_v15  ;;  %5300 = vmatmul.mubr.bf16.vlgmr.msra.gmra.mxu0 %v10601_v37  ;;  %v3538_v14 = vld [vmem:[#allocation3 + $0x98] sm:$0xff]  ;;  %v1530_v15 = vld [vmem:[#allocation2 + $0x1af] sm:$0xff] }
 0x263   : > { %4674 = vmatmul.mubr.bf16.gmra.mxu1 %v10603_v8  ;;  %2492 = vst.msk [vmem:[#allocation3 + $0xb8] sm:$0xf] %vm16826_vm3, %v2353_v13  ;;  %10764 = vmatprep.mubr.msk.bf16.mxu0 %vm16828_vm0, %v12253_v53  ;;  %v10613_v49 = vcombine.low %v3537_v50, %v3538_v14 }
 0x264   : > { %10660 = vmatprep.mubr.msk.bf16.mxu1 %vm16828_vm0, %v12255_v32 }
 0x265   : > { %v2355_v19 = vpop.permute.xlu0 %2354  ;;  %v3539_v5 = vld [vmem:[#allocation3 + $0xa0] sm:$0xff] }
 0x266   : > { %v2357_v2 = vpop.permute.xlu1 %2356  ;;  %2493 = vst.msk [vmem:[#allocation3 + $0xc0] sm:$0xf] %vm16826_vm3, %v2355_v19  ;;  %v3540_v7 = vld [vmem:[#allocation3 + $0xa8] sm:$0xff]  ;;  %v12267_v19 = vld [vmem:[#allocation3 + $0xb4] ss:$8 sps:$4 sm:$0xff]  }
 0x267   : > { %2494 = vst.msk [vmem:[#allocation3 + $0xc8] sm:$0xf] %vm16826_vm3, %v2357_v2  ;;  %v10615_v13 = vcombine.low %v3539_v5, %v3540_v7 }
 0x269   : > { %v2359_v24 = vpop.permute.xlu0 %2358 }
 0x26a   : > { %v2361_v18 = vpop.permute.xlu1 %2360  ;;  %2495 = vst.msk [vmem:[#allocation3 + $0xd0] sm:$0xf] %vm16826_vm3, %v2359_v24  ;;  %5308 = vmatmul.mubr.bf16.gmra.mxu0 %v10603_v8  ;;  %v2959_v24 = vld [vmem:[#allocation2 + $0x1a9] sm:$0xff] }
 0x26b   : > { %4682 = vmatmul.mubr.bf16.gmra.mxu1 %v10605_v21  ;;  %2496 = vst.msk [vmem:[#allocation3 + $0xd8] sm:$0xf] %vm16826_vm3, %v2361_v18  ;;  %10765 = vmatprep.mubr.msk.bf16.mxu0 %vm16828_vm0, %v12255_v32  ;;  %v11451_v18 = vpack.c.bf16 %v1529_v46, %v1529_v46 }
 0x26c   : > { %10661 = vmatprep.mubr.msk.bf16.mxu1 %vm16828_vm0, %v12257_v27 }
 0x26d   : > { %v2363_v12 = vpop.permute.xlu0 %2362  ;;  %1800 = vst.msk [vmem:[#allocation3 + $0x1a0] sm:$0xf] %vm16827_vm2, %v11451_v18 }
 0x26e   : > { %v2365_v36 = vpop.permute.xlu1 %2364  ;;  %2497 = vst.msk [vmem:[#allocation3 + $0xe0] sm:$0xf] %vm16826_vm3, %v2363_v12 }
 0x26f   : > { %2498 = vst.msk [vmem:[#allocation3 + $0xe8] sm:$0xf] %vm16826_vm3, %v2365_v36  ;;  %v11655_v36 = vpack.c.bf16 %v2959_v24, %v2959_v24  ;;  %v12284_v24 = vld [vmem:[#allocation3 + $0x114] ss:$8 sps:$4 sm:$0xff]  }
 0x271   : > { %v2367_v20 = vpop.permute.xlu0 %2366  ;;  %3229 = vst.msk [vmem:[#allocation3 + $0x1a4] sm:$0xf] %vm16827_vm2, %v11655_v36 }
 0x272   : > { %v2369_v59 = vpop.permute.xlu1 %2368  ;;  %2499 = vst.msk [vmem:[#allocation3 + $0xf0] sm:$0xf] %vm16826_vm3, %v2367_v20  ;;  %5316 = vmatmul.mubr.bf16.gmra.mxu0 %v10605_v21  ;;  %v11452_v21 = vpack.c.bf16 %v1530_v15, %v1530_v15  ;;  %v12274_v56 = vld [vmem:[#allocation3 + $0xd0] ss:$8 sps:$4 sm:$0xff]  }
 0x273   : > { %4690 = vmatmul.mubr.bf16.gmra.mxu1 %v10607_v54  ;;  %2500 = vst.msk [vmem:[#allocation3 + $0xf8] sm:$0xf] %vm16826_vm3, %v2369_v59  ;;  %10766 = vmatprep.mubr.msk.bf16.mxu0 %vm16828_vm0, %v12257_v27  ;;  %v11656_v27 = vpack.c.bf16 %v2960_v1, %v2960_v1 }
 0x274   : > { %10662 = vmatprep.mubr.msk.bf16.mxu1 %vm16828_vm0, %v12259_v6  ;;  %1801 = vst.msk [vmem:[#allocation3 + $0x1a8] sm:$0xf] %vm16827_vm2, %v11452_v21 }
 0x275   : > { %v2371_v33 = vpop.permute.xlu0 %2370  ;;  %3230 = vst.msk [vmem:[#allocation3 + $0x1ac] sm:$0xf] %vm16827_vm2, %v11656_v27 }
 0x276   : > { %v2373_v52 = vpop.permute.xlu1 %2372  ;;  %2501 = vst.msk [vmem:[#allocation3 + $0x100] sm:$0xf] %vm16826_vm3, %v2371_v33  ;;  %v12312_v33 = vld [vmem:[%s16822_s2 + $0x88] sm:$0xff]  }
 0x277   : > { %2502 = vst.msk [vmem:[#allocation3 + $0x108] sm:$0xf] %vm16826_vm3, %v2373_v52  ;;  %8330 = vmatpush1.bf16.msra.mxu1 %v12312_v33 }
 0x278   : > { %8331 = vmatprep.subr.bf16.mxu1 %v16824_v10 }
 0x279   : > { %v2375_v41 = vpop.permute.xlu0 %2374 }
 0x27a   : > { %v2377_v40 = vpop.permute.xlu1 %2376  ;;  %2503 = vst.msk [vmem:[#allocation3 + $0x110] sm:$0xf] %vm16826_vm3, %v2375_v41  ;;  %5324 = vmatmul.mubr.bf16.gmra.mxu0 %v10607_v54  ;;  %v3541_v54 = vld [vmem:[#allocation3 + $0xb0] sm:$0xff] }
 0x27b   : > { %4698 = vmatmul.mubr.bf16.gmra.mxu1 %v10609_v29  ;;  %2504 = vst.msk [vmem:[#allocation3 + $0x118] sm:$0xf] %vm16826_vm3, %v2377_v40  ;;  %10767 = vmatprep.mubr.msk.bf16.mxu0 %vm16828_vm0, %v12259_v6  ;;  %v3542_v6 = vld [vmem:[#allocation3 + $0xb8] sm:$0xff] }
 0x27c   : > { %10663 = vmatprep.mubr.msk.bf16.mxu1 %vm16828_vm0, %v12261_v39  ;;  %v10617_v52 = vcombine.low %v3541_v54, %v3542_v6  ;;  %v12287_v54 = vld [vmem:[#allocation3 + $0x124] ss:$8 sps:$4 sm:$0xff]  }
 0x27d   : > { %v2379_v42 = vpop.permute.xlu0 %2378 }
 0x27e   : > { %v2381_v4 = vpop.permute.xlu1 %2380  ;;  %2505 = vst.msk [vmem:[#allocation3 + $0x120] sm:$0xf] %vm16826_vm3, %v2379_v42 }
 0x27f   : > { %2506 = vst.msk [vmem:[#allocation3 + $0x128] sm:$0xf] %vm16826_vm3, %v2381_v4 }
 0x281   : > { %v2383_v25 = vpop.permute.xlu0 %2382 }
 0x282   : > { %v2385_v47 = vpop.permute.xlu1 %2384  ;;  %2507 = vst.msk [vmem:[#allocation3 + $0x130] sm:$0xf] %vm16826_vm3, %v2383_v25  ;;  %5332 = vmatmul.mubr.bf16.gmra.mxu0 %v10609_v29  ;;  %v12269_v29 = vld [vmem:[#allocation3 + $0xc4] ss:$8 sps:$4 sm:$0xff]   ;;  %v13590_v25 = vld [vmem:[#allocation3 + $0x194] ss:$8 sps:$4 sm:$0xff]  }
 0x283   : > { %4706 = vmatmul.mubr.bf16.gmra.mxu1 %v10611_v62  ;;  %2508 = vst.msk [vmem:[#allocation3 + $0x138] sm:$0xf] %vm16826_vm3, %v2385_v47  ;;  %10768 = vmatprep.mubr.msk.bf16.mxu0 %vm16828_vm0, %v12261_v39  ;;  %v12272_v47 = vld [vmem:[#allocation3 + $0xd4] ss:$8 sps:$4 sm:$0xff]  }
 0x284   : > { %10664 = vmatprep.mubr.msk.bf16.mxu1 %vm16828_vm0, %v12263_v44  ;;  %7529 = vst.msk [vmem:[#allocation3 + $0x19c] sm:$0xf] %vm16827_vm2, %v13437_v11 }
 0x285   : > { %v2387_v53 = vpop.permute.xlu0 %2386 }
 0x286   : > { %v2389_v37 = vpop.permute.xlu1 %2388  ;;  %2509 = vst.msk [vmem:[#allocation3 + $0x140] sm:$0xf] %vm16826_vm3, %v2387_v53 }
 0x287   : > { %2510 = vst.msk [vmem:[#allocation3 + $0x148] sm:$0xf] %vm16826_vm3, %v2389_v37 }
 0x289   : > { %v2391_v0 = vpop.permute.xlu0 %2390 }
 0x28a   : > { %v2393_v60 = vpop.permute.xlu1 %2392  ;;  %2511 = vst.msk [vmem:[#allocation3 + $0x150] sm:$0xf] %vm16826_vm3, %v2391_v0  ;;  %5340 = vmatmul.mubr.bf16.gmra.mxu0 %v10611_v62  ;;  %v12271_v62 = vld [vmem:[#allocation3 + $0xc0] ss:$8 sps:$4 sm:$0xff]  }
 0x28b   : > { %4714 = vmatmul.mubr.bf16.gmra.mxu1 %v10613_v49  ;;  %2512 = vst.msk [vmem:[#allocation3 + $0x158] sm:$0xf] %vm16826_vm3, %v2393_v60  ;;  %10769 = vmatprep.mubr.msk.bf16.mxu0 %vm16828_vm0, %v12263_v44  ;;  %v12313_v0 = vld [vmem:[%s16822_s2 + $0x80] sm:$0xff]  }
 0x28c   : > { %10665 = vmatprep.mubr.msk.bf16.mxu1 %vm16828_vm0, %v12265_v58  ;;  %8332 = vmatpush1.bf16.msra.mxu1 %v12313_v0 }
 0x28d   : > { %v2395_v32 = vpop.permute.xlu0 %2394  ;;  %v13560_v2 = vpop.f32.mrf.mxu0  ;;  %8333 = vmatprep.subr.bf16.mxu1 %v16824_v10 }
 0x28e   : > { %v2397_v8 = vpop.permute.xlu1 %2396  ;;  %2513 = vst.msk [vmem:[#allocation3 + $0x160] sm:$0xf] %vm16826_vm3, %v2395_v32  ;;  %16835 = vst [vmem:[#allocation12_spill] sm:$0xff] %v13560_v2 }
 0x28f   : > { %2514 = vst.msk [vmem:[#allocation3 + $0x168] sm:$0xf] %vm16826_vm3, %v2397_v8  ;;  %v4116_v12 = vpop.f32.mrf.mxu0  ;;  %v12277_v8 = vld [vmem:[#allocation3 + $0xe0] ss:$8 sps:$4 sm:$0xff]  }
 0x291   : > { %v2399_v28 = vpop.permute.xlu0 %2398  ;;  %v13569_v59 = vpop.f32.mrf.mxu0 }
 0x292   : > { %v2401_v23 = vpop.permute.xlu1 %2400  ;;  %2515 = vst.msk [vmem:[#allocation3 + $0x170] sm:$0xf] %vm16826_vm3, %v2399_v28  ;;  %16836 = vst [vmem:[#allocation13_spill] sm:$0xff] %v13569_v59  ;;  %5348 = vmatmul.mubr.bf16.gmra.mxu0 %v10613_v49 }
 0x293   : > { %4722 = vmatmul.mubr.bf16.gmra.mxu1 %v10615_v13  ;;  %2516 = vst.msk [vmem:[#allocation3 + $0x178] sm:$0xf] %vm16826_vm3, %v2401_v23  ;;  %10770 = vmatprep.mubr.msk.bf16.mxu0 %vm16828_vm0, %v12265_v58  ;;  %v4119_v31 = vpop.f32.mrf.mxu0  ;;  %v12275_v58 = vld [vmem:[#allocation3 + $0xe4] ss:$8 sps:$4 sm:$0xff]  }
 0x294   : > { %10666 = vmatprep.mubr.msk.bf16.mxu1 %vm16828_vm0, %v12267_v19 }
 0x295   : > { %v2403_v63 = vpop.permute.xlu0 %2402  ;;  %v13577_v34 = vpop.f32.mrf.mxu0 }
 0x296   : > { %v2405_v20 = vpop.permute.xlu1 %2404  ;;  %2517 = vst.msk [vmem:[#allocation3 + $0x180] sm:$0xf] %vm16826_vm3, %v2403_v63  ;;  %16837 = vst [vmem:[#allocation14_spill] sm:$0xff] %v13577_v34 }
 0x297   : > { %2518 = vst.msk [vmem:[#allocation3 + $0x188] sm:$0xf] %vm16826_vm3, %v2405_v20  ;;  %v4124_v41 = vpop.f32.mrf.mxu0  ;;  %v12315_v20 = vld [vmem:[%s16822_s2 + $0x70] sm:$0xff]  }
 0x299   : > { %v2407_v40 = vpop.permute.xlu0 %2406  ;;  %v13583_v38 = vpop.f32.mrf.mxu0 }
 0x29a   : > { %v2409_v39 = vpop.permute.xlu1 %2408  ;;  %2519 = vst.msk [vmem:[#allocation3 + $0x190] sm:$0xf] %vm16826_vm3, %v2407_v40  ;;  %16838 = vst [vmem:[#allocation15_spill] sm:$0xff] %v13583_v38  ;;  %5356 = vmatmul.mubr.bf16.gmra.mxu0 %v10615_v13  ;;  %v12278_v13 = vld [vmem:[#allocation3 + $0xf4] ss:$8 sps:$4 sm:$0xff]  }
 0x29b   : > { %4730 = vmatmul.mubr.bf16.gmra.mxu1 %v10617_v52  ;;  %2520 = vst.msk [vmem:[#allocation3 + $0x198] sm:$0xf] %vm16826_vm3, %v2409_v39  ;;  %10771 = vmatprep.mubr.msk.bf16.mxu0 %vm16828_vm0, %v12267_v19  ;;  %v4127_v42 = vpop.f32.mrf.mxu0  ;;  %v12280_v19 = vld [vmem:[#allocation3 + $0xf0] ss:$8 sps:$4 sm:$0xff]  }
 0x29c   : > { %10667 = vmatprep.mubr.msk.bf16.mxu1 %vm16828_vm0, %v12269_v29  ;;  %v12293_v42 = vld [vmem:[#allocation3 + $0x144] ss:$8 sps:$4 sm:$0xff]  }
 0x29d   : > { %v2411_v4 = vpop.permute.xlu0 %2410  ;;  %v13588_v44 = vpop.f32.mrf.mxu0 }
 0x29e   : > { %v2413_v51 = vpop.permute.xlu1 %2412  ;;  %2521 = vst.msk [vmem:[#allocation3 + $0x1a0] sm:$0xf] %vm16826_vm3, %v2411_v4  ;;  %16839 = vst [vmem:[#allocation16_spill] sm:$0xff] %v13588_v44 }
 0x29f   : > { %2522 = vst.msk [vmem:[#allocation3 + $0x1a8] sm:$0xf] %vm16826_vm3, %v2413_v51  ;;  %v4132_v50 = vpop.f32.mrf.mxu0  ;;  %v12292_v51 = vld [vmem:[#allocation3 + $0x130] ss:$8 sps:$4 sm:$0xff]  }
 0x2a1   : > { %v13595_v14 = vpop.f32.mrf.mxu0 }
 0x2a2   : > { %16840 = vst [vmem:[#allocation17_spill] sm:$0xff] %v13595_v14  ;;  %5364 = vmatmul.mubr.bf16.gmra.mxu0 %v10617_v52  ;;  %v12289_v52 = vld [vmem:[#allocation3 + $0x120] ss:$8 sps:$4 sm:$0xff]  }
 0x2a3   : > { %4738 = vmatmul.mubr.bf16.gmra.mxu1 %v12271_v62  ;;  %10772 = vmatprep.mubr.msk.bf16.mxu0 %vm16828_vm0, %v12269_v29  ;;  %v4135_v49 = vpop.f32.mrf.mxu0  ;;  %v12290_v29 = vld [vmem:[#allocation3 + $0x134] ss:$8 sps:$4 sm:$0xff]  }
 0x2a4   : > { %10668 = vmatprep.mubr.msk.bf16.mxu1 %vm16828_vm0, %v12272_v47 }
 0x2a5   : > { %v13600_v53 = vld [vmem:[#allocation3 + $0x1a0] sm:$0xff]  ;;  %v13606_v11 = vpop.f32.mrf.mxu0 }
 0x2a6   : > { %v13598_v37 = vld [vmem:[#allocation3 + $0x1a8] sm:$0xff]  ;;  %6102 = vst.msk [vmem:[#allocation3 + $0x1a0] sm:$0xf] %vm16827_vm2, %v11451_v18  ;;  %7530 = vst.msk [vmem:[#allocation3 + $0x1a4] sm:$0xf] %vm16827_vm2, %v11655_v36 }
 0x2a7   : > { %6103 = vst.msk [vmem:[#allocation3 + $0x1a8] sm:$0xf] %vm16827_vm2, %v11452_v21  ;;  %7531 = vst.msk [vmem:[#allocation3 + $0x1ac] sm:$0xf] %vm16827_vm2, %v11656_v27  ;;  %v4140_v60 = vpop.f32.mrf.mxu0  ;;  %v12281_v21 = vld [vmem:[#allocation3 + $0x104] ss:$8 sps:$4 sm:$0xff]   ;;  %v16885_v2 = vcombine.low %v13600_v53, %v13598_v37 }
 0x2a8   : > { %16841 = vst [vmem:[#allocation18_spill] sm:$0xff] %v13606_v11  ;;  %v12314_v27 = vld [vmem:[%s16822_s2 + $0x78] sm:$0xff]   ;;  %v12283_v18 = vld [vmem:[#allocation3 + $0x100] ss:$8 sps:$4 sm:$0xff]  }
 0x2a9   : > { %v13612_v5 = vpop.f32.mrf.mxu0  ;;  %8334 = vmatpush1.bf16.msra.mxu1 %v12314_v27  ;;  %v12286_v36 = vld [vmem:[#allocation3 + $0x110] ss:$8 sps:$4 sm:$0xff]   ;;  %v12296_v60 = vld [vmem:[#allocation3 + $0x154] ss:$8 sps:$4 sm:$0xff]   ;;  %v12317_v27 = vld [vmem:[%s16822_s2 + $0x60] sm:$0xff]  }
 0x2aa   : > { %16842 = vst [vmem:[#allocation19_spill] sm:$0xff] %v13612_v5  ;;  %5372 = vmatmul.mubr.bf16.gmra.mxu0 %v12271_v62  ;;  %8335 = vmatprep.subr.bf16.mxu1 %v16824_v10 }
 0x2ab   : > { %4746 = vmatmul.mubr.bf16.gmra.mxu1 %v12274_v56  ;;  %10773 = vmatprep.mubr.msk.bf16.mxu0 %vm16828_vm0, %v12272_v47  ;;  %v4143_v7 = vpop.f32.mrf.mxu0  ;;  %v12316_v47 = vld [vmem:[%s16822_s2 + $0x68] sm:$0xff]  }
 0x2ac   : > { %10669 = vmatprep.mubr.msk.bf16.mxu1 %vm16828_vm0, %v12275_v58 }
 0x2ad   : > { %v13616_v32 = vpop.f32.mrf.mxu0  ;;  %8336 = vmatpush1.bf16.msra.mxu1 %v12315_v20 }
 0x2ae   : > { %16843 = vst [vmem:[#allocation20_spill] sm:$0xff] %v13616_v32  ;;  %8337 = vmatprep.subr.bf16.mxu1 %v16824_v10  ;;  %v12309_v32 = vld [vmem:[#allocation3 + $0x180] ss:$8 sps:$4 sm:$0xff]  }
 0x2af   : > { %v4148_v15 = vpop.f32.mrf.mxu0 }
 0x2b0   : > { %v516_v15 = vlaneseq }
 0x2b1   : > { %v13619_v1 = vpop.f32.mrf.mxu0  ;;  %8338 = vmatpush1.bf16.msra.mxu1 %v12316_v47 }
 0x2b2   : > { %16844 = vst [vmem:[#allocation21_spill] sm:$0xff] %v13619_v1  ;;  %5380 = vmatmul.mubr.bf16.gmra.mxu0 %v12274_v56  ;;  %8339 = vmatprep.subr.bf16.mxu1 %v16824_v10  ;;  %v12295_v56 = vld [vmem:[#allocation3 + $0x140] ss:$8 sps:$4 sm:$0xff]  }
 0x2b3   : > { %4754 = vmatmul.mubr.bf16.gmra.mxu1 %v12277_v8  ;;  %10774 = vmatprep.mubr.msk.bf16.mxu0 %vm16828_vm0, %v12275_v58  ;;  %v4151_v46 = vpop.f32.mrf.mxu0 }
 0x2b4   : > { %10670 = vmatprep.mubr.msk.bf16.mxu1 %vm16828_vm0, %v12278_v13 }
 0x2b5   : > { %8340 = vmatpush1.bf16.msra.mxu1 %v12317_v27 }
 0x2b6   : > { %8349 = vmatprep.subr.bf16.mxu1 %v16824_v10 }
 0x2ba   : > { %5388 = vmatmul.mubr.bf16.gmra.mxu0 %v12277_v8 }
 0x2bb   : > { %4762 = vmatmul.mubr.bf16.gmra.mxu1 %v12280_v19  ;;  %10775 = vmatprep.mubr.msk.bf16.mxu0 %vm16828_vm0, %v12278_v13  ;;  %v12298_v13 = vld [vmem:[#allocation3 + $0x150] ss:$8 sps:$4 sm:$0xff]  }
 0x2bc   : > { %10671 = vmatprep.mubr.msk.bf16.mxu1 %vm16828_vm0, %v12281_v21 }
 0x2c0   : > { %v13629_v23 = vpop.f32.mrf.mxu0 }
 0x2c1   : > { %16845 = vst [vmem:[#allocation22_spill] sm:$0xff] %v13629_v23 }
 0x2c2   : > { %5396 = vmatmul.mubr.bf16.gmra.mxu0 %v12280_v19  ;;  %v4156_v28 = vpop.f32.mrf.mxu0  ;;  %v12299_v19 = vld [vmem:[#allocation3 + $0x164] ss:$8 sps:$4 sm:$0xff]  }
 0x2c3   : > { %4770 = vmatmul.mubr.bf16.gmra.mxu1 %v12283_v18  ;;  %10776 = vmatprep.mubr.msk.bf16.mxu0 %vm16828_vm0, %v12281_v21 }
 0x2c4   : > { %10672 = vmatprep.mubr.msk.bf16.mxu1 %vm16828_vm0, %v12284_v24  ;;  %v13632_v12 = vpop.f32.mrf.mxu0 }
 0x2c5   : > { %16846 = vst [vmem:[#allocation23_spill] sm:$0xff] %v13632_v12 }
 0x2c6   : > { %v4159_v6 = vpop.f32.mrf.mxu0 }
 0x2c7   : > { %v12301_v6 = vld [vmem:[#allocation3 + $0x160] ss:$8 sps:$4 sm:$0xff]  }
 0x2ca   : > { %v13638_v63 = vpop.f32.mrf.mxu0  ;;  %5404 = vmatmul.mubr.bf16.gmra.mxu0 %v12283_v18  ;;  %v13670_v18 = vshrl.u32 %v516_v15, 7 }
 0x2cb   : > { %4778 = vmatmul.mubr.bf16.gmra.mxu1 %v12286_v36  ;;  %16847 = vst [vmem:[#allocation24_spill] sm:$0xff] %v13638_v63  ;;  %10777 = vmatprep.mubr.msk.bf16.mxu0 %vm16828_vm0, %v12284_v24 }
 0x2cc   : > { %10673 = vmatprep.mubr.msk.bf16.mxu1 %vm16828_vm0, %v12287_v54  ;;  %v4164_v31 = vpop.f32.mrf.mxu0  ;;  %v518_v28 = vadd.s32 8, %v13670_v18  ;;  %v14160_v34 = vadd.s32 160, %v13670_v18 }
 0x2cd   : > { %v12302_v31 = vld [vmem:[#allocation3 + $0x174] ss:$8 sps:$4 sm:$0xff]  }
 0x2ce   : > { %v13642_v33 = vpop.f32.mrf.mxu0 }
 0x2cf   : > { %16848 = vst [vmem:[#allocation25_spill] sm:$0xff] %v13642_v33 }
 0x2d0   : > { %v4167_v39 = vpop.f32.mrf.mxu0 }
 0x2d2   : > { %v13645_v40 = vpop.f32.mrf.mxu0  ;;  %5412 = vmatmul.mubr.bf16.gmra.mxu0 %v12286_v36 }
 0x2d3   : > { %4786 = vmatmul.mubr.bf16.gmra.mxu1 %v12289_v52  ;;  %16849 = vst [vmem:[#allocation26_spill] sm:$0xff] %v13645_v40  ;;  %10778 = vmatprep.mubr.msk.bf16.mxu0 %vm16828_vm0, %v12287_v54  ;;  %v519_v54 = vadd.s32 16, %v13670_v18  ;;  %v13796_v40 = vld [vmem:[#allocation3 + $0x190] sm:$0xff] }
 0x2d4   : > { %10674 = vmatprep.mubr.msk.bf16.mxu1 %vm16828_vm0, %v12290_v29  ;;  %v4172_v41 = vpop.f32.mrf.mxu0 }
 0x2d5   : > { %v13684_v39 = vmul.u32.u64.low 2863311531, %v518_v28  ;;  %v13685_v41 = vmul.u32.u64.high 2863311531, %v518_v28, %v13684_v39 }
 0x2d6   : > { %v13648_v4 = vpop.f32.mrf.mxu0  ;;  %v12318_v39 = vld [vmem:[%s16822_s2 + $0xb8] sm:$0xff]  }
 0x2d7   : > { %16850 = vst [vmem:[#allocation27_spill] sm:$0xff] %v13648_v4  ;;  %8350 = vmatpush2.bf16.msra.mxu1 %v12318_v39 }
 0x2d8   : > { %v4175_v62 = vpop.f32.mrf.mxu0  ;;  %8351 = vmatprep.subr.bf16.mxu1 %v16824_v10 }
 0x2da   : > { %v13654_v50 = vpop.f32.mrf.mxu0  ;;  %5420 = vmatmul.mubr.bf16.gmra.mxu0 %v12289_v52 }
 0x2db   : > { %4794 = vmatmul.mubr.bf16.gmra.mxu1 %v12292_v51  ;;  %16851 = vst [vmem:[#allocation28_spill] sm:$0xff] %v13654_v50  ;;  %10779 = vmatprep.mubr.msk.bf16.mxu0 %vm16828_vm0, %v12290_v29  ;;  %v13681_v52 = vmul.u32.u64.low 2863311531, %v13670_v18  ;;  %v13682_v29 = vmul.u32.u64.high 2863311531, %v13670_v18, %v13681_v52 }
 0x2dc   : > { %10675 = vmatprep.mubr.msk.bf16.mxu1 %vm16828_vm0, %v12293_v42  ;;  %v4180_v49 = vpop.f32.mrf.mxu0  ;;  %v13710_v52 = vadd.s32 40, %v13670_v18 }
 0x2dd   : > { %v13695_v49 = vadd.s32 24, %v13670_v18  ;;  %v571_v15 = vshrl.u32 %v13682_v29, 4 }
 0x2de   : > { %v13658_v58 = vpop.f32.mrf.mxu0 }
 0x2df   : > { %16852 = vst [vmem:[#allocation29_spill] sm:$0xff] %v13658_v58 }
 0x2e0   : > { %v4183_v0 = vpop.f32.mrf.mxu0 }
 0x2e1   : > { %v13698_v0 = vadd.s32 32, %v13670_v18 }
 0x2e2   : > { %v13661_v7 = vpop.f32.mrf.mxu0  ;;  %5428 = vmatmul.mubr.bf16.gmra.mxu0 %v12292_v51 }
 0x2e3   : > { %4802 = vmatmul.mubr.bf16.gmra.mxu1 %v12295_v56  ;;  %16853 = vst [vmem:[#allocation30_spill] sm:$0xff] %v13661_v7  ;;  %10780 = vmatprep.mubr.msk.bf16.mxu0 %vm16828_vm0, %v12293_v42  ;;  %v13688_v42 = vmul.u32.u64.low 2863311531, %v519_v54  ;;  %v13689_v62 = vmul.u32.u64.high 2863311531, %v519_v54, %v13688_v42 }
 0x2e4   : > { %10676 = vmatprep.mubr.msk.bf16.mxu1 %vm16828_vm0, %v12296_v60  ;;  %v4188_v8 = vpop.f32.mrf.mxu0 }
 0x2e6   : > { %v13664_v46 = vpop.f32.mrf.mxu0 }
 0x2e7   : > { %16854 = vst [vmem:[#allocation31_spill] sm:$0xff] %v13664_v46  ;;  %v12306_v46 = vld [vmem:[#allocation3 + $0x184] ss:$8 sps:$4 sm:$0xff]  }
 0x2e8   : > { %v4191_v21 = vpop.f32.mrf.mxu0 }
 0x2e9   : > { %v582_v21 = vshrl.u32 %v13685_v41, 4  ;;  %v572_v41 = vmul.u32 24, %v571_v15 }
 0x2ea   : > { %v13672_v24 = vpop.f32.mrf.mxu0  ;;  %5436 = vmatmul.mubr.bf16.gmra.mxu0 %v12295_v56 }
 0x2eb   : > { %4810 = vmatmul.mubr.bf16.gmra.mxu1 %v12298_v13  ;;  %16855 = vst [vmem:[#allocation32_spill] sm:$0xff] %v13672_v24  ;;  %10781 = vmatprep.mubr.msk.bf16.mxu0 %vm16828_vm0, %v12296_v60  ;;  %v12305_v60 = vld [vmem:[#allocation3 + $0x170] ss:$8 sps:$4 sm:$0xff]  }
 0x2ec   : > { %10677 = vmatprep.mubr.msk.bf16.mxu1 %vm16828_vm0, %v12299_v19  ;;  %v4196_v36 = vpop.f32.mrf.mxu0 }
 0x2ed   : > { %v593_v36 = vshrl.u32 %v13689_v62, 4  ;;  %v13723_v62 = vadd.s32 48, %v13670_v18 }
 0x2ee   : > { %v13678_v20 = vpop.f32.mrf.mxu0 }
 0x2ef   : > { %16856 = vst [vmem:[#allocation33_spill] sm:$0xff] %v13678_v20 }
 0x2f0   : > { %v4199_v51 = vpop.f32.mrf.mxu0 }
 0x2f1   : > { %v13716_v51 = vmul.u32.u64.low 2863311531, %v13698_v0  ;;  %v13717_v29 = vmul.u32.u64.high 2863311531, %v13698_v0, %v13716_v51 }
 0x2f2   : > { %v13691_v47 = vpop.f32.mrf.mxu0  ;;  %5444 = vmatmul.mubr.bf16.gmra.mxu0 %v12298_v13  ;;  %v13705_v27 = vmul.u32.u64.low 2863311531, %v13695_v49  ;;  %v13706_v13 = vmul.u32.u64.high 2863311531, %v13695_v49, %v13705_v27  ;;  %v13731_v51 = vadd.s32 56, %v13670_v18 }
 0x2f3   : > { %4818 = vmatmul.mubr.bf16.gmra.mxu1 %v12301_v6  ;;  %16857 = vst [vmem:[#allocation34_spill] sm:$0xff] %v13691_v47  ;;  %10782 = vmatprep.mubr.msk.bf16.mxu0 %vm16828_vm0, %v12299_v19 }
 0x2f4   : > { %10678 = vmatprep.mubr.msk.bf16.mxu1 %vm16828_vm0, %v12302_v31  ;;  %v4204_v56 = vpop.f32.mrf.mxu0  ;;  %v13753_v20 = vmul.u32.u64.low 2863311531, %v13731_v51  ;;  %v13754_v24 = vmul.u32.u64.high 2863311531, %v13731_v51, %v13753_v20 }
 0x2f5   : > { %v583_v56 = vmul.u32 24, %v582_v21  ;;  %v13773_v20 = vadd.s32 88, %v13670_v18 }
 0x2f6   : > { %v13700_v8 = vpop.f32.mrf.mxu0 }
 0x2f7   : > { %16858 = vst [vmem:[#allocation35_spill] sm:$0xff] %v13700_v8  ;;  %v13727_v8 = vmul.u32.u64.low 2863311531, %v13710_v52  ;;  %v13728_v47 = vmul.u32.u64.high 2863311531, %v13710_v52, %v13727_v8  ;;  %v13743_v39 = vsub.s32 %v518_v28, %v583_v56  ;;  %v615_v28 = vshrl.u32 %v13717_v29, 4 }
 0x2f8   : > { %v4207_v19 = vpop.f32.mrf.mxu0 }
 0x2f9   : > { %v594_v19 = vmul.u32 24, %v593_v36  ;;  %v604_v36 = vshrl.u32 %v13706_v13, 4  ;;  %vm1094_vm6 = vcmp.ne.s32.totalorder %v13743_v39, 0  ;;  %vm1142_vm7 = vcmp.lt.s32.totalorder %v13743_v39, 0 }
 0x2fa   : > { %v13719_v42 = vpop.f32.mrf.mxu0  ;;  %5452 = vmatmul.mubr.bf16.gmra.mxu0 %v12301_v6  ;;  %v13734_v6 = vadd.s32 64, %v13670_v18  ;;  %vm13820_vm11 = vmand %vm1142_vm7, %vm1094_vm6 }
 0x2fb   : > { %4826 = vmatmul.mubr.bf16.gmra.mxu1 %v12305_v60  ;;  %16859 = vst [vmem:[#allocation36_spill] sm:$0xff] %v13719_v42  ;;  %10783 = vmatprep.mubr.msk.bf16.mxu0 %vm16828_vm0, %v12302_v31  ;;  %v13739_v31 = vsub.s32 %v13670_v18, %v572_v41  ;;  %v13750_v42 = vsub.s32 %v519_v54, %v594_v19  ;;  %v13757_v41 = vadd.s32 72, %v13670_v18  ;;  %v605_v19 = vmul.u32 24, %v604_v36 }
 0x2fc   : > { %v4212_v27 = vpop.f32.mrf.mxu0  ;;  %v13761_v13 = vmul.u32.u64.low 2863311531, %v13734_v6  ;;  %v13762_v56 = vmul.u32.u64.high 2863311531, %v13734_v6, %v13761_v13 }
 0x2fd   : > { %v13747_v27 = vmul.u32.u64.low 2863311531, %v13723_v62  ;;  %v13748_v8 = vmul.u32.u64.high 2863311531, %v13723_v62, %v13747_v27  ;;  %vm1093_vm4 = vcmp.ne.s32.totalorder %v13739_v31, 0  ;;  %vm1141_vm5 = vcmp.lt.s32.totalorder %v13739_v31, 0 }
 0x2fe   : > { %v13736_v15 = vpop.f32.mrf.mxu0  ;;  %v13765_v27 = vadd.s32 80, %v13670_v18  ;;  %v1237_v54 = vadd.s32 24, %v13739_v31  ;;  %vm1095_vm8 = vcmp.ne.s32.totalorder %v13750_v42, 0  ;;  %v626_v13 = vshrl.u32 %v13728_v47, 4  ;;  %vm13804_vm10 = vmand %vm1141_vm5, %vm1093_vm4 }
 0x2ff   : > { %16860 = vst [vmem:[#allocation37_spill] sm:$0xff] %v13736_v15  ;;  %vm1143_vm9 = vcmp.lt.s32.totalorder %v13750_v42, 0  ;;  %v13825_v63 = vsub.s32 %v13695_v49, %v605_v19  ;;  %v637_v12 = vshrl.u32 %v13748_v8, 4  ;;  %v648_v49 = vshrl.u32 %v13754_v24, 4  ;;  %v12319_v8 = vld [vmem:[%s16822_s2 + $0xb0] sm:$0xff]  }
 0x300   : > { %v4215_v10 = vpop.f32.mrf.mxu0  ;;  %v13791_v50 = vmul.u32.u64.low 2863311531, %v13765_v27  ;;  %v13792_v4 = vmul.u32.u64.high 2863311531, %v13765_v27, %v13791_v50  ;;  %vm13836_vm12 = vmand %vm1143_vm9, %vm1095_vm8  ;;  %v627_v11 = vmul.u32 24, %v626_v13  ;;  %v659_v44 = vshrl.u32 %v13762_v56, 4  ;;  %8352 = vmatpush2.bf16.msra.mxu1 %v12319_v8 }
 0x301   : > { %v13859_v13 = vsel %vm13804_vm10, %v1237_v54, %v13739_v31  ;;  %vm1096_vm13 = vcmp.ne.s32.totalorder %v13825_v63, 0  ;;  %vm1144_vm14 = vcmp.lt.s32.totalorder %v13825_v63, 0  ;;  %v638_v33 = vmul.u32 24, %v637_v12 }
 0x302   : > { %v13741_v21 = vpop.f32.mrf.mxu1  ;;  %v13767_v10 = vpop.f32.mrf.mxu0  ;;  %5460 = vmatmul.mubr.bf16.gmra.mxu0 %v12305_v60  ;;  %v13781_v60 = vadd.s32 96, %v13670_v18  ;;  %v16870_v31 = vmov 0   ;;  %v13882_v54 = vadd.s32 24, %v13825_v63  ;;  %v681_v47 = vshrl.u32 %v13792_v4, 4  ;;  %vm13958_vm8 = vmand %vm1144_vm14, %vm1096_vm13 }
 0x303   : > { %16861 = vst [vmem:[#allocation38_spill] sm:$0xff] %v13767_v10  ;;  %10784 = vmatprep.mubr.msk.bf16.mxu0 %vm16828_vm0, %v12306_v46  ;;  %v13786_v10 = vmul.u32.u64.low 2863311531, %v13757_v41  ;;  %v13787_v7 = vmul.u32.u64.high 2863311531, %v13757_v41, %v13786_v10  ;;  %v616_v46 = vmul.u32 24, %v615_v28  ;;  %v1239_v28 = vadd.s32 24, %v13750_v42  ;;  %8353 = vmatprep.subr.bf16.mxu1 %v16870_v31 }
 0x304   : > { %v4645_v15 = vpop.f32.mrf.mxu1  ;;  %v13811_v50 = vmul.u32.u64.low 2863311531, %v13773_v20  ;;  %v13812_v10 = vmul.u32.u64.high 2863311531, %v13773_v20, %v13811_v50  ;;  %v13829_v23 = vmul.u32.u64.low 2863311531, %v13781_v60  ;;  %v13830_v1 = vmul.u32.u64.high 2863311531, %v13781_v60, %v13829_v23 }
 0x305   : > { %v4220_v15 = vpop.f32.mrf.mxu0  ;;  %v13849_v14 = vsub.s32 %v13698_v0, %v616_v46  ;;  %v13867_v0 = vadd.s32 104, %v13670_v18  ;;  %v13885_v46 = vsub.s32 %v13710_v52, %v627_v11  ;;  %v13891_v12 = vadd.s32 112, %v13670_v18 }
 0x306   : > { %v13775_v29 = vpop.f32.mrf.mxu1  ;;  %v13798_v15 = vld [vmem:[#allocation3 + $0x198] sm:$0xff]  ;;  %v13901_v52 = vadd.s32 120, %v13670_v18  ;;  %v13910_v4 = vsub.s32 %v13723_v62, %v638_v33  ;;  %v13923_v62 = vadd.s32 128, %v13670_v18 }
 0x307   : > { %v13794_v36 = vpop.f32.mrf.mxu0  ;;  %v10747_v23 = vcombine.low %v13796_v40, %v13798_v15  ;;  %v670_v15 = vshrl.u32 %v13787_v7, 4  ;;  %vm1097_vm15 = vcmp.ne.s32.totalorder %v13849_v14, 0  ;;  %vm1145_vm1 = vcmp.lt.s32.totalorder %v13849_v14, 0 }
 0x308   : > { %v4648_v58 = vpop.f32.mrf.mxu1  ;;  %16862 = vst [vmem:[#allocation39_spill] sm:$0xff] %v13794_v36  ;;  %v13897_v8 = vmul.u32.u64.low 2863311531, %v13867_v0  ;;  %v13898_v11 = vmul.u32.u64.high 2863311531, %v13867_v0, %v13897_v8  ;;  %vm1098_vm4 = vcmp.ne.s32.totalorder %v13885_v46, 0  ;;  %vm1146_vm5 = vcmp.lt.s32.totalorder %v13885_v46, 0  ;;  %vm13976_vm10 = vmand %vm1145_vm1, %vm1097_vm15 }
 0x309   : > { %v1238_v58 = vadd.s32 24, %v13743_v39  ;;  %v4223_v50 = vpop.f32.mrf.mxu0  ;;  %v682_v8 = vmul.u32 24, %v681_v47  ;;  %vm1099_vm6 = vcmp.ne.s32.totalorder %v13910_v4, 0  ;;  %vm1147_vm7 = vcmp.lt.s32.totalorder %v13910_v4, 0  ;;  %vm13992_vm13 = vmand %vm1146_vm5, %vm1098_vm4 }
 0x30a   : > { %v10750_v50 = vcombine.high %v13600_v53, %v13598_v37  ;;  %5468 = vmatmul.mubr.bf16.gmra.mxu0 %v12309_v32  ;;  %v13876_v32 = vsel %vm13836_vm12, %v1239_v28, %v13750_v42  ;;  %v660_v42 = vmul.u32 24, %v659_v44  ;;  %v692_v28 = vshrl.u32 %v13812_v10, 4  ;;  %vm14008_vm15 = vmand %vm1147_vm7, %vm1099_vm6 }
 0x30b   : > { %v13814_v36 = vpop.f32.mrf.mxu1  ;;  %v13852_v38 = vpop.f32.mrf.mxu0  ;;  %v13864_v40 = vsel %vm13820_vm11, %v1238_v58, %v13743_v39  ;;  %10785 = vmatprep.mubr.msk.bf16.mxu0 %vm16828_vm0, %v13590_v25  ;;  %v649_v25 = vmul.u32 24, %v648_v49  ;;  %v13907_v44 = vadd.s32 24, %v13849_v14  ;;  %v703_v49 = vshrl.u32 %v13830_v1, 4 }
 0x30c   : > { %16869 = vst [vmem:[#allocation40_spill] sm:$0xff] %v13852_v38  ;;  %v13928_v1 = vsub.s32 %v13734_v6, %v660_v42  ;;  %v13946_v42 = vadd.s32 24, %v13910_v4  ;;  %vm1381_vm6 = vcmp.le.s32.totalorder %v13859_v13, 16 }
 0x30d   : > { %v4653_v19 = vpop.f32.mrf.mxu1  ;;  %v4228_v39 = vpop.f32.mrf.mxu0  ;;  %v704_v47 = vmul.u32 24, %v703_v49 }
 0x30e   : > { %v13916_v19 = vsub.s32 %v13731_v51, %v649_v25  ;;  %v671_v39 = vmul.u32 24, %v670_v15  ;;  %v13931_v51 = vmul.u32.u64.low 2863311531, %v13901_v52  ;;  %v13932_v25 = vmul.u32.u64.high 2863311531, %v13901_v52, %v13931_v51 }
 0x30f   : > { %v13869_v56 = vpop.f32.mrf.mxu1  ;;  %v13893_v58 = vpop.f32.mrf.mxu0  ;;  %v13964_v51 = vsub.s32 %v13765_v27, %v682_v8  ;;  %vm1101_vm12 = vcmp.ne.s32.totalorder %v13928_v1, 0  ;;  %v714_v8 = vshrl.u32 %v13898_v11, 4  ;;  %vm1149_vm14 = vcmp.lt.s32.totalorder %v13928_v1, 0 }
 0x310   : > { %16871 = vst [vmem:[#allocation41_spill] sm:$0xff] %v13893_v58  ;;  %v13919_v24 = vmul.u32.u64.low 2863311531, %v13891_v12  ;;  %v13920_v58 = vmul.u32.u64.high 2863311531, %v13891_v12, %v13919_v24  ;;  %vm1100_vm9 = vcmp.ne.s32.totalorder %v13916_v19, 0  ;;  %vm1148_vm11 = vcmp.lt.s32.totalorder %v13916_v19, 0 }
 0x311   : > { %v4656_v5 = vpop.f32.mrf.mxu1  ;;  %v4231_v10 = vpop.f32.mrf.mxu0  ;;  %v13938_v24 = vadd.s32 24, %v13885_v46  ;;  %vm14027_vm7 = vmand %vm1148_vm11, %vm1100_vm9  ;;  %v1244_v59 = vadd.s32 24, %v13916_v19  ;;  %vm1103_vm3 = vcmp.ne.s32.totalorder %v13964_v51, 0  ;;  %vm1151_vm2 = vcmp.lt.s32.totalorder %v13964_v51, 0 }
 0x312   : > { %5476 = vmatmul.mubr.bf16.gmra.mxu0 %v10747_v23  ;;  %v693_v10 = vmul.u32 24, %v692_v28  ;;  %v13942_v23 = vadd.s32 136, %v13670_v18  ;;  %v13949_v28 = vsub.s32 %v13757_v41, %v671_v39  ;;  %vm14044_vm9 = vmand %vm1149_vm14, %vm1101_vm12  ;;  %v715_v3 = vmul.u32 24, %v714_v8 }
 0x313   : > { %v13903_v7 = vpop.f32.mrf.mxu1  ;;  %v13925_v33 = vpop.f32.mrf.mxu0  ;;  %10786 = vmatprep.mubr.msk.bf16.mxu0 %vm16828_vm0, %v10750_v50  ;;  %v13952_v50 = vadd.s32 144, %v13670_v18  ;;  %v13967_v41 = vmul.u32.u64.low 2863311531, %v13923_v62  ;;  %v13968_v39 = vmul.u32.u64.high 2863311531, %v13923_v62, %v13967_v41  ;;  %v14070_v8 = vsel %vm13958_vm8, %v13882_v54, %v13825_v63 }
 0x314   : > { %16872 = vst [vmem:[#allocation42_spill] sm:$0xff] %v13925_v33  ;;  %v13983_v27 = vsub.s32 %v13773_v20, %v693_v10  ;;  %v13998_v33 = vsub.s32 %v13781_v60, %v704_v47  ;;  %v14001_v20 = vmul.u32.u64.low 2863311531, %v13942_v23  ;;  %v14002_v10 = vmul.u32.u64.high 2863311531, %v13942_v23, %v14001_v20 }
 0x315   : > { %v4661_v5 = vpop.f32.mrf.mxu1  ;;  %v4236_v6 = vpop.f32.mrf.mxu0  ;;  %vm1102_vm1 = vcmp.ne.s32.totalorder %v13949_v28, 0  ;;  %vm1150_vm4 = vcmp.lt.s32.totalorder %v13949_v28, 0  ;;  %v14015_v60 = vmul.u32.u64.low 2863311531, %v13952_v50  ;;  %v14016_v47 = vmul.u32.u64.high 2863311531, %v13952_v50, %v14015_v60  ;;  %v12320_v20 = vld [vmem:[%s16822_s2 + $0xa8] sm:$0xff]  }
 0x316   : > { %v725_v60 = vshrl.u32 %v13920_v58, 4  ;;  %vm1104_vm11 = vcmp.ne.s32.totalorder %v13983_v27, 0  ;;  %vm1152_vm0 = vcmp.lt.s32.totalorder %v13983_v27, 0  ;;  %v736_v58 = vshrl.u32 %v13932_v25, 4  ;;  %8354 = vmatpush2.bf16.msra.mxu1 %v12320_v20  ;;  %vm14058_vm12 = vmand %vm1150_vm4, %vm1102_vm1 }
 0x317   : > { %v13934_v15 = vpop.f32.mrf.mxu1  ;;  %v13970_v6 = vpop.f32.mrf.mxu0  ;;  %v1246_v53 = vadd.s32 24, %v13949_v28  ;;  %vm1105_vm14 = vcmp.ne.s32.totalorder %v13998_v33, 0  ;;  %vm1153_vm5 = vcmp.lt.s32.totalorder %v13998_v33, 0  ;;  %8355 = vmatprep.subr.bf16.mxu1 %v16870_v31  ;;  %v14076_v20 = vsel %vm13976_vm10, %v13907_v44, %v13849_v14  ;;  %vm14082_vm1 = vmand %vm1151_vm2, %vm1103_vm3 }
 0x318   : > { %16875 = vst [vmem:[#allocation43_spill] sm:$0xff] %v13970_v6  ;;  %v1248_v49 = vadd.s32 24, %v13983_v27  ;;  %vm1334_vm8 = vcmp.ge.s32.totalorder %v13864_v40, 1  ;;  %vm1382_vm4 = vcmp.le.s32.totalorder %v13864_v40, 16  ;;  %v14094_v14 = vsel %vm13992_vm13, %v13938_v24, %v13885_v46  ;;  %vm14100_vm2 = vmand %vm1152_vm0, %vm1104_vm11 }
 0x319   : > { %v4664_v5 = vpop.f32.mrf.mxu1  ;;  %v4239_v11 = vpop.f32.mrf.mxu0  ;;  %v1249_v44 = vadd.s32 24, %v13998_v33  ;;  %v14112_v46 = vsel %vm14008_vm15, %v13946_v42, %v13910_v4  ;;  %vm14118_vm0 = vmand %vm1153_vm5, %vm1105_vm14  ;;  %v14123_v6 = vsub.s32 %v13867_v0, %v715_v3  ;;  %vm1335_vm3 = vcmp.ge.s32.totalorder %v13876_v32, 1 }
 0x31a   : > { %5484 = vmatmul.mubr.bf16.gmra.mxu0 %v16885_v2  ;;  %v1245_v2 = vadd.s32 24, %v13928_v1  ;;  %v726_v5 = vmul.u32 24, %v725_v60  ;;  %v14126_v60 = vadd.s32 152, %v13670_v18  ;;  %vm1383_vm10 = vcmp.le.s32.totalorder %v13876_v32, 16 }
 0x31b   : > { %v13986_v41 = vpop.f32.mrf.mxu1  ;;  %v14135_v38 = vsel %vm14027_vm7, %v1244_v59, %v13916_v19  ;;  %v14145_v0 = vsel %vm14058_vm12, %v1246_v53, %v13949_v28  ;;  %v758_v4 = vshrl.u32 %v14002_v10, 4  ;;  %v14156_v59 = vsel %vm14100_vm2, %v1248_v49, %v13983_v27 }
 0x31c   : > { %v14140_v3 = vsel %vm14044_vm9, %v1245_v2, %v13928_v1  ;;  %v769_v17 = vshrl.u32 %v14016_v47, 4  ;;  %v4644_v19 = vadd.f32 %v13741_v21, %v13351_v35  ;;  %v14167_v55 = vsel %vm14118_vm0, %v1249_v44, %v13998_v33  ;;  %vm14228_vm0 = vmand %vm1334_vm8, %vm1382_vm4 }
 0x31d   : > { %v4669_v11 = vpop.f32.mrf.mxu1  ;;  %v14170_v28 = vsub.s32 %v13891_v12, %v726_v5  ;;  %vm1106_vm13 = vcmp.ne.s32.totalorder %v14123_v6, 0  ;;  %v14177_v47 = vmul.u32.u64.low 2863311531, %v14126_v60  ;;  %v14178_v2 = vmul.u32.u64.high 2863311531, %v14126_v60, %v14177_v47  ;;  %vm14261_vm9 = vmand %vm1335_vm3, %vm1383_vm10 }
 0x31e   : > { %v14035_v11 = vpop.f32.mrf.mxu0  ;;  %vm1154_vm15 = vcmp.lt.s32.totalorder %v14123_v6, 0  ;;  %v1250_v33 = vadd.s32 24, %v14123_v6  ;;  %v759_v12 = vmul.u32 24, %v758_v4  ;;  %vm16897_vm5 = vcmp.ge.s32.totalorder %v13859_v13, 1  ;;  %v12321_v47 = vld [vmem:[%s16822_s2 + $0xa0] sm:$0xff]  }
 0x31f   : > { %16884 = vst [vmem:[#allocation44_spill] sm:$0xff] %v14035_v11  ;;  %v14051_v11 = vpop.f32.mrf.mxu1  ;;  %vm14188_vm7 = vmand %vm16897_vm5, %vm1381_vm6  ;;  %v770_v53 = vmul.u32 24, %v769_v17  ;;  %v14197_v54 = vadd.s32 168, %v13670_v18  ;;  %v4647_v44 = vadd.f32 %v13775_v29, %v13356_v45  ;;  %vm1384_vm6 = vcmp.le.s32.totalorder %v14070_v8, 16  ;;  %8356 = vmatpush2.bf16.msra.mxu1 %v12321_v47 }
 0x320   : > { %v4244_v25 = vpop.f32.mrf.mxu0  ;;  %vm1107_vm11 = vcmp.ne.s32.totalorder %v14170_v28, 0  ;;  %vm1155_vm12 = vcmp.lt.s32.totalorder %v14170_v28, 0  ;;  %v14213_v45 = vadd.s32 176, %v13670_v18  ;;  %vm16900_vm2 = vcmask 523264   ;;  %vm14251_vm5 = vmand %vm1154_vm15, %vm1106_vm13  ;;  %9568 = vmatprep.subr.bf16.mxu1 %v16870_v31 }
 0x321   : > { %v1247_v25 = vadd.s32 24, %v13964_v51  ;;  %v4672_v63 = vpop.f32.mrf.mxu1  ;;  %v4652_v40 = vadd.f32 %v13814_v36, %v13360_v57  ;;  %vm1337_vm8 = vcmp.ge.s32.totalorder %v14076_v20, 1  ;;  %vm1385_vm4 = vcmp.le.s32.totalorder %v14076_v20, 16  ;;  %vm14281_vm3 = vmand %vm1155_vm12, %vm1107_vm11 }
 0x322   : > { %v747_v63 = vshrl.u32 %v13968_v39, 4  ;;  %v14106_v61 = vpop.f32.mrf.mxu0  ;;  %v737_v39 = vmul.u32 24, %v736_v58  ;;  %v780_v37 = vshrl.u32 %v14178_v2, 4  ;;  %vm16909_vm15 = vcmask 523264  }
 0x323   : > { %16894 = vst [vmem:[#allocation45_spill] sm:$0xff] %v14106_v61  ;;  %v14128_v61 = vpop.f32.mrf.mxu1  ;;  %v14151_v58 = vsel %vm14082_vm1, %v1247_v25, %v13964_v51  ;;  %v14193_v25 = vmul.u32.u64.low 2863311531, %v14160_v34  ;;  %v14194_v49 = vmul.u32.u64.high 2863311531, %v14160_v34, %v14193_v25  ;;  %v4655_v17 = vadd.f32 %v13869_v56, %v13364_v9 }
 0x324   : > { %v4247_v42 = vpop.f32.mrf.mxu0  ;;  %v748_v51 = vmul.u32 24, %v747_v63  ;;  %v14174_v10 = vsub.s32 %v13901_v52, %v737_v39  ;;  %v14209_v39 = vadd.s32 24, %v14170_v28  ;;  %v14271_v25 = vadd.s32 184, %v13670_v18 }
 0x325   : > { %v4677_v1 = vpop.f32.mrf.mxu1 }
 0x326   : > { %v5301_v27 = vpop.f32.mrf.mxu0  ;;  %v14205_v13 = vsub.s32 %v13923_v62, %v748_v51  ;;  %vm1108_vm14 = vcmp.ne.s32.totalorder %v14174_v10, 0  ;;  %vm1156_vm1 = vcmp.lt.s32.totalorder %v14174_v10, 0  ;;  %v14221_v62 = vsub.s32 %v13942_v23, %v759_v12 }
 0x327   : > { %v14180_v35 = vpop.f32.mrf.mxu1  ;;  %v5492_v21 = vadd.f32 %v5301_v27, %v4644_v19  ;;  %v1252_v1 = vadd.s32 24, %v14174_v10  ;;  %v14234_v51 = vsub.s32 %v13952_v50, %v770_v53  ;;  %vm14298_vm11 = vmand %vm1156_vm1, %vm1108_vm14 }
 0x328   : > { %v5303_v52 = vpop.f32.mrf.mxu0  ;;  %v14237_v27 = vmul.u32.u64.low 2863311531, %v14197_v54  ;;  %v14238_v23 = vmul.u32.u64.high 2863311531, %v14197_v54, %v14237_v27  ;;  %vm1110_vm10 = vcmp.ne.s32.totalorder %v14221_v62, 0  ;;  %vm1158_vm13 = vcmp.lt.s32.totalorder %v14221_v62, 0 }
 0x329   : > { %v5540_v5 = vmax.f32 %v5492_v21, 0.0  ;;  %v4680_v63 = vpop.f32.mrf.mxu1  ;;  %v14267_v52 = vmul.u32.u64.low 2863311531, %v14213_v45  ;;  %v14268_v53 = vmul.u32.u64.high 2863311531, %v14213_v45, %v14267_v52  ;;  %vm1111_vm12 = vcmp.ne.s32.totalorder %v14234_v51, 0  ;;  %vm14323_vm1 = vmand %vm1158_vm13, %vm1110_vm10 }
 0x32a   : > { %v5304_v24 = vpop.f32.mrf.mxu0  ;;  %v1253_v27 = vadd.s32 24, %v14205_v13  ;;  %v1255_v56 = vadd.s32 24, %v14234_v51  ;;  %v802_v2 = vshrl.u32 %v14238_v23, 4  ;;  %vm1339_vm10 = vcmp.ge.s32.totalorder %v14112_v46, 1 }
 0x32b   : > { %v5684_v29 = vsel %vm14188_vm7, %v5540_v5, 0.0  ;;  %v14217_v4 = vpop.f32.mrf.mxu1  ;;  %v5493_v42 = vadd.f32 %v5304_v24, %v4647_v44  ;;  %vm1109_vm7 = vcmp.ne.s32.totalorder %v14205_v13, 0  ;;  %v14292_v24 = vsel %vm14251_vm5, %v1250_v33, %v14123_v6 }
 0x32c   : > { %5732 = vst.msk [vmem:[#allocation2 + $0x20] sm:$0xff] %vm16900_vm2, %v5684_v29  ;;  %v5306_v19 = vpop.f32.mrf.mxu0  ;;  %vm1157_vm2 = vcmp.lt.s32.totalorder %v14205_v13, 0  ;;  %vm1338_vm5 = vcmp.ge.s32.totalorder %v14094_v14, 1  ;;  %vm1387_vm13 = vcmp.le.s32.totalorder %v14112_v46, 16  ;;  %v813_v33 = vshrl.u32 %v14268_v53, 4 }
 0x32d   : > { %v5541_v21 = vmax.f32 %v5493_v42, 0.0  ;;  %v4685_v12 = vpop.f32.mrf.mxu1  ;;  %v791_v42 = vshrl.u32 %v14194_v49, 4  ;;  %vm14313_vm14 = vmand %vm1157_vm2, %vm1109_vm7  ;;  %v1254_v49 = vadd.s32 24, %v14221_v62  ;;  %vm16918_vm7 = vcmask 523264  }
 0x32e   : > { %v5309_v36 = vpop.f32.mrf.mxu0  ;;  %vm16919_vm2 = vcmp.ge.s32.totalorder %v14070_v8, 1  ;;  %v14372_v8 = vsel %vm14313_vm14, %v1253_v27, %v14205_v13  ;;  %vm1389_vm14 = vcmp.le.s32.totalorder %v14140_v3, 16  ;;  %v14676_v46 = vadd.s32 232, %v13670_v18 }
 0x32f   : > { %v5685_v44 = vsel %vm14228_vm0, %v5541_v21, 0.0  ;;  %v14275_v5 = vpop.f32.mrf.mxu1  ;;  %v5494_v32 = vadd.f32 %v5309_v36, %v4652_v40  ;;  %vm1159_vm0 = vcmp.lt.s32.totalorder %v14234_v51, 0  ;;  %v781_v40 = vmul.u32 24, %v780_v37 }
 0x330   : > { %5733 = vst.msk [vmem:[#allocation2 + $0x28] sm:$0xff] %vm16909_vm15, %v5685_v44  ;;  %v5311_v63 = vpop.f32.mrf.mxu0  ;;  %vm1386_vm15 = vcmp.le.s32.totalorder %v14094_v14, 16  ;;  %v14329_v21 = vmul.u32.u64.low 2863311531, %v14271_v25  ;;  %v14330_v12 = vmul.u32.u64.high 2863311531, %v14271_v25, %v14329_v21  ;;  %v14345_v37 = vsel %vm14298_vm11, %v1252_v1, %v14174_v10 }
 0x331   : > { %v5542_v19 = vmax.f32 %v5494_v32, 0.0  ;;  %v4688_v6 = vpop.f32.mrf.mxu1  ;;  %v14340_v32 = vsel %vm14281_vm3, %v14209_v39, %v14170_v28  ;;  %vm14360_vm3 = vmand %vm16919_vm2, %vm1384_vm6  ;;  %v792_v1 = vmul.u32 24, %v791_v42  ;;  %v14375_v42 = vadd.s32 192, %v13670_v18 }
 0x332   : > { %v5312_v47 = vpop.f32.mrf.mxu0  ;;  %vm1340_vm6 = vcmp.ge.s32.totalorder %v14135_v38, 1  ;;  %vm1388_vm11 = vcmp.le.s32.totalorder %v14135_v38, 16  ;;  %v14391_v13 = vsub.s32 %v14126_v60, %v781_v40  ;;  %v4663_v28 = vadd.f32 %v13934_v15, %v13377_v22 }
 0x333   : > { %v5686_v50 = vsel %vm14261_vm9, %v5542_v19, 0.0  ;;  %v14334_v36 = vpop.f32.mrf.mxu1  ;;  %v5495_v52 = vadd.f32 %v5312_v47, %v4655_v17  ;;  %v6824_v44 = vld [vmem:[#allocation2 + $0x20] sm:$0xff]  ;;  %vm14351_vm9 = vmand %vm1159_vm0, %vm1111_vm12  ;;  %v4660_v19 = vadd.f32 %v13903_v7, %v13370_v16  ;;  %v14383_v16 = vsel %vm14323_vm1, %v1254_v49, %v14221_v62 }
 0x334   : > { %v6104_v63 = vld [vmem:[#allocation2 + $0x1f] sm:$0xff]  ;;  %5734 = vst.msk [vmem:[#allocation2 + $0x30] sm:$0xff] %vm16918_vm7, %v5686_v50  ;;  %v5314_v10 = vpop.f32.mrf.mxu0  ;;  %v11861_v39 = vpack.c.bf16 %v6824_v44, %v6824_v44  ;;  %v14388_v7 = vsel %vm14351_vm9, %v1255_v56, %v14234_v51  ;;  %vm16922_vm12 = vcmask 519168   ;;  %vm1341_vm0 = vcmp.ge.s32.totalorder %v14140_v3, 1  ;;  %vm16923_vm1 = vmmov %vm16918_vm7 }
 0x335   : > { %v11759_v29 = vpack.c.bf16 %v6104_v63, %v6104_v63  ;;  %v5783_v17 = vld [vmem:[#allocation2 + $0x1f] sm:$0xff]  ;;  %v5543_v6 = vmax.f32 %v5495_v52, 0.0  ;;  %v4693_v47 = vpop.f32.mrf.mxu1  ;;  %v14402_v51 = vadd.s32 200, %v13670_v18  ;;  %vm14409_vm9 = vmand %vm1337_vm8, %vm1385_vm4  ;;  %v14414_v52 = vsub.s32 %v14160_v34, %v792_v1 }
 0x336   : > { %7016 = vrot.lane.b32.xlu0 %v11861_v39, %s12563_s9  ;;  %v5317_v23 = vpop.f32.mrf.mxu0  ;;  %v11708_v56 = vpack.c.bf16 %v5783_v17, %v5783_v17  ;;  %v803_v44 = vmul.u32 24, %v802_v2  ;;  %v12322_v63 = vld [vmem:[%s16822_s2 + $0x38] sm:$0xff]   ;;  %vm16926_vm8 = vmmov %vm16922_vm12  ;;  %vm1112_vm4 = vcmp.ne.s32.totalorder %v14391_v13, 0  ;;  %v814_v1 = vmul.u32 24, %v813_v33 }
 0x337   : > { %6344 = vst.msk [vmem:[#allocation4] sm:$0xf] %vm16922_vm12, %v11759_v29  ;;  %v5687_v27 = vsel %vm14360_vm3, %v5543_v6, 0.0  ;;  %v14397_v21 = vpop.f32.mrf.mxu1  ;;  %v5496_v9 = vadd.f32 %v5317_v23, %v4660_v19  ;;  %v6825_v62 = vld [vmem:[#allocation2 + $0x28] sm:$0xff]  ;;  %v14422_v39 = vmul.u32.u64.low 2863311531, %v14375_v42  ;;  %v14423_v29 = vmul.u32.u64.high 2863311531, %v14375_v42, %v14422_v39  ;;  %vm16927_vm7 = vmmov %vm16926_vm8  ;;  %8911 = vmatpush1.bf16.msra.mxu0 %v12322_v63 }
 0x338   : > { %v6105_v60 = vld [vmem:[#allocation2 + $0x27] sm:$0xff]  ;;  %5735 = vst.msk [vmem:[#allocation2 + $0x38] sm:$0xff] %vm16923_vm1, %v5687_v27  ;;  %v5319_v40 = vpop.f32.mrf.mxu0  ;;  %v11862_v50 = vpack.c.bf16 %v6825_v62, %v6825_v62  ;;  %v824_v2 = vshrl.u32 %v14330_v12, 4  ;;  %v14435_v47 = vmul.u32.u64.low 2863311531, %v14402_v51  ;;  %v14436_v23 = vmul.u32.u64.high 2863311531, %v14402_v51, %v14435_v47  ;;  %8912 = vmatprep.subr.bf16.mxu0 %v16870_v31  ;;  %vm16928_vm2 = vmmov %vm16923_vm1 }
 0x339   : > { %v7532_v49 = vld [vmem:[#allocation2 + $0x21] sm:$0xff]  ;;  %v11760_v57 = vpack.c.bf16 %v6105_v60, %v6105_v60  ;;  %v5544_v10 = vmax.f32 %v5496_v9, 0.0  ;;  %v4696_v20 = vpop.f32.mrf.mxu1  ;;  %6053 = vst.msk [vmem:[#allocation3 + $0x18] sm:$0xf] %vm16926_vm8, %v11708_v56  ;;  %vm14444_vm3 = vmand %vm1338_vm5, %vm1386_vm15  ;;  %vm1160_vm12 = vcmp.lt.s32.totalorder %v14391_v13, 0  ;;  %v14450_v60 = vsub.s32 %v14197_v54, %v803_v44 }
 0x33a   : > { %7018 = vrot.lane.b32.xlu1 %v11862_v50, %s12563_s9  ;;  %v5320_v34 = vpop.f32.mrf.mxu0  ;;  %v11963_v22 = vpack.c.bf16 %v7532_v49, %v7532_v49  ;;  %vm16931_vm1 = vmmov %vm16927_vm7  ;;  %v4668_v56 = vadd.f32 %v13986_v41, %v13384_v26  ;;  %v14456_v14 = vadd.s32 24, %v14391_v13  ;;  %vm1113_vm5 = vcmp.ne.s32.totalorder %v14414_v52, 0 }
 0x33b   : > { %6345 = vst.msk [vmem:[#allocation4 + $0x8] sm:$0xf] %vm16927_vm7, %v11760_v57  ;;  %v5688_v15 = vsel %vm14409_vm9, %v5544_v10, 0.0  ;;  %v14432_v17 = vpop.f32.mrf.mxu1  ;;  %v5497_v19 = vadd.f32 %v5320_v34, %v4663_v28  ;;  %v6826_v6 = vld [vmem:[#allocation2 + $0x30] sm:$0xff]  ;;  %vm1161_vm15 = vcmp.lt.s32.totalorder %v14414_v52, 0  ;;  %v825_v54 = vmul.u32 24, %v824_v2  ;;  %vm16932_vm9 = vmmov %vm16931_vm1 }
 0x33c   : > { %v6106_v27 = vld [vmem:[#allocation2 + $0x2f] sm:$0xff]  ;;  %5736 = vst.msk [vmem:[#allocation2 + $0x40] sm:$0xff] %vm16928_vm2, %v5688_v15  ;;  %v5322_v33 = vpop.f32.mrf.mxu0  ;;  %v11863_v62 = vpack.c.bf16 %v6826_v6, %v6826_v6  ;;  %v14462_v44 = vadd.s32 208, %v13670_v18  ;;  %v14470_v10 = vadd.s32 24, %v14414_v52  ;;  %v14473_v20 = vsub.s32 %v14213_v45, %v814_v1  ;;  %vm16933_vm8 = vmmov %vm16928_vm2 }
 0x33d   : > { %v7533_v9 = vld [vmem:[#allocation2 + $0x29] sm:$0xff]  ;;  %v11761_v49 = vpack.c.bf16 %v6106_v27, %v6106_v27  ;;  %7772 = vst.msk [vmem:[#allocation4 + $0x4] sm:$0xf] %vm16931_vm1, %v11963_v22  ;;  %v5545_v53 = vmax.f32 %v5497_v19, 0.0  ;;  %v4701_v40 = vpop.f32.mrf.mxu1  ;;  %vm14480_vm7 = vmand %vm1339_vm10, %vm1387_vm13  ;;  %vm1114_vm2 = vcmp.ne.s32.totalorder %v14450_v60, 0  ;;  %v4671_v1 = vadd.f32 %v14051_v11, %v13392_v30 }
 0x33e   : > { %7020 = vrot.lane.b32.xlu0 %v11863_v62, %s12563_s9  ;;  %v5325_v50 = vpop.f32.mrf.mxu0  ;;  %v11964_v57 = vpack.c.bf16 %v7533_v9, %v7533_v9  ;;  %vm14493_vm10 = vmand %vm1340_vm6, %vm1388_vm11  ;;  %vm1342_vm13 = vcmp.ge.s32.totalorder %v14145_v0, 1  ;;  %v14500_v47 = vadd.s32 24, %v14450_v60  ;;  %v835_v27 = vshrl.u32 %v14423_v29, 4 }
 0x33f   : > { %6346 = vst.msk [vmem:[#allocation4 + $0x10] sm:$0xf] %vm16932_vm9, %v11761_v49  ;;  %v5689_v26 = vsel %vm14444_vm3, %v5545_v53, 0.0  ;;  %v14467_v41 = vpop.f32.mrf.mxu1  ;;  %v5498_v63 = vadd.f32 %v5325_v50, %v4668_v56  ;;  %v6827_v28 = vld [vmem:[#allocation2 + $0x38] sm:$0xff]  ;;  %vm1162_vm3 = vcmp.lt.s32.totalorder %v14450_v60, 0  ;;  %vm1390_vm9 = vcmp.le.s32.totalorder %v14145_v0, 16  ;;  %vm14508_vm6 = vmand %vm1341_vm0, %vm1389_vm14 }
 0x340   : > { %v6107_v39 = vld [vmem:[#allocation2 + $0x37] sm:$0xff]  ;;  %5737 = vst.msk [vmem:[#allocation2 + $0x48] sm:$0xff] %vm16933_vm8, %v5689_v26  ;;  %v5327_v2 = vpop.f32.mrf.mxu0  ;;  %v11864_v22 = vpack.c.bf16 %v6827_v28, %v6827_v28  ;;  %v14513_v38 = vsub.s32 %v14271_v25, %v825_v54  ;;  %v14516_v9 = vmul.u32.u64.low 2863311531, %v14462_v44  ;;  %v14517_v12 = vmul.u32.u64.high 2863311531, %v14462_v44, %v14516_v9  ;;  %vm16940_vm11 = vmmov %vm16931_vm1 }
 0x341   : > { %v11762_v15 = vpack.c.bf16 %v6107_v39, %v6107_v39  ;;  %7773 = vst.msk [vmem:[#allocation4 + $0xc] sm:$0xf] %vm16931_vm1, %v11964_v57  ;;  %v7534_v45 = vld [vmem:[#allocation2 + $0x31] sm:$0xff]  ;;  %v5546_v19 = vmax.f32 %v5498_v63, 0.0  ;;  %v4704_v6 = vpop.f32.mrf.mxu1  ;;  %vm1115_vm0 = vcmp.ne.s32.totalorder %v14473_v20, 0  ;;  %v846_v56 = vshrl.u32 %v14436_v23, 4  ;;  %vm16941_vm14 = vmmov %vm16933_vm8 }
 0x342   : > { %7022 = vrot.lane.b32.xlu1 %v11864_v22, %s12563_s9  ;;  %v5328_v30 = vpop.f32.mrf.mxu0  ;;  %v11965_v29 = vpack.c.bf16 %v7534_v45, %v7534_v45  ;;  %vm14531_vm8 = vmand %vm1160_vm12, %vm1112_vm4  ;;  %v14537_v57 = vadd.s32 216, %v13670_v18  ;;  %v4676_v26 = vadd.f32 %v14128_v61, %v13401_v48  ;;  %vm1391_vm4 = vcmp.le.s32.totalorder %v14151_v58, 16 }
 0x343   : > { %6347 = vst.msk [vmem:[#allocation4 + $0x18] sm:$0xf] %vm16940_vm11, %v11762_v15  ;;  %v5690_v33 = vsel %vm14480_vm7, %v5546_v19, 0.0  ;;  %v14522_v62 = vpop.f32.mrf.mxu1  ;;  %v5499_v3 = vadd.f32 %v5328_v30, %v4671_v1  ;;  %v6828_v49 = vld [vmem:[#allocation2 + $0x40] sm:$0xff]  ;;  %vm1163_vm7 = vcmp.lt.s32.totalorder %v14473_v20, 0  ;;  %vm1343_vm11 = vcmp.ge.s32.totalorder %v14151_v58, 1  ;;  %vm14548_vm12 = vmand %vm1161_vm15, %vm1113_vm5 }
 0x344   : > { %v6108_v25 = vld [vmem:[#allocation2 + $0x3f] sm:$0xff]  ;;  %5738 = vst.msk [vmem:[#allocation2 + $0x50] sm:$0xff] %vm16941_vm14, %v5690_v33  ;;  %v5330_v40 = vpop.f32.mrf.mxu0  ;;  %v11865_v50 = vpack.c.bf16 %v6828_v49, %v6828_v49  ;;  %v836_v34 = vmul.u32 24, %v835_v27  ;;  %vm14557_vm14 = vmand %vm1162_vm3, %vm1114_vm2  ;;  %v1259_v61 = vadd.s32 24, %v14473_v20  ;;  %vm1116_vm5 = vcmp.ne.s32.totalorder %v14513_v38, 0 }
 0x345   : > { %v7535_v53 = vld [vmem:[#allocation2 + $0x39] sm:$0xff]  ;;  %v11763_v23 = vpack.c.bf16 %v6108_v25, %v6108_v25  ;;  %7774 = vst.msk [vmem:[#allocation4 + $0x14] sm:$0xf] %vm16931_vm1, %v11965_v29  ;;  %v5547_v63 = vmax.f32 %v5499_v3, 0.0  ;;  %v4709_v28 = vpop.f32.mrf.mxu1  ;;  %vm1164_vm15 = vcmp.lt.s32.totalorder %v14513_v38, 0  ;;  %v14565_v15 = vadd.s32 224, %v13670_v18  ;;  %vm16948_vm2 = vmmov %vm16931_vm1 }
 0x346   : > { %v11966_v2 = vpack.c.bf16 %v7535_v53, %v7535_v53  ;;  %7024 = vrot.lane.b32.xlu0 %v11865_v50, %s12563_s9  ;;  %v5333_v22 = vpop.f32.mrf.mxu0  ;;  %v1260_v27 = vadd.s32 24, %v14513_v38  ;;  %v847_v30 = vmul.u32 24, %v846_v56  ;;  %vm16949_vm3 = vcmask 523264   ;;  %v12330_v53 = vld [vmem:[%s16822_s2 + $0x30] sm:$0xff]  }
 0x347   : > { %6348 = vst.msk [vmem:[#allocation4 + $0x20] sm:$0xf] %vm16931_vm1, %v11763_v23  ;;  %v5691_v45 = vsel %vm14493_vm10, %v5547_v63, 0.0  ;;  %v14570_v1 = vpop.f32.mrf.mxu1  ;;  %v5500_v19 = vadd.f32 %v5333_v22, %v4676_v26  ;;  %v6829_v6 = vld [vmem:[#allocation2 + $0x48] sm:$0xff]  ;;  %vm14579_vm10 = vmand %vm1163_vm7, %vm1115_vm0  ;;  %v14584_v49 = vmul.u32.u64.low 2863311531, %v14537_v57  ;;  %v14585_v25 = vmul.u32.u64.high 2863311531, %v14537_v57, %v14584_v49  ;;  %8913 = vmatpush1.bf16.msra.mxu0 %v12330_v53 }
 0x348   : > { %v6109_v9 = vld [vmem:[#allocation2 + $0x47] sm:$0xff]  ;;  %7775 = vst.msk [vmem:[#allocation4 + $0x1c] sm:$0xf] %vm16948_vm2, %v11966_v2  ;;  %v5335_v33 = vpop.f32.mrf.mxu0  ;;  %v11866_v3 = vpack.c.bf16 %v6829_v6, %v6829_v6  ;;  %v4679_v40 = vadd.f32 %v14180_v35, %v13410_v43  ;;  %vm1344_vm1 = vcmp.ge.s32.totalorder %v14156_v59, 1  ;;  %vm1392_vm0 = vcmp.le.s32.totalorder %v14156_v59, 16  ;;  %vm14598_vm7 = vmand %vm1164_vm15, %vm1116_vm5  ;;  %8914 = vmatprep.subr.bf16.mxu0 %v16870_v31 }
 0x349   : > { %v7536_v29 = vld [vmem:[#allocation2 + $0x41] sm:$0xff]  ;;  %5739 = vst.msk [vmem:[#allocation2 + $0x58] sm:$0xff] %vm16949_vm3, %v5691_v45  ;;  %v11764_v56 = vpack.c.bf16 %v6109_v9, %v6109_v9  ;;  %v5548_v50 = vmax.f32 %v5500_v19, 0.0  ;;  %v4712_v23 = vpop.f32.mrf.mxu1  ;;  %v14603_v63 = vsub.s32 %v14375_v42, %v836_v34  ;;  %v14610_v35 = vsel %vm14531_vm8, %v14456_v14, %v14391_v13  ;;  %vm16954_vm5 = vmmov %vm16948_vm2 }
 0x34a   : > { %v11967_v28 = vpack.c.bf16 %v7536_v29, %v7536_v29  ;;  %7026 = vrot.lane.b32.xlu1 %v11866_v3, %s12563_s9  ;;  %v5336_v43 = vpop.f32.mrf.mxu0  ;;  %v857_v2 = vshrl.u32 %v14517_v12, 4  ;;  %v14614_v22 = vmul.u32.u64.low 2863311531, %v14565_v15  ;;  %v14615_v45 = vmul.u32.u64.high 2863311531, %v14565_v15, %v14614_v22  ;;  %vm16955_vm8 = vmmov %vm16948_vm2 }
 0x34b   : > { %6349 = vst.msk [vmem:[#allocation4 + $0x28] sm:$0xf] %vm16954_vm5, %v11764_v56  ;;  %v5692_v42 = vsel %vm14508_vm6, %v5548_v50, 0.0  ;;  %v14620_v34 = vpop.f32.mrf.mxu1  ;;  %v5501_v19 = vadd.f32 %v5336_v43, %v4679_v40  ;;  %v6830_v6 = vld [vmem:[#allocation2 + $0x50] sm:$0xff]  ;;  %v14626_v13 = vsel %vm14548_vm12, %v14470_v10, %v14414_v52  ;;  %v14629_v14 = vsub.s32 %v14402_v51, %v847_v30  ;;  %vm16956_vm6 = vmmov %vm16949_vm3 }
 0x34c   : > { %v6110_v12 = vld [vmem:[#allocation2 + $0x4f] sm:$0xff]  ;;  %7776 = vst.msk [vmem:[#allocation4 + $0x24] sm:$0xf] %vm16955_vm8, %v11967_v28  ;;  %vm14638_vm15 = vmand %vm1342_vm13, %vm1390_vm9  ;;  %v5338_v52 = vpop.f32.mrf.mxu0  ;;  %v11867_v10 = vpack.c.bf16 %v6830_v6, %v6830_v6  ;;  %v14646_v51 = vsel %vm14557_vm14, %v14500_v47, %v14450_v60  ;;  %v14651_v39 = vsel %vm14579_vm10, %v1259_v61, %v14473_v20  ;;  %v14656_v0 = vsel %vm14598_vm7, %v1260_v27, %v14513_v38  ;;  %v16965_v28 = vld [vmem:[#allocation9_spill] sm:$0xff] }
 0x34d   : > { %v7537_v54 = vld [vmem:[#allocation2 + $0x49] sm:$0xff]  ;;  %5740 = vst.msk [vmem:[#allocation2 + $0x60] sm:$0xff] %vm16956_vm6, %v5692_v42  ;;  %v5549_v29 = vmax.f32 %v5501_v19, 0.0  ;;  %v4717_v33 = vpop.f32.mrf.mxu1  ;;  %vm1345_vm13 = vcmp.ge.s32.totalorder %v14167_v55, 1  ;;  %vm1393_vm9 = vcmp.le.s32.totalorder %v14167_v55, 16  ;;  %vm1117_vm12 = vcmp.ne.s32.totalorder %v14603_v63, 0  ;;  %vm16960_vm7 = vmmov %vm16954_vm5 }
 0x34e   : > { %v16959_v30 = vld [vmem:[#allocation8_spill] sm:$0xff]  ;;  %v11765_v60 = vpack.c.bf16 %v6110_v12, %v6110_v12  ;;  %7028 = vrot.lane.b32.xlu0 %v11867_v10, %s12563_s9  ;;  %v5341_v20 = vpop.f32.mrf.mxu0  ;;  %vm1165_vm14 = vcmp.lt.s32.totalorder %v14603_v63, 0  ;;  %v14666_v47 = vadd.s32 24, %v14603_v63  ;;  %v858_v38 = vmul.u32 24, %v857_v2  ;;  %vm16961_vm5 = vmmov %vm16956_vm6  ;;  %v16981_v55 = vld [vmem:[#allocation11_spill] sm:$0xff] }
 0x34f   : > { %v4684_v9 = vadd.f32 %v14217_v4, %v16959_v30  ;;  %v11968_v48 = vpack.c.bf16 %v7537_v54, %v7537_v54  ;;  %v5693_v4 = vsel %vm14638_vm15, %v5549_v29, 0.0  ;;  %v14670_v61 = vpop.f32.mrf.mxu1  ;;  %vm1346_vm2 = vcmp.ge.s32.totalorder %v14292_v24, 1  ;;  %vm14684_vm8 = vmand %vm1343_vm11, %vm1391_vm4 }
 0x350   : > { %v6831_v3 = vld [vmem:[#allocation2 + $0x58] sm:$0xff]  ;;  %vm1394_vm3 = vcmp.le.s32.totalorder %v14292_v24, 16  ;;  %vm1118_vm10 = vcmp.ne.s32.totalorder %v14629_v14, 0  ;;  %6350 = vst.msk [vmem:[#allocation4 + $0x30] sm:$0xf] %vm16960_vm7, %v11765_v60  ;;  %v5343_v53 = vpop.f32.mrf.mxu0  ;;  %vm1166_vm6 = vcmp.lt.s32.totalorder %v14629_v14, 0  ;;  %vm16964_vm15 = vmmov %vm16960_vm7  ;;  %v4687_v43 = vadd.f32 %v14275_v5, %v16965_v28 }
 0x351   : > { %v5502_v27 = vadd.f32 %v5341_v20, %v4684_v9  ;;  %v6111_v49 = vld [vmem:[#allocation2 + $0x57] sm:$0xff]  ;;  %5741 = vst.msk [vmem:[#allocation2 + $0x68] sm:$0xff] %vm16961_vm5, %v5693_v4  ;;  %v11868_v40 = vpack.c.bf16 %v6831_v3, %v6831_v3  ;;  %v14690_v50 = vadd.s32 24, %v14629_v14  ;;  %v868_v23 = vshrl.u32 %v14585_v25, 4  ;;  %v4720_v2 = vpop.f32.mrf.mxu1  ;;  %vm16966_vm11 = vmmov %vm16960_vm7  ;;  %v16971_v4 = vld [vmem:[#allocation10_spill] sm:$0xff] }
 0x352   : > { %7777 = vst.msk [vmem:[#allocation4 + $0x2c] sm:$0xf] %vm16964_vm15, %v11968_v48  ;;  %v7538_v26 = vld [vmem:[#allocation2 + $0x51] sm:$0xff]  ;;  %v14697_v22 = vadd.s32 240, %v13670_v18  ;;  %v11766_v42 = vpack.c.bf16 %v6111_v49, %v6111_v49  ;;  %v5344_v19 = vpop.f32.mrf.mxu0  ;;  %v14701_v6 = vsub.s32 %v14462_v44, %v858_v38  ;;  %v879_v25 = vshrl.u32 %v14615_v45, 4  ;;  %vm16967_vm4 = vmmov %vm16961_vm5 }
 0x353   : > { %v5550_v58 = vmax.f32 %v5502_v27, 0.0  ;;  %7030 = vrot.lane.b32.xlu1 %v11868_v40, %s12563_s9  ;;  %v14705_v12 = vadd.s32 248, %v13670_v18  ;;  %v11969_v54 = vpack.c.bf16 %v7538_v26, %v7538_v26  ;;  %v14709_v11 = vpop.f32.mrf.mxu1  ;;  %v5503_v52 = vadd.f32 %v5344_v19, %v4687_v43  ;;  %vm14721_vm7 = vmand %vm1344_vm1, %vm1392_vm0 }
 0x354   : > { %v6832_v10 = vld [vmem:[#allocation2 + $0x60] sm:$0xff]  ;;  %v14712_v30 = vmul.u32.u64.low 2863311531, %v14676_v46  ;;  %v14713_v9 = vmul.u32.u64.high 2863311531, %v14676_v46, %v14712_v30  ;;  %6351 = vst.msk [vmem:[#allocation4 + $0x38] sm:$0xf] %vm16966_vm11, %v11766_v42  ;;  %v5346_v29 = vpop.f32.mrf.mxu0  ;;  %v869_v60 = vmul.u32 24, %v868_v23  ;;  %vm16970_vm5 = vmmov %vm16966_vm11  ;;  %v4692_v27 = vadd.f32 %v14334_v36, %v16971_v4 }
 0x355   : > { %v5694_v5 = vsel %vm14684_vm8, %v5550_v58, 0.0  ;;  %v6112_v44 = vld [vmem:[#allocation2 + $0x5f] sm:$0xff]  ;;  %v11869_v33 = vpack.c.bf16 %v6832_v10, %v6832_v10  ;;  %v14726_v20 = vadd.s32 256, %v13670_v18  ;;  %7778 = vst.msk [vmem:[#allocation4 + $0x34] sm:$0xf] %vm16970_vm5, %v11969_v54  ;;  %v5551_v3 = vmax.f32 %v5503_v52, 0.0  ;;  %v4725_v49 = vpop.f32.mrf.mxu1  ;;  %vm14737_vm8 = vmand %vm1165_vm14, %vm1117_vm12 }
 0x356   : > { %5742 = vst.msk [vmem:[#allocation2 + $0x70] sm:$0xff] %vm16967_vm4, %v5694_v5  ;;  %v11767_v38 = vpack.c.bf16 %v6112_v44, %v6112_v44  ;;  %v7539_v48 = vld [vmem:[#allocation2 + $0x59] sm:$0xff]  ;;  %vm1347_vm1 = vcmp.ge.s32.totalorder %v14340_v32, 1  ;;  %vm1395_vm0 = vcmp.le.s32.totalorder %v14340_v32, 16  ;;  %v5349_v36 = vpop.f32.mrf.mxu0  ;;  %vm14750_vm15 = vmand %vm1166_vm6, %vm1118_vm10  ;;  %vm1119_vm12 = vcmp.ne.s32.totalorder %v14701_v6, 0  ;;  %v12338_v29 = vld [vmem:[%s16822_s2 + $0x28] sm:$0xff]  }
 0x357   : > { %v14742_v56 = vmul.u32.u64.low 2863311531, %v14697_v22  ;;  %v14743_v53 = vmul.u32.u64.high 2863311531, %v14697_v22, %v14742_v56  ;;  %7032 = vrot.lane.b32.xlu0 %v11869_v33, %s12563_s9  ;;  %v14756_v23 = vmul.u32.u64.low 2863311531, %v14705_v12  ;;  %v14757_v26 = vmul.u32.u64.high 2863311531, %v14705_v12, %v14756_v23  ;;  %vm16976_vm14 = vmmov %vm16970_vm5  ;;  %v14762_v58 = vpop.f32.mrf.mxu1  ;;  %8915 = vmatpush1.bf16.msra.mxu0 %v12338_v29 }
 0x358   : > { %6352 = vst.msk [vmem:[#allocation4 + $0x40] sm:$0xf] %vm16976_vm14, %v11767_v38  ;;  %v11970_v28 = vpack.c.bf16 %v7539_v48, %v7539_v48  ;;  %v5695_v43 = vsel %vm14721_vm7, %v5551_v3, 0.0  ;;  %v5504_v2 = vadd.f32 %v5349_v36, %v4692_v27  ;;  %v6833_v42 = vld [vmem:[#allocation2 + $0x68] sm:$0xff]  ;;  %vm1167_vm10 = vcmp.lt.s32.totalorder %v14701_v6, 0  ;;  %vm16977_vm6 = vmmov %vm16967_vm4  ;;  %v5351_v10 = vpop.f32.mrf.mxu0  ;;  %8916 = vmatprep.subr.bf16.mxu0 %v16870_v31 }
 0x359   : > { %v880_v19 = vmul.u32 24, %v879_v25  ;;  %v6113_v54 = vld [vmem:[#allocation2 + $0x67] sm:$0xff]  ;;  %5743 = vst.msk [vmem:[#allocation2 + $0x78] sm:$0xff] %vm16977_vm6, %v5695_v43  ;;  %vm14770_vm11 = vmand %vm1345_vm13, %vm1393_vm9  ;;  %v11870_v30 = vpack.c.bf16 %v6833_v42, %v6833_v42  ;;  %v14775_v44 = vmul.u32.u64.low 2863311531, %v14726_v20  ;;  %v14776_v45 = vmul.u32.u64.high 2863311531, %v14726_v20, %v14775_v44  ;;  %v4728_v48 = vpop.f32.mrf.mxu1  ;;  %v16989_v42 = vld [vmem:[#allocation12_spill] sm:$0xff] }
 0x35a   : > { %v7540_v5 = vld [vmem:[#allocation2 + $0x61] sm:$0xff]  ;;  %v14779_v25 = vadd.s32 264, %v13670_v18  ;;  %vm16980_vm4 = vmmov %vm16970_vm5  ;;  %v4695_v33 = vadd.f32 %v14397_v21, %v16981_v55  ;;  %v5552_v38 = vmax.f32 %v5504_v2, 0.0  ;;  %vm1348_vm13 = vcmp.ge.s32.totalorder %v14345_v37, 1  ;;  %v5352_v21 = vpop.f32.mrf.mxu0 }
 0x35b   : > { %7779 = vst.msk [vmem:[#allocation4 + $0x3c] sm:$0xf] %vm16980_vm4, %v11970_v28  ;;  %vm1396_vm9 = vcmp.le.s32.totalorder %v14345_v37, 16  ;;  %v14790_v4 = vsub.s32 %v14537_v57, %v869_v60  ;;  %v11768_v27 = vpack.c.bf16 %v6113_v54, %v6113_v54  ;;  %7034 = vrot.lane.b32.xlu1 %v11870_v30, %s12563_s9  ;;  %vm14797_vm7 = vmand %vm1346_vm2, %vm1394_vm3  ;;  %v14805_v49 = vsel %vm14737_vm8, %v14666_v47, %v14603_v63  ;;  %v14816_v36 = vpop.f32.mrf.mxu1 }
 0x35c   : > { %v14811_v57 = vsel %vm14750_vm15, %v14690_v50, %v14629_v14  ;;  %v1263_v60 = vadd.s32 24, %v14701_v6  ;;  %v11971_v24 = vpack.c.bf16 %v7540_v5, %v7540_v5  ;;  %v5696_v56 = vsel %vm14770_vm11, %v5552_v38, 0.0  ;;  %vm16984_vm2 = vmmov %vm16980_vm4  ;;  %v5354_v59 = vpop.f32.mrf.mxu0 }
 0x35d   : > { %v5505_v23 = vadd.f32 %v5352_v21, %v4695_v33  ;;  %v6834_v28 = vld [vmem:[#allocation2 + $0x70] sm:$0xff]  ;;  %v14819_v63 = vsub.s32 %v14565_v15, %v880_v19  ;;  %v890_v47 = vshrl.u32 %v14713_v9, 4  ;;  %6353 = vst.msk [vmem:[#allocation4 + $0x48] sm:$0xf] %vm16984_vm2, %v11768_v27  ;;  %vm16985_vm3 = vmmov %vm16977_vm6  ;;  %v14838_v2 = vadd.s32 272, %v13670_v18  ;;  %v4733_v5 = vpop.f32.mrf.mxu1 }
 0x35e   : > { %v6114_v14 = vld [vmem:[#allocation2 + $0x6f] sm:$0xff]  ;;  %5744 = vst.msk [vmem:[#allocation2 + $0x80] sm:$0xff] %vm16985_vm3, %v5696_v56  ;;  %v11871_v40 = vpack.c.bf16 %v6834_v28, %v6834_v28  ;;  %vm14829_vm5 = vmand %vm1167_vm10, %vm1119_vm12  ;;  %v14834_v15 = vmul.u32.u64.low 2863311531, %v14779_v25  ;;  %v14835_v9 = vmul.u32.u64.high 2863311531, %v14779_v25, %v14834_v15  ;;  %v4700_v19 = vadd.f32 %v14432_v17, %v16989_v42  ;;  %v5357_v10 = vpop.f32.mrf.mxu0  ;;  %v16995_v56 = vld [vmem:[#allocation13_spill] sm:$0xff] }
 0x35f   : > { %v7541_v50 = vld [vmem:[#allocation2 + $0x69] sm:$0xff]  ;;  %vm16988_vm8 = vmmov %vm16984_vm2  ;;  %v5553_v54 = vmax.f32 %v5505_v23, 0.0  ;;  %vm1349_vm15 = vcmp.ge.s32.totalorder %v14372_v8, 1  ;;  %vm1397_vm12 = vcmp.le.s32.totalorder %v14372_v8, 16  ;;  %vm1120_vm14 = vcmp.ne.s32.totalorder %v14790_v4, 0  ;;  %v14852_v55 = vpop.f32.mrf.mxu1 }
 0x360   : > { %7780 = vst.msk [vmem:[#allocation4 + $0x44] sm:$0xf] %vm16988_vm8, %v11971_v24  ;;  %v11769_v52 = vpack.c.bf16 %v6114_v14, %v6114_v14  ;;  %7036 = vrot.lane.b32.xlu0 %v11871_v40, %s12563_s9  ;;  %vm1168_vm10 = vcmp.lt.s32.totalorder %v14790_v4, 0  ;;  %v901_v30 = vshrl.u32 %v14743_v53, 4  ;;  %v912_v44 = vshrl.u32 %v14757_v26, 4  ;;  %v6835_v38 = vld [vmem:[#allocation2 + $0x78] sm:$0xff]  ;;  %vm16990_vm6 = vmmov %vm16984_vm2  ;;  %v5359_v3 = vpop.f32.mrf.mxu0 }
 0x361   : > { %v11972_v29 = vpack.c.bf16 %v7541_v50, %v7541_v50  ;;  %v5697_v17 = vsel %vm14797_vm7, %v5553_v54, 0.0  ;;  %v5506_v33 = vadd.f32 %v5357_v10, %v4700_v19  ;;  %v14857_v48 = vsel %vm14829_vm5, %v1263_v60, %v14701_v6  ;;  %v6115_v53 = vld [vmem:[#allocation2 + $0x77] sm:$0xff]  ;;  %vm16991_vm11 = vmmov %vm16985_vm3  ;;  %v4736_v14 = vpop.f32.mrf.mxu1 }
 0x362   : > { %v1264_v27 = vadd.s32 24, %v14790_v4  ;;  %6354 = vst.msk [vmem:[#allocation4 + $0x50] sm:$0xf] %vm16990_vm6, %v11769_v52  ;;  %vm14866_vm4 = vmand %vm1347_vm1, %vm1395_vm0  ;;  %v11872_v21 = vpack.c.bf16 %v6835_v38, %v6835_v38  ;;  %v923_v6 = vshrl.u32 %v14776_v45, 4  ;;  %v4703_v23 = vadd.f32 %v14467_v41, %v16995_v56  ;;  %v5360_v59 = vpop.f32.mrf.mxu0 }
 0x363   : > { %5745 = vst.msk [vmem:[#allocation2 + $0x88] sm:$0xff] %vm16991_vm11, %v5697_v17  ;;  %v14872_v60 = vmul.u32.u64.low 2863311531, %v14838_v2  ;;  %v14873_v24 = vmul.u32.u64.high 2863311531, %v14838_v2, %v14872_v60  ;;  %vm16994_vm7 = vmmov %vm16984_vm2  ;;  %v5554_v28 = vmax.f32 %v5506_v33, 0.0  ;;  %vm1350_vm1 = vcmp.ge.s32.totalorder %v14383_v16, 1  ;;  %v14895_v42 = vpop.f32.mrf.mxu1  ;;  %v7542_v33 = vld [vmem:[#allocation2 + $0x71] sm:$0xff] }
 0x364   : > { %7781 = vst.msk [vmem:[#allocation4 + $0x4c] sm:$0xf] %vm16994_vm7, %v11972_v29  ;;  %vm1398_vm0 = vcmp.le.s32.totalorder %v14383_v16, 16  ;;  %vm14884_vm2 = vmand %vm1168_vm10, %vm1120_vm14  ;;  %v891_v45 = vmul.u32 24, %v890_v47  ;;  %v11770_v50 = vpack.c.bf16 %v6115_v53, %v6115_v53  ;;  %7038 = vrot.lane.b32.xlu1 %v11872_v21, %s12563_s9  ;;  %vm1121_vm3 = vcmp.ne.s32.totalorder %v14819_v63, 0  ;;  %v5362_v10 = vpop.f32.mrf.mxu0  ;;  %v17002_v53 = vld [vmem:[#allocation14_spill] sm:$0xff] }
 0x365   : > { %v902_v41 = vmul.u32 24, %v901_v30  ;;  %v913_v40 = vmul.u32 24, %v912_v44  ;;  %v14891_v43 = vadd.s32 280, %v13670_v18  ;;  %v5698_v15 = vsel %vm14866_vm4, %v5554_v28, 0.0  ;;  %v6836_v54 = vld [vmem:[#allocation2 + $0x80] sm:$0xff]  ;;  %vm16998_vm10 = vmmov %vm16990_vm6  ;;  %v4741_v3 = vpop.f32.mrf.mxu1 }
 0x366   : > { %v5507_v19 = vadd.f32 %v5360_v59, %v4703_v23  ;;  %vm1351_vm5 = vcmp.ge.s32.totalorder %v14388_v7, 1  ;;  %vm1399_vm8 = vcmp.le.s32.totalorder %v14388_v7, 16  ;;  %vm1169_vm14 = vcmp.lt.s32.totalorder %v14819_v63, 0  ;;  %6355 = vst.msk [vmem:[#allocation4 + $0x58] sm:$0xf] %vm16998_vm10, %v11770_v50  ;;  %v6116_v5 = vld [vmem:[#allocation2 + $0x7f] sm:$0xff]  ;;  %vm16999_vm6 = vmmov %vm16991_vm11  ;;  %v5365_v56 = vpop.f32.mrf.mxu0 }
 0x367   : > { %v14901_v47 = vadd.s32 24, %v14819_v63  ;;  %5746 = vst.msk [vmem:[#allocation2 + $0x90] sm:$0xff] %vm16999_vm6, %v5698_v15  ;;  %vm14909_vm11 = vmand %vm1348_vm13, %vm1396_vm9  ;;  %v11873_v30 = vpack.c.bf16 %v6836_v54, %v6836_v54  ;;  %v14916_v44 = vsel %vm14884_vm2, %v1264_v27, %v14790_v4  ;;  %v924_v29 = vmul.u32 24, %v923_v6  ;;  %v7543_v38 = vld [vmem:[#allocation2 + $0x79] sm:$0xff]  ;;  %v14937_v23 = vpop.f32.mrf.mxu1  ;;  %v17007_v54 = vld [vmem:[#allocation15_spill] sm:$0xff] }
 0x368   : > { %v934_v17 = vshrl.u32 %v14835_v9, 4  ;;  %v4708_v26 = vadd.f32 %v14522_v62, %v17002_v53  ;;  %v5555_v37 = vmax.f32 %v5507_v19, 0.0  ;;  %v14922_v21 = vsub.s32 %v14676_v46, %v891_v45  ;;  %vm17003_vm13 = vmmov %vm16994_vm7  ;;  %v5367_v50 = vpop.f32.mrf.mxu0  ;;  %v12346_v19 = vld [vmem:[%s16822_s2 + $0x20] sm:$0xff]   ;;  %v12354_v7 = vld [vmem:[%s16822_s2 + $0x18] sm:$0xff]  }
 0x369   : > { %v11771_v60 = vpack.c.bf16 %v6116_v5, %v6116_v5  ;;  %7040 = vrot.lane.b32.xlu0 %v11873_v30, %s12563_s9  ;;  %v14926_v4 = vsub.s32 %v14697_v22, %v902_v41  ;;  %v14929_v27 = vsub.s32 %v14705_v12, %v913_v40  ;;  %v11973_v32 = vpack.c.bf16 %v7542_v33, %v7542_v33  ;;  %vm17004_vm9 = vmmov %vm16999_vm6  ;;  %v4744_v52 = vpop.f32.mrf.mxu1 }
 0x36a   : > { %v14932_v9 = vmul.u32.u64.low 2863311531, %v14891_v43  ;;  %v14933_v6 = vmul.u32.u64.high 2863311531, %v14891_v43, %v14932_v9  ;;  %v5699_v62 = vsel %vm14909_vm11, %v5555_v37, 0.0  ;;  %v5508_v46 = vadd.f32 %v5365_v56, %v4708_v26  ;;  %v6837_v28 = vld [vmem:[#allocation2 + $0x88] sm:$0xff]  ;;  %vm14945_vm4 = vmand %vm1349_vm15, %vm1397_vm12  ;;  %8917 = vmatpush1.bf16.msra.mxu0 %v12346_v19  ;;  %v17014_v56 = vld [vmem:[#allocation16_spill] sm:$0xff] }
 0x36b   : > { %6356 = vst.msk [vmem:[#allocation4 + $0x60] sm:$0xf] %vm17003_vm13, %v11771_v60  ;;  %v6117_v14 = vld [vmem:[#allocation2 + $0x87] sm:$0xff]  ;;  %v11974_v22 = vpack.c.bf16 %v7543_v38, %v7543_v38  ;;  %v11874_v59 = vpack.c.bf16 %v6837_v28, %v6837_v28  ;;  %v14950_v41 = vsub.s32 %v14726_v20, %v924_v29  ;;  %v935_v40 = vmul.u32 24, %v934_v17  ;;  %vm17008_vm2 = vmmov %vm16994_vm7  ;;  %v14973_v17 = vpop.f32.mrf.mxu1  ;;  %8918 = vmatprep.subr.bf16.mxu0 %v16870_v31 }
 0x36c   : > { %v7544_v45 = vld [vmem:[#allocation2 + $0x81] sm:$0xff]  ;;  %5747 = vst.msk [vmem:[#allocation2 + $0x98] sm:$0xff] %vm17004_vm9, %v5699_v62  ;;  %v945_v15 = vshrl.u32 %v14873_v24, 4  ;;  %v4711_v5 = vadd.f32 %v14570_v1, %v17007_v54  ;;  %v5556_v8 = vmax.f32 %v5508_v46, 0.0  ;;  %vm1400_vm12 = vcmp.le.s32.totalorder %v14610_v35, 16  ;;  %v5368_v24 = vpop.f32.mrf.mxu0  ;;  %vm17009_vm9 = vmmov %vm17008_vm2 }
 0x36d   : > { %v11772_v10 = vpack.c.bf16 %v6117_v14, %v6117_v14  ;;  %7782 = vst.msk [vmem:[#allocation4 + $0x54] sm:$0xf] %vm16994_vm7, %v11973_v32  ;;  %v11975_v20 = vpack.c.bf16 %v7544_v45, %v7544_v45  ;;  %7042 = vrot.lane.b32.xlu1 %v11874_v59, %s12563_s9  ;;  %vm1122_vm10 = vcmp.ne.s32.totalorder %v14922_v21, 0  ;;  %vm1170_vm6 = vcmp.lt.s32.totalorder %v14922_v21, 0  ;;  %vm17010_vm7 = vmmov %vm17008_vm2  ;;  %v4749_v46 = vpop.f32.mrf.mxu1 }
 0x36e   : > { %7783 = vst.msk [vmem:[#allocation4 + $0x5c] sm:$0xf] %vm17008_vm2, %v11974_v22  ;;  %v14966_v1 = vadd.s32 24, %v14922_v21  ;;  %v14969_v30 = vadd.s32 288, %v13670_v18  ;;  %v5700_v29 = vsel %vm14945_vm4, %v5556_v8, 0.0  ;;  %v5509_v33 = vadd.f32 %v5368_v24, %v4711_v5  ;;  %v6838_v38 = vld [vmem:[#allocation2 + $0x90] sm:$0xff]  ;;  %vm14985_vm4 = vmand %vm1350_vm1, %vm1398_vm0  ;;  %v5370_v37 = vpop.f32.mrf.mxu0  ;;  %8919 = vmatpush1.bf16.msra.mxu0 %v12354_v7 }
 0x36f   : > { %vm1123_vm11 = vcmp.ne.s32.totalorder %v14926_v4, 0  ;;  %vm1171_vm13 = vcmp.lt.s32.totalorder %v14926_v4, 0  ;;  %6357 = vst.msk [vmem:[#allocation4 + $0x68] sm:$0xf] %vm17009_vm9, %v11772_v10  ;;  %v6118_v53 = vld [vmem:[#allocation2 + $0x8f] sm:$0xff]  ;;  %vm17011_vm2 = vcmask 523264   ;;  %v11875_v3 = vpack.c.bf16 %v6838_v38, %v6838_v38  ;;  %vm15000_vm0 = vmand %vm1169_vm14, %vm1121_vm3  ;;  %v15022_v59 = vpop.f32.mrf.mxu1  ;;  %8920 = vmatprep.subr.bf16.mxu0 %v16870_v31 }
 0x370   : > { %7784 = vst.msk [vmem:[#allocation4 + $0x64] sm:$0xf] %vm17010_vm7, %v11975_v20  ;;  %vm1124_vm15 = vcmp.ne.s32.totalorder %v14929_v27, 0  ;;  %vm1172_vm9 = vcmp.lt.s32.totalorder %v14929_v27, 0  ;;  %vm1125_vm7 = vcmp.ne.s32.totalorder %v14950_v41, 0  ;;  %v7545_v60 = vld [vmem:[#allocation2 + $0x89] sm:$0xff]  ;;  %v4716_v9 = vadd.f32 %v14620_v34, %v17014_v56  ;;  %v5373_v32 = vpop.f32.mrf.mxu0  ;;  %vm15028_vm3 = vmand %vm1170_vm6, %vm1122_vm10 }
 0x371   : > { %5748 = vst.msk [vmem:[#allocation2 + $0xa0] sm:$0xff] %vm17011_vm2, %v5700_v29  ;;  %v5557_v62 = vmax.f32 %v5509_v33, 0.0  ;;  %vm1401_vm1 = vcmp.le.s32.totalorder %v14626_v13, 16  ;;  %v15005_v28 = vsub.s32 %v14779_v25, %v935_v40  ;;  %v946_v14 = vmul.u32 24, %v945_v15  ;;  %7044 = vrot.lane.b32.xlu0 %v11875_v3, %s12563_s9  ;;  %vm15012_vm2 = vmand %vm1351_vm5, %vm1399_vm8  ;;  %v17026_v29 = vld [vmem:[#allocation17_spill] sm:$0xff]  ;;  %v4752_v33 = vpop.f32.mrf.mxu1 }
 0x372   : > { %v15017_v22 = vmul.u32.u64.low 2863311531, %v14969_v30  ;;  %v15018_v45 = vmul.u32.u64.high 2863311531, %v14969_v30, %v15017_v22  ;;  %v11773_v12 = vpack.c.bf16 %v6118_v53, %v6118_v53  ;;  %v11976_v50 = vpack.c.bf16 %v7545_v60, %v7545_v60  ;;  %v5375_v5 = vpop.f32.mrf.mxu0  ;;  %vm15045_vm14 = vmand %vm1171_vm13, %vm1123_vm11 }
 0x373   : > { %v5701_v25 = vsel %vm14985_vm4, %v5557_v62, 0.0  ;;  %v5510_v40 = vadd.f32 %v5373_v32, %v4716_v9  ;;  %v6839_v15 = vld [vmem:[#allocation2 + $0x98] sm:$0xff]  ;;  %vm1173_vm5 = vcmp.lt.s32.totalorder %v14950_v41, 0  ;;  %v956_v19 = vshrl.u32 %v14933_v6, 4  ;;  %vm15061_vm13 = vmand %vm1172_vm9, %vm1124_vm15  ;;  %v15087_v62 = vpop.f32.mrf.mxu1 }
 0x374   : > { %v6119_v54 = vld [vmem:[#allocation2 + $0x97] sm:$0xff]  ;;  %vm17021_vm8 = vcmask 523264   ;;  %v11876_v8 = vpack.c.bf16 %v6839_v15, %v6839_v15  ;;  %v15039_v52 = vsel %vm15000_vm0, %v14901_v47, %v14819_v63  ;;  %v1267_v6 = vadd.s32 24, %v14926_v4  ;;  %vm15077_vm15 = vmand %vm1173_vm5, %vm1125_vm7 }
 0x375   : > { %5749 = vst.msk [vmem:[#allocation2 + $0xa8] sm:$0xff] %vm17021_vm8, %v5701_v25  ;;  %v1268_v20 = vadd.s32 24, %v14929_v27  ;;  %vm17024_vm10 = vcmask 519168   ;;  %v7546_v24 = vld [vmem:[#allocation2 + $0x91] sm:$0xff]  ;;  %v4719_v63 = vadd.f32 %v14670_v61, %v17026_v29  ;;  %v5558_v47 = vmax.f32 %v5510_v40, 0.0  ;;  %v5376_v61 = vpop.f32.mrf.mxu0  ;;  %v4757_v15 = vpop.f32.mrf.mxu1 }
 0x376   : > { %6358 = vst.msk [vmem:[#allocation4 + $0x70] sm:$0xf] %vm17024_vm10, %v11773_v12  ;;  %vm17025_vm6 = vmmov %vm17024_vm10  ;;  %vm1354_vm4 = vcmp.ge.s32.totalorder %v14646_v51, 1  ;;  %vm1402_vm11 = vcmp.le.s32.totalorder %v14646_v51, 16  ;;  %v1269_v53 = vadd.s32 24, %v14950_v41  ;;  %v11774_v26 = vpack.c.bf16 %v6119_v54, %v6119_v54  ;;  %7046 = vrot.lane.b32.xlu1 %v11876_v8, %s12563_s9 }
 0x377   : > { %7785 = vst.msk [vmem:[#allocation4 + $0x6c] sm:$0xf] %vm17025_vm6, %v11976_v50  ;;  %v15071_v37 = vsel %vm15028_vm3, %v14966_v1, %v14922_v21  ;;  %vm1126_vm9 = vcmp.ne.s32.totalorder %v15005_v28, 0  ;;  %v15083_v60 = vsub.s32 %v14838_v2, %v946_v14  ;;  %v11977_v56 = vpack.c.bf16 %v7546_v24, %v7546_v24  ;;  %vm17031_vm7 = vmmov %vm17025_vm6  ;;  %v5378_v14 = vpop.f32.mrf.mxu0  ;;  %v15141_v10 = vpop.f32.mrf.mxu1 }
 0x378   : > { %v5702_v9 = vsel %vm15012_vm2, %v5558_v47, 0.0  ;;  %v5511_v21 = vadd.f32 %v5376_v61, %v4719_v63  ;;  %v6840_v1 = vld [vmem:[#allocation2 + $0xa0] sm:$0xff]  ;;  %vm1174_vm0 = vcmp.lt.s32.totalorder %v15005_v28, 0  ;;  %v957_v46 = vmul.u32 24, %v956_v19  ;;  %6359 = vst.msk [vmem:[#allocation4 + $0x78] sm:$0xf] %vm17031_vm7, %v11774_v26  ;;  %vm17032_vm3 = vmmov %vm17021_vm8 }
 0x379   : > { %v6120_v16 = vld [vmem:[#allocation2 + $0x9f] sm:$0xff]  ;;  %5750 = vst.msk [vmem:[#allocation2 + $0xb0] sm:$0xff] %vm17032_vm3, %v5702_v9  ;;  %vm17033_vm5 = vcmp.ge.s32.totalorder %v14610_v35, 1  ;;  %v11877_v34 = vpack.c.bf16 %v6840_v1, %v6840_v1  ;;  %v15103_v32 = vsel %vm15045_vm14, %v1267_v6, %v14926_v4  ;;  %v15108_v22 = vsel %vm15061_vm13, %v1268_v20, %v14929_v27  ;;  %vm17036_vm2 = vmmov %vm17025_vm6  ;;  %v17046_v26 = vld [vmem:[#allocation19_spill] sm:$0xff] }
 0x37a   : > { %vm15096_vm8 = vmand %vm17033_vm5, %vm1400_vm12  ;;  %v11775_v12 = vpack.c.bf16 %v6120_v16, %v6120_v16  ;;  %v7547_v50 = vld [vmem:[#allocation2 + $0x99] sm:$0xff]  ;;  %7786 = vst.msk [vmem:[#allocation4 + $0x74] sm:$0xf] %vm17036_vm2, %v11977_v56  ;;  %v5559_v40 = vmax.f32 %v5511_v21, 0.0  ;;  %vm1355_vm12 = vcmp.ge.s32.totalorder %v14651_v39, 1  ;;  %vm1403_vm10 = vcmp.le.s32.totalorder %v14651_v39, 16 }
 0x37b   : > { %v17037_v35 = vld [vmem:[#allocation18_spill] sm:$0xff]  ;;  %v15118_v4 = vsel %vm15077_vm15, %v1269_v53, %v14950_v41  ;;  %v15121_v27 = vadd.s32 296, %v13670_v18  ;;  %7048 = vrot.lane.b32.xlu0 %v11877_v34, %s12563_s9  ;;  %vm15131_vm14 = vmand %vm1174_vm0, %vm1126_vm9  ;;  %v1270_v41 = vadd.s32 24, %v15005_v28  ;;  %vm1127_vm6 = vcmp.ne.s32.totalorder %v15083_v60, 0 }
 0x37c   : > { %v4724_v25 = vadd.f32 %v14709_v11, %v17037_v35  ;;  %v5381_v11 = vpop.f32.mrf.mxu0  ;;  %v967_v54 = vshrl.u32 %v15018_v45, 4  ;;  %vm17040_vm13 = vmmov %vm17036_vm2  ;;  %v11978_v5 = vpack.c.bf16 %v7547_v50, %v7547_v50  ;;  %v5703_v8 = vsel %vm15096_vm8, %v5559_v40, 0.0  ;;  %v6841_v20 = vld [vmem:[#allocation2 + $0xa8] sm:$0xff] }
 0x37d   : > { %6360 = vst.msk [vmem:[#allocation4 + $0x80] sm:$0xf] %vm17040_vm13, %v11775_v12  ;;  %vm1175_vm15 = vcmp.lt.s32.totalorder %v15083_v60, 0  ;;  %v15145_v24 = vsub.s32 %v14891_v43, %v957_v46  ;;  %v6121_v29 = vld [vmem:[#allocation2 + $0xa7] sm:$0xff]  ;;  %vm17041_vm9 = vmmov %vm17032_vm3  ;;  %vm17042_vm0 = vcmp.ge.s32.totalorder %v14626_v13, 1  ;;  %v11878_v33 = vpack.c.bf16 %v6841_v20, %v6841_v20  ;;  %v4760_v13 = vpop.f32.mrf.mxu1  ;;  %v5786_v20 = vld [vmem:[#allocation2 + $0x37] sm:$0xff] }
 0x37e   : > { %v5512_v6 = vadd.f32 %v5381_v11, %v4724_v25  ;;  %v7548_v63 = vld [vmem:[#allocation2 + $0xa1] sm:$0xff]  ;;  %5751 = vst.msk [vmem:[#allocation2 + $0xb8] sm:$0xff] %vm17041_vm9, %v5703_v8  ;;  %vm15152_vm7 = vmand %vm17042_vm0, %vm1401_vm1  ;;  %v5383_v47 = vpop.f32.mrf.mxu0  ;;  %v15157_v38 = vadd.s32 304, %v13670_v18  ;;  %v11776_v43 = vpack.c.bf16 %v6121_v29, %v6121_v29  ;;  %v4727_v61 = vadd.f32 %v14762_v58, %v17046_v26  ;;  %v5789_v26 = vld [vmem:[#allocation2 + $0x4f] sm:$0xff] }
 0x37f   : > { %vm17045_vm3 = vmmov %vm17036_vm2  ;;  %v11979_v53 = vpack.c.bf16 %v7548_v63, %v7548_v63  ;;  %vm1356_vm1 = vcmp.ge.s32.totalorder %v14656_v0, 1  ;;  %vm1404_vm5 = vcmp.le.s32.totalorder %v14656_v0, 16  ;;  %7050 = vrot.lane.b32.xlu1 %v11878_v33, %s12563_s9  ;;  %v15173_v1 = vsel %vm15131_vm14, %v1270_v41, %v15005_v28  ;;  %v15191_v14 = vpop.f32.mrf.mxu1  ;;  %v17053_v41 = vld [vmem:[#allocation20_spill] sm:$0xff]  ;;  %v15216_v29 = vld [vmem:[#allocation2 + $0x27] sm:$0xff] }
 0x380   : > { %7787 = vst.msk [vmem:[#allocation4 + $0x7c] sm:$0xf] %vm17045_vm3, %v11978_v5  ;;  %v5560_v3 = vmax.f32 %v5512_v6, 0.0  ;;  %v15166_v56 = vmul.u32.u64.low 2863311531, %v15121_v27  ;;  %v15167_v9 = vmul.u32.u64.high 2863311531, %v15121_v27, %v15166_v56  ;;  %v5384_v21 = vpop.f32.mrf.mxu0  ;;  %vm15179_vm8 = vmand %vm1175_vm15, %vm1127_vm6  ;;  %v1271_v46 = vadd.s32 24, %v15083_v60 }
 0x381   : > { %v968_v16 = vmul.u32 24, %v967_v54  ;;  %v15185_v2 = vadd.s32 312, %v13670_v18  ;;  %6361 = vst.msk [vmem:[#allocation4 + $0x88] sm:$0xf] %vm17036_vm2, %v11776_v43  ;;  %vm17049_vm13 = vmmov %vm17036_vm2  ;;  %v5513_v34 = vadd.f32 %v5384_v21, %v4727_v61  ;;  %v6842_v12 = vld [vmem:[#allocation2 + $0xb0] sm:$0xff]  ;;  %vm1128_vm14 = vcmp.ne.s32.totalorder %v15145_v24, 0  ;;  %v4765_v8 = vpop.f32.mrf.mxu1 }
 0x382   : > { %7788 = vst.msk [vmem:[#allocation4 + $0x84] sm:$0xf] %vm17049_vm13, %v11979_v53  ;;  %v5704_v28 = vsel %vm15152_vm7, %v5560_v3, 0.0  ;;  %v15195_v50 = vadd.s32 320, %v13670_v18  ;;  %v6122_v35 = vld [vmem:[#allocation2 + $0xaf] sm:$0xff]  ;;  %vm17050_vm6 = vmmov %vm17041_vm9  ;;  %v5386_v15 = vpop.f32.mrf.mxu0  ;;  %v11879_v7 = vpack.c.bf16 %v6842_v12, %v6842_v12  ;;  %vm1176_vm9 = vcmp.lt.s32.totalorder %v15145_v24, 0 }
 0x383   : > { %v7549_v25 = vld [vmem:[#allocation2 + $0xa9] sm:$0xff]  ;;  %5752 = vst.msk [vmem:[#allocation2 + $0xc0] sm:$0xff] %vm17050_vm6, %v5704_v28  ;;  %vm15202_vm15 = vmand %vm1354_vm4, %vm1402_vm11  ;;  %v15208_v11 = vmul.u32.u64.low 2863311531, %v15157_v38  ;;  %v15209_v19 = vmul.u32.u64.high 2863311531, %v15157_v38, %v15208_v11  ;;  %v4732_v54 = vadd.f32 %v14816_v36, %v17053_v41  ;;  %v5561_v5 = vmax.f32 %v5513_v34, 0.0  ;;  %v5787_v43 = vld [vmem:[#allocation2 + $0x3f] sm:$0xff]  ;;  %v15232_v3 = vpop.f32.mrf.mxu1 }
 0x384   : > { %vm1357_vm0 = vcmp.ge.s32.totalorder %v14805_v49, 1  ;;  %vm1405_vm4 = vcmp.le.s32.totalorder %v14805_v49, 16  ;;  %v11777_v51 = vpack.c.bf16 %v6122_v35, %v6122_v35  ;;  %v11980_v6 = vpack.c.bf16 %v7549_v25, %v7549_v25  ;;  %7052 = vrot.lane.b32.xlu0 %v11879_v7, %s12563_s9  ;;  %v5389_v63 = vpop.f32.mrf.mxu0  ;;  %v5788_v53 = vld [vmem:[#allocation2 + $0x47] sm:$0xff]  ;;  %vm17054_vm11 = vmmov %vm17036_vm2  ;;  %v7214_v15 = vld [vmem:[#allocation2 + $0x39] sm:$0xff] }
 0x385   : > { %v15222_v45 = vsel %vm15179_vm8, %v1271_v46, %v15083_v60  ;;  %v1272_v36 = vadd.s32 24, %v15145_v24  ;;  %v15226_v47 = vmul.u32.u64.low 2863311531, %v15185_v2  ;;  %v15227_v33 = vmul.u32.u64.high 2863311531, %v15185_v2, %v15226_v47  ;;  %v6843_v56 = vld [vmem:[#allocation2 + $0xb8] sm:$0xff]  ;;  %vm17055_vm7 = vmmov %vm17036_vm2  ;;  %v7215_v7 = vld [vmem:[#allocation2 + $0x41] sm:$0xff] }
 0x386   : > { %v5705_v61 = vsel %vm15202_vm15, %v5561_v5, 0.0  ;;  %v5514_v13 = vadd.f32 %v5389_v63, %v4732_v54  ;;  %v15235_v60 = vmul.u32.u64.low 2863311531, %v15195_v50  ;;  %v15236_v21 = vmul.u32.u64.high 2863311531, %v15195_v50, %v15235_v60  ;;  %6362 = vst.msk [vmem:[#allocation4 + $0x90] sm:$0xf] %vm17054_vm11, %v11777_v51  ;;  %v6123_v58 = vld [vmem:[#allocation2 + $0xb7] sm:$0xff]  ;;  %vm17056_vm3 = vmmov %vm17050_vm6  ;;  %v5391_v34 = vpop.f32.mrf.mxu0  ;;  %v4768_v5 = vpop.f32.mrf.mxu1 }
 0x387   : > { %7789 = vst.msk [vmem:[#allocation4 + $0x8c] sm:$0xf] %vm17055_vm7, %v11980_v6  ;;  %v7550_v46 = vld [vmem:[#allocation2 + $0xb1] sm:$0xff]  ;;  %vm15246_vm8 = vmand %vm1355_vm12, %vm1403_vm10  ;;  %v11880_v12 = vpack.c.bf16 %v6843_v56, %v6843_v56  ;;  %v15251_v35 = vsub.s32 %v14969_v30, %v968_v16  ;;  %v11778_v25 = vpack.c.bf16 %v6123_v58, %v6123_v58  ;;  %vm1358_vm2 = vcmp.ge.s32.totalorder %v14811_v57, 1  ;;  %v15270_v51 = vld [vmem:[#allocation2 + $0x21] sm:$0xff] }
 0x388   : > { %5753 = vst.msk [vmem:[#allocation2 + $0xc8] sm:$0xff] %vm17056_vm3, %v5705_v61  ;;  %v11981_v40 = vpack.c.bf16 %v7550_v46, %v7550_v46  ;;  %v17059_v11 = vld [vmem:[#allocation21_spill] sm:$0xff]  ;;  %v5562_v54 = vmax.f32 %v5514_v13, 0.0  ;;  %vm1406_vm12 = vcmp.le.s32.totalorder %v14811_v57, 16  ;;  %vm15261_vm10 = vmand %vm1176_vm9, %vm1128_vm14  ;;  %v978_v30 = vshrl.u32 %v15167_v9, 4  ;;  %v15266_v8 = vld [vmem:[#allocation2 + $0x2f] sm:$0xff]  ;;  %v5392_v6 = vpop.f32.mrf.mxu0  ;;  %v15285_v46 = vpop.f32.mrf.mxu1 }
 0x389   : > { %v4735_v41 = vadd.f32 %v14852_v55, %v17059_v11  ;;  %v11711_v16 = vpack.c.bf16 %v5786_v20, %v5786_v20  ;;  %v15268_v55 = vld [vmem:[#allocation2 + $0x19] sm:$0xff]  ;;  %7054 = vrot.lane.b32.xlu1 %v11880_v12, %s12563_s9  ;;  %vm1359_vm13 = vcmp.ge.s32.totalorder %v14857_v48, 1  ;;  %vm1407_vm6 = vcmp.le.s32.totalorder %v14857_v48, 16  ;;  %vm17062_vm14 = vmmov %vm17055_vm7  ;;  %v15281_v60 = vld [vmem:[#allocation2 + $0x67] sm:$0xff] }
 0x38a   : > { %6363 = vst.msk [vmem:[#allocation4 + $0x98] sm:$0xf] %vm17062_vm14, %v11778_v25  ;;  %vm17063_vm15 = vmmov %vm17055_vm7  ;;  %v11712_v63 = vpack.c.bf16 %v5787_v43, %v5787_v43  ;;  %v11713_v47 = vpack.c.bf16 %v5788_v53, %v5788_v53  ;;  %v11714_v20 = vpack.c.bf16 %v5789_v26, %v5789_v26  ;;  %v11709_v61 = vpack.c.bf16 %v15216_v29, %v15216_v29  ;;  %v5790_v13 = vld [vmem:[#allocation2 + $0x57] sm:$0xff]  ;;  %v15279_v56 = vld [vmem:[#allocation2 + $0x5f] sm:$0xff]  ;;  %v5394_v26 = vpop.f32.mrf.mxu0 }
 0x38b   : > { %7790 = vst.msk [vmem:[#allocation4 + $0x94] sm:$0xf] %vm17063_vm15, %v11981_v40  ;;  %v5706_v58 = vsel %vm15246_vm8, %v5562_v54, 0.0  ;;  %v5515_v34 = vadd.f32 %v5392_v6, %v4735_v41  ;;  %v6844_v12 = vld [vmem:[#allocation2 + $0xc0] sm:$0xff]  ;;  %vm17064_vm9 = vmmov %vm17055_vm7  ;;  %v11915_v43 = vpack.c.bf16 %v7214_v15, %v7214_v15  ;;  %v11916_v53 = vpack.c.bf16 %v7215_v7, %v7215_v7  ;;  %v7216_v0 = vld [vmem:[#allocation2 + $0x49] sm:$0xff]  ;;  %v4773_v6 = vpop.f32.mrf.mxu1 }
 0x38c   : > { %v6124_v25 = vld [vmem:[#allocation2 + $0xbf] sm:$0xff]  ;;  %6056 = vst.msk [vmem:[#allocation3 + $0x30] sm:$0xf] %vm17064_vm9, %v11711_v16  ;;  %vm17065_vm11 = vmmov %vm17056_vm3  ;;  %v11881_v28 = vpack.c.bf16 %v6844_v12, %v6844_v12  ;;  %v15300_v11 = vsel %vm15261_vm10, %v1272_v36, %v15145_v24  ;;  %v7217_v7 = vld [vmem:[#allocation2 + $0x51] sm:$0xff]  ;;  %v11710_v36 = vpack.c.bf16 %v15266_v8, %v15266_v8  ;;  %v11715_v39 = vpack.c.bf16 %v5790_v13, %v5790_v13 }
 0x38d   : > { %v7551_v40 = vld [vmem:[#allocation2 + $0xb9] sm:$0xff]  ;;  %5754 = vst.msk [vmem:[#allocation2 + $0xd0] sm:$0xff] %vm17065_vm11, %v5706_v58  ;;  %vm15293_vm7 = vmand %vm1356_vm1, %vm1404_vm5  ;;  %v11779_v41 = vpack.c.bf16 %v6124_v25, %v6124_v25  ;;  %v5563_v16 = vmax.f32 %v5515_v34, 0.0  ;;  %v12362_v24 = vld [vmem:[%s16822_s2 + $0x10] sm:$0xff]   ;;  %vm1360_vm10 = vcmp.ge.s32.totalorder %v14916_v44, 1  ;;  %v11911_v8 = vpack.c.bf16 %v15268_v55, %v15268_v55 }
 0x38e   : > { %v11982_v15 = vpack.c.bf16 %v7551_v40, %v7551_v40  ;;  %vm17068_vm3 = vmmov %vm17064_vm9  ;;  %v17072_v54 = vld [vmem:[#allocation22_spill] sm:$0xff]  ;;  %7056 = vrot.lane.b32.xlu0 %v11881_v28, %s12563_s9  ;;  %vm1408_vm9 = vcmp.le.s32.totalorder %v14916_v44, 16  ;;  %v11716_v13 = vpack.c.bf16 %v15279_v56, %v15279_v56  ;;  %v11717_v58 = vpack.c.bf16 %v15281_v60, %v15281_v60  ;;  %v5794_v34 = vld [vmem:[#allocation2 + $0x77] sm:$0xff]  ;;  %8921 = vmatpush1.bf16.msra.mxu0 %v12362_v24 }
 0x38f   : > { %6057 = vst.msk [vmem:[#allocation3 + $0x38] sm:$0xf] %vm17068_vm3, %v11712_v63  ;;  %vm17069_vm8 = vmmov %vm17068_vm3  ;;  %v4740_v5 = vadd.f32 %v14895_v42, %v17072_v54  ;;  %v15315_v63 = vld [vmem:[#allocation2 + $0x6f] sm:$0xff]  ;;  %v5397_v42 = vpop.f32.mrf.mxu0  ;;  %v15334_v12 = vld [vmem:[#allocation2 + $0x7f] sm:$0xff]  ;;  %v5707_v40 = vsel %vm15293_vm7, %v5563_v16, 0.0  ;;  %v11917_v56 = vpack.c.bf16 %v7216_v0, %v7216_v0  ;;  %v11918_v60 = vpack.c.bf16 %v7217_v7, %v7217_v7  ;;  %8922 = vmatprep.subr.bf16.mxu0 %v16870_v31 }
 0x390   : > { %6058 = vst.msk [vmem:[#allocation3 + $0x40] sm:$0xf] %vm17069_vm8, %v11713_v47  ;;  %vm17070_vm14 = vmmov %vm17068_vm3  ;;  %v15317_v47 = vld [vmem:[#allocation2 + $0x29] sm:$0xff]  ;;  %v7218_v49 = vld [vmem:[#allocation2 + $0x59] sm:$0xff] }
 0x391   : > { %6059 = vst.msk [vmem:[#allocation3 + $0x48] sm:$0xf] %vm17070_vm14, %v11714_v20  ;;  %vm17071_vm15 = vmmov %vm17068_vm3  ;;  %v15319_v20 = vld [vmem:[#allocation2 + $0x31] sm:$0xff]  ;;  %v15336_v25 = vld [vmem:[#allocation2 + $0x87] sm:$0xff]  ;;  %v5516_v55 = vadd.f32 %v5397_v42, %v4740_v5  ;;  %v5399_v28 = vpop.f32.mrf.mxu0 }
 0x392   : > { %6054 = vst.msk [vmem:[#allocation3 + $0x20] sm:$0xf] %vm17071_vm15, %v11709_v61  ;;  %vm17073_vm1 = vmmov %vm17068_vm3  ;;  %v11912_v61 = vpack.c.bf16 %v15270_v51, %v15270_v51  ;;  %v6125_v26 = vld [vmem:[#allocation2 + $0xc7] sm:$0xff]  ;;  %vm17079_vm15 = vcmask 523264   ;;  %v15367_v42 = vld [vmem:[#allocation2 + $0x8f] sm:$0xff] }
 0x393   : > { %7484 = vst.msk [vmem:[#allocation3 + $0x34] sm:$0xf] %vm17073_vm1, %v11915_v43  ;;  %vm17074_vm5 = vmmov %vm17073_vm1  ;;  %v15340_v43 = vpop.f32.mrf.mxu1  ;;  %v7552_v51 = vld [vmem:[#allocation2 + $0xc1] sm:$0xff]  ;;  %v11780_v54 = vpack.c.bf16 %v6125_v26, %v6125_v26  ;;  %v5564_v6 = vmax.f32 %v5516_v55, 0.0  ;;  %v5801_v57 = vld [vmem:[#allocation2 + $0xaf] sm:$0xff] }
 0x394   : > { %7485 = vst.msk [vmem:[#allocation3 + $0x3c] sm:$0xf] %vm17074_vm5, %v11916_v53  ;;  %vm17075_vm11 = vmmov %vm17073_vm1  ;;  %v6845_v53 = vld [vmem:[#allocation2 + $0xc8] sm:$0xff]  ;;  %v11983_v5 = vpack.c.bf16 %v7552_v51, %v7552_v51  ;;  %v15384_v55 = vld [vmem:[#allocation2 + $0x9f] sm:$0xff] }
 0x395   : > { %6364 = vst.msk [vmem:[#allocation4 + $0xa0] sm:$0xf] %vm17075_vm11, %v11779_v41  ;;  %vm17076_vm3 = vmmov %vm17073_vm1  ;;  %v11882_v41 = vpack.c.bf16 %v6845_v53, %v6845_v53  ;;  %v7219_v0 = vld [vmem:[#allocation2 + $0x61] sm:$0xff]  ;;  %v4776_v24 = vpop.f32.mrf.mxu1 }
 0x396   : > { %7791 = vst.msk [vmem:[#allocation4 + $0x9c] sm:$0xf] %vm17076_vm3, %v11982_v15  ;;  %vm17077_vm8 = vmmov %vm17073_vm1  ;;  %v15354_v15 = vadd.s32 24, %v15251_v35  ;;  %v17085_v7 = vld [vmem:[#allocation23_spill] sm:$0xff] }
 0x397   : > { %6055 = vst.msk [vmem:[#allocation3 + $0x28] sm:$0xf] %vm17077_vm8, %v11710_v36  ;;  %vm17078_vm14 = vmmov %vm17073_vm1  ;;  %v4743_v16 = vadd.f32 %v14937_v23, %v17085_v7  ;;  %v11718_v36 = vpack.c.bf16 %v15315_v63, %v15315_v63  ;;  %7058 = vrot.lane.b32.xlu1 %v11882_v41, %s12563_s9  ;;  %v11913_v23 = vpack.c.bf16 %v15317_v47, %v15317_v47  ;;  %v15386_v53 = vld [vmem:[#allocation2 + $0xa7] sm:$0xff]  ;;  %v15390_v51 = vpop.f32.mrf.mxu1 }
 0x398   : > { %6060 = vst.msk [vmem:[#allocation3 + $0x50] sm:$0xf] %vm17078_vm14, %v11715_v39  ;;  %vm15349_vm7 = vmand %vm1357_vm0, %vm1405_vm4  ;;  %v11719_v39 = vpack.c.bf16 %v5794_v34, %v5794_v34  ;;  %v11914_v63 = vpack.c.bf16 %v15319_v20, %v15319_v20  ;;  %v11721_v34 = vpack.c.bf16 %v15336_v25, %v15336_v25  ;;  %v7553_v20 = vld [vmem:[#allocation2 + $0xc9] sm:$0xff]  ;;  %v11920_v25 = vpack.c.bf16 %v7219_v0, %v7219_v0  ;;  %v15482_v44 = vld [vmem:[#allocation2 + $0xa1] sm:$0xff] }
 0x399   : > { %5755 = vst.msk [vmem:[#allocation2 + $0xd8] sm:$0xff] %vm17079_vm15, %v5707_v40  ;;  %vm17082_vm5 = vmmov %vm17073_vm1  ;;  %v5798_v40 = vld [vmem:[#allocation2 + $0x97] sm:$0xff]  ;;  %v5708_v26 = vsel %vm15349_vm7, %v5564_v6, 0.0  ;;  %v11984_v7 = vpack.c.bf16 %v7553_v20, %v7553_v20  ;;  %v4781_v24 = vpop.f32.mrf.mxu1 }
 0x39a   : > { %7480 = vst.msk [vmem:[#allocation3 + $0x14] sm:$0xf] %vm17073_vm1, %v11911_v8  ;;  %vm17083_vm11 = vmmov %vm17073_vm1  ;;  %v15369_v8 = vld [vmem:[#allocation2 + $0x69] sm:$0xff] }
 0x39b   : > { %7481 = vst.msk [vmem:[#allocation3 + $0x1c] sm:$0xf] %vm17082_vm5, %v11912_v61  ;;  %vm17084_vm3 = vmmov %vm17073_vm1  ;;  %v15371_v61 = vld [vmem:[#allocation2 + $0x71] sm:$0xff]  ;;  %vm17092_vm5 = vcmask 523264  }
 0x39c   : > { %6061 = vst.msk [vmem:[#allocation3 + $0x58] sm:$0xf] %vm17083_vm11, %v11716_v13  ;;  %vm17086_vm0 = vmmov %vm17073_vm1  ;;  %v5400_v13 = vpop.f32.mrf.mxu0  ;;  %v17098_v0 = vld [vmem:[#allocation24_spill] sm:$0xff] }
 0x39d   : > { %6062 = vst.msk [vmem:[#allocation3 + $0x60] sm:$0xf] %vm17084_vm3, %v11717_v58  ;;  %vm17087_vm4 = vmmov %vm17086_vm0  ;;  %v11720_v58 = vpack.c.bf16 %v15334_v12, %v15334_v12  ;;  %v5517_v47 = vadd.f32 %v5400_v13, %v4743_v16  ;;  %v11919_v12 = vpack.c.bf16 %v7218_v49, %v7218_v49  ;;  %v5802_v49 = vld [vmem:[#allocation2 + $0xb7] sm:$0xff]  ;;  %v4748_v16 = vadd.f32 %v14973_v17, %v17098_v0 }
 0x39e   : > { %7486 = vst.msk [vmem:[#allocation3 + $0x44] sm:$0xf] %vm17086_vm0, %v11917_v56  ;;  %vm17088_vm8 = vmmov %vm17086_vm0  ;;  %v6846_v56 = vld [vmem:[#allocation2 + $0xd0] sm:$0xff]  ;;  %v5402_v28 = vpop.f32.mrf.mxu0  ;;  %v11722_v17 = vpack.c.bf16 %v15367_v42, %v15367_v42  ;;  %v11921_v13 = vpack.c.bf16 %v15369_v8, %v15369_v8  ;;  %v11724_v42 = vpack.c.bf16 %v15384_v55, %v15384_v55 }
 0x39f   : > { %7487 = vst.msk [vmem:[#allocation3 + $0x4c] sm:$0xf] %vm17087_vm4, %v11918_v60  ;;  %vm17089_vm14 = vmmov %vm17086_vm0  ;;  %v6126_v60 = vld [vmem:[#allocation2 + $0xcf] sm:$0xff]  ;;  %v11883_v41 = vpack.c.bf16 %v6846_v56, %v6846_v56  ;;  %v5565_v6 = vmax.f32 %v5517_v47, 0.0  ;;  %v15448_v47 = vpop.f32.mrf.mxu1 }
 0x3a0   : > { %6365 = vst.msk [vmem:[#allocation4 + $0xa8] sm:$0xf] %vm17088_vm8, %v11780_v54  ;;  %vm17090_vm15 = vmmov %vm17086_vm0  ;;  %v979_v54 = vmul.u32 24, %v978_v30  ;;  %vm1409_vm8 = vcmp.le.s32.totalorder %v15039_v52, 16  ;;  %v11723_v30 = vpack.c.bf16 %v5798_v40, %v5798_v40  ;;  %v5405_v48 = vpop.f32.mrf.mxu0  ;;  %v15444_v40 = vld [vmem:[#allocation2 + $0xcf] sm:$0xff]  ;;  %v6847_v56 = vld [vmem:[#allocation2 + $0xd8] sm:$0xff] }
 0x3a1   : > { %7792 = vst.msk [vmem:[#allocation4 + $0xa4] sm:$0xf] %vm17089_vm14, %v11983_v5  ;;  %vm17091_vm1 = vmmov %vm17086_vm0  ;;  %v11781_v5 = vpack.c.bf16 %v6126_v60, %v6126_v60  ;;  %7060 = vrot.lane.b32.xlu0 %v11883_v41, %s12563_s9  ;;  %v5518_v8 = vadd.f32 %v5405_v48, %v4748_v16  ;;  %v7554_v55 = vld [vmem:[#allocation2 + $0xd1] sm:$0xff]  ;;  %v11727_v60 = vpack.c.bf16 %v5802_v49, %v5802_v49  ;;  %v4784_v16 = vpop.f32.mrf.mxu1  ;;  %v15493_v48 = vld [vmem:[#allocation2 + $0xa9] sm:$0xff] }
 0x3a2   : > { %6063 = vst.msk [vmem:[#allocation3 + $0x68] sm:$0xf] %vm17090_vm15, %v11718_v36  ;;  %vm15399_vm11 = vmand %vm1358_vm2, %vm1406_vm12  ;;  %vm1361_vm12 = vcmp.ge.s32.totalorder %v15039_v52, 1  ;;  %v15425_v36 = vld [vmem:[#allocation2 + $0x79] sm:$0xff]  ;;  %v5407_v20 = vpop.f32.mrf.mxu0  ;;  %v11985_v28 = vpack.c.bf16 %v7554_v55, %v7554_v55  ;;  %v11928_v16 = vpack.c.bf16 %v15482_v44, %v15482_v44  ;;  %v17137_v52 = vld [vmem:[#allocation27_spill] sm:$0xff] }
 0x3a3   : > { %6064 = vst.msk [vmem:[#allocation3 + $0x70] sm:$0xf] %vm17091_vm1, %v11719_v39  ;;  %vm17095_vm7 = vmmov %vm17086_vm0  ;;  %v15427_v39 = vld [vmem:[#allocation2 + $0x81] sm:$0xff]  ;;  %vm1362_vm1 = vcmp.ge.s32.totalorder %v15071_v37, 1  ;;  %v5806_v41 = vld [vmem:[#allocation2 + $0xd7] sm:$0xff]  ;;  %v5566_v0 = vmax.f32 %v5518_v8, 0.0 }
 0x3a4   : > { %5756 = vst.msk [vmem:[#allocation2 + $0xe0] sm:$0xff] %vm17092_vm5, %v5708_v26  ;;  %vm17096_vm3 = vmmov %vm17086_vm0  ;;  %v5709_v26 = vsel %vm15399_vm11, %v5565_v6, 0.0  ;;  %vm1410_vm5 = vcmp.le.s32.totalorder %v15071_v37, 16  ;;  %v15480_v6 = vld [vmem:[#allocation2 + $0x99] sm:$0xff]  ;;  %v5408_v24 = vpop.f32.mrf.mxu0 }
 0x3a5   : > { %7482 = vst.msk [vmem:[#allocation3 + $0x24] sm:$0xf] %vm17095_vm7, %v11913_v23  ;;  %vm17097_vm4 = vmmov %vm17086_vm0  ;;  %v11922_v23 = vpack.c.bf16 %v15371_v61, %v15371_v61  ;;  %v6127_v61 = vld [vmem:[#allocation2 + $0xd7] sm:$0xff] }
 0x3a6   : > { %7483 = vst.msk [vmem:[#allocation3 + $0x2c] sm:$0xf] %vm17096_vm3, %v11914_v63  ;;  %vm15415_vm2 = vmand %vm1359_vm13, %vm1407_vm6  ;;  %v11725_v63 = vpack.c.bf16 %v15386_v53, %v15386_v53  ;;  %v11726_v53 = vpack.c.bf16 %v5801_v57, %v5801_v57  ;;  %v11782_v29 = vpack.c.bf16 %v6127_v61, %v6127_v61  ;;  %v17112_v57 = vld [vmem:[#allocation25_spill] sm:$0xff]  ;;  %v5410_v61 = vpop.f32.mrf.mxu0 }
 0x3a7   : > { %6065 = vst.msk [vmem:[#allocation3 + $0x78] sm:$0xf] %vm17086_vm0, %v11720_v58  ;;  %vm17101_vm14 = vmmov %vm17086_vm0  ;;  %v15440_v58 = vld [vmem:[#allocation2 + $0xbf] sm:$0xff]  ;;  %v4751_v49 = vadd.f32 %v15022_v59, %v17112_v57  ;;  %v11923_v59 = vpack.c.bf16 %v15425_v36, %v15425_v36  ;;  %v11730_v36 = vpack.c.bf16 %v15444_v40, %v15444_v40  ;;  %v12370_v57 = vld [vmem:[%s16822_s2 + $0x8] sm:$0xff]   ;;  %v4759_v61 = vadd.f32 %v15141_v10, %v17137_v52 }
 0x3a8   : > { %6066 = vst.msk [vmem:[#allocation3 + $0x80] sm:$0xf] %vm17097_vm4, %v11721_v34  ;;  %vm17102_vm15 = vmmov %vm17086_vm0  ;;  %v15442_v34 = vld [vmem:[#allocation2 + $0xc7] sm:$0xff]  ;;  %8923 = vmatpush1.bf16.msra.mxu0 %v12370_v57 }
 0x3a9   : > { %7488 = vst.msk [vmem:[#allocation3 + $0x54] sm:$0xf] %vm17101_vm14, %v11919_v12  ;;  %vm17103_vm13 = vmmov %vm17086_vm0  ;;  %v11884_v12 = vpack.c.bf16 %v6847_v56, %v6847_v56  ;;  %8924 = vmatprep.subr.bf16.mxu0 %v16870_v31 }
 0x3aa   : > { %7489 = vst.msk [vmem:[#allocation3 + $0x5c] sm:$0xf] %vm17102_vm15, %v11920_v25  ;;  %vm17104_vm6 = vmmov %vm17086_vm0  ;;  %v15456_v25 = vsub.s32 %v15121_v27, %v979_v54  ;;  %v11924_v54 = vpack.c.bf16 %v15427_v39, %v15427_v39  ;;  %v11731_v39 = vpack.c.bf16 %v5806_v41, %v5806_v41 }
 0x3ab   : > { %6366 = vst.msk [vmem:[#allocation4 + $0xb0] sm:$0xf] %vm17103_vm13, %v11781_v5  ;;  %vm17105_vm7 = vmmov %vm17086_vm0  ;;  %v7224_v5 = vld [vmem:[#allocation2 + $0x89] sm:$0xff]  ;;  %7062 = vrot.lane.b32.xlu1 %v11884_v12, %s12563_s9  ;;  %v6128_v8 = vld [vmem:[#allocation2 + $0xdf] sm:$0xff] }
 0x3ac   : > { %7793 = vst.msk [vmem:[#allocation4 + $0xac] sm:$0xf] %vm17104_vm6, %v11984_v7  ;;  %vm17106_vm3 = vmmov %vm17086_vm0  ;;  %vm17107_vm0 = vcmask 523264   ;;  %v7225_v7 = vld [vmem:[#allocation2 + $0x91] sm:$0xff]  ;;  %vm1129_vm6 = vcmp.ne.s32.totalorder %v15251_v35, 0  ;;  %v7555_v56 = vld [vmem:[#allocation2 + $0xd9] sm:$0xff]  ;;  %v11783_v9 = vpack.c.bf16 %v6128_v8, %v6128_v8 }
 0x3ad   : > { %6067 = vst.msk [vmem:[#allocation3 + $0x88] sm:$0xf] %vm17105_vm7, %v11722_v17  ;;  %vm17108_vm11 = vmmov %vm17106_vm3  ;;  %vm1177_vm7 = vcmp.lt.s32.totalorder %v15251_v35, 0  ;;  %v11728_v17 = vpack.c.bf16 %v15440_v58, %v15440_v58  ;;  %v6848_v58 = vld [vmem:[#allocation2 + $0xe0] sm:$0xff]  ;;  %v11926_v40 = vpack.c.bf16 %v7225_v7, %v7225_v7  ;;  %v989_v8 = vshrl.u32 %v15209_v19, 4 }
 0x3ae   : > { %6068 = vst.msk [vmem:[#allocation3 + $0x90] sm:$0xf] %vm17106_vm3, %v11723_v30  ;;  %vm17109_vm4 = vmmov %vm17106_vm3  ;;  %v11729_v30 = vpack.c.bf16 %v15442_v34, %v15442_v34  ;;  %v11925_v34 = vpack.c.bf16 %v7224_v5, %v7224_v5  ;;  %v11885_v55 = vpack.c.bf16 %v6848_v58, %v6848_v58  ;;  %v5807_v20 = vld [vmem:[#allocation2 + $0xdf] sm:$0xff]  ;;  %v1274_v57 = vadd.s32 24, %v15456_v25 }
 0x3af   : > { %5757 = vst.msk [vmem:[#allocation2 + $0xe8] sm:$0xff] %vm17107_vm0, %v5709_v26  ;;  %vm17110_vm14 = vmmov %vm17106_vm3  ;;  %v5519_v26 = vadd.f32 %v5408_v24, %v4751_v49  ;;  %v7231_v12 = vld [vmem:[#allocation2 + $0xc1] sm:$0xff]  ;;  %v11732_v49 = vpack.c.bf16 %v5807_v20, %v5807_v20 }
 0x3b0   : > { %7490 = vst.msk [vmem:[#allocation3 + $0x64] sm:$0xf] %vm17108_vm11, %v11921_v13  ;;  %vm17111_vm15 = vmmov %vm17106_vm3  ;;  %v15495_v13 = vld [vmem:[#allocation2 + $0xb1] sm:$0xff]  ;;  %7064 = vrot.lane.b32.xlu0 %v11885_v55, %s12563_s9 }
 0x3b1   : > { %7491 = vst.msk [vmem:[#allocation3 + $0x6c] sm:$0xf] %vm17109_vm4, %v11922_v23  ;;  %vm15468_vm13 = vmand %vm1360_vm10, %vm1408_vm9  ;;  %v15497_v23 = vld [vmem:[#allocation2 + $0xb9] sm:$0xff]  ;;  %v5567_v5 = vmax.f32 %v5519_v26, 0.0 }
 0x3b2   : > { %6069 = vst.msk [vmem:[#allocation3 + $0x98] sm:$0xf] %vm17110_vm14, %v11724_v42  ;;  %vm17115_vm0 = vmmov %vm17106_vm3  ;;  %v5710_v42 = vsel %vm15415_vm2, %v5566_v0, 0.0  ;;  %vm17120_vm14 = vcmask 523264   ;;  %v11927_v0 = vpack.c.bf16 %v15480_v6, %v15480_v6  ;;  %v11931_v24 = vpack.c.bf16 %v15497_v23, %v15497_v23  ;;  %v7233_v6 = vld [vmem:[#allocation2 + $0xd1] sm:$0xff] }
 0x3b3   : > { %6070 = vst.msk [vmem:[#allocation3 + $0xa0] sm:$0xf] %vm17111_vm15, %v11725_v63  ;;  %vm17116_vm10 = vmmov %vm17115_vm0  ;;  %v15501_v63 = vpop.f32.mrf.mxu1 }
 0x3b4   : > { %6071 = vst.msk [vmem:[#allocation3 + $0xa8] sm:$0xf] %vm17106_vm3, %v11726_v53  ;;  %vm17117_vm9 = vmmov %vm17115_vm0  ;;  %v15507_v53 = vadd.s32 328, %v13670_v18 }
 0x3b5   : > { %6072 = vst.msk [vmem:[#allocation3 + $0xb0] sm:$0xf] %vm17115_vm0, %v11727_v60  ;;  %vm17118_vm11 = vmmov %vm17115_vm0  ;;  %v11986_v60 = vpack.c.bf16 %v7555_v56, %v7555_v56  ;;  %v4789_v7 = vpop.f32.mrf.mxu1 }
 0x3b6   : > { %6367 = vst.msk [vmem:[#allocation4 + $0xb8] sm:$0xf] %vm17116_vm10, %v11782_v29  ;;  %vm17119_vm4 = vmmov %vm17115_vm0  ;;  %v7232_v29 = vld [vmem:[#allocation2 + $0xc9] sm:$0xff]  ;;  %vm1363_vm10 = vcmp.ge.s32.totalorder %v15103_v32, 1  ;;  %v7556_v26 = vld [vmem:[#allocation2 + $0xe1] sm:$0xff] }
 0x3b7   : > { %7794 = vst.msk [vmem:[#allocation4 + $0xb4] sm:$0xf] %vm17117_vm9, %v11985_v28  ;;  %vm17121_vm2 = vmmov %vm17115_vm0  ;;  %v17124_v28 = vld [vmem:[#allocation26_spill] sm:$0xff]  ;;  %vm1411_vm9 = vcmp.le.s32.totalorder %v15103_v32, 16 }
 0x3b8   : > { %7492 = vst.msk [vmem:[#allocation3 + $0x74] sm:$0xf] %vm17118_vm11, %v11923_v59  ;;  %vm17122_vm15 = vmmov %vm17115_vm0  ;;  %v4756_v41 = vadd.f32 %v15087_v62, %v17124_v28  ;;  %v5413_v62 = vpop.f32.mrf.mxu0  ;;  %v11929_v59 = vpack.c.bf16 %v15493_v48, %v15493_v48  ;;  %v6129_v44 = vld [vmem:[#allocation2 + $0xe7] sm:$0xff]  ;;  %v11932_v48 = vpack.c.bf16 %v7231_v12, %v7231_v12 }
 0x3b9   : > { %7493 = vst.msk [vmem:[#allocation3 + $0x7c] sm:$0xf] %vm17119_vm4, %v11924_v54  ;;  %vm17123_vm3 = vmmov %vm17115_vm0  ;;  %v11930_v54 = vpack.c.bf16 %v15495_v13, %v15495_v13  ;;  %v11933_v13 = vpack.c.bf16 %v7232_v29, %v7232_v29  ;;  %v11784_v56 = vpack.c.bf16 %v6129_v44, %v6129_v44  ;;  %v7235_v20 = vld [vmem:[#allocation2 + $0xe1] sm:$0xff] }
 0x3ba   : > { %5758 = vst.msk [vmem:[#allocation2 + $0xf0] sm:$0xff] %vm17120_vm14, %v5710_v42  ;;  %vm17125_vm11 = vmmov %vm17115_vm0  ;;  %v6849_v42 = vld [vmem:[#allocation2 + $0xe8] sm:$0xff]  ;;  %v5415_v23 = vpop.f32.mrf.mxu0  ;;  %v11936_v28 = vpack.c.bf16 %v7235_v20, %v7235_v20 }
 0x3bb   : > { %6073 = vst.msk [vmem:[#allocation3 + $0xb8] sm:$0xf] %vm17121_vm2, %v11728_v17  ;;  %vm17126_vm4 = vmmov %vm17115_vm0  ;;  %v15535_v17 = vld [vmem:[#allocation2 + $0xd9] sm:$0xff]  ;;  %v11886_v58 = vpack.c.bf16 %v6849_v42, %v6849_v42 }
 0x3bc   : > { %6074 = vst.msk [vmem:[#allocation3 + $0xc0] sm:$0xf] %vm17122_vm15, %v11729_v30  ;;  %vm17127_vm14 = vmmov %vm17115_vm0  ;;  %v5711_v30 = vsel %vm15468_vm13, %v5567_v5, 0.0  ;;  %v5416_v12 = vpop.f32.mrf.mxu0  ;;  %v11935_v29 = vpack.c.bf16 %v15535_v17, %v15535_v17 }
 0x3bd   : > { %6075 = vst.msk [vmem:[#allocation3 + $0xc8] sm:$0xf] %vm17123_vm3, %v11730_v36  ;;  %vm17128_vm2 = vmmov %vm17115_vm0  ;;  %v15539_v36 = vpop.f32.mrf.mxu1  ;;  %7066 = vrot.lane.b32.xlu1 %v11886_v58, %s12563_s9  ;;  %v5521_v5 = vadd.f32 %v5416_v12, %v4759_v61 }
 0x3be   : > { %6076 = vst.msk [vmem:[#allocation3 + $0xd0] sm:$0xf] %vm17115_vm0, %v11731_v39  ;;  %v5520_v39 = vadd.f32 %v5413_v62, %v4756_v41  ;;  %vm17129_vm15 = vmmov %vm17115_vm0 }
 0x3bf   : > { %7494 = vst.msk [vmem:[#allocation3 + $0x84] sm:$0xf] %vm17125_vm11, %v11925_v34  ;;  %vm17130_vm3 = vmmov %vm17115_vm0  ;;  %vm17131_vm0 = vcmask 523264   ;;  %v11987_v34 = vpack.c.bf16 %v7556_v26, %v7556_v26  ;;  %v5569_v44 = vmax.f32 %v5521_v5, 0.0 }
 0x3c0   : > { %7495 = vst.msk [vmem:[#allocation3 + $0x8c] sm:$0xf] %vm17126_vm4, %v11926_v40  ;;  %vm15548_vm13 = vmand %vm1361_vm12, %vm1409_vm8  ;;  %v5808_v40 = vld [vmem:[#allocation2 + $0xe7] sm:$0xff]  ;;  %v5568_v55 = vmax.f32 %v5520_v39, 0.0  ;;  %vm1364_vm12 = vcmp.ge.s32.totalorder %v15108_v22, 1  ;;  %vm1412_vm8 = vcmp.le.s32.totalorder %v15108_v22, 16 }
 0x3c1   : > { %6368 = vst.msk [vmem:[#allocation4 + $0xc0] sm:$0xf] %vm17127_vm14, %v11783_v9  ;;  %vm17134_vm11 = vmmov %vm17128_vm2  ;;  %v4792_v9 = vpop.f32.mrf.mxu1  ;;  %v11733_v19 = vpack.c.bf16 %v5808_v40, %v5808_v40  ;;  %v6850_v7 = vld [vmem:[#allocation2 + $0xf0] sm:$0xff]  ;;  %v12378_v22 = vld [vmem:[%s16822_s2] sm:$0xff]  }
 0x3c2   : > { %7795 = vst.msk [vmem:[#allocation4 + $0xbc] sm:$0xf] %vm17128_vm2, %v11986_v60  ;;  %vm17135_vm4 = vmmov %vm17128_vm2  ;;  %v11934_v60 = vpack.c.bf16 %v7233_v6, %v7233_v6  ;;  %v5712_v37 = vsel %vm15548_vm13, %v5568_v55, 0.0  ;;  %v7557_v62 = vld [vmem:[#allocation2 + $0xe9] sm:$0xff]  ;;  %8925 = vmatpush1.bf16.msra.mxu0 %v12378_v22 }
 0x3c3   : > { %6077 = vst.msk [vmem:[#allocation3 + $0xd8] sm:$0xf] %vm17129_vm15, %v11732_v49  ;;  %vm17136_vm14 = vmmov %vm17128_vm2  ;;  %v15581_v41 = vpop.f32.mrf.mxu1  ;;  %v1000_v49 = vshrl.u32 %v15227_v33, 4  ;;  %v11988_v6 = vpack.c.bf16 %v7557_v62, %v7557_v62  ;;  %v5809_v17 = vld [vmem:[#allocation2 + $0xef] sm:$0xff]  ;;  %8934 = vmatprep.subr.bf16.mxu0 %v16870_v31 }
 0x3c4   : > { %7496 = vst.msk [vmem:[#allocation3 + $0x94] sm:$0xf] %vm17130_vm3, %v11927_v0  ;;  %vm17138_vm15 = vmmov %vm17128_vm2  ;;  %v6130_v0 = vld [vmem:[#allocation2 + $0xef] sm:$0xff] }
 0x3c5   : > { %5759 = vst.msk [vmem:[#allocation2 + $0xf8] sm:$0xff] %vm17131_vm0, %v5711_v30  ;;  %vm17139_vm3 = vmmov %vm17128_vm2  ;;  %v11785_v33 = vpack.c.bf16 %v6130_v0, %v6130_v0  ;;  %v7236_v30 = vld [vmem:[#allocation2 + $0xe9] sm:$0xff]  ;;  %v4797_v26 = vpop.f32.mrf.mxu1  ;;  %v1001_v55 = vmul.u32 24, %v1000_v49 }
 0x3c6   : > { %7497 = vst.msk [vmem:[#allocation3 + $0x9c] sm:$0xf] %vm17134_vm11, %v11928_v16  ;;  %vm15569_vm0 = vmand %vm1362_vm1, %vm1410_vm5  ;;  %vm1130_vm11 = vcmp.ne.s32.totalorder %v15456_v25, 0  ;;  %v5418_v16 = vpop.f32.mrf.mxu0  ;;  %v17150_v39 = vld [vmem:[#allocation28_spill] sm:$0xff] }
 0x3c7   : > { %7498 = vst.msk [vmem:[#allocation3 + $0xa4] sm:$0xf] %vm17135_vm4, %v11929_v59  ;;  %vm1178_vm4 = vcmp.lt.s32.totalorder %v15456_v25, 0  ;;  %vm17143_vm1 = vmmov %vm17128_vm2  ;;  %v11887_v59 = vpack.c.bf16 %v6850_v7, %v6850_v7  ;;  %v4764_v42 = vadd.f32 %v15191_v14, %v17150_v39  ;;  %v1011_v14 = vshrl.u32 %v15236_v21, 4  ;;  %v15623_v40 = vpop.f32.mrf.mxu1 }
 0x3c8   : > { %7499 = vst.msk [vmem:[#allocation3 + $0xac] sm:$0xf] %vm17136_vm14, %v11930_v54  ;;  %vm17142_vm14 = vmmov %vm17128_vm2  ;;  %v5421_v27 = vpop.f32.mrf.mxu0 }
 0x3c9   : > { %7500 = vst.msk [vmem:[#allocation3 + $0xb4] sm:$0xf] %vm17128_vm2, %v11931_v24  ;;  %7796 = vst.msk [vmem:[#allocation4 + $0xc4] sm:$0xf] %vm17128_vm2, %v11987_v34  ;;  %v990_v24 = vmul.u32 24, %v989_v8  ;;  %vm1365_vm2 = vcmp.ge.s32.totalorder %v15118_v4, 1  ;;  %7068 = vrot.lane.b32.xlu0 %v11887_v59, %s12563_s9  ;;  %v5522_v52 = vadd.f32 %v5421_v27, %v4764_v42  ;;  %v4800_v49 = vpop.f32.mrf.mxu1 }
 0x3ca   : > { %7501 = vst.msk [vmem:[#allocation3 + $0xbc] sm:$0xf] %vm17138_vm15, %v11932_v48  ;;  %vm17144_vm5 = vmmov %vm17143_vm1  ;;  %vm17145_vm15 = vcmask 523264   ;;  %v11734_v48 = vpack.c.bf16 %v5809_v17, %v5809_v17  ;;  %v15613_v58 = vmul.u32.u64.low 2863311531, %v15507_v53  ;;  %v15614_v8 = vmul.u32.u64.high 2863311531, %v15507_v53, %v15613_v58  ;;  %v5423_v20 = vpop.f32.mrf.mxu0  ;;  %v17166_v27 = vld [vmem:[#allocation30_spill] sm:$0xff] }
 0x3cb   : > { %7502 = vst.msk [vmem:[#allocation3 + $0xc4] sm:$0xf] %vm17139_vm3, %v11933_v13  ;;  %vm15592_vm13 = vmand %vm1177_vm7, %vm1129_vm6  ;;  %vm1413_vm6 = vcmp.le.s32.totalorder %v15118_v4, 16  ;;  %v11937_v13 = vpack.c.bf16 %v7236_v30, %v7236_v30  ;;  %v5713_v34 = vsel %vm15569_vm0, %v5569_v44, 0.0  ;;  %v5570_v7 = vmax.f32 %v5522_v52, 0.0 }
 0x3cc   : > { %6369 = vst.msk [vmem:[#allocation4 + $0xc8] sm:$0xf] %vm17142_vm14, %v11784_v56  ;;  %vm17148_vm3 = vmmov %vm17143_vm1  ;;  %v15617_v56 = vadd.s32 336, %v13670_v18  ;;  %v6851_v61 = vld [vmem:[#allocation2 + $0xf8] sm:$0xff]  ;;  %v15629_v21 = vsel %vm15592_vm13, %v15354_v15, %v15251_v35  ;;  %v15643_v15 = vsub.s32 %v15157_v38, %v990_v24  ;;  %vm1366_vm13 = vcmp.ge.s32.totalorder %v15173_v1, 1  ;;  %v5424_v62 = vpop.f32.mrf.mxu0  ;;  %v15663_v24 = vpop.f32.mrf.mxu1 }
 0x3cd   : > { %6078 = vst.msk [vmem:[#allocation3 + $0xe0] sm:$0xf] %vm17143_vm1, %v11733_v19  ;;  %vm17149_vm14 = vmmov %vm17143_vm1  ;;  %v6131_v9 = vld [vmem:[#allocation2 + $0xf7] sm:$0xff]  ;;  %v11888_v35 = vpack.c.bf16 %v6851_v61, %v6851_v61  ;;  %v1012_v16 = vmul.u32 24, %v1011_v14  ;;  %v15666_v17 = vsub.s32 %v15185_v2, %v1001_v55  ;;  %v4772_v23 = vadd.f32 %v15285_v46, %v17166_v27  ;;  %v7019_v27 = vpop.permute.xlu1 %7018 }
 0x3ce   : > { %7503 = vst.msk [vmem:[#allocation3 + $0xcc] sm:$0xf] %vm17144_vm5, %v11934_v60  ;;  %vm15607_vm7 = vmand %vm1178_vm4, %vm1130_vm11  ;;  %v7558_v19 = vld [vmem:[#allocation2 + $0xf1] sm:$0xff]  ;;  %v11786_v10 = vpack.c.bf16 %v6131_v9, %v6131_v9  ;;  %v5426_v2 = vpop.f32.mrf.mxu0  ;;  %v4805_v58 = vpop.f32.mrf.mxu1  ;;  %v15693_v55 = vadd.s32 24, %v15643_v15  ;;  %v1022_v9 = vshrl.u32 %v15614_v8, 4 }
 0x3cf   : > { %5760 = vst.msk [vmem:[#allocation2 + $0x100] sm:$0xff] %vm17145_vm15, %v5712_v37  ;;  %vm17153_vm5 = vmmov %vm17143_vm1  ;;  %v11989_v12 = vpack.c.bf16 %v7558_v19, %v7558_v19  ;;  %v17158_v37 = vld [vmem:[#allocation29_spill] sm:$0xff]  ;;  %7070 = vrot.lane.b32.xlu1 %v11888_v35, %s12563_s9  ;;  %v15653_v38 = vsel %vm15607_vm7, %v1274_v57, %v15456_v25  ;;  %v15669_v25 = vadd.s32 344, %v13670_v18  ;;  %v15696_v46 = vsub.s32 %v15195_v50, %v1012_v16 }
 0x3d0   : > { %7504 = vst.msk [vmem:[#allocation3 + $0xd4] sm:$0xf] %vm17148_vm3, %v11935_v29  ;;  %vm17154_vm11 = vmmov %vm17143_vm1  ;;  %v5810_v29 = vld [vmem:[#allocation2 + $0xf7] sm:$0xff]  ;;  %v4767_v5 = vadd.f32 %v15232_v3, %v17158_v37  ;;  %v15656_v59 = vmul.u32.u64.low 2863311531, %v15617_v56  ;;  %v15657_v3 = vmul.u32.u64.high 2863311531, %v15617_v56, %v15656_v59  ;;  %v5429_v61 = vpop.f32.mrf.mxu0  ;;  %v15703_v60 = vpop.f32.mrf.mxu1  ;;  %v1276_v58 = vadd.s32 24, %v15666_v17 }
 0x3d1   : > { %7505 = vst.msk [vmem:[#allocation3 + $0xdc] sm:$0xf] %vm17149_vm14, %v11936_v28  ;;  %vm17155_vm4 = vmmov %vm17143_vm1  ;;  %v7237_v28 = vld [vmem:[#allocation2 + $0xf1] sm:$0xff]  ;;  %v11735_v32 = vpack.c.bf16 %v5810_v29, %v5810_v29  ;;  %v5524_v20 = vadd.f32 %v5429_v61, %v4772_v23  ;;  %v7017_v37 = vpop.permute.xlu0 %7016 }
 0x3d2   : > { %6370 = vst.msk [vmem:[#allocation4 + $0xd0] sm:$0xf] %vm17143_vm1, %v11785_v33  ;;  %vm15638_vm0 = vmand %vm1363_vm10, %vm1411_vm9  ;;  %vm1414_vm10 = vcmp.le.s32.totalorder %v15173_v1, 16  ;;  %v11938_v0 = vpack.c.bf16 %v7237_v28, %v7237_v28  ;;  %v5523_v33 = vadd.f32 %v5424_v62, %v4767_v5  ;;  %v5431_v28 = vpop.f32.mrf.mxu0  ;;  %v4808_v59 = vpop.f32.mrf.mxu1 }
 0x3d3   : > { %7797 = vst.msk [vmem:[#allocation4 + $0xcc] sm:$0xf] %vm17153_vm5, %v11988_v6  ;;  %vm17159_vm9 = vmmov %vm17143_vm1  ;;  %v5714_v54 = vsel %vm15638_vm0, %v5570_v7, 0.0  ;;  %v5572_v16 = vmax.f32 %v5524_v20, 0.0  ;;  %v1277_v28 = vadd.s32 24, %v15696_v46 }
 0x3d4   : > { %6079 = vst.msk [vmem:[#allocation3 + $0xe8] sm:$0xf] %vm17154_vm11, %v11734_v48  ;;  %vm17160_vm3 = vmmov %vm17143_vm1  ;;  %vm1131_vm11 = vcmp.ne.s32.totalorder %v15643_v15, 0  ;;  %v5571_v14 = vmax.f32 %v5523_v33, 0.0  ;;  %v5432_v33 = vpop.f32.mrf.mxu0  ;;  %v15743_v2 = vpop.f32.mrf.mxu1 }
 0x3d5   : > { %7506 = vst.msk [vmem:[#allocation3 + $0xe4] sm:$0xf] %vm17155_vm4, %v11937_v13  ;;  %vm17161_vm14 = vmmov %vm17143_vm1  ;;  %vm1367_vm4 = vcmp.ge.s32.totalorder %v15222_v45, 1 }
 0x3d6   : > { %5761 = vst.msk [vmem:[#allocation2 + $0x108] sm:$0xff] %vm17145_vm15, %v5713_v34  ;;  %v6852_v6 = vld [vmem:[#allocation2 + $0x100] sm:$0xff]  ;;  %vm17162_vm7 = vmmov %vm17143_vm1  ;;  %v5434_v23 = vpop.f32.mrf.mxu0  ;;  %v4813_v1 = vpop.f32.mrf.mxu1 }
 0x3d7   : > { %6371 = vst.msk [vmem:[#allocation4 + $0xd8] sm:$0xf] %vm17159_vm9, %v11786_v10  ;;  %v6132_v57 = vld [vmem:[#allocation2 + $0xff] sm:$0xff]  ;;  %vm17163_vm1 = vmmov %vm17145_vm15  ;;  %v11889_v42 = vpack.c.bf16 %v6852_v6, %v6852_v6  ;;  %vm1368_vm9 = vcmp.ge.s32.totalorder %v15300_v11, 1  ;;  %v15708_v50 = vmul.u32.u64.low 2863311531, %v15669_v25  ;;  %v15709_v10 = vmul.u32.u64.high 2863311531, %v15669_v25, %v15708_v50 }
 0x3d8   : > { %7798 = vst.msk [vmem:[#allocation4 + $0xd4] sm:$0xf] %vm17160_vm3, %v11989_v12  ;;  %v7559_v30 = vld [vmem:[#allocation2 + $0xf9] sm:$0xff]  ;;  %vm15678_vm5 = vmand %vm1364_vm12, %vm1412_vm8  ;;  %v11787_v44 = vpack.c.bf16 %v6132_v57, %v6132_v57  ;;  %vm1415_vm12 = vcmp.le.s32.totalorder %v15222_v45, 16  ;;  %vm1179_vm8 = vcmp.lt.s32.totalorder %v15643_v15, 0  ;;  %v1033_v57 = vshrl.u32 %v15657_v3, 4 }
 0x3d9   : > { %6080 = vst.msk [vmem:[#allocation3 + $0xf0] sm:$0xf] %vm17161_vm14, %v11735_v32  ;;  %v11990_v26 = vpack.c.bf16 %v7559_v30, %v7559_v30  ;;  %v5811_v48 = vld [vmem:[#allocation2 + $0xff] sm:$0xff]  ;;  %7072 = vrot.lane.b32.xlu0 %v11889_v42, %s12563_s9  ;;  %vm17167_vm15 = vmmov %vm17160_vm3  ;;  %v5715_v19 = vsel %vm15678_vm5, %v5571_v14, 0.0  ;;  %v15846_v23 = vadd.s32 360, %v13670_v18 }
 0x3da   : > { %7507 = vst.msk [vmem:[#allocation3 + $0xec] sm:$0xf] %vm17162_vm7, %v11938_v0  ;;  %v7238_v13 = vld [vmem:[#allocation2 + $0xf9] sm:$0xff]  ;;  %v11736_v34 = vpack.c.bf16 %v5811_v48, %v5811_v48  ;;  %vm17168_vm0 = vmmov %vm17160_vm3  ;;  %vm1416_vm3 = vcmp.le.s32.totalorder %v15300_v11, 16  ;;  %v17173_v0 = vld [vmem:[#allocation31_spill] sm:$0xff] }
 0x3db   : > { %5762 = vst.msk [vmem:[#allocation2 + $0x110] sm:$0xff] %vm17163_vm1, %v5714_v54  ;;  %v11939_v52 = vpack.c.bf16 %v7238_v13, %v7238_v13  ;;  %vm17169_vm14 = vmmov %vm17168_vm0  ;;  %v4775_v62 = vadd.f32 %v15340_v43, %v17173_v0  ;;  %v1023_v43 = vmul.u32 24, %v1022_v9  ;;  %v17183_v9 = vld [vmem:[#allocation32_spill] sm:$0xff] }
 0x3dc   : > { %6372 = vst.msk [vmem:[#allocation4 + $0xe0] sm:$0xf] %vm17167_vm15, %v11787_v44  ;;  %vm17170_vm7 = vmmov %vm17168_vm0  ;;  %vm1132_vm15 = vcmp.ne.s32.totalorder %v15666_v17, 0 }
 0x3dd   : > { %7799 = vst.msk [vmem:[#allocation4 + $0xdc] sm:$0xf] %vm17168_vm0, %v11990_v26  ;;  %v6853_v35 = vld [vmem:[#allocation2 + $0x108] sm:$0xff]  ;;  %vm15718_vm5 = vmand %vm1365_vm2, %vm1413_vm6  ;;  %vm17174_vm0 = vcmask 1043968   ;;  %vm1180_vm2 = vcmp.lt.s32.totalorder %v15666_v17, 0  ;;  %v5525_v42 = vadd.f32 %v5432_v33, %v4775_v62  ;;  %v15747_v26 = vadd.s32 352, %v13670_v18 }
 0x3de   : > { %v6133_v8 = vld [vmem:[#allocation2 + $0x107] sm:$0xff]  ;;  %6081 = vst.msk [vmem:[#allocation3 + $0xf8] sm:$0xf] %vm17169_vm14, %v11736_v34  ;;  %v11890_v5 = vpack.c.bf16 %v6853_v35, %v6853_v35  ;;  %vm15733_vm6 = vmand %vm1179_vm8, %vm1131_vm11  ;;  %vm1133_vm14 = vcmp.ne.s32.totalorder %v15696_v46, 0  ;;  %v5716_v39 = vsel %vm15718_vm5, %v5572_v16, 0.0  ;;  %vm1181_vm11 = vcmp.lt.s32.totalorder %v15696_v46, 0 }
 0x3df   : > { %v7560_v12 = vld [vmem:[#allocation2 + $0x101] sm:$0xff]  ;;  %7508 = vst.msk [vmem:[#allocation3 + $0xf4] sm:$0xf] %vm17170_vm7, %v11939_v52  ;;  %v11788_v7 = vpack.c.bf16 %v6133_v8, %v6133_v8  ;;  %vm15755_vm5 = vmand %vm1366_vm13, %vm1414_vm10  ;;  %v5573_v20 = vmax.f32 %v5525_v42, 0.0  ;;  %vm1369_vm13 = vcmp.ge.s32.totalorder %v15629_v21, 1  ;;  %vm1417_vm10 = vcmp.le.s32.totalorder %v15629_v21, 16 }
 0x3e0   : > { %5763 = vst.msk [vmem:[#allocation2 + $0x118] sm:$0xff] %vm17163_vm1, %v5715_v19  ;;  %v11991_v49 = vpack.c.bf16 %v7560_v12, %v7560_v12  ;;  %v5812_v32 = vld [vmem:[#allocation2 + $0x107] sm:$0xff]  ;;  %7074 = vrot.lane.b32.xlu1 %v11890_v5, %s12563_s9  ;;  %vm17177_vm1 = vmmov %vm17170_vm7  ;;  %v4780_v19 = vadd.f32 %v15390_v51, %v17183_v9  ;;  %v5437_v51 = vpop.f32.mrf.mxu0  ;;  %v15781_v12 = vsel %vm15733_vm6, %v15693_v55, %v15643_v15  ;;  %v1034_v5 = vmul.u32 24, %v1033_v57  ;;  %v15799_v55 = vpop.f32.mrf.mxu1 }
 0x3e1   : > { %7160 = vst.msk [vmem:[#allocation4] sm:$0xf] %vm17174_vm0, %v7017_v37  ;;  %v11737_v4 = vpack.c.bf16 %v5812_v32, %v5812_v32  ;;  %v7239_v54 = vld [vmem:[#allocation2 + $0x101] sm:$0xff]  ;;  %vm17178_vm8 = vmmov %vm17177_vm1  ;;  %vm17179_vm0 = vcmask 523264   ;;  %v15793_v37 = vsub.s32 %v15507_v53, %v1023_v43  ;;  %v5717_v15 = vsel %vm15755_vm5, %v5573_v20, 0.0 }
 0x3e2   : > { %6373 = vst.msk [vmem:[#allocation4 + $0xe8] sm:$0xf] %vm17170_vm7, %v11788_v7  ;;  %v11940_v30 = vpack.c.bf16 %v7239_v54, %v7239_v54  ;;  %v6854_v44 = vld [vmem:[#allocation2 + $0x110] sm:$0xff]  ;;  %vm17182_vm7 = vmmov %vm17177_vm1  ;;  %v5526_v7 = vadd.f32 %v5437_v51, %v4780_v19  ;;  %v15802_v32 = vmul.u32.u64.low 2863311531, %v15747_v26  ;;  %v15803_v0 = vmul.u32.u64.high 2863311531, %v15747_v26, %v15802_v32  ;;  %v5439_v59 = vpop.f32.mrf.mxu0  ;;  %v4816_v45 = vpop.f32.mrf.mxu1 }
 0x3e3   : > { %7800 = vst.msk [vmem:[#allocation4 + $0xe4] sm:$0xf] %vm17177_vm1, %v11991_v49  ;;  %v6134_v48 = vld [vmem:[#allocation2 + $0x10f] sm:$0xff]  ;;  %v11891_v14 = vpack.c.bf16 %v6854_v44, %v6854_v44  ;;  %vm17184_vm1 = vcmask 1043968   ;;  %vm15812_vm5 = vmand %vm1367_vm4, %vm1415_vm12  ;;  %vm17197_vm4 = vcmask 1043968   ;;  %v1044_v44 = vshrl.u32 %v15709_v10, 4 }
 0x3e4   : > { %v7561_v13 = vld [vmem:[#allocation2 + $0x109] sm:$0xff]  ;;  %6082 = vst.msk [vmem:[#allocation3 + $0x100] sm:$0xf] %vm17178_vm8, %v11737_v4  ;;  %v11789_v22 = vpack.c.bf16 %v6134_v48, %v6134_v48  ;;  %vm15770_vm8 = vmand %vm1180_vm2, %vm1132_vm15  ;;  %vm17189_vm2 = vcmask 519168   ;;  %v7021_v4 = vpop.permute.xlu0 %7020  ;;  %v5574_v42 = vmax.f32 %v5526_v7, 0.0  ;;  %v5440_v3 = vpop.f32.mrf.mxu0  ;;  %v1278_v1 = vadd.s32 24, %v15793_v37 }
 0x3e5   : > { %5764 = vst.msk [vmem:[#allocation2 + $0x120] sm:$0xff] %vm17179_vm0, %v5716_v39  ;;  %v11992_v34 = vpack.c.bf16 %v7561_v13, %v7561_v13  ;;  %v5813_v52 = vld [vmem:[#allocation2 + $0x10f] sm:$0xff]  ;;  %7076 = vrot.lane.b32.xlu0 %v11891_v14, %s12563_s9  ;;  %vm1370_vm0 = vcmp.ge.s32.totalorder %v15653_v38, 1  ;;  %vm15787_vm15 = vmand %vm1181_vm11, %vm1133_vm14  ;;  %vm17193_vm11 = vcmask 523264   ;;  %v15819_v33 = vsel %vm15770_vm8, %v1276_v58, %v15666_v17  ;;  %v15852_v58 = vpop.f32.mrf.mxu1  ;;  %v12386_v7 = vld [vmem:[%s16822_s2 + $0x58] sm:$0xff]  }
 0x3e6   : > { %7509 = vst.msk [vmem:[#allocation3 + $0xfc] sm:$0xf] %vm17182_vm7, %v11940_v30  ;;  %v7240_v61 = vld [vmem:[#allocation2 + $0x109] sm:$0xff]  ;;  %v11738_v50 = vpack.c.bf16 %v5813_v52, %v5813_v52  ;;  %vm1418_vm7 = vcmp.le.s32.totalorder %v15653_v38, 16  ;;  %v17196_v30 = vld [vmem:[#allocation33_spill] sm:$0xff]  ;;  %vm15830_vm12 = vmand %vm1368_vm9, %vm1416_vm3  ;;  %v15840_v10 = vsel %vm15787_vm15, %v1277_v28, %v15696_v46  ;;  %v5718_v14 = vsel %vm15812_vm5, %v5574_v42, 0.0  ;;  %v7023_v52 = vpop.permute.xlu1 %7022  ;;  %8935 = vmatpush2.bf16.msra.mxu0 %v12386_v7 }
 0x3e7   : > { %7161 = vst.msk [vmem:[#allocation4 + $0x8] sm:$0xf] %vm17184_vm1, %v7019_v27  ;;  %v11941_v8 = vpack.c.bf16 %v7240_v61, %v7240_v61  ;;  %vm17190_vm1 = vmmov %vm17189_vm2  ;;  %v6855_v49 = vld [vmem:[#allocation2 + $0x118] sm:$0xff]  ;;  %v4783_v39 = vadd.f32 %v15448_v47, %v17196_v30  ;;  %v15843_v27 = vsub.s32 %v15617_v56, %v1034_v5  ;;  %vm1371_vm8 = vcmp.ge.s32.totalorder %v15781_v12, 1  ;;  %v5442_v61 = vpop.f32.mrf.mxu0  ;;  %v4821_v28 = vpop.f32.mrf.mxu1  ;;  %8936 = vmatprep.subr.bf16.mxu0 %v16870_v31 }
 0x3e8   : > { %6374 = vst.msk [vmem:[#allocation4 + $0xf0] sm:$0xf] %vm17189_vm2, %v11789_v22  ;;  %v6135_v62 = vld [vmem:[#allocation2 + $0x117] sm:$0xff]  ;;  %vm17191_vm6 = vmmov %vm17190_vm1  ;;  %v11892_v54 = vpack.c.bf16 %v6855_v49, %v6855_v49  ;;  %vm1419_vm15 = vcmp.le.s32.totalorder %v15781_v12, 16  ;;  %vm1134_vm2 = vcmp.ne.s32.totalorder %v15793_v37, 0  ;;  %v1045_v5 = vmul.u32 24, %v1044_v44  ;;  %v7025_v44 = vpop.permute.xlu0 %7024 }
 0x3e9   : > { %7801 = vst.msk [vmem:[#allocation4 + $0xec] sm:$0xf] %vm17190_vm1, %v11992_v34  ;;  %v7562_v16 = vld [vmem:[#allocation2 + $0x111] sm:$0xff]  ;;  %vm17192_vm14 = vmmov %vm17190_vm1  ;;  %v11790_v6 = vpack.c.bf16 %v6135_v62, %v6135_v62  ;;  %v5527_v22 = vadd.f32 %v5440_v3, %v4783_v39  ;;  %v5445_v32 = vpop.f32.mrf.mxu0  ;;  %v1055_v17 = vshrl.u32 %v15803_v0, 4  ;;  %v1279_v0 = vadd.s32 24, %v15843_v27 }
 0x3ea   : > { %6083 = vst.msk [vmem:[#allocation3 + $0x108] sm:$0xf] %vm17191_vm6, %v11738_v50  ;;  %v11993_v43 = vpack.c.bf16 %v7562_v16, %v7562_v16  ;;  %v5814_v57 = vld [vmem:[#allocation2 + $0x117] sm:$0xff]  ;;  %7078 = vrot.lane.b32.xlu1 %v11892_v54, %s12563_s9  ;;  %vm17200_vm9 = vmmov %vm17190_vm1  ;;  %v15884_v62 = vmul.u32.u64.low 2863311531, %v15846_v23  ;;  %v15885_v16 = vmul.u32.u64.high 2863311531, %v15846_v23, %v15884_v62  ;;  %v15891_v54 = vpop.f32.mrf.mxu1  ;;  %v15939_v61 = vsub.s32 %v15669_v25, %v1045_v5  ;;  %v7027_v28 = vpop.permute.xlu1 %7026 }
 0x3eb   : > { %7510 = vst.msk [vmem:[#allocation3 + $0x104] sm:$0xf] %vm17192_vm14, %v11941_v8  ;;  %v11739_v48 = vpack.c.bf16 %v5814_v57, %v5814_v57  ;;  %v7241_v13 = vld [vmem:[#allocation2 + $0x111] sm:$0xff]  ;;  %vm17201_vm3 = vmmov %vm17190_vm1  ;;  %vm1182_vm1 = vcmp.lt.s32.totalorder %v15793_v37, 0  ;;  %v17205_v8 = vld [vmem:[#allocation34_spill] sm:$0xff]  ;;  %v5575_v29 = vmax.f32 %v5527_v22, 0.0  ;;  %v5447_v45 = vpop.f32.mrf.mxu0 }
 0x3ec   : > { %5765 = vst.msk [vmem:[#allocation2 + $0x128] sm:$0xff] %vm17193_vm11, %v5717_v15  ;;  %v12326_v47 = vld [vmem:[%s16822_s2 + $0xf8] sm:$0xff]   ;;  %v11942_v11 = vpack.c.bf16 %v7241_v13, %v7241_v13  ;;  %v6856_v34 = vld [vmem:[#allocation2 + $0x120] sm:$0xff]  ;;  %vm17202_vm6 = vmmov %vm17201_vm3  ;;  %v4788_v51 = vadd.f32 %v15501_v63, %v17205_v8  ;;  %v15866_v15 = vadd.s32 368, %v13670_v18  ;;  %v1056_v63 = vmul.u32 24, %v1055_v17 }
 0x3ed   : > { %7162 = vst.msk [vmem:[#allocation4 + $0x10] sm:$0xf] %vm17197_vm4, %v7021_v4  ;;  %v6136_v56 = vld [vmem:[#allocation2 + $0x11f] sm:$0xff]  ;;  %vm17203_vm14 = vmmov %vm17193_vm11  ;;  %v11893_v9 = vpack.c.bf16 %v6856_v34, %v6856_v34  ;;  %v5719_v4 = vsel %vm15830_vm12, %v5575_v29, 0.0  ;;  %v12334_v13 = vld [vmem:[%s16822_s2 + $0xf0] sm:$0xff]   ;;  %v4824_v34 = vpop.f32.mrf.mxu1  ;;  %v15981_v45 = vadd.s32 376, %v13670_v18 }
 0x3ee   : > { %6375 = vst.msk [vmem:[#allocation4 + $0xf8] sm:$0xf] %vm17200_vm9, %v11790_v6  ;;  %v7563_v46 = vld [vmem:[#allocation2 + $0x119] sm:$0xff]  ;;  %v11791_v35 = vpack.c.bf16 %v6136_v56, %v6136_v56  ;;  %vm17204_vm11 = vmmov %vm17201_vm3  ;;  %vm1372_vm9 = vcmp.ge.s32.totalorder %v15819_v33, 1  ;;  %v5528_v6 = vadd.f32 %v5445_v32, %v4788_v51  ;;  %v15997_v34 = vsub.s32 %v15747_v26, %v1056_v63 }
 0x3ef   : > { %7802 = vst.msk [vmem:[#allocation4 + $0xf4] sm:$0xf] %vm17201_vm3, %v11993_v43  ;;  %v12323_v19 = vld [vmem:[#allocation4] ss:$8 sps:$4 sm:$0xff]   ;;  %v12325_v20 = vld [vmem:[#allocation4 + $0x4] ss:$8 sps:$4 sm:$0xff]   ;;  %v11994_v50 = vpack.c.bf16 %v7563_v46, %v7563_v46  ;;  %vm17206_vm5 = vmmov %vm17197_vm4  ;;  %7080 = vrot.lane.b32.xlu0 %v11893_v9, %s12563_s9  ;;  %v5448_v46 = vpop.f32.mrf.mxu0 }
 0x3f0   : > { %6084 = vst.msk [vmem:[#allocation3 + $0x110] sm:$0xf] %vm17202_vm6, %v11739_v48  ;;  %v5815_v49 = vld [vmem:[#allocation2 + $0x11f] sm:$0xff]  ;;  %vm17207_vm4 = vmmov %vm17203_vm14  ;;  %vm1135_vm6 = vcmp.ne.s32.totalorder %v15843_v27, 0  ;;  %v5576_v22 = vmax.f32 %v5528_v6, 0.0  ;;  %v12342_v9 = vld [vmem:[%s16822_s2 + $0xe8] sm:$0xff]  }
 0x3f1   : > { %5766 = vst.msk [vmem:[#allocation2 + $0x130] sm:$0xff] %vm17203_vm14, %v5718_v14  ;;  %11177 = vmatprep.mubr.msk.bf16.mxu1 %vm17207_vm4, %v12325_v20  ;;  %vm15878_vm3 = vmand %vm1182_vm1, %vm1134_vm2  ;;  %v11740_v53 = vpack.c.bf16 %v5815_v49, %v5815_v49  ;;  %v7242_v59 = vld [vmem:[#allocation2 + $0x119] sm:$0xff]  ;;  %vm1183_vm2 = vcmp.lt.s32.totalorder %v15843_v27, 0  ;;  %v17215_v14 = vld [vmem:[#allocation35_spill] sm:$0xff]  ;;  %v15953_v25 = vmul.u32.u64.low 2863311531, %v15866_v15  ;;  %v15954_v8 = vmul.u32.u64.high 2863311531, %v15866_v15, %v15953_v25  ;;  %v5450_v5 = vpop.f32.mrf.mxu0 }
 0x3f2   : > { %7511 = vst.msk [vmem:[#allocation3 + $0x10c] sm:$0xf] %vm17204_vm11, %v11942_v11  ;;  %vm17210_vm14 = vmmov %vm17204_vm11  ;;  %8358 = vmatmul.mubr.bf16.vlgmr.msra.gmra.mxu1 %v12323_v19  ;;  %v11943_v39 = vpack.c.bf16 %v7242_v59, %v7242_v59  ;;  %v4791_v21 = vadd.f32 %v15539_v36, %v17215_v14  ;;  %v15928_v38 = vsel %vm15878_vm3, %v1278_v1, %v15793_v37  ;;  %v15948_v1 = vpop.f32.mrf.mxu1  ;;  %vm1373_vm3 = vcmp.ge.s32.totalorder %v15840_v10, 1  ;;  %v12327_v49 = vld [vmem:[#allocation4 + $0x14] ss:$8 sps:$4 sm:$0xff]   ;;  %v17227_v59 = vld [vmem:[#allocation36_spill] sm:$0xff]  ;;  %v7029_v14 = vpop.permute.xlu0 %7028 }
 0x3f3   : > { %7163 = vst.msk [vmem:[#allocation4 + $0x18] sm:$0xf] %vm17206_vm5, %v7023_v52  ;;  %v6857_v43 = vld [vmem:[#allocation2 + $0x128] sm:$0xff]  ;;  %vm17211_vm1 = vmmov %vm17207_vm4  ;;  %9569 = vmatpush1.bf16.msra.mxu1 %v12326_v47  ;;  %vm1420_vm4 = vcmp.le.s32.totalorder %v15819_v33, 16  ;;  %v5453_v42 = vpop.f32.mrf.mxu0  ;;  %v12350_v18 = vld [vmem:[%s16822_s2 + $0xe0] sm:$0xff]  }
 0x3f4   : > { %6376 = vst.msk [vmem:[#allocation4 + $0x100] sm:$0xf] %vm17210_vm14, %v11791_v35  ;;  %v6137_v57 = vld [vmem:[#allocation2 + $0x127] sm:$0xff]  ;;  %vm15899_vm5 = vmand %vm1369_vm13, %vm1417_vm10  ;;  %v11894_v48 = vpack.c.bf16 %v6857_v43, %v6857_v43  ;;  %vm17216_vm13 = vcmask 1043968   ;;  %9570 = vmatprep.subr.bf16.mxu1 %v16870_v31  ;;  %v5529_v35 = vadd.f32 %v5448_v46, %v4791_v21  ;;  %v4829_v43 = vpop.f32.mrf.mxu1 }
 0x3f5   : > { %7803 = vst.msk [vmem:[#allocation4 + $0xfc] sm:$0xf] %vm17204_vm11, %v11994_v50  ;;  %v7564_v30 = vld [vmem:[#allocation2 + $0x121] sm:$0xff]  ;;  %v11792_v3 = vpack.c.bf16 %v6137_v57, %v6137_v57  ;;  %vm17214_vm12 = vmmov %vm17204_vm11  ;;  %v5720_v20 = vsel %vm15899_vm5, %v5576_v22, 0.0  ;;  %v1280_v22 = vadd.s32 24, %v15939_v61 }
 0x3f6   : > { %5767 = vst.msk [vmem:[#allocation2 + $0x138] sm:$0xff] %vm17211_vm1, %v5719_v4  ;;  %v11995_v11 = vpack.c.bf16 %v7564_v30, %v7564_v30  ;;  %vm15915_vm10 = vmand %vm1370_vm0, %vm1418_vm7  ;;  %v5816_v36 = vld [vmem:[#allocation2 + $0x127] sm:$0xff]  ;;  %7082 = vrot.lane.b32.xlu1 %v11894_v48, %s12563_s9  ;;  %v4796_v4 = vadd.f32 %v15581_v41, %v17227_v59  ;;  %v5577_v6 = vmax.f32 %v5529_v35, 0.0 }
 0x3f7   : > { %6085 = vst.msk [vmem:[#allocation3 + $0x118] sm:$0xf] %vm17214_vm12, %v11740_v53  ;;  %v7243_v56 = vld [vmem:[#allocation2 + $0x121] sm:$0xff]  ;;  %vm17219_vm14 = vmmov %vm17204_vm11  ;;  %v11741_v37 = vpack.c.bf16 %v5816_v36, %v5816_v36  ;;  %9571 = vmatpush1.bf16.msra.mxu1 %v12334_v13  ;;  %v15987_v13 = vpop.f32.mrf.mxu1 }
 0x3f8   : > { %7164 = vst.msk [vmem:[#allocation4 + $0x20] sm:$0xf] %vm17216_vm13, %v7025_v44  ;;  %vm15934_vm0 = vmand %vm1183_vm2, %vm1135_vm6  ;;  %v11944_v19 = vpack.c.bf16 %v7243_v56, %v7243_v56  ;;  %v6858_v50 = vld [vmem:[#allocation2 + $0x130] sm:$0xff]  ;;  %vm1421_vm6 = vcmp.le.s32.totalorder %v15840_v10, 16  ;;  %9572 = vmatprep.subr.bf16.mxu1 %v16870_v31  ;;  %v5721_v12 = vsel %vm15915_vm10, %v5577_v6, 0.0  ;;  %v5530_v17 = vadd.f32 %v5453_v42, %v4796_v4  ;;  %v17236_v56 = vld [vmem:[#allocation37_spill] sm:$0xff] }
 0x3f9   : > { %7512 = vst.msk [vmem:[#allocation3 + $0x114] sm:$0xf] %vm17219_vm14, %v11943_v39  ;;  %vm17222_vm7 = vmmov %vm17204_vm11  ;;  %v6138_v51 = vld [vmem:[#allocation2 + $0x12f] sm:$0xff]  ;;  %v11895_v7 = vpack.c.bf16 %v6858_v50, %v6858_v50  ;;  %v15966_v57 = vsel %vm15934_vm0, %v1279_v0, %v15843_v27  ;;  %v1066_v27 = vshrl.u32 %v15885_v16, 4  ;;  %v4799_v46 = vadd.f32 %v15623_v40, %v17236_v56 }
 0x3fa   : > { %6377 = vst.msk [vmem:[#allocation4 + $0x108] sm:$0xf] %vm17222_vm7, %v11792_v3  ;;  %vm17223_vm11 = vmmov %vm17222_vm7  ;;  %v7565_v29 = vld [vmem:[#allocation2 + $0x129] sm:$0xff]  ;;  %v11793_v62 = vpack.c.bf16 %v6138_v51, %v6138_v51  ;;  %v5578_v52 = vmax.f32 %v5530_v17, 0.0  ;;  %v16023_v50 = vmul.u32.u64.low 2863311531, %v15981_v45  ;;  %v16024_v25 = vmul.u32.u64.high 2863311531, %v15981_v45, %v16023_v50 }
 0x3fb   : > { %7804 = vst.msk [vmem:[#allocation4 + $0x104] sm:$0xf] %vm17223_vm11, %v11995_v11  ;;  %vm17224_vm2 = vmmov %vm17211_vm1  ;;  %v12329_v32 = vld [vmem:[#allocation4 + $0x10] ss:$8 sps:$4 sm:$0xff]   ;;  %v11996_v53 = vpack.c.bf16 %v7565_v29, %v7565_v29  ;;  %v5817_v30 = vld [vmem:[#allocation2 + $0x12f] sm:$0xff]  ;;  %7084 = vrot.lane.b32.xlu0 %v11895_v7, %s12563_s9  ;;  %v5455_v11 = vpop.f32.mrf.mxu0  ;;  %9573 = vmatpush1.bf16.msra.mxu1 %v12342_v9  ;;  %v1067_v33 = vmul.u32 24, %v1066_v27 }
 0x3fc   : > { %5768 = vst.msk [vmem:[#allocation2 + $0x140] sm:$0xff] %vm17224_vm2, %v5720_v20  ;;  %vm17225_vm1 = vmmov %vm17222_vm7  ;;  %v7244_v39 = vld [vmem:[#allocation2 + $0x129] sm:$0xff]  ;;  %v11742_v44 = vpack.c.bf16 %v5817_v30, %v5817_v30  ;;  %9574 = vmatprep.subr.bf16.mxu1 %v16870_v31  ;;  %v12358_v51 = vld [vmem:[%s16822_s2 + $0xd8] sm:$0xff]  }
 0x3fd   : > { %6086 = vst.msk [vmem:[#allocation3 + $0x120] sm:$0xf] %vm17225_vm1, %v11741_v37  ;;  %vm17226_vm5 = vmmov %vm17225_vm1  ;;  %v11945_v48 = vpack.c.bf16 %v7244_v39, %v7244_v39  ;;  %v6859_v3 = vld [vmem:[#allocation2 + $0x138] sm:$0xff]  ;;  %v4832_v37 = vpop.f32.mrf.mxu1  ;;  %v5456_v40 = vpop.f32.mrf.mxu0  ;;  %v12394_v27 = vld [vmem:[%s16822_s2 + $0x50] sm:$0xff]  }
 0x3fe   : > { %7513 = vst.msk [vmem:[#allocation3 + $0x11c] sm:$0xf] %vm17226_vm5, %v11944_v19  ;;  %vm17228_vm12 = vmmov %vm17216_vm13  ;;  %vm1374_vm13 = vcmp.ge.s32.totalorder %v15928_v38, 1  ;;  %v6139_v16 = vld [vmem:[#allocation2 + $0x137] sm:$0xff]  ;;  %v11896_v21 = vpack.c.bf16 %v6859_v3, %v6859_v3  ;;  %v5531_v5 = vadd.f32 %v5456_v40, %v4799_v46  ;;  %8937 = vmatpush2.bf16.msra.mxu0 %v12394_v27  ;;  %v17256_v56 = vld [vmem:[#allocation39_spill] sm:$0xff] }
 0x3ff   : > { %7165 = vst.msk [vmem:[#allocation4 + $0x28] sm:$0xf] %vm17228_vm12, %v7027_v28  ;;  %vm15974_vm14 = vmand %vm1371_vm8, %vm1419_vm15  ;;  %vm1136_vm8 = vcmp.ne.s32.totalorder %v15939_v61, 0  ;;  %vm1184_vm15 = vcmp.lt.s32.totalorder %v15939_v61, 0  ;;  %v11794_v47 = vpack.c.bf16 %v6139_v16, %v6139_v16  ;;  %v7566_v0 = vld [vmem:[#allocation2 + $0x131] sm:$0xff]  ;;  %9575 = vmatpush1.bf16.msra.mxu1 %v12350_v18  ;;  %8938 = vmatprep.subr.bf16.mxu0 %v16870_v31  ;;  %v4807_v46 = vadd.f32 %v15703_v60, %v17256_v56 }
 0x400   : > { %vm17231_vm7 = vmmov %vm17224_vm2  ;;  %5769 = vst.msk [vmem:[#allocation2 + $0x148] sm:$0xff] %vm17224_vm2, %v5721_v12  ;;  %v5818_v36 = vld [vmem:[#allocation2 + $0x137] sm:$0xff]  ;;  %v11997_v9 = vpack.c.bf16 %v7566_v0, %v7566_v0  ;;  %7086 = vrot.lane.b32.xlu1 %v11896_v21, %s12563_s9  ;;  %v5722_v28 = vsel %vm15974_vm14, %v5578_v52, 0.0  ;;  %vm1375_vm14 = vcmp.ge.s32.totalorder %v15966_v57, 1  ;;  %v5579_v41 = vmax.f32 %v5531_v5, 0.0  ;;  %9576 = vmatprep.subr.bf16.mxu1 %v16870_v31 }
 0x401   : > { %11178 = vmatprep.mubr.msk.bf16.mxu1 %vm17231_vm7, %v12327_v49  ;;  %vm17232_vm0 = vmmov %vm17225_vm1  ;;  %v11743_v19 = vpack.c.bf16 %v5818_v36, %v5818_v36  ;;  %v7245_v20 = vld [vmem:[#allocation2 + $0x131] sm:$0xff]  ;;  %v1077_v49 = vshrl.u32 %v15954_v8, 4  ;;  %v17246_v8 = vld [vmem:[#allocation38_spill] sm:$0xff] }
 0x402   : > { %6378 = vst.msk [vmem:[#allocation4 + $0x110] sm:$0xf] %vm17232_vm0, %v11793_v62  ;;  %vm17233_vm11 = vmmov %vm17232_vm0  ;;  %8366 = vmatmul.mubr.bf16.gmra.mxu1 %v12329_v32  ;;  %v11946_v29 = vpack.c.bf16 %v7245_v20, %v7245_v20  ;;  %v7031_v62 = vpop.permute.xlu1 %7030  ;;  %v12331_v4 = vld [vmem:[#allocation4 + $0x24] ss:$8 sps:$4 sm:$0xff]   ;;  %v4804_v39 = vadd.f32 %v15663_v24, %v17246_v8  ;;  %v1088_v20 = vshrl.u32 %v16024_v25, 4 }
 0x403   : > { %7805 = vst.msk [vmem:[#allocation4 + $0x10c] sm:$0xf] %vm17233_vm11, %v11996_v53  ;;  %vm17234_vm10 = vmmov %vm17232_vm0  ;;  %v6860_v7 = vld [vmem:[#allocation2 + $0x140] sm:$0xff]  ;;  %v5458_v53 = vpop.f32.mrf.mxu0  ;;  %9577 = vmatpush1.bf16.msra.mxu1 %v12358_v51  ;;  %v12366_v0 = vld [vmem:[%s16822_s2 + $0xd0] sm:$0xff]  }
 0x404   : > { %6087 = vst.msk [vmem:[#allocation3 + $0x128] sm:$0xf] %vm17234_vm10, %v11742_v44  ;;  %vm17235_vm1 = vmmov %vm17232_vm0  ;;  %v6140_v32 = vld [vmem:[#allocation2 + $0x13f] sm:$0xff]  ;;  %v11897_v59 = vpack.c.bf16 %v6860_v7, %v6860_v7  ;;  %vm1423_vm10 = vcmp.le.s32.totalorder %v15966_v57, 16  ;;  %9578 = vmatprep.subr.bf16.mxu1 %v16870_v31 }
 0x405   : > { %7514 = vst.msk [vmem:[#allocation3 + $0x124] sm:$0xf] %vm17235_vm1, %v11945_v48  ;;  %vm17237_vm5 = vmmov %vm17228_vm12  ;;  %v7567_v63 = vld [vmem:[#allocation2 + $0x139] sm:$0xff]  ;;  %v11795_v43 = vpack.c.bf16 %v6140_v32, %v6140_v32  ;;  %v5461_v48 = vpop.f32.mrf.mxu0  ;;  %v12335_v32 = vld [vmem:[#allocation4 + $0x34] ss:$8 sps:$4 sm:$0xff]  }
 0x406   : > { %7166 = vst.msk [vmem:[#allocation4 + $0x30] sm:$0xf] %vm17237_vm5, %v7029_v14  ;;  %vm16008_vm12 = vmand %vm1372_vm9, %vm1420_vm4  ;;  %vm1422_vm4 = vcmp.le.s32.totalorder %v15928_v38, 16  ;;  %v12333_v6 = vld [vmem:[#allocation4 + $0x20] ss:$8 sps:$4 sm:$0xff]   ;;  %v11998_v30 = vpack.c.bf16 %v7567_v63, %v7567_v63  ;;  %v5819_v44 = vld [vmem:[#allocation2 + $0x13f] sm:$0xff]  ;;  %7088 = vrot.lane.b32.xlu0 %v11897_v59, %s12563_s9  ;;  %v5532_v3 = vadd.f32 %v5461_v48, %v4804_v39  ;;  %v7035_v25 = vpop.permute.xlu1 %7034 }
 0x407   : > { %vm16018_vm7 = vmand %vm1184_vm15, %vm1136_vm8  ;;  %7806 = vst.msk [vmem:[#allocation4 + $0x114] sm:$0xf] %vm17232_vm0, %v11997_v9  ;;  %v11744_v12 = vpack.c.bf16 %v5819_v44, %v5819_v44  ;;  %v7246_v10 = vld [vmem:[#allocation2 + $0x139] sm:$0xff]  ;;  %v5723_v17 = vsel %vm16008_vm12, %v5579_v41, 0.0  ;;  %v6861_v18 = vld [vmem:[#allocation2 + $0x148] sm:$0xff]  ;;  %v5463_v21 = vpop.f32.mrf.mxu0  ;;  %9579 = vmatpush1.bf16.msra.mxu1 %v12366_v0  ;;  %v1089_v41 = vmul.u32 24, %v1088_v20 }
 0x408   : > { %vm17242_vm9 = vmmov %vm17232_vm0  ;;  %v16046_v42 = vsel %vm16018_vm7, %v1280_v22, %v15939_v61  ;;  %vm1137_vm7 = vcmp.ne.s32.totalorder %v15997_v34, 0  ;;  %v16065_v61 = vsub.s32 %v15846_v23, %v1067_v33  ;;  %6380 = vst.msk [vmem:[#allocation4 + $0x120] sm:$0xf] %vm17232_vm0, %v11795_v43  ;;  %v1078_v23 = vmul.u32 24, %v1077_v49  ;;  %v6141_v11 = vld [vmem:[#allocation2 + $0x147] sm:$0xff]  ;;  %v7033_v22 = vpop.permute.xlu0 %7032  ;;  %9580 = vmatprep.subr.bf16.mxu1 %v16870_v31  ;;  %v12390_v57 = vld [vmem:[%s16822_s2 + $0x118] sm:$0xff]  }
 0x409   : > { %6379 = vst.msk [vmem:[#allocation4 + $0x118] sm:$0xf] %vm17242_vm9, %v11794_v47  ;;  %vm17243_vm11 = vmmov %vm17232_vm0  ;;  %vm1185_vm9 = vcmp.lt.s32.totalorder %v15997_v34, 0  ;;  %v11947_v14 = vpack.c.bf16 %v7246_v10, %v7246_v10  ;;  %v11898_v47 = vpack.c.bf16 %v6861_v18, %v6861_v18  ;;  %v11796_v36 = vpack.c.bf16 %v6141_v11, %v6141_v11  ;;  %v7568_v38 = vld [vmem:[#allocation2 + $0x141] sm:$0xff]  ;;  %v5464_v60 = vpop.f32.mrf.mxu0  ;;  %v12339_v37 = vld [vmem:[#allocation4 + $0x44] ss:$8 sps:$4 sm:$0xff]  }
 0x40a   : > { %6088 = vst.msk [vmem:[#allocation3 + $0x130] sm:$0xf] %vm17243_vm11, %v11743_v19  ;;  %vm17244_vm8 = vmmov %vm17224_vm2  ;;  %v5580_v52 = vmax.f32 %v5532_v3, 0.0  ;;  %v11999_v26 = vpack.c.bf16 %v7568_v38, %v7568_v38  ;;  %v5820_v9 = vld [vmem:[#allocation2 + $0x147] sm:$0xff]  ;;  %v5533_v50 = vadd.f32 %v5464_v60, %v4807_v46 }
 0x40b   : > { %5770 = vst.msk [vmem:[#allocation2 + $0x150] sm:$0xff] %vm17244_vm8, %v5722_v28  ;;  %vm17245_vm15 = vmmov %vm17232_vm0  ;;  %v7247_v19 = vld [vmem:[#allocation2 + $0x141] sm:$0xff]  ;;  %7090 = vrot.lane.b32.xlu1 %v11898_v47, %s12563_s9  ;;  %v11745_v40 = vpack.c.bf16 %v5820_v9, %v5820_v9  ;;  %v5466_v7 = vpop.f32.mrf.mxu0  ;;  %v17277_v47 = vld [vmem:[#allocation41_spill] sm:$0xff] }
 0x40c   : > { %7515 = vst.msk [vmem:[#allocation3 + $0x12c] sm:$0xf] %vm17245_vm15, %v11946_v29  ;;  %vm17247_vm2 = vmmov %vm17237_vm5  ;;  %v11948_v35 = vpack.c.bf16 %v7247_v19, %v7247_v19  ;;  %v16115_v29 = vsub.s32 %v15866_v15, %v1078_v23  ;;  %v12374_v28 = vld [vmem:[%s16822_s2 + $0xc8] sm:$0xff]   ;;  %v17267_v15 = vld [vmem:[#allocation40_spill] sm:$0xff]  ;;  %v7037_v23 = vpop.permute.xlu0 %7036  ;;  %v4815_v0 = vadd.f32 %v15799_v55, %v17277_v47 }
 0x40d   : > { %7167 = vst.msk [vmem:[#allocation4 + $0x38] sm:$0xf] %vm17247_vm2, %v7031_v62  ;;  %vm16057_vm1 = vmand %vm1373_vm3, %vm1421_vm6  ;;  %v1281_v62 = vadd.s32 24, %v15997_v34  ;;  %v4812_v59 = vadd.f32 %v15743_v2, %v17267_v15  ;;  %v5469_v39 = vpop.f32.mrf.mxu0  ;;  %9581 = vmatpush1.bf16.msra.mxu1 %v12374_v28  ;;  %v17287_v28 = vld [vmem:[#allocation42_spill] sm:$0xff] }
 0x40e   : > { %vm17250_vm5 = vmmov %vm17244_vm8  ;;  %vm1376_vm8 = vcmp.ge.s32.totalorder %v16046_v42, 1  ;;  %v5724_v33 = vsel %vm16057_vm1, %v5580_v52, 0.0  ;;  %7517 = vst.msk [vmem:[#allocation3 + $0x13c] sm:$0xf] %vm17232_vm0, %v11948_v35  ;;  %9582 = vmatprep.subr.bf16.mxu1 %v16870_v31 }
 0x40f   : > { %11179 = vmatprep.mubr.msk.bf16.mxu1 %vm17250_vm5, %v12331_v4  ;;  %vm17251_vm11 = vmmov %vm17232_vm0  ;;  %v5581_v4 = vmax.f32 %v5533_v50, 0.0  ;;  %v5471_v18 = vpop.f32.mrf.mxu0  ;;  %v1283_v50 = vadd.s32 24, %v16115_v29 }
 0x410   : > { %7807 = vst.msk [vmem:[#allocation4 + $0x11c] sm:$0xf] %vm17251_vm11, %v11998_v30  ;;  %8374 = vmatmul.mubr.bf16.gmra.mxu1 %v12333_v6  ;;  %vm16075_vm3 = vmand %vm1374_vm13, %vm1422_vm4  ;;  %v1282_v6 = vadd.s32 24, %v16065_v61 }
 0x411   : > { %vm17254_vm6 = vmmov %vm17250_vm5  ;;  %vm1186_vm5 = vcmp.lt.s32.totalorder %v16065_v61, 0  ;;  %v5725_v48 = vsel %vm16075_vm3, %v5581_v4, 0.0  ;;  %v5472_v52 = vpop.f32.mrf.mxu0 }
 0x412   : > { %5771 = vst.msk [vmem:[#allocation2 + $0x158] sm:$0xff] %vm17254_vm6, %v5723_v17  ;;  %vm17255_vm13 = vmmov %vm17232_vm0  ;;  %v6862_v51 = vld [vmem:[#allocation2 + $0x150] sm:$0xff]  ;;  %v12382_v17 = vld [vmem:[%s16822_s2 + $0xc0] sm:$0xff]   ;;  %v5535_v60 = vadd.f32 %v5472_v52, %v4815_v0 }
 0x413   : > { %6089 = vst.msk [vmem:[#allocation3 + $0x138] sm:$0xf] %vm17255_vm13, %v11744_v12  ;;  %vm17257_vm12 = vmmov %vm17247_vm2  ;;  %vm1138_vm2 = vcmp.ne.s32.totalorder %v16065_v61, 0  ;;  %v6142_v5 = vld [vmem:[#allocation2 + $0x14f] sm:$0xff]  ;;  %v11899_v49 = vpack.c.bf16 %v6862_v51, %v6862_v51  ;;  %v5534_v12 = vadd.f32 %v5469_v39, %v4812_v59  ;;  %9583 = vmatpush1.bf16.msra.mxu1 %v12382_v17  ;;  %v7041_v39 = vpop.permute.xlu0 %7040 }
 0x414   : > { %7168 = vst.msk [vmem:[#allocation4 + $0x40] sm:$0xf] %vm17257_vm12, %v7033_v22  ;;  %vm16092_vm4 = vmand %vm1375_vm14, %vm1423_vm10  ;;  %v12337_v63 = vld [vmem:[#allocation4 + $0x30] ss:$8 sps:$4 sm:$0xff]   ;;  %v11797_v53 = vpack.c.bf16 %v6142_v5, %v6142_v5  ;;  %v5821_v30 = vld [vmem:[#allocation2 + $0x14f] sm:$0xff]  ;;  %v4820_v5 = vadd.f32 %v15852_v58, %v17287_v28  ;;  %9592 = vmatprep.subr.bf16.mxu1 %v16870_v31 }
 0x415   : > { %vm17260_vm15 = vmmov %vm17232_vm0  ;;  %v7569_v43 = vld [vmem:[#allocation2 + $0x149] sm:$0xff]  ;;  %7092 = vrot.lane.b32.xlu0 %v11899_v49, %s12563_s9  ;;  %v11746_v44 = vpack.c.bf16 %v5821_v30, %v5821_v30 }
 0x416   : > { %7516 = vst.msk [vmem:[#allocation3 + $0x134] sm:$0xf] %vm17260_vm15, %v11947_v14  ;;  %vm16104_vm14 = vmand %vm1185_vm9, %vm1137_vm7  ;;  %v7248_v8 = vld [vmem:[#allocation2 + $0x149] sm:$0xff]  ;;  %v12000_v27 = vpack.c.bf16 %v7569_v43, %v7569_v43 }
 0x417   : > { %vm17263_vm10 = vmmov %vm17232_vm0  ;;  %v11949_v24 = vpack.c.bf16 %v7248_v8, %v7248_v8  ;;  %v1329_v16 = vsel %vm16104_vm14, %v1281_v62, %v15997_v34  ;;  %v12402_v49 = vld [vmem:[%s16822_s2 + $0x48] sm:$0xff]   ;;  %9593 = vmatpush2.bf16.msra.mxu1 %v12390_v57 }
 0x418   : > { %6381 = vst.msk [vmem:[#allocation4 + $0x128] sm:$0xf] %vm17263_vm10, %v11796_v36  ;;  %vm17264_vm7 = vmmov %vm17232_vm0  ;;  %vm1139_vm10 = vcmp.ne.s32.totalorder %v16115_v29, 0  ;;  %v5582_v36 = vmax.f32 %v5534_v12, 0.0  ;;  %8939 = vmatpush2.bf16.msra.mxu0 %v12402_v49  ;;  %9594 = vmatprep.subr.bf16.mxu1 %v16870_v31 }
 0x419   : > { %7808 = vst.msk [vmem:[#allocation4 + $0x124] sm:$0xf] %vm17264_vm7, %v11999_v26  ;;  %vm17265_vm9 = vmmov %vm17254_vm6  ;;  %vm1424_vm6 = vcmp.le.s32.totalorder %v16046_v42, 16  ;;  %v6863_v10 = vld [vmem:[#allocation2 + $0x158] sm:$0xff]  ;;  %vm1187_vm7 = vcmp.lt.s32.totalorder %v16115_v29, 0  ;;  %v16183_v26 = vsub.s32 %v15981_v45, %v1089_v41  ;;  %v7039_v45 = vpop.permute.xlu1 %7038  ;;  %8940 = vmatprep.subr.bf16.mxu0 %v16870_v31  ;;  %v17305_v42 = vld [vmem:[#allocation44_spill] sm:$0xff] }
 0x41a   : > { %5772 = vst.msk [vmem:[#allocation2 + $0x160] sm:$0xff] %vm17265_vm9, %v5724_v33  ;;  %vm17266_vm1 = vmmov %vm17232_vm0  ;;  %v6143_v3 = vld [vmem:[#allocation2 + $0x157] sm:$0xff]  ;;  %v11900_v11 = vpack.c.bf16 %v6863_v10, %v6863_v10  ;;  %v5726_v19 = vsel %vm16092_vm4, %v5582_v36, 0.0  ;;  %v12406_v36 = vld [vmem:[%s16822_s2 + $0x108] sm:$0xff]  }
 0x41b   : > { %6090 = vst.msk [vmem:[#allocation3 + $0x140] sm:$0xf] %vm17266_vm1, %v11745_v40  ;;  %vm17268_vm11 = vmmov %vm17257_vm12  ;;  %v11798_v14 = vpack.c.bf16 %v6143_v3, %v6143_v3  ;;  %v7570_v21 = vld [vmem:[#allocation2 + $0x151] sm:$0xff]  ;;  %v5474_v40 = vpop.f32.mrf.mxu0  ;;  %v1284_v17 = vadd.s32 24, %v16183_v26 }
 0x41c   : > { %7169 = vst.msk [vmem:[#allocation4 + $0x48] sm:$0xf] %vm17268_vm11, %v7035_v25  ;;  %vm17269_vm13 = vmmov %vm17265_vm9  ;;  %v5822_v22 = vld [vmem:[#allocation2 + $0x157] sm:$0xff]  ;;  %v12001_v38 = vpack.c.bf16 %v7570_v21, %v7570_v21  ;;  %7094 = vrot.lane.b32.xlu1 %v11900_v11, %s12563_s9  ;;  %v5583_v25 = vmax.f32 %v5535_v60, 0.0 }
 0x41d   : > { %11180 = vmatprep.mubr.msk.bf16.mxu1 %vm17269_vm13, %v12335_v32  ;;  %vm16137_vm12 = vmand %vm1186_vm5, %vm1138_vm2  ;;  %v11747_v56 = vpack.c.bf16 %v5822_v22, %v5822_v22  ;;  %v7249_v46 = vld [vmem:[#allocation2 + $0x151] sm:$0xff]  ;;  %6383 = vst.msk [vmem:[#allocation4 + $0x138] sm:$0xf] %vm17232_vm0, %v11798_v14  ;;  %v7043_v34 = vpop.permute.xlu1 %7042 }
 0x41e   : > { %vm17272_vm15 = vmmov %vm17232_vm0  ;;  %8382 = vmatmul.mubr.bf16.gmra.mxu1 %v12337_v63  ;;  %v16172_v55 = vsel %vm16137_vm12, %v1282_v6, %v16065_v61  ;;  %v11950_v9 = vpack.c.bf16 %v7249_v46, %v7249_v46  ;;  %v5477_v63 = vpop.f32.mrf.mxu0  ;;  %v12343_v46 = vld [vmem:[#allocation4 + $0x54] ss:$8 sps:$4 sm:$0xff]  }
 0x41f   : > { %6382 = vst.msk [vmem:[#allocation4 + $0x130] sm:$0xf] %vm17272_vm15, %v11797_v53  ;;  %vm17273_vm2 = vmmov %vm17265_vm9  ;;  %v5536_v4 = vadd.f32 %v5477_v63, %v4820_v5  ;;  %v7045_v5 = vpop.permute.xlu0 %7044  ;;  %v17314_v63 = vld [vmem:[#allocation45_spill] sm:$0xff] }
 0x420   : > { %5773 = vst.msk [vmem:[#allocation2 + $0x168] sm:$0xff] %vm17273_vm2, %v5725_v48  ;;  %vm17274_vm3 = vmmov %vm17232_vm0  ;;  %11181 = vmatprep.mubr.msk.bf16.mxu1 %vm17273_vm2, %v12339_v37  ;;  %v5479_v8 = vpop.f32.mrf.mxu0  ;;  %v17295_v48 = vld [vmem:[#allocation43_spill] sm:$0xff] }
 0x421   : > { %7809 = vst.msk [vmem:[#allocation4 + $0x12c] sm:$0xf] %vm17274_vm3, %v12000_v27  ;;  %vm17275_vm5 = vmmov %vm17232_vm0  ;;  %v6864_v61 = vld [vmem:[#allocation2 + $0x160] sm:$0xff]  ;;  %vm1426_vm3 = vcmp.le.s32.totalorder %v16172_v55, 16  ;;  %v12398_v27 = vld [vmem:[%s16822_s2 + $0x110] sm:$0xff]   ;;  %v4823_v12 = vadd.f32 %v15891_v54, %v17295_v48  ;;  %v5584_v10 = vmax.f32 %v5536_v4, 0.0 }
 0x422   : > { %6091 = vst.msk [vmem:[#allocation3 + $0x148] sm:$0xf] %vm17275_vm5, %v11746_v44  ;;  %vm17276_vm9 = vmmov %vm17232_vm0  ;;  %v6144_v20 = vld [vmem:[#allocation2 + $0x15f] sm:$0xff]  ;;  %v11901_v35 = vpack.c.bf16 %v6864_v61, %v6864_v61  ;;  %vm1140_vm5 = vcmp.ne.s32.totalorder %v16183_v26, 0  ;;  %v5480_v54 = vpop.f32.mrf.mxu0  ;;  %9595 = vmatpush2.bf16.msra.mxu1 %v12398_v27 }
 0x423   : > { %7518 = vst.msk [vmem:[#allocation3 + $0x144] sm:$0xf] %vm17276_vm9, %v11949_v24  ;;  %vm17278_vm1 = vmmov %vm17268_vm11  ;;  %vm1377_vm11 = vcmp.ge.s32.totalorder %v1329_v16, 1  ;;  %v12341_v33 = vld [vmem:[#allocation4 + $0x40] ss:$8 sps:$4 sm:$0xff]   ;;  %v11799_v51 = vpack.c.bf16 %v6144_v20, %v6144_v20  ;;  %v5823_v32 = vld [vmem:[#allocation2 + $0x15f] sm:$0xff]  ;;  %v5537_v22 = vadd.f32 %v5480_v54, %v4823_v12  ;;  %9596 = vmatprep.subr.bf16.mxu1 %v16870_v31 }
 0x424   : > { %7170 = vst.msk [vmem:[#allocation4 + $0x50] sm:$0xf] %vm17278_vm1, %v7037_v23  ;;  %vm16163_vm14 = vmand %vm1376_vm8, %vm1424_vm6  ;;  %vm1425_vm6 = vcmp.le.s32.totalorder %v1329_v16, 16  ;;  %v7571_v7 = vld [vmem:[#allocation2 + $0x159] sm:$0xff]  ;;  %7096 = vrot.lane.b32.xlu0 %v11901_v35, %s12563_s9  ;;  %v11748_v62 = vpack.c.bf16 %v5823_v32, %v5823_v32 }
 0x425   : > { %vm16178_vm8 = vmand %vm1187_vm7, %vm1139_vm10  ;;  %vm1378_vm7 = vcmp.ge.s32.totalorder %v16172_v55, 1  ;;  %v12002_v58 = vpack.c.bf16 %v7571_v7, %v7571_v7  ;;  %v7250_v53 = vld [vmem:[#allocation2 + $0x159] sm:$0xff]  ;;  %v5727_v15 = vsel %vm16163_vm14, %v5583_v25, 0.0 }
 0x426   : > { %vm17283_vm13 = vmmov %vm17232_vm0  ;;  %8390 = vmatmul.mubr.bf16.gmra.mxu1 %v12341_v33  ;;  %v11951_v30 = vpack.c.bf16 %v7250_v53, %v7250_v53  ;;  %v1331_v41 = vsel %vm16178_vm8, %v1283_v50, %v16115_v29  ;;  %v12347_v27 = vld [vmem:[#allocation4 + $0x64] ss:$8 sps:$4 sm:$0xff]  }
 0x427   : > { %7810 = vst.msk [vmem:[#allocation4 + $0x134] sm:$0xf] %vm17283_vm13, %v12001_v38  ;;  %vm17284_vm12 = vmmov %vm17232_vm0  ;;  %v6865_v6 = vld [vmem:[#allocation2 + $0x168] sm:$0xff]  ;;  %v5482_v38 = vpop.f32.mrf.mxu0  ;;  %9597 = vmatpush2.bf16.msra.mxu1 %v12406_v36 }
 0x428   : > { %6092 = vst.msk [vmem:[#allocation3 + $0x150] sm:$0xf] %vm17284_vm12, %v11747_v56  ;;  %vm17285_vm15 = vmmov %vm17273_vm2  ;;  %v6145_v43 = vld [vmem:[#allocation2 + $0x167] sm:$0xff]  ;;  %v11902_v2 = vpack.c.bf16 %v6865_v6, %v6865_v6  ;;  %9598 = vmatprep.subr.bf16.mxu1 %v16870_v31 }
 0x429   : > { %5774 = vst.msk [vmem:[#allocation2 + $0x170] sm:$0xff] %vm17285_vm15, %v5726_v19  ;;  %vm17286_vm4 = vmmov %vm17232_vm0  ;;  %v11800_v44 = vpack.c.bf16 %v6145_v43, %v6145_v43  ;;  %v7572_v24 = vld [vmem:[#allocation2 + $0x161] sm:$0xff]  ;;  %v5585_v19 = vmax.f32 %v5537_v22, 0.0 }
 0x42a   : > { %7519 = vst.msk [vmem:[#allocation3 + $0x14c] sm:$0xf] %vm17286_vm4, %v11950_v9  ;;  %vm17288_vm10 = vmmov %vm17278_vm1  ;;  %v12003_v3 = vpack.c.bf16 %v7572_v24, %v7572_v24  ;;  %v5824_v18 = vld [vmem:[#allocation2 + $0x167] sm:$0xff]  ;;  %7098 = vrot.lane.b32.xlu1 %v11902_v2, %s12563_s9  ;;  %v4828_v9 = vadd.f32 %v15948_v1, %v17305_v42 }
 0x42b   : > { %7171 = vst.msk [vmem:[#allocation4 + $0x58] sm:$0xf] %vm17288_vm10, %v7039_v45  ;;  %vm17289_vm9 = vmmov %vm17232_vm0  ;;  %vm1188_vm0 = vcmp.lt.s32.totalorder %v16183_v26, 0  ;;  %v7251_v23 = vld [vmem:[#allocation2 + $0x161] sm:$0xff]  ;;  %v11749_v16 = vpack.c.bf16 %v5824_v18, %v5824_v18  ;;  %v5485_v45 = vpop.f32.mrf.mxu0 }
 0x42c   : > { %6384 = vst.msk [vmem:[#allocation4 + $0x140] sm:$0xf] %vm17289_vm9, %v11799_v51  ;;  %vm16213_vm1 = vmand %vm1377_vm11, %vm1425_vm6  ;;  %v11952_v14 = vpack.c.bf16 %v7251_v23, %v7251_v23  ;;  %v5538_v33 = vadd.f32 %v5485_v45, %v4828_v9  ;;  %v12413_v38 = vld [vmem:[%s16822_s2 + $0x100] sm:$0xff]  }
 0x42d   : > { %vm17292_vm13 = vmmov %vm17273_vm2  ;;  %6385 = vst.msk [vmem:[#allocation4 + $0x148] sm:$0xf] %vm17286_vm4, %v11800_v44  ;;  %v5728_v21 = vsel %vm16213_vm1, %v5584_v10, 0.0  ;;  %v5487_v28 = vpop.f32.mrf.mxu0  ;;  %v12410_v10 = vld [vmem:[%s16822_s2 + $0x40] sm:$0xff]   ;;  %9599 = vmatpush2.bf16.msra.mxu1 %v12413_v38 }
 0x42e   : > { %5775 = vst.msk [vmem:[#allocation2 + $0x178] sm:$0xff] %vm17292_vm13, %v5727_v15  ;;  %vm17293_vm14 = vmmov %vm17286_vm4  ;;  %8941 = vmatpush2.bf16.msra.mxu0 %v12410_v10  ;;  %v6395_v10 = vld [vmem:[#allocation2 + $0x20] sm:$0xff] }
 0x42f   : > { %7811 = vst.msk [vmem:[#allocation4 + $0x13c] sm:$0xf] %vm17293_vm14, %v12002_v58  ;;  %vm17294_vm11 = vmmov %vm17286_vm4  ;;  %v4831_v58 = vadd.f32 %v15987_v13, %v17314_v63  ;;  %v5488_v4 = vpop.f32.mrf.mxu0 }
 0x430   : > { %6093 = vst.msk [vmem:[#allocation3 + $0x158] sm:$0xf] %vm17294_vm11, %v11748_v62  ;;  %vm17296_vm6 = vmmov %vm17288_vm10  ;;  %v6866_v47 = vld [vmem:[#allocation2 + $0x170] sm:$0xff]  ;;  %vm1379_vm10 = vcmp.ge.s32.totalorder %v1331_v41, 1  ;;  %v5586_v62 = vmax.f32 %v5538_v33, 0.0 }
 0x431   : > { %7172 = vst.msk [vmem:[#allocation4 + $0x60] sm:$0xf] %vm17296_vm6, %v7041_v39  ;;  %vm16235_vm8 = vmand %vm1378_vm7, %vm1426_vm3  ;;  %v6146_v0 = vld [vmem:[#allocation2 + $0x16f] sm:$0xff]  ;;  %v11903_v56 = vpack.c.bf16 %v6866_v47, %v6866_v47  ;;  %vm1427_vm3 = vcmp.le.s32.totalorder %v1331_v41, 16  ;;  %v7047_v39 = vpop.permute.xlu1 %7046  ;;  %v5490_v2 = vpop.f32.mrf.mxu0 }
 0x432   : > { %vm17299_vm12 = vmmov %vm17286_vm4  ;;  %5776 = vst.msk [vmem:[#allocation2 + $0x180] sm:$0xff] %vm17273_vm2, %v5728_v21  ;;  %v12345_v52 = vld [vmem:[#allocation4 + $0x50] ss:$8 sps:$4 sm:$0xff]   ;;  %v11801_v55 = vpack.c.bf16 %v6146_v0, %v6146_v0  ;;  %v5825_v57 = vld [vmem:[#allocation2 + $0x16f] sm:$0xff]  ;;  %v5729_v37 = vsel %vm16235_vm8, %v5585_v19, 0.0  ;;  %v7049_v21 = vpop.permute.xlu0 %7048 }
 0x433   : > { %7520 = vst.msk [vmem:[#allocation3 + $0x154] sm:$0xf] %vm17299_vm12, %v11951_v30  ;;  %vm16247_vm15 = vmand %vm1188_vm0, %vm1140_vm5  ;;  %v7573_v61 = vld [vmem:[#allocation2 + $0x169] sm:$0xff]  ;;  %7100 = vrot.lane.b32.xlu0 %v11903_v56, %s12563_s9  ;;  %v11750_v40 = vpack.c.bf16 %v5825_v57, %v5825_v57  ;;  %v5539_v30 = vadd.f32 %v5488_v4, %v4831_v58  ;;  %v12355_v2 = vld [vmem:[#allocation4 + $0x84] ss:$8 sps:$4 sm:$0xff]  }
 0x434   : > { %vm17302_vm7 = vmmov %vm17286_vm4  ;;  %v1332_v60 = vsel %vm16247_vm15, %v1284_v17, %v16183_v26  ;;  %v7252_v20 = vld [vmem:[#allocation2 + $0x169] sm:$0xff]  ;;  %v12004_v1 = vpack.c.bf16 %v7573_v61, %v7573_v61 }
 0x435   : > { %7812 = vst.msk [vmem:[#allocation4 + $0x144] sm:$0xf] %vm17302_vm7, %v12003_v3  ;;  %vm17303_vm5 = vmmov %vm17286_vm4  ;;  %v11953_v35 = vpack.c.bf16 %v7252_v20, %v7252_v20  ;;  %v6867_v50 = vld [vmem:[#allocation2 + $0x178] sm:$0xff]  ;;  %vm1428_vm12 = vcmp.le.s32.totalorder %v1332_v60, 16  ;;  %v5587_v48 = vmax.f32 %v5539_v30, 0.0  ;;  %v7051_v19 = vpop.permute.xlu1 %7050 }
 0x436   : > { %6094 = vst.msk [vmem:[#allocation3 + $0x160] sm:$0xf] %vm17303_vm5, %v11749_v16  ;;  %vm17304_vm9 = vmmov %vm17286_vm4  ;;  %v6147_v51 = vld [vmem:[#allocation2 + $0x177] sm:$0xff]  ;;  %v11904_v25 = vpack.c.bf16 %v6867_v50, %v6867_v50  ;;  %v12351_v61 = vld [vmem:[#allocation4 + $0x74] ss:$8 sps:$4 sm:$0xff]  }
 0x437   : > { %7521 = vst.msk [vmem:[#allocation3 + $0x15c] sm:$0xf] %vm17304_vm9, %v11952_v14  ;;  %vm17306_vm1 = vmmov %vm17296_vm6  ;;  %vm1380_vm6 = vcmp.ge.s32.totalorder %v1332_v60, 1  ;;  %v11802_v7 = vpack.c.bf16 %v6147_v51, %v6147_v51  ;;  %v7574_v49 = vld [vmem:[#allocation2 + $0x171] sm:$0xff] }
 0x438   : > { %7173 = vst.msk [vmem:[#allocation4 + $0x68] sm:$0xf] %vm17306_vm1, %v7043_v34  ;;  %vm17307_vm0 = vmmov %vm17273_vm2  ;;  %v5826_v32 = vld [vmem:[#allocation2 + $0x177] sm:$0xff]  ;;  %v12005_v53 = vpack.c.bf16 %v7574_v49, %v7574_v49  ;;  %7102 = vrot.lane.b32.xlu1 %v11904_v25, %s12563_s9  ;;  %v7053_v25 = vpop.permute.xlu0 %7052 }
 0x439   : > { %11182 = vmatprep.mubr.msk.bf16.mxu1 %vm17307_vm0, %v12343_v46  ;;  %vm17308_vm13 = vmmov %vm17286_vm4  ;;  %7522 = vst.msk [vmem:[#allocation3 + $0x164] sm:$0xf] %vm17286_vm4, %v11953_v35  ;;  %v11751_v15 = vpack.c.bf16 %v5826_v32, %v5826_v32  ;;  %v7253_v59 = vld [vmem:[#allocation2 + $0x171] sm:$0xff]  ;;  %v6868_v8 = vld [vmem:[#allocation2 + $0x180] sm:$0xff] }
 0x43a   : > { %6386 = vst.msk [vmem:[#allocation4 + $0x150] sm:$0xf] %vm17308_vm13, %v11801_v55  ;;  %vm16275_vm14 = vmand %vm1379_vm10, %vm1427_vm3  ;;  %8398 = vmatmul.mubr.bf16.gmra.mxu1 %v12345_v52  ;;  %v11954_v6 = vpack.c.bf16 %v7253_v59, %v7253_v59  ;;  %v6148_v31 = vld [vmem:[#allocation2 + $0x17f] sm:$0xff]  ;;  %v11905_v41 = vpack.c.bf16 %v6868_v8, %v6868_v8  ;;  %v6392_v52 = vld [vmem:[#allocation2 + $0x8] sm:$0xff] }
 0x43b   : > { %vm17311_vm11 = vmmov %vm17307_vm0  ;;  %v5730_v43 = vsel %vm16275_vm14, %v5586_v62, 0.0  ;;  %v11803_v24 = vpack.c.bf16 %v6148_v31, %v6148_v31  ;;  %v7575_v12 = vld [vmem:[#allocation2 + $0x179] sm:$0xff]  ;;  %v11807_v35 = vpack.c.bf16 %v6392_v52, %v6392_v52  ;;  %v7055_v31 = vpop.permute.xlu1 %7054  ;;  %v6404_v52 = vld [vmem:[#allocation2 + $0x68] sm:$0xff] }
 0x43c   : > { %5777 = vst.msk [vmem:[#allocation2 + $0x188] sm:$0xff] %vm17311_vm11, %v5729_v37  ;;  %vm17312_vm15 = vmmov %vm17286_vm4  ;;  %v5827_v29 = vld [vmem:[#allocation2 + $0x17f] sm:$0xff]  ;;  %7104 = vrot.lane.b32.xlu0 %v11905_v41, %s12563_s9  ;;  %v12006_v17 = vpack.c.bf16 %v7575_v12, %v7575_v12  ;;  %v6393_v37 = vld [vmem:[#allocation2 + $0x10] sm:$0xff] }
 0x43d   : > { %7813 = vst.msk [vmem:[#allocation4 + $0x14c] sm:$0xf] %vm17312_vm15, %v12004_v1  ;;  %vm17313_vm8 = vmmov %vm17286_vm4  ;;  %v11752_v3 = vpack.c.bf16 %v5827_v29, %v5827_v29  ;;  %v7254_v18 = vld [vmem:[#allocation2 + $0x179] sm:$0xff]  ;;  %v11808_v62 = vpack.c.bf16 %v6393_v37, %v6393_v37  ;;  %v6400_v12 = vld [vmem:[#allocation2 + $0x48] sm:$0xff] }
 0x43e   : > { %6095 = vst.msk [vmem:[#allocation3 + $0x168] sm:$0xf] %vm17313_vm8, %v11750_v40  ;;  %vm17315_vm10 = vmmov %vm17306_vm1  ;;  %v11955_v14 = vpack.c.bf16 %v7254_v18, %v7254_v18  ;;  %v6398_v51 = vld [vmem:[#allocation2 + $0x38] sm:$0xff]  ;;  %v12359_v18 = vld [vmem:[#allocation4 + $0x94] ss:$8 sps:$4 sm:$0xff]  }
 0x43f   : > { %7174 = vst.msk [vmem:[#allocation4 + $0x70] sm:$0xf] %vm17315_vm10, %v7045_v5  ;;  %vm17316_vm7 = vmmov %vm17286_vm4  ;;  %v12349_v44 = vld [vmem:[#allocation4 + $0x60] ss:$8 sps:$4 sm:$0xff]   ;;  %v7059_v29 = vpop.permute.xlu1 %7058  ;;  %v6408_v37 = vld [vmem:[#allocation2 + $0x88] sm:$0xff] }
 0x440   : > { %6387 = vst.msk [vmem:[#allocation4 + $0x158] sm:$0xf] %vm17316_vm7, %v11802_v7  ;;  %vm16293_vm2 = vmand %vm1380_vm6, %vm1428_vm12  ;;  %v6394_v8 = vld [vmem:[#allocation2 + $0x18] sm:$0xff] }
 0x441   : > { %vm17319_vm3 = vmmov %vm17286_vm4  ;;  %v5731_v23 = vsel %vm16293_vm2, %v5587_v48, 0.0 }
 0x442   : > { %7814 = vst.msk [vmem:[#allocation4 + $0x154] sm:$0xf] %vm17319_vm3, %v12005_v53  ;;  %vm17320_vm5 = vmmov %vm17319_vm3 }
 0x443   : > { %6096 = vst.msk [vmem:[#allocation3 + $0x170] sm:$0xf] %vm17320_vm5, %v11751_v15  ;;  %vm17321_vm9 = vmmov %vm17307_vm0  ;;  %v6869_v54 = vld [vmem:[#allocation2 + $0x188] sm:$0xff] }
 0x444   : > { %5778 = vst.msk [vmem:[#allocation2 + $0x190] sm:$0xff] %vm17321_vm9, %v5730_v43  ;;  %vm17322_vm1 = vmmov %vm17319_vm3  ;;  %v6149_v11 = vld [vmem:[#allocation2 + $0x187] sm:$0xff]  ;;  %v16311_v22 = vpack.c.bf16 %v6869_v54, %v6869_v54 }
 0x445   : > { %7523 = vst.msk [vmem:[#allocation3 + $0x16c] sm:$0xf] %vm17322_vm1, %v11954_v6  ;;  %vm17323_vm0 = vmmov %vm17315_vm10  ;;  %v7576_v16 = vld [vmem:[#allocation2 + $0x181] sm:$0xff]  ;;  %v11804_v47 = vpack.c.bf16 %v6149_v11, %v6149_v11  ;;  %v6401_v11 = vld [vmem:[#allocation2 + $0x50] sm:$0xff] }
 0x446   : > { %7175 = vst.msk [vmem:[#allocation4 + $0x78] sm:$0xf] %vm17323_vm0, %v7047_v39  ;;  %vm17324_vm13 = vmmov %vm17321_vm9  ;;  %v12007_v0 = vpack.c.bf16 %v7576_v16, %v7576_v16  ;;  %v5828_v36 = vld [vmem:[#allocation2 + $0x187] sm:$0xff]  ;;  %7106 = vrot.lane.b32.xlu1 %v16311_v22, %s12563_s9  ;;  %v11813_v39 = vpack.c.bf16 %v6398_v51, %v6398_v51 }
 0x447   : > { %11183 = vmatprep.mubr.msk.bf16.mxu1 %vm17324_vm13, %v12347_v27  ;;  %vm17325_vm14 = vmmov %vm17322_vm1  ;;  %v7255_v34 = vld [vmem:[#allocation2 + $0x181] sm:$0xff]  ;;  %v11753_v56 = vpack.c.bf16 %v5828_v36, %v5828_v36  ;;  %v7063_v36 = vpop.permute.xlu1 %7062 }
 0x448   : > { %6388 = vst.msk [vmem:[#allocation4 + $0x160] sm:$0xf] %vm17325_vm14, %v11803_v24  ;;  %8406 = vmatmul.mubr.bf16.gmra.mxu1 %v12349_v44  ;;  %vm17326_vm11 = vmmov %vm17321_vm9  ;;  %v11956_v46 = vpack.c.bf16 %v7255_v34, %v7255_v34  ;;  %v6399_v27 = vld [vmem:[#allocation2 + $0x40] sm:$0xff]  ;;  %v11809_v44 = vpack.c.bf16 %v6394_v8, %v6394_v8  ;;  %v7057_v24 = vpop.permute.xlu0 %7056  ;;  %v6396_v54 = vld [vmem:[#allocation2 + $0x28] sm:$0xff] }
 0x449   : > { %5779 = vst.msk [vmem:[#allocation2 + $0x198] sm:$0xff] %vm17326_vm11, %v5731_v23  ;;  %vm17327_vm6 = vmmov %vm17322_vm1  ;;  %v11814_v48 = vpack.c.bf16 %v6399_v27, %v6399_v27 }
 0x44a   : > { %7815 = vst.msk [vmem:[#allocation4 + $0x15c] sm:$0xf] %vm17327_vm6, %v12006_v17  ;;  %vm17328_vm12 = vmmov %vm17322_vm1  ;;  %v11815_v17 = vpack.c.bf16 %v6400_v12, %v6400_v12  ;;  %v6417_v12 = vld [vmem:[#allocation2 + $0xd0] sm:$0xff] }
 0x44b   : > { %6097 = vst.msk [vmem:[#allocation3 + $0x178] sm:$0xf] %vm17328_vm12, %v11752_v3  ;;  %vm17329_vm15 = vmmov %vm17323_vm0  ;;  %v6870_v55 = vld [vmem:[#allocation2 + $0x190] sm:$0xff]  ;;  %v11810_v3 = vpack.c.bf16 %v6395_v10, %v6395_v10 }
 0x44c   : > { %7176 = vst.msk [vmem:[#allocation4 + $0x80] sm:$0xf] %vm17329_vm15, %v7049_v21  ;;  %vm17330_vm8 = vmmov %vm17322_vm1  ;;  %v6150_v42 = vld [vmem:[#allocation2 + $0x18f] sm:$0xff]  ;;  %v16326_v60 = vpack.c.bf16 %v6870_v55, %v6870_v55  ;;  %v7061_v16 = vpop.permute.xlu0 %7060  ;;  %v11816_v21 = vpack.c.bf16 %v6401_v11, %v6401_v11  ;;  %v6403_v55 = vld [vmem:[#allocation2 + $0x60] sm:$0xff] }
 0x44d   : > { %7524 = vst.msk [vmem:[#allocation3 + $0x174] sm:$0xf] %vm17330_vm8, %v11955_v14  ;;  %vm17331_vm4 = vmmov %vm17322_vm1  ;;  %v7577_v9 = vld [vmem:[#allocation2 + $0x189] sm:$0xff]  ;;  %v11805_v20 = vpack.c.bf16 %v6150_v42, %v6150_v42  ;;  %v11811_v14 = vpack.c.bf16 %v6396_v54, %v6396_v54  ;;  %v6419_v54 = vld [vmem:[#allocation2 + $0xe0] sm:$0xff] }
 0x44e   : > { %6389 = vst.msk [vmem:[#allocation4 + $0x168] sm:$0xf] %vm17331_vm4, %v11804_v47  ;;  %vm17332_vm10 = vmmov %vm17322_vm1  ;;  %v12353_v57 = vld [vmem:[#allocation4 + $0x70] ss:$8 sps:$4 sm:$0xff]   ;;  %v12008_v45 = vpack.c.bf16 %v7577_v9, %v7577_v9  ;;  %v5829_v1 = vld [vmem:[#allocation2 + $0x18f] sm:$0xff]  ;;  %7108 = vrot.lane.b32.xlu0 %v16326_v60, %s12563_s9  ;;  %v11819_v9 = vpack.c.bf16 %v6404_v52, %v6404_v52 }
 0x44f   : > { %7816 = vst.msk [vmem:[#allocation4 + $0x164] sm:$0xf] %vm17332_vm10, %v12007_v0  ;;  %vm17333_vm7 = vmmov %vm17322_vm1  ;;  %v7256_v40 = vld [vmem:[#allocation2 + $0x189] sm:$0xff]  ;;  %v11754_v26 = vpack.c.bf16 %v5829_v1, %v5829_v1  ;;  %v6402_v47 = vld [vmem:[#allocation2 + $0x58] sm:$0xff] }
 0x450   : > { %6098 = vst.msk [vmem:[#allocation3 + $0x180] sm:$0xf] %vm17333_vm7, %v11753_v56  ;;  %vm17334_vm2 = vmmov %vm17322_vm1  ;;  %v11957_v33 = vpack.c.bf16 %v7256_v40, %v7256_v40  ;;  %v6871_v50 = vld [vmem:[#allocation2 + $0x198] sm:$0xff]  ;;  %v6397_v0 = vld [vmem:[#allocation2 + $0x30] sm:$0xff]  ;;  %v11817_v34 = vpack.c.bf16 %v6402_v47, %v6402_v47  ;;  %v7065_v42 = vpop.permute.xlu0 %7064 }
 0x451   : > { %7525 = vst.msk [vmem:[#allocation3 + $0x17c] sm:$0xf] %vm17334_vm2, %v11956_v46  ;;  %vm17335_vm3 = vmmov %vm17323_vm0  ;;  %v6151_v28 = vld [vmem:[#allocation2 + $0x197] sm:$0xff]  ;;  %v16334_v7 = vpack.c.bf16 %v6871_v50, %v6871_v50  ;;  %v5831_v59 = vld [vmem:[#allocation2 + $0x19f] sm:$0xff]  ;;  %v11812_v38 = vpack.c.bf16 %v6397_v0, %v6397_v0  ;;  %v11823_v50 = vpack.c.bf16 %v6408_v37, %v6408_v37 }
 0x452   : > { %7177 = vst.msk [vmem:[#allocation4 + $0x88] sm:$0xf] %vm17335_vm3, %v7051_v19  ;;  %vm17336_vm5 = vmmov %vm17321_vm9  ;;  %v7578_v5 = vld [vmem:[#allocation2 + $0x191] sm:$0xff]  ;;  %v11806_v49 = vpack.c.bf16 %v6151_v28, %v6151_v28  ;;  %v7579_v32 = vld [vmem:[#allocation2 + $0x199] sm:$0xff]  ;;  %6608 = vrot.lane.b32.xlu0 %v11807_v35, %s12563_s9  ;;  %v11756_v43 = vpack.c.bf16 %v5831_v59, %v5831_v59  ;;  %v11818_v19 = vpack.c.bf16 %v6403_v55, %v6403_v55 }
 0x453   : > { %11184 = vmatprep.mubr.msk.bf16.mxu1 %vm17336_vm5, %v12351_v61  ;;  %vm17337_vm9 = vmmov %vm17322_vm1  ;;  %7817 = vst.msk [vmem:[#allocation4 + $0x16c] sm:$0xf] %vm17322_vm1, %v12008_v45  ;;  %v12009_v63 = vpack.c.bf16 %v7578_v5, %v7578_v5  ;;  %v5830_v58 = vld [vmem:[#allocation2 + $0x197] sm:$0xff]  ;;  %v12010_v53 = vpack.c.bf16 %v7579_v32, %v7579_v32  ;;  %7110 = vrot.lane.b32.xlu1 %v16334_v7, %s12563_s9  ;;  %v12367_v40 = vld [vmem:[#allocation4 + $0xb4] ss:$8 sps:$4 sm:$0xff]  }
 0x454   : > { %6390 = vst.msk [vmem:[#allocation4 + $0x170] sm:$0xf] %vm17337_vm9, %v11805_v20  ;;  %8414 = vmatmul.mubr.bf16.gmra.mxu1 %v12353_v57  ;;  %vm17338_vm0 = vmmov %vm17322_vm1  ;;  %v11755_v15 = vpack.c.bf16 %v5830_v58, %v5830_v58  ;;  %v7257_v4 = vld [vmem:[#allocation2 + $0x191] sm:$0xff]  ;;  %v7258_v6 = vld [vmem:[#allocation2 + $0x199] sm:$0xff]  ;;  %v7067_v20 = vpop.permute.xlu1 %7066 }
 0x455   : > { %6099 = vst.msk [vmem:[#allocation3 + $0x188] sm:$0xf] %vm17338_vm0, %v11754_v26  ;;  %vm17339_vm13 = vmmov %vm17338_vm0  ;;  %v11958_v13 = vpack.c.bf16 %v7257_v4, %v7257_v4  ;;  %v11959_v30 = vpack.c.bf16 %v7258_v6, %v7258_v6  ;;  %v12363_v56 = vld [vmem:[#allocation4 + $0xa4] ss:$8 sps:$4 sm:$0xff]   ;;  %v6407_v26 = vld [vmem:[#allocation2 + $0x80] sm:$0xff] }
 0x456   : > { %7526 = vst.msk [vmem:[#allocation3 + $0x184] sm:$0xf] %vm17339_vm13, %v11957_v33  ;;  %vm17340_vm14 = vmmov %vm17335_vm3  ;;  %6620 = vrot.lane.b32.xlu0 %v11813_v39, %s12563_s9  ;;  %v6406_v61 = vld [vmem:[#allocation2 + $0x78] sm:$0xff]  ;;  %v6405_v57 = vld [vmem:[#allocation2 + $0x70] sm:$0xff]  ;;  %v7069_v33 = vpop.permute.xlu0 %7068  ;;  %v11822_v51 = vpack.c.bf16 %v6407_v26, %v6407_v26 }
 0x457   : > { %7178 = vst.msk [vmem:[#allocation4 + $0x90] sm:$0xf] %vm17340_vm14, %v7053_v25  ;;  %vm17341_vm11 = vmmov %vm17338_vm0  ;;  %6610 = vrot.lane.b32.xlu1 %v11808_v62, %s12563_s9  ;;  %v11821_v45 = vpack.c.bf16 %v6406_v61, %v6406_v61  ;;  %v11820_v1 = vpack.c.bf16 %v6405_v57, %v6405_v57  ;;  %v6410_v28 = vld [vmem:[#allocation2 + $0x98] sm:$0xff]  ;;  %v6409_v5 = vld [vmem:[#allocation2 + $0x90] sm:$0xff] }
 0x458   : > { %6391 = vst.msk [vmem:[#allocation4 + $0x178] sm:$0xf] %vm17341_vm11, %v11806_v49  ;;  %vm17342_vm6 = vmmov %vm17338_vm0  ;;  %v7071_v25 = vpop.permute.xlu1 %7070  ;;  %v11825_v49 = vpack.c.bf16 %v6410_v28, %v6410_v28  ;;  %v11824_v32 = vpack.c.bf16 %v6409_v5, %v6409_v5  ;;  %v6412_v62 = vld [vmem:[#allocation2 + $0xa8] sm:$0xff]  ;;  %v6414_v6 = vld [vmem:[#allocation2 + $0xb8] sm:$0xff] }
 0x459   : > { %7818 = vst.msk [vmem:[#allocation4 + $0x174] sm:$0xf] %vm17342_vm6, %v12009_v63  ;;  %vm17343_vm12 = vmmov %vm17338_vm0  ;;  %v12357_v41 = vld [vmem:[#allocation4 + $0x80] ss:$8 sps:$4 sm:$0xff]   ;;  %v12371_v63 = vld [vmem:[#allocation4 + $0xc4] ss:$8 sps:$4 sm:$0xff]   ;;  %v11827_v59 = vpack.c.bf16 %v6412_v62, %v6412_v62 }
 0x45a   : > { %7819 = vst.msk [vmem:[#allocation4 + $0x17c] sm:$0xf] %vm17343_vm12, %v12010_v53  ;;  %vm17344_vm15 = vmmov %vm17338_vm0  ;;  %6612 = vrot.lane.b32.xlu0 %v11809_v44, %s12563_s9  ;;  %v6411_v53 = vld [vmem:[#allocation2 + $0xa0] sm:$0xff]  ;;  %v6421_v47 = vld [vmem:[#allocation2 + $0xf0] sm:$0xff] }
 0x45b   : > { %6100 = vst.msk [vmem:[#allocation3 + $0x190] sm:$0xf] %vm17344_vm15, %v11755_v15  ;;  %vm17345_vm8 = vmmov %vm17338_vm0  ;;  %6622 = vrot.lane.b32.xlu1 %v11814_v48, %s12563_s9  ;;  %v7073_v15 = vpop.permute.xlu0 %7072  ;;  %v11826_v4 = vpack.c.bf16 %v6411_v53, %v6411_v53  ;;  %v6418_v48 = vld [vmem:[#allocation2 + $0xd8] sm:$0xff]  ;;  %v6423_v52 = vld [vmem:[#allocation2 + $0x100] sm:$0xff] }
 0x45c   : > { %6101 = vst.msk [vmem:[#allocation3 + $0x198] sm:$0xf] %vm17345_vm8, %v11756_v43  ;;  %vm17346_vm4 = vmmov %vm17338_vm0  ;;  %v6413_v43 = vld [vmem:[#allocation2 + $0xb0] sm:$0xff]  ;;  %v6427_v37 = vld [vmem:[#allocation2 + $0x120] sm:$0xff] }
 0x45d   : > { %7527 = vst.msk [vmem:[#allocation3 + $0x18c] sm:$0xf] %vm17346_vm4, %v11958_v13  ;;  %vm17347_vm10 = vmmov %vm17338_vm0  ;;  %v7075_v13 = vpop.permute.xlu1 %7074  ;;  %v11828_v8 = vpack.c.bf16 %v6413_v43, %v6413_v43  ;;  %v6425_v61 = vld [vmem:[#allocation2 + $0x110] sm:$0xff]  ;;  %v6431_v62 = vld [vmem:[#allocation2 + $0x140] sm:$0xff] }
 0x45e   : > { %7528 = vst.msk [vmem:[#allocation3 + $0x194] sm:$0xf] %vm17347_vm10, %v11959_v30  ;;  %vm17348_vm7 = vmmov %vm17335_vm3  ;;  %6624 = vrot.lane.b32.xlu0 %v11815_v17, %s12563_s9  ;;  %v11829_v30 = vpack.c.bf16 %v6414_v6, %v6414_v6  ;;  %v11832_v17 = vpack.c.bf16 %v6417_v12, %v6417_v12  ;;  %v6429_v28 = vld [vmem:[#allocation2 + $0x130] sm:$0xff] }
 0x45f   : > { %7179 = vst.msk [vmem:[#allocation4 + $0x98] sm:$0xf] %vm17348_vm7, %v7055_v31  ;;  %vm17349_vm2 = vmmov %vm17336_vm5  ;;  %6614 = vrot.lane.b32.xlu1 %v11810_v3, %s12563_s9  ;;  %v12375_v31 = vld [vmem:[#allocation4 + $0xd4] ss:$8 sps:$4 sm:$0xff]   ;;  %v7077_v27 = vpop.permute.xlu0 %7076  ;;  %v12379_v3 = vld [vmem:[#allocation4 + $0xe4] ss:$8 sps:$4 sm:$0xff]  }
 0x460   : > { %11185 = vmatprep.mubr.msk.bf16.mxu1 %vm17349_vm2, %v12355_v2  ;;  %7180 = vst.msk [vmem:[#allocation4 + $0xa0] sm:$0xf] %vm17335_vm3, %v7057_v24  ;;  %vm17350_vm5 = vmmov %vm17335_vm3  ;;  %v6416_v2 = vld [vmem:[#allocation2 + $0xc8] sm:$0xff]  ;;  %v6433_v6 = vld [vmem:[#allocation2 + $0x150] sm:$0xff] }
 0x461   : > { %8422 = vmatmul.mubr.bf16.gmra.mxu1 %v12357_v41  ;;  %7181 = vst.msk [vmem:[#allocation4 + $0xa8] sm:$0xf] %vm17350_vm5, %v7059_v29  ;;  %vm17351_vm9 = vmmov %vm17349_vm2  ;;  %v6415_v41 = vld [vmem:[#allocation2 + $0xc0] sm:$0xff]  ;;  %v11831_v44 = vpack.c.bf16 %v6416_v2, %v6416_v2  ;;  %v7079_v10 = vpop.permute.xlu1 %7078  ;;  %v11833_v29 = vpack.c.bf16 %v6418_v48, %v6418_v48  ;;  %v6437_v48 = vld [vmem:[#allocation2 + $0x170] sm:$0xff] }
 0x462   : > { %11186 = vmatprep.mubr.msk.bf16.mxu1 %vm17351_vm9, %v12359_v18  ;;  %vm17352_vm1 = vmmov %vm17335_vm3  ;;  %6616 = vrot.lane.b32.xlu0 %v11811_v14, %s12563_s9  ;;  %v11830_v24 = vpack.c.bf16 %v6415_v41, %v6415_v41  ;;  %v11834_v14 = vpack.c.bf16 %v6419_v54, %v6419_v54  ;;  %v6435_v2 = vld [vmem:[#allocation2 + $0x160] sm:$0xff] }
 0x463   : > { %7182 = vst.msk [vmem:[#allocation4 + $0xb0] sm:$0xf] %vm17352_vm1, %v7061_v16  ;;  %6626 = vrot.lane.b32.xlu1 %v11816_v21, %s12563_s9  ;;  %vm17353_vm0 = vmmov %vm17352_vm1  ;;  %v7081_v11 = vpop.permute.xlu0 %7080  ;;  %v6422_v21 = vld [vmem:[#allocation2 + $0xf8] sm:$0xff] }
 0x464   : > { %7183 = vst.msk [vmem:[#allocation4 + $0xb8] sm:$0xf] %vm17353_vm0, %v7063_v36  ;;  %vm17354_vm13 = vmmov %vm17349_vm2  ;;  %v11837_v36 = vpack.c.bf16 %v6422_v21, %v6422_v21  ;;  %v12403_v21 = vld [vmem:[#allocation4 + $0x144] ss:$8 sps:$4 sm:$0xff]  }
 0x465   : > { %vm17355_vm14 = vmmov %vm17353_vm0 }
 0x466   : > { %v12361_v23 = vld [vmem:[#allocation4 + $0x90] ss:$8 sps:$4 sm:$0xff]   ;;  %6628 = vrot.lane.b32.xlu0 %v11817_v34, %s12563_s9  ;;  %7184 = vst.msk [vmem:[#allocation4 + $0xc0] sm:$0xf] %vm17355_vm14, %v7065_v42  ;;  %vm17356_vm11 = vmmov %vm17353_vm0  ;;  %v11836_v34 = vpack.c.bf16 %v6421_v47, %v6421_v47 }
 0x467   : > { %6618 = vrot.lane.b32.xlu1 %v11812_v38, %s12563_s9  ;;  %7185 = vst.msk [vmem:[#allocation4 + $0xc8] sm:$0xf] %vm17356_vm11, %v7067_v20  ;;  %vm17357_vm6 = vmmov %vm17349_vm2  ;;  %v12383_v38 = vld [vmem:[#allocation4 + $0xf4] ss:$8 sps:$4 sm:$0xff]  }
 0x468   : > { %v12365_v46 = vld [vmem:[#allocation4 + $0xa0] ss:$8 sps:$4 sm:$0xff]   ;;  %vm17358_vm12 = vmmov %vm17353_vm0  ;;  %v7083_v0 = vpop.permute.xlu1 %7082 }
 0x469   : > { %8430 = vmatmul.mubr.bf16.gmra.mxu1 %v12361_v23  ;;  %7186 = vst.msk [vmem:[#allocation4 + $0xd0] sm:$0xf] %vm17358_vm12, %v7069_v33  ;;  %vm17359_vm15 = vmmov %vm17353_vm0  ;;  %v6420_v23 = vld [vmem:[#allocation2 + $0xe8] sm:$0xff] }
 0x46a   : > { %11187 = vmatprep.mubr.msk.bf16.mxu1 %vm17354_vm13, %v12363_v56  ;;  %6632 = vrot.lane.b32.xlu0 %v11819_v9, %s12563_s9  ;;  %7187 = vst.msk [vmem:[#allocation4 + $0xd8] sm:$0xf] %vm17359_vm15, %v7071_v25  ;;  %vm17360_vm8 = vmmov %vm17349_vm2  ;;  %v11835_v16 = vpack.c.bf16 %v6420_v23, %v6420_v23  ;;  %v11838_v9 = vpack.c.bf16 %v6423_v52, %v6423_v52 }
 0x46b   : > { %6630 = vrot.lane.b32.xlu1 %v11818_v19, %s12563_s9  ;;  %v12369_v35 = vld [vmem:[#allocation4 + $0xb0] ss:$8 sps:$4 sm:$0xff]   ;;  %vm17361_vm4 = vmmov %vm17353_vm0  ;;  %v6426_v19 = vld [vmem:[#allocation2 + $0x118] sm:$0xff] }
 0x46c   : > { %7188 = vst.msk [vmem:[#allocation4 + $0xe0] sm:$0xf] %vm17361_vm4, %v7073_v15  ;;  %vm17362_vm10 = vmmov %vm17353_vm0  ;;  %v11841_v20 = vpack.c.bf16 %v6426_v19, %v6426_v19  ;;  %v12411_v19 = vld [vmem:[#allocation4 + $0x164] ss:$8 sps:$4 sm:$0xff]  }
 0x46d   : > { %7189 = vst.msk [vmem:[#allocation4 + $0xe8] sm:$0xf] %vm17362_vm10, %v7075_v13  ;;  %vm17363_vm7 = vmmov %vm17349_vm2  ;;  %v7085_v55 = vpop.permute.xlu0 %7084 }
 0x46e   : > { %6636 = vrot.lane.b32.xlu0 %v11821_v45, %s12563_s9  ;;  %v12373_v58 = vld [vmem:[#allocation4 + $0xc0] ss:$8 sps:$4 sm:$0xff]   ;;  %vm17364_vm2 = vmmov %vm17353_vm0  ;;  %v11840_v45 = vpack.c.bf16 %v6425_v61, %v6425_v61 }
 0x46f   : > { %6634 = vrot.lane.b32.xlu1 %v11820_v1, %s12563_s9  ;;  %7190 = vst.msk [vmem:[#allocation4 + $0xf0] sm:$0xf] %vm17364_vm2, %v7077_v27  ;;  %vm17365_vm3 = vmmov %vm17353_vm0  ;;  %v12387_v1 = vld [vmem:[#allocation4 + $0x104] ss:$8 sps:$4 sm:$0xff]  }
 0x470   : > { %7191 = vst.msk [vmem:[#allocation4 + $0xf8] sm:$0xf] %vm17365_vm3, %v7079_v10  ;;  %vm17366_vm5 = vmmov %vm17357_vm6 }
 0x471   : > { %8438 = vmatmul.mubr.bf16.gmra.mxu1 %v12365_v46  ;;  %v12377_v39 = vld [vmem:[#allocation4 + $0xd0] ss:$8 sps:$4 sm:$0xff]   ;;  %vm17367_vm9 = vmmov %vm17353_vm0 }
 0x472   : > { %11188 = vmatprep.mubr.msk.bf16.mxu1 %vm17357_vm6, %v12367_v40  ;;  %6640 = vrot.lane.b32.xlu0 %v11823_v50, %s12563_s9  ;;  %7192 = vst.msk [vmem:[#allocation4 + $0x100] sm:$0xf] %vm17367_vm9, %v7081_v11  ;;  %vm17368_vm1 = vmmov %vm17353_vm0  ;;  %v6424_v46 = vld [vmem:[#allocation2 + $0x108] sm:$0xff]  ;;  %v7087_v57 = vpop.permute.xlu1 %7086  ;;  %v11842_v50 = vpack.c.bf16 %v6427_v37, %v6427_v37  ;;  %v6443_v11 = vld [vmem:[#allocation2 + $0x1a0] sm:$0xff] }
 0x473   : > { %6638 = vrot.lane.b32.xlu1 %v11822_v51, %s12563_s9  ;;  %7193 = vst.msk [vmem:[#allocation4 + $0x108] sm:$0xf] %vm17368_vm1, %v7083_v0  ;;  %vm17369_vm0 = vmmov %vm17366_vm5  ;;  %v11839_v42 = vpack.c.bf16 %v6424_v46, %v6424_v46  ;;  %v6430_v51 = vld [vmem:[#allocation2 + $0x138] sm:$0xff]  ;;  %v11858_v0 = vpack.c.bf16 %v6443_v11, %v6443_v11  ;;  %v12407_v46 = vld [vmem:[#allocation4 + $0x154] ss:$8 sps:$4 sm:$0xff]  }
 0x474   : > { %v12381_v18 = vld [vmem:[#allocation4 + $0xe0] ss:$8 sps:$4 sm:$0xff]   ;;  %vm17370_vm13 = vmmov %vm17368_vm1  ;;  %v11845_v25 = vpack.c.bf16 %v6430_v51, %v6430_v51  ;;  %v12414_v37 = vld [vmem:[#allocation4 + $0x174] ss:$8 sps:$4 sm:$0xff]  }
 0x475   : > { %7194 = vst.msk [vmem:[#allocation4 + $0x110] sm:$0xf] %vm17370_vm13, %v7085_v55  ;;  %vm17371_vm14 = vmmov %vm17368_vm1 }
 0x476   : > { %6644 = vrot.lane.b32.xlu0 %v11825_v49, %s12563_s9  ;;  %7195 = vst.msk [vmem:[#allocation4 + $0x118] sm:$0xf] %vm17371_vm14, %v7087_v57  ;;  %vm17372_vm11 = vmmov %vm17369_vm0  ;;  %v11844_v49 = vpack.c.bf16 %v6429_v28, %v6429_v28  ;;  %v12418_v28 = vld [vmem:[#allocation3 + $0x4] ss:$8 sps:$4 sm:$0xff]  }
 0x477   : > { %6642 = vrot.lane.b32.xlu1 %v11824_v32, %s12563_s9  ;;  %v12385_v56 = vld [vmem:[#allocation4 + $0xf0] ss:$8 sps:$4 sm:$0xff]   ;;  %vm17373_vm6 = vmmov %vm17368_vm1  ;;  %v12391_v32 = vld [vmem:[#allocation4 + $0x114] ss:$8 sps:$4 sm:$0xff]  }
 0x478   : > { %v7089_v26 = vpop.permute.xlu0 %7088  ;;  %vm17374_vm12 = vmmov %vm17368_vm1 }
 0x479   : > { %8446 = vmatmul.mubr.bf16.gmra.mxu1 %v12369_v35  ;;  %v6428_v35 = vld [vmem:[#allocation2 + $0x128] sm:$0xff]  ;;  %7196 = vst.msk [vmem:[#allocation4 + $0x120] sm:$0xf] %vm17373_vm6, %v7089_v26  ;;  %vm17375_vm15 = vmmov %vm17369_vm0 }
 0x47a   : > { %11189 = vmatprep.mubr.msk.bf16.mxu1 %vm17360_vm8, %v12371_v63  ;;  %6648 = vrot.lane.b32.xlu0 %v11827_v59, %s12563_s9  ;;  %v12389_v40 = vld [vmem:[#allocation4 + $0x100] ss:$8 sps:$4 sm:$0xff]   ;;  %v11843_v33 = vpack.c.bf16 %v6428_v35, %v6428_v35  ;;  %v11846_v59 = vpack.c.bf16 %v6431_v62, %v6431_v62  ;;  %vm17376_vm8 = vmmov %vm17368_vm1 }
 0x47b   : > { %6646 = vrot.lane.b32.xlu1 %v11826_v4, %s12563_s9  ;;  %v6434_v4 = vld [vmem:[#allocation2 + $0x158] sm:$0xff]  ;;  %vm17377_vm4 = vmmov %vm17368_vm1 }
 0x47c   : > { %v11849_v13 = vpack.c.bf16 %v6434_v4, %v6434_v4  ;;  %vm17378_vm10 = vmmov %vm17369_vm0 }
 0x47d   : > { %v7091_v5 = vpop.permute.xlu1 %7090  ;;  %v12393_v63 = vld [vmem:[#allocation4 + $0x110] ss:$8 sps:$4 sm:$0xff]   ;;  %vm17380_vm2 = vmmov %vm17368_vm1 }
 0x47e   : > { %6652 = vrot.lane.b32.xlu0 %v11829_v30, %s12563_s9  ;;  %7197 = vst.msk [vmem:[#allocation4 + $0x128] sm:$0xf] %vm17374_vm12, %v7091_v5  ;;  %v11848_v30 = vpack.c.bf16 %v6433_v6, %v6433_v6  ;;  %vm17381_vm3 = vmmov %vm17369_vm0 }
 0x47f   : > { %6650 = vrot.lane.b32.xlu1 %v11828_v8, %s12563_s9  ;;  %v12395_v8 = vld [vmem:[#allocation4 + $0x124] ss:$8 sps:$4 sm:$0xff]   ;;  %vm17383_vm9 = vmmov %vm17368_vm1 }
 0x481   : > { %8454 = vmatmul.mubr.bf16.gmra.mxu1 %v12373_v58  ;;  %v6432_v58 = vld [vmem:[#allocation2 + $0x148] sm:$0xff] }
 0x482   : > { %11190 = vmatprep.mubr.msk.bf16.mxu1 %vm17363_vm7, %v12375_v31  ;;  %6656 = vrot.lane.b32.xlu0 %v11831_v44, %s12563_s9  ;;  %v11847_v15 = vpack.c.bf16 %v6432_v58, %v6432_v58  ;;  %v11850_v44 = vpack.c.bf16 %v6435_v2, %v6435_v2  ;;  %vm17379_vm7 = vmmov %vm17368_vm1 }
 0x483   : > { %6654 = vrot.lane.b32.xlu1 %v11830_v24, %s12563_s9  ;;  %v6438_v24 = vld [vmem:[#allocation2 + $0x178] sm:$0xff] }
 0x484   : > { %v11853_v10 = vpack.c.bf16 %v6438_v24, %v6438_v24 }
 0x485   : > { %v12397_v31 = vld [vmem:[#allocation4 + $0x120] ss:$8 sps:$4 sm:$0xff]  }
 0x486   : > { %6660 = vrot.lane.b32.xlu0 %v11833_v29, %s12563_s9  ;;  %v11852_v29 = vpack.c.bf16 %v6437_v48, %v6437_v48 }
 0x487   : > { %6658 = vrot.lane.b32.xlu1 %v11832_v17, %s12563_s9  ;;  %v7093_v53 = vpop.permute.xlu0 %7092  ;;  %v12399_v17 = vld [vmem:[#allocation4 + $0x134] ss:$8 sps:$4 sm:$0xff]  }
 0x488   : > { %7198 = vst.msk [vmem:[#allocation4 + $0x130] sm:$0xf] %vm17376_vm8, %v7093_v53 }
 0x489   : > { %8462 = vmatmul.mubr.bf16.gmra.mxu1 %v12377_v39  ;;  %v6436_v39 = vld [vmem:[#allocation2 + $0x168] sm:$0xff] }
 0x48a   : > { %11191 = vmatprep.mubr.msk.bf16.mxu1 %vm17366_vm5, %v12379_v3  ;;  %6664 = vrot.lane.b32.xlu0 %v11835_v16, %s12563_s9  ;;  %v11851_v27 = vpack.c.bf16 %v6436_v39, %v6436_v39  ;;  %vm17382_vm5 = vmmov %vm17368_vm1  ;;  %v6444_v16 = vld [vmem:[#allocation2 + $0x1a8] sm:$0xff] }
 0x48b   : > { %6662 = vrot.lane.b32.xlu1 %v11834_v14, %s12563_s9  ;;  %vm17384_vm1 = vmmov %vm17369_vm0  ;;  %v12424_v39 = vld [vmem:[#allocation3 + $0x44] ss:$8 sps:$4 sm:$0xff]  }
 0x48c   : > { %vm17387_vm14 = vmmov %vm17384_vm1 }
 0x48e   : > { %6668 = vrot.lane.b32.xlu0 %v11837_v36, %s12563_s9  ;;  %v7095_v43 = vpop.permute.xlu1 %7094  ;;  %v11859_v36 = vpack.c.bf16 %v6444_v16, %v6444_v16  ;;  %v12428_v16 = vld [vmem:[#allocation3 + $0x54] ss:$8 sps:$4 sm:$0xff]  }
 0x48f   : > { %6666 = vrot.lane.b32.xlu1 %v11836_v34, %s12563_s9  ;;  %7199 = vst.msk [vmem:[#allocation4 + $0x138] sm:$0xf] %vm17377_vm4, %v7095_v43 }
 0x491   : > { %8470 = vmatmul.mubr.bf16.gmra.mxu1 %v12381_v18  ;;  %v6439_v18 = vld [vmem:[#allocation2 + $0x180] sm:$0xff] }
 0x492   : > { %11192 = vmatprep.mubr.msk.bf16.mxu1 %vm17369_vm0, %v12383_v38  ;;  %6672 = vrot.lane.b32.xlu0 %v11839_v42, %s12563_s9  ;;  %v11854_v54 = vpack.c.bf16 %v6439_v18, %v6439_v18  ;;  %vm17385_vm0 = vmmov %vm17380_vm2 }
 0x493   : > { %6670 = vrot.lane.b32.xlu1 %v11838_v9, %s12563_s9  ;;  %vm17386_vm13 = vmmov %vm17385_vm0 }
 0x494   : > { %vm17389_vm6 = vmmov %vm17385_vm0 }
 0x495   : > { %vm17390_vm12 = vmmov %vm17385_vm0 }
 0x496   : > { %6676 = vrot.lane.b32.xlu0 %v11841_v20, %s12563_s9  ;;  %v7097_v41 = vpop.permute.xlu0 %7096  ;;  %v12401_v3 = vld [vmem:[#allocation4 + $0x130] ss:$8 sps:$4 sm:$0xff]   ;;  %vm17392_vm8 = vmmov %vm17385_vm0 }
 0x497   : > { %6674 = vrot.lane.b32.xlu1 %v11840_v45, %s12563_s9  ;;  %7200 = vst.msk [vmem:[#allocation4 + $0x140] sm:$0xf] %vm17379_vm7, %v7097_v41  ;;  %vm17393_vm4 = vmmov %vm17385_vm0 }
 0x498   : > { %vm17395_vm7 = vmmov %vm17385_vm0 }
 0x499   : > { %8478 = vmatmul.mubr.bf16.gmra.mxu1 %v12385_v56 }
 0x49a   : > { %11193 = vmatprep.mubr.msk.bf16.mxu1 %vm17372_vm11, %v12387_v1  ;;  %6680 = vrot.lane.b32.xlu0 %v11843_v33, %s12563_s9  ;;  %vm17388_vm11 = vmmov %vm17385_vm0 }
 0x49b   : > { %6678 = vrot.lane.b32.xlu1 %v11842_v50, %s12563_s9 }
 0x49c   : > { %v7099_v12 = vpop.permute.xlu1 %7098 }
 0x49d   : > { %7201 = vst.msk [vmem:[#allocation4 + $0x148] sm:$0xf] %vm17380_vm2, %v7099_v12  ;;  %vm17396_vm2 = vmmov %vm17384_vm1 }
 0x49e   : > { %6684 = vrot.lane.b32.xlu0 %v11845_v25, %s12563_s9 }
 0x49f   : > { %6682 = vrot.lane.b32.xlu1 %v11844_v49, %s12563_s9 }
 0x4a1   : > { %8486 = vmatmul.mubr.bf16.gmra.mxu1 %v12389_v40 }
 0x4a2   : > { %11194 = vmatprep.mubr.msk.bf16.mxu1 %vm17375_vm15, %v12391_v32  ;;  %6688 = vrot.lane.b32.xlu0 %v11847_v15, %s12563_s9  ;;  %vm17391_vm15 = vmmov %vm17384_vm1  ;;  %v12421_v32 = vld [vmem:[#allocation3 + $0x34] ss:$8 sps:$4 sm:$0xff]  }
 0x4a3   : > { %6686 = vrot.lane.b32.xlu1 %v11846_v59, %s12563_s9  ;;  %v12422_v59 = vld [vmem:[#allocation3 + $0x14] ss:$8 sps:$4 sm:$0xff]  }
 0x4a4   : > { %v12405_v47 = vld [vmem:[#allocation4 + $0x140] ss:$8 sps:$4 sm:$0xff]  }
 0x4a5   : > { %v7101_v23 = vpop.permute.xlu0 %7100 }
 0x4a6   : > { %6692 = vrot.lane.b32.xlu0 %v11849_v13, %s12563_s9  ;;  %7202 = vst.msk [vmem:[#allocation4 + $0x150] sm:$0xf] %vm17382_vm5, %v7101_v23  ;;  %vm17398_vm5 = vmmov %vm17385_vm0 }
 0x4a7   : > { %6690 = vrot.lane.b32.xlu1 %v11848_v30, %s12563_s9 }
 0x4a9   : > { %8494 = vmatmul.mubr.bf16.gmra.mxu1 %v12393_v63 }
 0x4aa   : > { %11195 = vmatprep.mubr.msk.bf16.mxu1 %vm17378_vm10, %v12395_v8  ;;  %6696 = vrot.lane.b32.xlu0 %v11851_v27, %s12563_s9  ;;  %v7103_v14 = vpop.permute.xlu1 %7102  ;;  %vm17394_vm10 = vmmov %vm17385_vm0 }
 0x4ab   : > { %6694 = vrot.lane.b32.xlu1 %v11850_v44, %s12563_s9  ;;  %7203 = vst.msk [vmem:[#allocation4 + $0x158] sm:$0xf] %vm17383_vm9, %v7103_v14  ;;  %vm17399_vm9 = vmmov %vm17384_vm1 }
 0x4ac   : > { %11261 = vmatprep.mubr.msk.bf16.mxu0 %vm17399_vm9, %v12418_v28  ;;  %vm17413_vm9 = vmmov %vm17396_vm2 }
 0x4ae   : > { %6700 = vrot.lane.b32.xlu0 %v11853_v10, %s12563_s9  ;;  %v7105_v34 = vpop.permute.xlu0 %7104  ;;  %v12426_v10 = vld [vmem:[#allocation3 + $0x24] ss:$8 sps:$4 sm:$0xff]  }
 0x4af   : > { %6698 = vrot.lane.b32.xlu1 %v11852_v29, %s12563_s9  ;;  %7204 = vst.msk [vmem:[#allocation4 + $0x160] sm:$0xf] %vm17385_vm0, %v7105_v34 }
 0x4b1   : > { %8502 = vmatmul.mubr.bf16.gmra.mxu1 %v12397_v31 }
 0x4b2   : > { %11196 = vmatprep.mubr.msk.bf16.mxu1 %vm17381_vm3, %v12399_v17  ;;  %6704 = vrot.lane.b32.xlu0 %v16311_v22, %s12563_s9  ;;  %v6445_v22 = vld [vmem:[#allocation2 + $0x1b0] sm:$0xff]  ;;  %vm17397_vm3 = vmmov %vm17385_vm0  ;;  %v16463_v63 = vpop.f32.mrf.mxu1 }
 0x4b3   : > { %6702 = vrot.lane.b32.xlu1 %v11854_v54, %s12563_s9  ;;  %v11860_v38 = vpack.c.bf16 %v6445_v22, %v6445_v22  ;;  %v12430_v22 = vld [vmem:[#allocation3 + $0x64] ss:$8 sps:$4 sm:$0xff]  }
 0x4b4   : > { %v8361_v4 = vpop.f32.mrf.mxu1 }
 0x4b5   : > { %v12436_v4 = vld [vmem:[#allocation3 + $0x94] ss:$8 sps:$4 sm:$0xff]  }
 0x4b6   : > { %6708 = vrot.lane.b32.xlu0 %v16334_v7, %s12563_s9  ;;  %v7936_v42 = vld [vmem:[#allocation4 + $0x160] sm:$0xff]  ;;  %v16469_v43 = vpop.f32.mrf.mxu1 }
 0x4b7   : > { %6706 = vrot.lane.b32.xlu1 %v16326_v60, %s12563_s9  ;;  %v12409_v60 = vld [vmem:[#allocation4 + $0x150] ss:$8 sps:$4 sm:$0xff]  }
 0x4b8   : > { %v7107_v56 = vpop.permute.xlu1 %7106  ;;  %v8364_v2 = vpop.f32.mrf.mxu1 }
 0x4b9   : > { %8510 = vmatmul.mubr.bf16.gmra.mxu1 %v12401_v3  ;;  %7205 = vst.msk [vmem:[#allocation4 + $0x168] sm:$0xf] %vm17386_vm13, %v7107_v56  ;;  %vm17401_vm13 = vmmov %vm17396_vm2 }
 0x4ba   : > { %11197 = vmatprep.mubr.msk.bf16.mxu1 %vm17384_vm1, %v12403_v21  ;;  %6712 = vrot.lane.b32.xlu0 %v11859_v36, %s12563_s9  ;;  %vm17400_vm1 = vmmov %vm17385_vm0 }
 0x4bb   : > { %6710 = vrot.lane.b32.xlu1 %v11858_v0, %s12563_s9 }
 0x4bf   : > { %6714 = vrot.lane.b32.xlu1 %v11860_v38, %s12563_s9  ;;  %s161_s9 = sand.u32 1, %s12551_s13  }
 0x4c0   : > { %v7109_v7 = vpop.permute.xlu0 %7108  ;;  %v7937_v9 = vld [vmem:[#allocation4 + $0x168] sm:$0xff]  ;;  %s10178_s27 = sshll.u32 %s161_s9, 7  ;;  %s16780_s8 = scalar_lea.sflag [#allocation6], %s161_s9 }
 0x4c1   : > { %8518 = vmatmul.mubr.bf16.gmra.mxu1 %v12405_v47  ;;  %7206 = vst.msk [vmem:[#allocation4 + $0x170] sm:$0xf] %vm17388_vm11, %v7109_v7  ;;  %v11161_v61 = vcombine.low %v7936_v42, %v7937_v9  ;;  %vm17403_vm11 = vmmov %vm17385_vm0  ;;  %v12432_v9 = vld [vmem:[#allocation3 + $0x74] ss:$8 sps:$4 sm:$0xff]   ;;  %s16725_s29 = scalar_lea.vmem [#allocation5], %s10178_s27 }
 0x4c2   : > { %11198 = vmatprep.mubr.msk.bf16.mxu1 %vm17387_vm14, %v12407_v46  ;;  %vm17402_vm14 = vmmov %vm17385_vm0  ;;  %v16474_v27 = vpop.f32.mrf.mxu1  ;;  %s10112_s4 = sshll.u32 %s16725_s29, 4  ;;  %s16774_s4 = int_to_ptr.vmem [resolvable:$true] %s10112_s4 }
 0x4c3   : > { %s12499_s16 = scalar_lea.vmem %s16774_s4, 2048  ;;  %p12506_p0 = scmp.lt.s32.totalorder %s16774_s4, %s12504_s11 }
 0x4c4   : > { %v6609_v55 = vpop.permute.xlu0 %6608  ;;  %v8369_v29 = vpop.f32.mrf.mxu1  ;;  %p12500_p11 = scmp.ne.s32.totalorder %s16774_s4, %s12499_s16  ;;  %p12507_p1 = scmp.lt.s32.totalorder %s12505_s17, %s12499_s16 }
 0x4c5   : > { %v7111_v52 = vpop.permute.xlu1 %7110  ;;  %6770 = vst.msk [vmem:[#allocation3] sm:$0xf] %vm17390_vm12, %v6609_v55  ;;  %vm17405_vm12 = vmmov %vm17385_vm0 }
 0x4c6   : > { %7207 = vst.msk [vmem:[#allocation4 + $0x178] sm:$0xf] %vm17389_vm6, %v7111_v52  ;;  %vm17404_vm6 = vmmov %vm17396_vm2  ;;  %v16479_v3 = vpop.f32.mrf.mxu1  ;;  %p12501_p12 = pnand %p12500_p11, %p12625_p5  ;;  %p12508_p2 = por %p12507_p1, %p12506_p0 }
 0x4c8   : > { %v6621_v20 = vpop.permute.xlu0 %6620  ;;  %v7938_v45 = vld [vmem:[#allocation4 + $0x170] sm:$0xff]  ;;  %v8372_v14 = vpop.f32.mrf.mxu1  ;;  %p12502_p13 = pneg %p12501_p12 }
 0x4c9   : > { %8526 = vmatmul.mubr.bf16.gmra.mxu1 %v12409_v60  ;;  %v6611_v57 = vpop.permute.xlu1 %6610  ;;  %6776 = vst.msk [vmem:[#allocation3 + $0x30] sm:$0xf] %vm17393_vm4, %v6621_v20  ;;  %vm17408_vm4 = vmmov %vm17385_vm0 }
 0x4ca   : > { %11199 = vmatprep.mubr.msk.bf16.mxu1 %vm17391_vm15, %v12411_v19  ;;  %6771 = vst.msk [vmem:[#allocation3 + $0x8] sm:$0xf] %vm17392_vm8, %v6611_v57  ;;  %vm17406_vm15 = vmmov %vm17385_vm0  ;;  %p12509_p3 = pnand %p12508_p2, %p12502_p13 }
 0x4cb   : > { %vm17407_vm8 = vmmov %vm17396_vm2 }
 0x4cc   : > { %v6613_v40 = vpop.permute.xlu0 %6612 }
 0x4cd   : > { %v6623_v1 = vpop.permute.xlu1 %6622  ;;  %v7939_v35 = vld [vmem:[#allocation4 + $0x178] sm:$0xff]  ;;  %6772 = vst.msk [vmem:[#allocation3 + $0x10] sm:$0xf] %vm17395_vm7, %v6613_v40  ;;  %vm17410_vm7 = vmmov %vm17396_vm2 }
 0x4ce   : > { %6777 = vst.msk [vmem:[#allocation3 + $0x38] sm:$0xf] %vm17394_vm10, %v6623_v1  ;;  %v11163_v26 = vcombine.low %v7938_v45, %v7939_v35  ;;  %vm17409_vm10 = vmmov %vm17385_vm0 }
 0x4d0   : > { %v6625_v50 = vpop.permute.xlu0 %6624  ;;  %v16485_v47 = vpop.f32.mrf.mxu1 }
 0x4d1   : > { %8534 = vmatmul.mubr.bf16.gmra.mxu1 %v11161_v61  ;;  %v6615_v33 = vpop.permute.xlu1 %6614  ;;  %v12416_v51 = vld [vmem:[#allocation3] ss:$8 sps:$4 sm:$0xff]   ;;  %6778 = vst.msk [vmem:[#allocation3 + $0x40] sm:$0xf] %vm17398_vm5, %v6625_v50  ;;  %vm17412_vm5 = vmmov %vm17385_vm0  ;;  %v12434_v50 = vld [vmem:[#allocation3 + $0x84] ss:$8 sps:$4 sm:$0xff]  }
 0x4d2   : > { %11200 = vmatprep.mubr.msk.bf16.mxu1 %vm17396_vm2, %v12414_v37  ;;  %6773 = vst.msk [vmem:[#allocation3 + $0x18] sm:$0xf] %vm17397_vm3, %v6615_v33  ;;  %8943 = vmatmul.mubr.bf16.vlgmr.msra.gmra.mxu0 %v12416_v51  ;;  %vm17411_vm3 = vmmov %vm17385_vm0  ;;  %v8377_v34 = vpop.f32.mrf.mxu1 }
 0x4d3   : > { %11262 = vmatprep.mubr.msk.bf16.mxu0 %vm17404_vm6, %v12422_v59  ;;  %vm17418_vm6 = vmmov %vm17385_vm0 }
 0x4d4   : > { %v6617_v25 = vpop.permute.xlu0 %6616  ;;  %v7822_v53 = vld [vmem:[#allocation3 + $0x10] sm:$0xff]  ;;  %v16490_v56 = vpop.f32.mrf.mxu1 }
 0x4d5   : > { %v6627_v5 = vpop.permute.xlu1 %6626  ;;  %v16458_v49 = vld [vmem:[#allocation3 + $0x30] ss:$8 sps:$4 sm:$0xff]   ;;  %6774 = vst.msk [vmem:[#allocation3 + $0x20] sm:$0xf] %vm17385_vm0, %v6617_v25 }
 0x4d6   : > { %6779 = vst.msk [vmem:[#allocation3 + $0x48] sm:$0xf] %vm17400_vm1, %v6627_v5  ;;  %vm17414_vm1 = vmmov %vm17385_vm0  ;;  %v8380_v52 = vpop.f32.mrf.mxu1 }
 0x4d8   : > { %v6629_v62 = vpop.permute.xlu0 %6628  ;;  %v9137_v8 = vld [vmem:[#allocation3 + $0x40] sm:$0xff] }
 0x4d9   : > { %8542 = vmatmul.mubr.bf16.gmra.mxu1 %v11163_v26  ;;  %v6619_v58 = vpop.permute.xlu1 %6618  ;;  %v7823_v15 = vld [vmem:[#allocation3 + $0x18] sm:$0xff]  ;;  %6780 = vst.msk [vmem:[#allocation3 + $0x50] sm:$0xf] %vm17403_vm11, %v6629_v62  ;;  %vm17417_vm11 = vmmov %vm17385_vm0 }
 0x4da   : > { %11369 = vmatprep.mubr.msk.bf16.mxu1 %vm17401_vm13, %v12421_v32  ;;  %6775 = vst.msk [vmem:[#allocation3 + $0x28] sm:$0xf] %vm17402_vm14, %v6619_v58  ;;  %v11203_v6 = vcombine.low %v7822_v53, %v7823_v15  ;;  %vm17415_vm13 = vmmov %vm17396_vm2 }
 0x4db   : > { %vm17416_vm14 = vmmov %vm17396_vm2 }
 0x4dc   : > { %8951 = vmatmul.mubr.bf16.gmra.mxu0 %v11203_v6  ;;  %v6633_v30 = vpop.permute.xlu0 %6632  ;;  %v7824_v48 = vld [vmem:[#allocation3 + $0x20] sm:$0xff] }
 0x4dd   : > { %v6631_v13 = vpop.permute.xlu1 %6630  ;;  %v9138_v31 = vld [vmem:[#allocation3 + $0x48] sm:$0xff]  ;;  %6782 = vst.msk [vmem:[#allocation3 + $0x60] sm:$0xf] %vm17406_vm15, %v6633_v30  ;;  %11263 = vmatprep.mubr.msk.bf16.mxu0 %vm17410_vm7, %v12426_v10  ;;  %vm17420_vm15 = vmmov %vm17385_vm0 }
 0x4de   : > { %6781 = vst.msk [vmem:[#allocation3 + $0x58] sm:$0xf] %vm17405_vm12, %v6631_v13  ;;  %v11311_v41 = vcombine.low %v9137_v8, %v9138_v31  ;;  %v16496_v42 = vpop.f32.mrf.mxu1  ;;  %vm17419_vm12 = vmmov %vm17385_vm0 }
 0x4df   : > { %vm17424_vm7 = vmmov %vm17385_vm0 }
 0x4e0   : > { %v6637_v24 = vpop.permute.xlu0 %6636  ;;  %v9139_v54 = vld [vmem:[#allocation3 + $0x50] sm:$0xff]  ;;  %v8385_v57 = vpop.f32.mrf.mxu1 }
 0x4e1   : > { %9601 = vmatmul.mubr.bf16.vlgmr.msra.gmra.mxu1 %v16458_v49  ;;  %v6635_v44 = vpop.permute.xlu1 %6634  ;;  %v7825_v12 = vld [vmem:[#allocation3 + $0x28] sm:$0xff]  ;;  %6784 = vst.msk [vmem:[#allocation3 + $0x70] sm:$0xf] %vm17409_vm10, %v6637_v24  ;;  %vm17423_vm10 = vmmov %vm17385_vm0 }
 0x4e2   : > { %11370 = vmatprep.mubr.msk.bf16.mxu1 %vm17407_vm8, %v12424_v39  ;;  %6783 = vst.msk [vmem:[#allocation3 + $0x68] sm:$0xf] %vm17408_vm4, %v6635_v44  ;;  %v11205_v17 = vcombine.low %v7824_v48, %v7825_v12  ;;  %vm17421_vm8 = vmmov %vm17396_vm2  ;;  %v16501_v45 = vpop.f32.mrf.mxu1  ;;  %v12438_v12 = vld [vmem:[#allocation3 + $0xa4] ss:$8 sps:$4 sm:$0xff]  }
 0x4e3   : > { %vm17422_vm4 = vmmov %vm17396_vm2 }
 0x4e4   : > { %8959 = vmatmul.mubr.bf16.gmra.mxu0 %v11205_v17  ;;  %v6641_v23 = vpop.permute.xlu0 %6640  ;;  %v9141_v7 = vld [vmem:[#allocation3 + $0x60] sm:$0xff]  ;;  %v8388_v37 = vpop.f32.mrf.mxu1 }
 0x4e5   : > { %v6639_v18 = vpop.permute.xlu1 %6638  ;;  %11264 = vmatprep.mubr.msk.bf16.mxu0 %vm17396_vm2, %v12421_v32  ;;  %v9140_v11 = vld [vmem:[#allocation3 + $0x58] sm:$0xff]  ;;  %6786 = vst.msk [vmem:[#allocation3 + $0x80] sm:$0xf] %vm17412_vm5, %v6641_v23  ;;  %vm17425_vm2 = vmmov %vm17385_vm0 }
 0x4e6   : > { %6785 = vst.msk [vmem:[#allocation3 + $0x78] sm:$0xf] %vm17411_vm3, %v6639_v18  ;;  %v11313_v21 = vcombine.low %v9139_v54, %v9140_v11  ;;  %v16506_v33 = vpop.f32.mrf.mxu1  ;;  %vm17426_vm3 = vmmov %vm17385_vm0 }
 0x4e7   : > { %vm17427_vm5 = vmmov %vm17422_vm4 }
 0x4e8   : > { %v6645_v36 = vpop.permute.xlu0 %6644  ;;  %v9143_v35 = vld [vmem:[#allocation3 + $0x70] sm:$0xff]  ;;  %v8393_v5 = vpop.f32.mrf.mxu1 }
 0x4e9   : > { %9609 = vmatmul.mubr.bf16.gmra.mxu1 %v11311_v41  ;;  %v6643_v0 = vpop.permute.xlu1 %6642  ;;  %6788 = vst.msk [vmem:[#allocation3 + $0x90] sm:$0xf] %vm17385_vm0, %v6645_v36  ;;  %v9142_v38 = vld [vmem:[#allocation3 + $0x68] sm:$0xff]  ;;  %v12440_v36 = vld [vmem:[#allocation3 + $0xb4] ss:$8 sps:$4 sm:$0xff]  }
 0x4ea   : > { %11371 = vmatprep.mubr.msk.bf16.mxu1 %vm17413_vm9, %v12428_v16  ;;  %6787 = vst.msk [vmem:[#allocation3 + $0x88] sm:$0xf] %vm17414_vm1, %v6643_v0  ;;  %v11315_v55 = vcombine.low %v9141_v7, %v9142_v38  ;;  %vm17428_vm9 = vmmov %vm17422_vm4 }
 0x4eb   : > { %vm17429_vm1 = vmmov %vm17385_vm0 }
 0x4ec   : > { %8967 = vmatmul.mubr.bf16.gmra.mxu0 %v16458_v49  ;;  %v6649_v60 = vpop.permute.xlu0 %6648  ;;  %v16511_v49 = vpop.f32.mrf.mxu1  ;;  %v9145_v62 = vld [vmem:[#allocation3 + $0x80] sm:$0xff] }
 0x4ed   : > { %v6647_v46 = vpop.permute.xlu1 %6646  ;;  %11265 = vmatprep.mubr.msk.bf16.mxu0 %vm17416_vm14, %v12424_v39  ;;  %6790 = vst.msk [vmem:[#allocation3 + $0xa0] sm:$0xf] %vm17418_vm6, %v6649_v60  ;;  %v9144_v20 = vld [vmem:[#allocation3 + $0x78] sm:$0xff]  ;;  %vm17431_vm14 = vmmov %vm17385_vm0 }
 0x4ee   : > { %6789 = vst.msk [vmem:[#allocation3 + $0x98] sm:$0xf] %vm17417_vm11, %v6647_v46  ;;  %v11317_v26 = vcombine.low %v9143_v35, %v9144_v20  ;;  %v8396_v53 = vpop.f32.mrf.mxu1  ;;  %vm17432_vm11 = vmmov %vm17422_vm4 }
 0x4ef   : > { %vm17433_vm6 = vmmov %vm17422_vm4 }
 0x4f0   : > { %v6653_v61 = vpop.permute.xlu0 %6652 }
 0x4f1   : > { %9617 = vmatmul.mubr.bf16.gmra.mxu1 %v11313_v21  ;;  %v6651_v19 = vpop.permute.xlu1 %6650  ;;  %6792 = vst.msk [vmem:[#allocation3 + $0xb0] sm:$0xf] %vm17420_vm15, %v6653_v61  ;;  %v9146_v25 = vld [vmem:[#allocation3 + $0x88] sm:$0xff]  ;;  %vm17435_vm15 = vmmov %vm17385_vm0 }
 0x4f2   : > { %11372 = vmatprep.mubr.msk.bf16.mxu1 %vm17415_vm13, %v12430_v22  ;;  %6791 = vst.msk [vmem:[#allocation3 + $0xa8] sm:$0xf] %vm17419_vm12, %v6651_v19  ;;  %v11319_v15 = vcombine.low %v9145_v62, %v9146_v25  ;;  %vm17430_vm13 = vmmov %vm17385_vm0  ;;  %v12442_v61 = vld [vmem:[#allocation3 + $0xc4] ss:$8 sps:$4 sm:$0xff]   ;;  %v12444_v25 = vld [vmem:[#allocation3 + $0xd4] ss:$8 sps:$4 sm:$0xff]  }
 0x4f3   : > { %vm17434_vm12 = vmmov %vm17385_vm0 }
 0x4f4   : > { %8975 = vmatmul.mubr.bf16.gmra.mxu0 %v11311_v41  ;;  %v6657_v40 = vpop.permute.xlu0 %6656  ;;  %v9147_v41 = vld [vmem:[#allocation3 + $0x90] sm:$0xff] }
 0x4f5   : > { %v6655_v1 = vpop.permute.xlu1 %6654  ;;  %11266 = vmatprep.mubr.msk.bf16.mxu0 %vm17422_vm4, %v12428_v16  ;;  %6794 = vst.msk [vmem:[#allocation3 + $0xc0] sm:$0xf] %vm17424_vm7, %v6657_v40  ;;  %v9148_v8 = vld [vmem:[#allocation3 + $0x98] sm:$0xff]  ;;  %vm17437_vm4 = vmmov %vm17385_vm0  ;;  %v9149_v16 = vld [vmem:[#allocation3 + $0xa0] sm:$0xff] }
 0x4f6   : > { %6793 = vst.msk [vmem:[#allocation3 + $0xb8] sm:$0xf] %vm17423_vm10, %v6655_v1  ;;  %v11321_v24 = vcombine.low %v9147_v41, %v9148_v8  ;;  %vm17438_vm10 = vmmov %vm17427_vm5 }
 0x4f7   : > { %vm17439_vm7 = vmmov %vm17427_vm5 }
 0x4f8   : > { %v6661_v28 = vpop.permute.xlu0 %6660 }
 0x4f9   : > { %9625 = vmatmul.mubr.bf16.gmra.mxu1 %v11315_v55  ;;  %v6659_v51 = vpop.permute.xlu1 %6658  ;;  %6796 = vst.msk [vmem:[#allocation3 + $0xd0] sm:$0xf] %vm17426_vm3, %v6661_v28  ;;  %v9150_v18 = vld [vmem:[#allocation3 + $0xa8] sm:$0xff]  ;;  %vm17441_vm3 = vmmov %vm17385_vm0 }
 0x4fa   : > { %11373 = vmatprep.mubr.msk.bf16.mxu1 %vm17421_vm8, %v12432_v9  ;;  %6795 = vst.msk [vmem:[#allocation3 + $0xc8] sm:$0xf] %vm17425_vm2, %v6659_v51  ;;  %v16516_v59 = vpop.f32.mrf.mxu1  ;;  %vm17436_vm8 = vmmov %vm17385_vm0 }
 0x4fb   : > { %vm17440_vm2 = vmmov %vm17385_vm0 }
 0x4fc   : > { %8983 = vmatmul.mubr.bf16.gmra.mxu0 %v11313_v21  ;;  %v6665_v58 = vpop.permute.xlu0 %6664  ;;  %v8401_v30 = vpop.f32.mrf.mxu1  ;;  %v11323_v21 = vcombine.low %v9149_v16, %v9150_v18 }
 0x4fd   : > { %v6663_v32 = vpop.permute.xlu1 %6662  ;;  %11267 = vmatprep.mubr.msk.bf16.mxu0 %vm17428_vm9, %v12430_v22  ;;  %6798 = vst.msk [vmem:[#allocation3 + $0xe0] sm:$0xf] %vm17385_vm0, %v6665_v58  ;;  %vm17443_vm9 = vmmov %vm17385_vm0  ;;  %v9152_v46 = vld [vmem:[#allocation3 + $0xb8] sm:$0xff] }
 0x4fe   : > { %6797 = vst.msk [vmem:[#allocation3 + $0xd8] sm:$0xf] %vm17429_vm1, %v6663_v32  ;;  %v16521_v31 = vpop.f32.mrf.mxu1  ;;  %vm17444_vm1 = vmmov %vm17433_vm6 }
 0x500   : > { %v6669_v13 = vpop.permute.xlu0 %6668  ;;  %v8404_v44 = vpop.f32.mrf.mxu1 }
 0x501   : > { %9633 = vmatmul.mubr.bf16.gmra.mxu1 %v11317_v26  ;;  %v6667_v6 = vpop.permute.xlu1 %6666  ;;  %6800 = vst.msk [vmem:[#allocation3 + $0xf0] sm:$0xf] %vm17431_vm14, %v6669_v13  ;;  %vm17447_vm14 = vmmov %vm17440_vm2  ;;  %v9154_v35 = vld [vmem:[#allocation3 + $0xc8] sm:$0xff]  ;;  %v9155_v13 = vld [vmem:[#allocation3 + $0xd0] sm:$0xff] }
 0x502   : > { %11374 = vmatprep.mubr.msk.bf16.mxu1 %vm17427_vm5, %v12434_v50  ;;  %6799 = vst.msk [vmem:[#allocation3 + $0xe8] sm:$0xf] %vm17430_vm13, %v6667_v6  ;;  %vm17442_vm5 = vmmov %vm17385_vm0 }
 0x503   : > { %vm17445_vm0 = vmmov %vm17444_vm1 }
 0x504   : > { %8991 = vmatmul.mubr.bf16.gmra.mxu0 %v11315_v55  ;;  %v6673_v2 = vpop.permute.xlu0 %6672  ;;  %v9151_v55 = vld [vmem:[#allocation3 + $0xb0] sm:$0xff]  ;;  %vm17446_vm13 = vmmov %vm17440_vm2  ;;  %v9157_v18 = vld [vmem:[#allocation3 + $0xe0] sm:$0xff] }
 0x505   : > { %v6671_v39 = vpop.permute.xlu1 %6670  ;;  %11268 = vmatprep.mubr.msk.bf16.mxu0 %vm17433_vm6, %v12432_v9  ;;  %6802 = vst.msk [vmem:[#allocation3 + $0x100] sm:$0xf] %vm17435_vm15, %v6673_v2  ;;  %v11325_v19 = vcombine.low %v9151_v55, %v9152_v46  ;;  %vm17449_vm6 = vmmov %vm17445_vm0  ;;  %v12446_v2 = vld [vmem:[#allocation3 + $0xe4] ss:$8 sps:$4 sm:$0xff]  }
 0x506   : > { %6801 = vst.msk [vmem:[#allocation3 + $0xf8] sm:$0xf] %vm17434_vm12, %v6671_v39  ;;  %vm17450_vm12 = vmmov %vm17440_vm2 }
 0x507   : > { %vm17451_vm15 = vmmov %vm17445_vm0 }
 0x508   : > { %v16526_v48 = vpop.f32.mrf.mxu1  ;;  %v6677_v29 = vpop.permute.xlu0 %6676 }
 0x509   : > { %9641 = vmatmul.mubr.bf16.gmra.mxu1 %v11319_v15  ;;  %v6675_v10 = vpop.permute.xlu1 %6674  ;;  %6804 = vst.msk [vmem:[#allocation3 + $0x110] sm:$0xf] %vm17437_vm4, %v6677_v29  ;;  %vm17453_vm4 = vmmov %vm17440_vm2 }
 0x50a   : > { %11375 = vmatprep.mubr.msk.bf16.mxu1 %vm17432_vm11, %v12436_v4  ;;  %6803 = vst.msk [vmem:[#allocation3 + $0x108] sm:$0xf] %vm17436_vm8, %v6675_v10  ;;  %v8409_v17 = vpop.f32.mrf.mxu1  ;;  %vm17448_vm11 = vmmov %vm17440_vm2  ;;  %v9158_v10 = vld [vmem:[#allocation3 + $0xe8] sm:$0xff] }
 0x50b   : > { %vm17452_vm8 = vmmov %vm17440_vm2  ;;  %v11331_v16 = vcombine.low %v9157_v18, %v9158_v10 }
 0x50c   : > { %v16531_v23 = vpop.f32.mrf.mxu1  ;;  %8999 = vmatmul.mubr.bf16.gmra.mxu0 %v11317_v26  ;;  %v6681_v11 = vpop.permute.xlu0 %6680 }
 0x50d   : > { %v6679_v54 = vpop.permute.xlu1 %6678  ;;  %11269 = vmatprep.mubr.msk.bf16.mxu0 %vm17439_vm7, %v12434_v50  ;;  %6806 = vst.msk [vmem:[#allocation3 + $0x120] sm:$0xf] %vm17441_vm3, %v6681_v11  ;;  %v9153_v50 = vld [vmem:[#allocation3 + $0xc0] sm:$0xff]  ;;  %vm17455_vm7 = vmmov %vm17445_vm0  ;;  %v12450_v46 = vld [vmem:[#allocation3 + $0xf0] ss:$8 sps:$4 sm:$0xff]  }
 0x50e   : > { %6805 = vst.msk [vmem:[#allocation3 + $0x118] sm:$0xf] %vm17440_vm2, %v6679_v54  ;;  %v8412_v14 = vpop.f32.mrf.mxu1  ;;  %v11327_v5 = vcombine.low %v9153_v50, %v9154_v35  ;;  %vm17456_vm3 = vmmov %vm17445_vm0 }
 0x50f   : > { %v12448_v14 = vld [vmem:[#allocation3 + $0xf4] ss:$8 sps:$4 sm:$0xff]  }
 0x510   : > { %v6685_v34 = vpop.permute.xlu0 %6684 }
 0x511   : > { %9649 = vmatmul.mubr.bf16.gmra.mxu1 %v11321_v24  ;;  %v6683_v22 = vpop.permute.xlu1 %6682  ;;  %6808 = vst.msk [vmem:[#allocation3 + $0x130] sm:$0xf] %vm17443_vm9, %v6685_v34  ;;  %vm17458_vm9 = vmmov %vm17440_vm2 }
 0x512   : > { %11376 = vmatprep.mubr.msk.bf16.mxu1 %vm17438_vm10, %v12438_v12  ;;  %6807 = vst.msk [vmem:[#allocation3 + $0x128] sm:$0xf] %vm17442_vm5, %v6683_v22  ;;  %vm17454_vm10 = vmmov %vm17440_vm2 }
 0x513   : > { %vm17457_vm5 = vmmov %vm17440_vm2 }
 0x514   : > { %v16536_v0 = vpop.f32.mrf.mxu1  ;;  %9007 = vmatmul.mubr.bf16.gmra.mxu0 %v11319_v15  ;;  %v6689_v52 = vpop.permute.xlu0 %6688  ;;  %v9156_v15 = vld [vmem:[#allocation3 + $0xd8] sm:$0xff] }
 0x515   : > { %v6687_v7 = vpop.permute.xlu1 %6686  ;;  %11270 = vmatprep.mubr.msk.bf16.mxu0 %vm17445_vm0, %v12436_v4  ;;  %6810 = vst.msk [vmem:[#allocation3 + $0x140] sm:$0xf] %vm17447_vm14, %v6689_v52  ;;  %v11329_v39 = vcombine.low %v9155_v13, %v9156_v15  ;;  %vm17461_vm14 = vmmov %vm17445_vm0  ;;  %v12456_v50 = vld [vmem:[#allocation3 + $0x110] ss:$8 sps:$4 sm:$0xff]  }
 0x516   : > { %v8417_v38 = vpop.f32.mrf.mxu1  ;;  %6809 = vst.msk [vmem:[#allocation3 + $0x138] sm:$0xf] %vm17446_vm13, %v6687_v7  ;;  %v12451_v7 = vld [vmem:[#allocation3 + $0x104] ss:$8 sps:$4 sm:$0xff]  }
 0x518   : > { %v16541_v60 = vpop.f32.mrf.mxu1  ;;  %v6693_v1 = vpop.permute.xlu0 %6692 }
 0x519   : > { %9657 = vmatmul.mubr.bf16.gmra.mxu1 %v11323_v21  ;;  %v6691_v57 = vpop.permute.xlu1 %6690  ;;  %6812 = vst.msk [vmem:[#allocation3 + $0x150] sm:$0xf] %vm17450_vm12, %v6693_v1  ;;  %vm17464_vm12 = vmmov %vm17445_vm0 }
 0x51a   : > { %11377 = vmatprep.mubr.msk.bf16.mxu1 %vm17444_vm1, %v12440_v36  ;;  %v8420_v9 = vpop.f32.mrf.mxu1  ;;  %6811 = vst.msk [vmem:[#allocation3 + $0x148] sm:$0xf] %vm17448_vm11, %v6691_v57  ;;  %vm17459_vm1 = vmmov %vm17440_vm2  ;;  %v12454_v57 = vld [vmem:[#allocation3 + $0x114] ss:$8 sps:$4 sm:$0xff]  }
 0x51b   : > { %vm17460_vm13 = vmmov %vm17459_vm1 }
 0x51c   : > { %9015 = vmatmul.mubr.bf16.gmra.mxu0 %v11321_v24  ;;  %v6697_v51 = vpop.permute.xlu0 %6696  ;;  %vm17462_vm11 = vmmov %vm17459_vm1 }
 0x51d   : > { %v6695_v37 = vpop.permute.xlu1 %6694  ;;  %11271 = vmatprep.mubr.msk.bf16.mxu0 %vm17451_vm15, %v12438_v12  ;;  %6814 = vst.msk [vmem:[#allocation3 + $0x160] sm:$0xf] %vm17453_vm4, %v6697_v51  ;;  %vm17465_vm15 = vmmov %vm17459_vm1  ;;  %v12457_v51 = vld [vmem:[#allocation3 + $0x124] ss:$8 sps:$4 sm:$0xff]  }
 0x51e   : > { %6813 = vst.msk [vmem:[#allocation3 + $0x158] sm:$0xf] %vm17452_vm8, %v6695_v37  ;;  %vm17466_vm8 = vmmov %vm17445_vm0 }
 0x51f   : > { %vm17467_vm4 = vmmov %vm17445_vm0 }
 0x520   : > { %v6701_v62 = vpop.permute.xlu0 %6700 }
 0x521   : > { %v16546_v20 = vpop.f32.mrf.mxu1  ;;  %9665 = vmatmul.mubr.bf16.gmra.mxu1 %v11325_v19  ;;  %v6699_v32 = vpop.permute.xlu1 %6698  ;;  %6816 = vst.msk [vmem:[#allocation3 + $0x170] sm:$0xf] %vm17440_vm2, %v6701_v62  ;;  %vm17470_vm2 = vmmov %vm17445_vm0  ;;  %v12459_v62 = vld [vmem:[#allocation3 + $0x120] ss:$8 sps:$4 sm:$0xff]  }
 0x522   : > { %11378 = vmatprep.mubr.msk.bf16.mxu1 %vm17449_vm6, %v12442_v61  ;;  %6815 = vst.msk [vmem:[#allocation3 + $0x168] sm:$0xf] %vm17454_vm10, %v6699_v32  ;;  %vm17463_vm6 = vmmov %vm17459_vm1  ;;  %v12465_v10 = vld [vmem:[#allocation3 + $0x140] ss:$8 sps:$4 sm:$0xff]  }
 0x523   : > { %v8425_v40 = vpop.f32.mrf.mxu1  ;;  %vm17468_vm10 = vmmov %vm17445_vm0 }
 0x524   : > { %9023 = vmatmul.mubr.bf16.gmra.mxu0 %v11323_v21  ;;  %v6705_v30 = vpop.permute.xlu0 %6704 }
 0x525   : > { %v16551_v26 = vpop.f32.mrf.mxu1  ;;  %v6703_v4 = vpop.permute.xlu1 %6702  ;;  %11272 = vmatprep.mubr.msk.bf16.mxu0 %vm17456_vm3, %v12440_v36  ;;  %6818 = vst.msk [vmem:[#allocation3 + $0x180] sm:$0xf] %vm17458_vm9, %v6705_v30  ;;  %vm17471_vm3 = vmmov %vm17445_vm0 }
 0x526   : > { %6817 = vst.msk [vmem:[#allocation3 + $0x178] sm:$0xf] %vm17457_vm5, %v6703_v4  ;;  %vm17472_vm5 = vmmov %vm17445_vm0 }
 0x527   : > { %v8428_v28 = vpop.f32.mrf.mxu1  ;;  %vm17473_vm9 = vmmov %vm17445_vm0 }
 0x528   : > { %v6709_v24 = vpop.permute.xlu0 %6708 }
 0x529   : > { %v16556_v58 = vpop.f32.mrf.mxu1  ;;  %9673 = vmatmul.mubr.bf16.gmra.mxu1 %v11327_v5  ;;  %v6707_v41 = vpop.permute.xlu1 %6706  ;;  %6820 = vst.msk [vmem:[#allocation3 + $0x190] sm:$0xf] %vm17460_vm13, %v6709_v24  ;;  %vm17475_vm13 = vmmov %vm17445_vm0 }
 0x52a   : > { %11379 = vmatprep.mubr.msk.bf16.mxu1 %vm17455_vm7, %v12444_v25  ;;  %6819 = vst.msk [vmem:[#allocation3 + $0x188] sm:$0xf] %vm17459_vm1, %v6707_v41  ;;  %vm17469_vm7 = vmmov %vm17445_vm0 }
 0x52b   : > { %v8433_v53 = vpop.f32.mrf.mxu1  ;;  %vm17474_vm1 = vmmov %vm17445_vm0 }
 0x52c   : > { %9031 = vmatmul.mubr.bf16.gmra.mxu0 %v11325_v19  ;;  %v6713_v54 = vpop.permute.xlu0 %6712  ;;  %v12460_v53 = vld [vmem:[#allocation3 + $0x134] ss:$8 sps:$4 sm:$0xff]  }
 0x52d   : > { %v16561_v6 = vpop.f32.mrf.mxu1  ;;  %v6711_v29 = vpop.permute.xlu1 %6710  ;;  %11273 = vmatprep.mubr.msk.bf16.mxu0 %vm17461_vm14, %v12442_v61  ;;  %6822 = vst.msk [vmem:[#allocation3 + $0x1a0] sm:$0xf] %vm17463_vm6, %v6713_v54  ;;  %v12453_v61 = vld [vmem:[#allocation3 + $0x100] ss:$8 sps:$4 sm:$0xff]   ;;  %vm17476_vm14 = vmmov %vm17445_vm0 }
 0x52e   : > { %6821 = vst.msk [vmem:[#allocation3 + $0x198] sm:$0xf] %vm17462_vm11, %v6711_v29  ;;  %v12466_v29 = vld [vmem:[#allocation3 + $0x154] ss:$8 sps:$4 sm:$0xff]   ;;  %vm17477_vm11 = vmmov %vm17445_vm0 }
 0x52f   : > { %v8436_v8 = vpop.f32.mrf.mxu1  ;;  %vm17478_vm6 = vmmov %vm17445_vm0 }
 0x530   : > { %v12462_v8 = vld [vmem:[#allocation3 + $0x130] ss:$8 sps:$4 sm:$0xff]  }
 0x531   : > { %v16566_v44 = vpop.f32.mrf.mxu1  ;;  %9681 = vmatmul.mubr.bf16.gmra.mxu1 %v11329_v39  ;;  %v6715_v36 = vpop.permute.xlu1 %6714 }
 0x532   : > { %11380 = vmatprep.mubr.msk.bf16.mxu1 %vm17445_vm0, %v12446_v2  ;;  %6823 = vst.msk [vmem:[#allocation3 + $0x1a8] sm:$0xf] %vm17465_vm15, %v6715_v36  ;;  %v12469_v36 = vld [vmem:[#allocation3 + $0x164] ss:$8 sps:$4 sm:$0xff]   ;;  %vm17480_vm15 = vmmov %vm17445_vm0 }
 0x533   : > { %v8441_v12 = vpop.f32.mrf.mxu1 }
 0x534   : > { %9039 = vmatmul.mubr.bf16.gmra.mxu0 %v11327_v5 }
 0x535   : > { %v16571_v17 = vpop.f32.mrf.mxu1  ;;  %11274 = vmatprep.mubr.msk.bf16.mxu0 %vm17466_vm8, %v12444_v25  ;;  %vm17481_vm8 = vmmov %vm17445_vm0 }
 0x537   : > { %v8444_v11 = vpop.f32.mrf.mxu1 }
 0x539   : > { %v16576_v21 = vpop.f32.mrf.mxu1  ;;  %9689 = vmatmul.mubr.bf16.gmra.mxu1 %v11331_v16 }
 0x53a   : > { %11381 = vmatprep.mubr.msk.bf16.mxu1 %vm17464_vm12, %v12448_v14  ;;  %vm17479_vm12 = vmmov %vm17445_vm0 }
 0x53b   : > { %v8449_v22 = vpop.f32.mrf.mxu1 }
 0x53c   : > { %9047 = vmatmul.mubr.bf16.gmra.mxu0 %v11329_v39  ;;  %v12463_v39 = vld [vmem:[#allocation3 + $0x144] ss:$8 sps:$4 sm:$0xff]  }
 0x53d   : > { %v16580_v34 = vpop.f32.mrf.mxu1  ;;  %11275 = vmatprep.mubr.msk.bf16.mxu0 %vm17468_vm10, %v12446_v2  ;;  %vm17483_vm10 = vmmov %vm17445_vm0 }
 0x53f   : > { %v8452_v38 = vpop.f32.mrf.mxu1 }
 0x541   : > { %v16583_v52 = vpop.f32.mrf.mxu1  ;;  %9697 = vmatmul.mubr.bf16.gmra.mxu1 %v12450_v46 }
 0x542   : > { %11382 = vmatprep.mubr.msk.bf16.mxu1 %vm17467_vm4, %v12451_v7  ;;  %vm17482_vm4 = vmmov %vm17445_vm0 }
 0x543   : > { %v8457_v55 = vpop.f32.mrf.mxu1 }
 0x544   : > { %9055 = vmatmul.mubr.bf16.gmra.mxu0 %v11331_v16  ;;  %v12471_v55 = vld [vmem:[#allocation3 + $0x160] ss:$8 sps:$4 sm:$0xff]  }
 0x545   : > { %v16586_v9 = vpop.f32.mrf.mxu1  ;;  %11276 = vmatprep.mubr.msk.bf16.mxu0 %vm17470_vm2, %v12448_v14  ;;  %v12468_v14 = vld [vmem:[#allocation3 + $0x150] ss:$8 sps:$4 sm:$0xff]   ;;  %vm17485_vm2 = vmmov %vm17445_vm0 }
 0x547   : > { %v8460_v19 = vpop.f32.mrf.mxu1 }
 0x548   : > { %v12472_v19 = vld [vmem:[#allocation3 + $0x174] ss:$8 sps:$4 sm:$0xff]  }
 0x549   : > { %v16589_v1 = vpop.f32.mrf.mxu1  ;;  %9705 = vmatmul.mubr.bf16.gmra.mxu1 %v12453_v61 }
 0x54a   : > { %11383 = vmatprep.mubr.msk.bf16.mxu1 %vm17469_vm7, %v12454_v57  ;;  %vm17484_vm7 = vmmov %vm17445_vm0 }
 0x54b   : > { %v8465_v40 = vpop.f32.mrf.mxu1 }
 0x54c   : > { %9063 = vmatmul.mubr.bf16.gmra.mxu0 %v12450_v46 }
 0x54d   : > { %v16592_v35 = vpop.f32.mrf.mxu1  ;;  %11277 = vmatprep.mubr.msk.bf16.mxu0 %vm17472_vm5, %v12451_v7  ;;  %vm9889_vm5 = vcmask 1046528  }
 0x54f   : > { %v8468_v37 = vpop.f32.mrf.mxu1 }
 0x551   : > { %v16595_v28 = vpop.f32.mrf.mxu1  ;;  %9713 = vmatmul.mubr.bf16.gmra.mxu1 %v12456_v50 }
 0x552   : > { %11384 = vmatprep.mubr.msk.bf16.mxu1 %vm17471_vm3, %v12457_v51  ;;  %vm17486_vm3 = vmmov %vm17445_vm0 }
 0x553   : > { %v8473_v5 = vpop.f32.mrf.mxu1 }
 0x554   : > { %9071 = vmatmul.mubr.bf16.gmra.mxu0 %v12453_v61 }
 0x555   : > { %v16598_v25 = vpop.f32.mrf.mxu1  ;;  %11278 = vmatprep.mubr.msk.bf16.mxu0 %vm17474_vm1, %v12454_v57 }
 0x557   : > { %v8476_v32 = vpop.f32.mrf.mxu1 }
 0x559   : > { %v16601_v15 = vpop.f32.mrf.mxu1  ;;  %9721 = vmatmul.mubr.bf16.gmra.mxu1 %v12459_v62 }
 0x55a   : > { %11385 = vmatprep.mubr.msk.bf16.mxu1 %vm17473_vm9, %v12460_v53 }
 0x55b   : > { %v8481_v4 = vpop.f32.mrf.mxu1 }
 0x55c   : > { %9079 = vmatmul.mubr.bf16.gmra.mxu0 %v12456_v50  ;;  %v12474_v50 = vld [vmem:[#allocation3 + $0x170] ss:$8 sps:$4 sm:$0xff]   ;;  %v12477_v4 = vld [vmem:[#allocation3 + $0x180] ss:$8 sps:$4 sm:$0xff]  }
 0x55d   : > { %v16604_v13 = vpop.f32.mrf.mxu1  ;;  %11279 = vmatprep.mubr.msk.bf16.mxu0 %vm17475_vm13, %v12457_v51  ;;  %v12475_v51 = vld [vmem:[#allocation3 + $0x184] ss:$8 sps:$4 sm:$0xff]  }
 0x55f   : > { %v8484_v30 = vpop.f32.mrf.mxu1 }
 0x560   : > { %v12478_v30 = vld [vmem:[#allocation3 + $0x194] ss:$8 sps:$4 sm:$0xff]  }
 0x561   : > { %v16607_v2 = vpop.f32.mrf.mxu1  ;;  %9729 = vmatmul.mubr.bf16.gmra.mxu1 %v12462_v8 }
 0x562   : > { %11386 = vmatprep.mubr.msk.bf16.mxu1 %vm17445_vm0, %v12463_v39 }
 0x563   : > { %v8489_v41 = vpop.f32.mrf.mxu1 }
 0x564   : > { %9087 = vmatmul.mubr.bf16.gmra.mxu0 %v12459_v62  ;;  %v9180_v41 = vld [vmem:[#allocation3 + $0x198] sm:$0xff] }
 0x565   : > { %v16610_v24 = vpop.f32.mrf.mxu1  ;;  %11280 = vmatprep.mubr.msk.bf16.mxu0 %vm17477_vm11, %v12460_v53 }
 0x567   : > { %v8492_v12 = vpop.f32.mrf.mxu1 }
 0x569   : > { %v16613_v18 = vpop.f32.mrf.mxu1  ;;  %9737 = vmatmul.mubr.bf16.gmra.mxu1 %v12465_v10 }
 0x56a   : > { %11387 = vmatprep.mubr.msk.bf16.mxu1 %vm17476_vm14, %v12466_v29 }
 0x56b   : > { %v8497_v54 = vpop.f32.mrf.mxu1 }
 0x56c   : > { %9095 = vmatmul.mubr.bf16.gmra.mxu0 %v12462_v8 }
 0x56d   : > { %v16616_v11 = vpop.f32.mrf.mxu1  ;;  %11281 = vmatprep.mubr.msk.bf16.mxu0 %vm17479_vm12, %v12463_v39 }
 0x56f   : > { %v8500_v16 = vpop.f32.mrf.mxu1 }
 0x571   : > { %v16619_v22 = vpop.f32.mrf.mxu1  ;;  %9745 = vmatmul.mubr.bf16.gmra.mxu1 %v12468_v14 }
 0x572   : > { %11388 = vmatprep.mubr.msk.bf16.mxu1 %vm17478_vm6, %v12469_v36 }
 0x573   : > { %v8505_v38 = vpop.f32.mrf.mxu1 }
 0x574   : > { %9103 = vmatmul.mubr.bf16.gmra.mxu0 %v12465_v10  ;;  %v9179_v10 = vld [vmem:[#allocation3 + $0x190] sm:$0xff] }
 0x575   : > { %v16622_v46 = vpop.f32.mrf.mxu1  ;;  %11282 = vmatprep.mubr.msk.bf16.mxu0 %vm17481_vm8, %v12466_v29  ;;  %v12480_v29 = vld [vmem:[#allocation3 + $0x1a4] ss:$8 sps:$4 sm:$0xff]   ;;  %v11353_v16 = vcombine.low %v9179_v10, %v9180_v41 }
 0x577   : > { %v8508_v7 = vpop.f32.mrf.mxu1 }
 0x578   : > { %v12482_v7 = vld [vmem:[#allocation3 + $0x1a0] ss:$8 sps:$4 sm:$0xff]  }
 0x579   : > { %v16625_v61 = vpop.f32.mrf.mxu1  ;;  %9753 = vmatmul.mubr.bf16.gmra.mxu1 %v12471_v55 }
 0x57a   : > { %11389 = vmatprep.mubr.msk.bf16.mxu1 %vm17480_vm15, %v12472_v19 }
 0x57b   : > { %v8513_v57 = vpop.f32.mrf.mxu1 }
 0x57c   : > { %9111 = vmatmul.mubr.bf16.gmra.mxu0 %v12468_v14 }
 0x57d   : > { %v16628_v40 = vpop.f32.mrf.mxu1  ;;  %11283 = vmatprep.mubr.msk.bf16.mxu0 %vm17483_vm10, %v12469_v36 }
 0x57f   : > { %v8516_v37 = vpop.f32.mrf.mxu1 }
 0x581   : > { %v16631_v5 = vpop.f32.mrf.mxu1  ;;  %9761 = vmatmul.mubr.bf16.gmra.mxu1 %v12474_v50 }
 0x582   : > { %11390 = vmatprep.mubr.msk.bf16.mxu1 %vm17482_vm4, %v12475_v51 }
 0x583   : > { %v8521_v32 = vpop.f32.mrf.mxu1 }
 0x584   : > { %9119 = vmatmul.mubr.bf16.gmra.mxu0 %v12471_v55 }
 0x585   : > { %v16634_v62 = vpop.f32.mrf.mxu1  ;;  %11284 = vmatprep.mubr.msk.bf16.mxu0 %vm17485_vm2, %v12472_v19 }
 0x587   : > { %v8524_v53 = vpop.f32.mrf.mxu1 }
 0x589   : > { %v16637_v8 = vpop.f32.mrf.mxu1  ;;  %9769 = vmatmul.mubr.bf16.gmra.mxu1 %v12477_v4 }
 0x58a   : > { %11391 = vmatprep.mubr.msk.bf16.mxu1 %vm17484_vm7, %v12478_v30 }
 0x58b   : > { %v8529_v39 = vpop.f32.mrf.mxu1 }
 0x58c   : > { %9127 = vmatmul.mubr.bf16.gmra.mxu0 %v12474_v50 }
 0x58d   : > { %v16640_v12 = vpop.f32.mrf.mxu1 }
 0x58f   : > { %v8532_v54 = vpop.f32.mrf.mxu1 }
 0x591   : > { %v16643_v14 = vpop.f32.mrf.mxu1  ;;  %9777 = vmatmul.mubr.bf16.gmra.mxu1 %v11353_v16 }
 0x592   : > { %11392 = vmatprep.mubr.msk.bf16.mxu1 %vm17486_vm3, %v12480_v29  ;;  %v8944_v19 = vpop.f32.mrf.mxu0 }
 0x593   : > { %v8537_v36 = vpop.f32.mrf.mxu1  ;;  %v8945_v39 = vadd.f32 %v8944_v19, %v16463_v63 }
 0x594   : > { %v8946_v32 = vpop.f32.mrf.mxu0 }
 0x595   : > { %v16646_v38 = vpop.f32.mrf.mxu1 }
 0x596   : > { %17487 = vst [vmem:[#allocation8_spill] sm:$0xff] %v16646_v38  ;;  %v8947_v4 = vpop.f32.mrf.mxu0 }
 0x597   : > { %v8540_v57 = vpop.f32.mrf.mxu1  ;;  %v8948_v50 = vadd.f32 %v8947_v4, %v16469_v43 }
 0x598   : > { %v8949_v41 = vpop.f32.mrf.mxu0 }
 0x599   : > { %v16648_v55 = vpop.f32.mrf.mxu1  ;;  %9785 = vmatmul.mubr.bf16.gmra.mxu1 %v12482_v7 }
 0x59a   : > { %17488 = vst [vmem:[#allocation9_spill] sm:$0xff] %v16648_v55 }
 0x59b   : > { %v8545_v37 = vpop.f32.mrf.mxu1 }
 0x59c   : > { %v8952_v54 = vpop.f32.mrf.mxu0 }
 0x59d   : > { %v16650_v51 = vpop.f32.mrf.mxu1 }
 0x59e   : > { %17489 = vst [vmem:[#allocation10_spill] sm:$0xff] %v16650_v51  ;;  %v8954_v57 = vpop.f32.mrf.mxu0  ;;  %v8953_v51 = vadd.f32 %v8952_v54, %v16474_v27 }
 0x59f   : > { %v8548_v53 = vpop.f32.mrf.mxu1 }
 0x5a0   : > { %v8955_v53 = vpop.f32.mrf.mxu0 }
 0x5a1   : > { %v9602_v30 = vpop.f32.mrf.mxu1 }
 0x5a2   : > { %v9793_v29 = vadd.f32 %v9602_v30, %v8945_v39  ;;  %v8957_v19 = vpop.f32.mrf.mxu0  ;;  %v8956_v39 = vadd.f32 %v8955_v53, %v16479_v3 }
 0x5a3   : > { %v9604_v10 = vpop.f32.mrf.mxu1 }
 0x5a4   : > { %v9890_v37 = vrot.slane %v9793_v29, 1  ;;  %v8960_v4 = vpop.f32.mrf.mxu0 }
 0x5a5   : > { %v9605_v16 = vpop.f32.mrf.mxu1  ;;  %v8961_v27 = vadd.f32 %v8960_v4, %v16485_v47 }
 0x5a6   : > { %v9794_v36 = vadd.f32 %v9605_v16, %v8948_v50  ;;  %v8962_v50 = vpop.f32.mrf.mxu0 }
 0x5a7   : > { %v9607_v7 = vpop.f32.mrf.mxu1 }
 0x5a8   : > { %v9891_v32 = vrot.slane %v9794_v36, 1  ;;  %v8963_v16 = vpop.f32.mrf.mxu0 }
 0x5a9   : > { %v9610_v55 = vpop.f32.mrf.mxu1 }
 0x5aa   : > { %v9795_v38 = vadd.f32 %v9610_v55, %v8953_v51  ;;  %v9892_v63 = vsel %vm9889_vm5, %v9890_v37, %v9891_v32  ;;  %v8965_v36 = vpop.f32.mrf.mxu0 }
 0x5ab   : > { %10002 = vxpose.xlu0.b32.start [1/16] (narrow) %v9892_v63, 64  ;;  %v9612_v41 = vpop.f32.mrf.mxu1 }
 0x5ac   : > { %v9893_v43 = vrot.slane %v9795_v38, 1  ;;  %v8964_v38 = vadd.f32 %v8963_v16, %v16490_v56  ;;  %v8968_v63 = vpop.f32.mrf.mxu0 }
 0x5ad   : > { %v9613_v30 = vpop.f32.mrf.mxu1 }
 0x5ae   : > { %v9894_v10 = vsel %vm9889_vm5, %v9891_v32, %v9893_v43  ;;  %v9796_v54 = vadd.f32 %v9613_v30, %v8956_v39  ;;  %v8970_v53 = vpop.f32.mrf.mxu0  ;;  %v8969_v30 = vadd.f32 %v8968_v63, %v16496_v42 }
 0x5af   : > { %10003 = vxpose.xlu0.b32.cont [2/16] (narrow) %v9894_v10, 64  ;;  %v9615_v29 = vpop.f32.mrf.mxu1 }
 0x5b0   : > { %v9895_v7 = vrot.slane %v9796_v54, 1  ;;  %v8971_v47 = vpop.f32.mrf.mxu0 }
 0x5b1   : > { %v9618_v55 = vpop.f32.mrf.mxu1  ;;  %v8972_v56 = vadd.f32 %v8971_v47, %v16501_v45 }
 0x5b2   : > { %v9797_v51 = vadd.f32 %v9618_v55, %v8961_v27  ;;  %v8973_v39 = vpop.f32.mrf.mxu0 }
 0x5b3   : > { %v9620_v57 = vpop.f32.mrf.mxu1 }
 0x5b4   : > { %v9896_v37 = vrot.slane %v9797_v51, 1  ;;  %v8976_v27 = vpop.f32.mrf.mxu0 }
 0x5b5   : > { %v9621_v19 = vpop.f32.mrf.mxu1  ;;  %v8977_v57 = vadd.f32 %v8976_v27, %v16506_v33 }
 0x5b6   : > { %v9798_v3 = vadd.f32 %v9621_v19, %v8964_v38  ;;  %v9897_v32 = vsel %vm9889_vm5, %v9895_v7, %v9896_v37  ;;  %v8978_v55 = vpop.f32.mrf.mxu0 }
 0x5b7   : > { %10004 = vxpose.xlu0.b32.cont [3/16] (narrow) %v9897_v32, 64  ;;  %v9623_v41 = vpop.f32.mrf.mxu1 }
 0x5b8   : > { %v9898_v43 = vrot.slane %v9798_v3, 1  ;;  %v8979_v38 = vpop.f32.mrf.mxu0 }
 0x5b9   : > { %v9626_v4 = vpop.f32.mrf.mxu1  ;;  %v8980_v41 = vadd.f32 %v8979_v38, %v16511_v49 }
 0x5ba   : > { %v9899_v10 = vsel %vm9889_vm5, %v9896_v37, %v9898_v43  ;;  %v9799_v29 = vadd.f32 %v9626_v4, %v8969_v30  ;;  %v8981_v63 = vpop.f32.mrf.mxu0 }
 0x5bb   : > { %10005 = vxpose.xlu0.b32.cont [4/16] (narrow) %v9899_v10, 64  ;;  %v9628_v50 = vpop.f32.mrf.mxu1 }
 0x5bc   : > { %v9900_v36 = vrot.slane %v9799_v29, 1  ;;  %v8984_v45 = vpop.f32.mrf.mxu0 }
 0x5bd   : > { %v9629_v54 = vpop.f32.mrf.mxu1  ;;  %v8985_v33 = vadd.f32 %v8984_v45, %v16516_v59 }
 0x5be   : > { %v9800_v16 = vadd.f32 %v9629_v54, %v8972_v56  ;;  %v8986_v43 = vpop.f32.mrf.mxu0 }
 0x5bf   : > { %v9631_v51 = vpop.f32.mrf.mxu1 }
 0x5c0   : > { %v9901_v7 = vrot.slane %v9800_v16, 1  ;;  %v8987_v39 = vpop.f32.mrf.mxu0 }
 0x5c1   : > { %v9634_v19 = vpop.f32.mrf.mxu1  ;;  %v8988_v54 = vadd.f32 %v8987_v39, %v16521_v31 }
 0x5c2   : > { %v9801_v42 = vadd.f32 %v9634_v19, %v8977_v57  ;;  %v9902_v37 = vsel %vm9889_vm5, %v9900_v36, %v9901_v7  ;;  %v8989_v56 = vpop.f32.mrf.mxu0 }
 0x5c3   : > { %10006 = vxpose.xlu0.b32.cont [5/16] (narrow) %v9902_v37, 64  ;;  %v9636_v3 = vpop.f32.mrf.mxu1 }
 0x5c4   : > { %v9903_v53 = vrot.slane %v9801_v42, 1  ;;  %v8992_v55 = vpop.f32.mrf.mxu0 }
 0x5c5   : > { %v9637_v32 = vpop.f32.mrf.mxu1  ;;  %v8993_v42 = vadd.f32 %v8992_v55, %v16526_v48 }
 0x5c6   : > { %v9904_v47 = vsel %vm9889_vm5, %v9901_v7, %v9903_v53  ;;  %v9802_v30 = vadd.f32 %v9637_v32, %v8980_v41  ;;  %v8994_v36 = vpop.f32.mrf.mxu0 }
 0x5c7   : > { %10007 = vxpose.xlu0.b32.cont [6/16] (narrow) %v9904_v47, 64  ;;  %v9639_v4 = vpop.f32.mrf.mxu1 }
 0x5c8   : > { %v9905_v27 = vrot.slane %v9802_v30, 1  ;;  %v8995_v59 = vpop.f32.mrf.mxu0 }
 0x5c9   : > { %v9642_v10 = vpop.f32.mrf.mxu1  ;;  %v8996_v31 = vadd.f32 %v8995_v59, %v16531_v23 }
 0x5ca   : > { %v9803_v50 = vadd.f32 %v9642_v10, %v8985_v33  ;;  %v8997_v63 = vpop.f32.mrf.mxu0 }
 0x5cb   : > { %v9644_v29 = vpop.f32.mrf.mxu1 }
 0x5cc   : > { %v9906_v16 = vrot.slane %v9803_v50, 1  ;;  %v9000_v45 = vpop.f32.mrf.mxu0 }
 0x5cd   : > { %v9645_v51 = vpop.f32.mrf.mxu1  ;;  %v9001_v33 = vadd.f32 %v9000_v45, %v16536_v0 }
 0x5ce   : > { %v9804_v49 = vadd.f32 %v9645_v51, %v8988_v54  ;;  %v9907_v57 = vsel %vm9889_vm5, %v9905_v27, %v9906_v16  ;;  %v9002_v43 = vpop.f32.mrf.mxu0 }
 0x5cf   : > { %10008 = vxpose.xlu0.b32.cont [7/16] (narrow) %v9907_v57, 64  ;;  %v9647_v7 = vpop.f32.mrf.mxu1 }
 0x5d0   : > { %v9908_v38 = vrot.slane %v9804_v49, 1  ;;  %v9003_v39 = vpop.f32.mrf.mxu0 }
 0x5d1   : > { %v9650_v19 = vpop.f32.mrf.mxu1 }
 0x5d2   : > { %v9909_v37 = vsel %vm9889_vm5, %v9906_v16, %v9908_v38  ;;  %v9805_v53 = vadd.f32 %v9650_v19, %v8993_v42  ;;  %v9005_v50 = vpop.f32.mrf.mxu0  ;;  %v9004_v16 = vadd.f32 %v9003_v39, %v16541_v60 }
 0x5d3   : > { %10009 = vxpose.xlu0.b32.cont [8/16] (narrow) %v9909_v37, 64  ;;  %v9652_v3 = vpop.f32.mrf.mxu1 }
 0x5d4   : > { %v9910_v4 = vrot.slane %v9805_v53, 1  ;;  %v9008_v23 = vpop.f32.mrf.mxu0 }
 0x5d5   : > { %v9653_v32 = vpop.f32.mrf.mxu1  ;;  %v9009_v0 = vadd.f32 %v9008_v23, %v16546_v20 }
 0x5d6   : > { %v9806_v41 = vadd.f32 %v9653_v32, %v8996_v31  ;;  %v9010_v55 = vpop.f32.mrf.mxu0 }
 0x5d7   : > { %v9655_v47 = vpop.f32.mrf.mxu1 }
 0x5d8   : > { %v9911_v30 = vrot.slane %v9806_v41, 1  ;;  %v9011_v57 = vpop.f32.mrf.mxu0 }
 0x5d9   : > { %v9658_v10 = vpop.f32.mrf.mxu1  ;;  %v9012_v63 = vadd.f32 %v9011_v57, %v16551_v26 }
 0x5da   : > { %v9807_v48 = vadd.f32 %v9658_v10, %v9001_v33  ;;  %v9912_v56 = vsel %vm9889_vm5, %v9910_v4, %v9911_v30  ;;  %v9013_v59 = vpop.f32.mrf.mxu0 }
 0x5db   : > { %10010 = vxpose.xlu0.b32.cont [9/16] (narrow) %v9912_v56, 64  ;;  %v9660_v29 = vpop.f32.mrf.mxu1 }
 0x5dc   : > { %v9913_v27 = vrot.slane %v9807_v48, 1  ;;  %v9016_v3 = vpop.f32.mrf.mxu0 }
 0x5dd   : > { %v9661_v54 = vpop.f32.mrf.mxu1  ;;  %v9017_v47 = vadd.f32 %v9016_v3, %v16556_v58 }
 0x5de   : > { %v9914_v51 = vsel %vm9889_vm5, %v9911_v30, %v9913_v27  ;;  %v9808_v36 = vadd.f32 %v9661_v54, %v9004_v16  ;;  %v9018_v53 = vpop.f32.mrf.mxu0 }
 0x5df   : > { %10011 = vxpose.xlu0.b32.cont [10/16] (narrow) %v9914_v51, 64  ;;  %v9663_v49 = vpop.f32.mrf.mxu1 }
 0x5e0   : > { %v9915_v42 = vrot.slane %v9808_v36, 1  ;;  %v9019_v20 = vpop.f32.mrf.mxu0 }
 0x5e1   : > { %v9666_v7 = vpop.f32.mrf.mxu1  ;;  %v9020_v26 = vadd.f32 %v9019_v20, %v16561_v6 }
 0x5e2   : > { %v9809_v38 = vadd.f32 %v9666_v7, %v9009_v0  ;;  %v9021_v4 = vpop.f32.mrf.mxu0 }
 0x5e3   : > { %v9668_v19 = vpop.f32.mrf.mxu1 }
 0x5e4   : > { %v9916_v37 = vrot.slane %v9809_v38, 1  ;;  %v9024_v10 = vpop.f32.mrf.mxu0 }
 0x5e5   : > { %v9669_v31 = vpop.f32.mrf.mxu1  ;;  %v9025_v23 = vadd.f32 %v9024_v10, %v16566_v44 }
 0x5e6   : > { %v9810_v60 = vadd.f32 %v9669_v31, %v9012_v63  ;;  %v9917_v45 = vsel %vm9889_vm5, %v9915_v42, %v9916_v37  ;;  %v9026_v56 = vpop.f32.mrf.mxu0 }
 0x5e7   : > { %10012 = vxpose.xlu0.b32.cont [11/16] (narrow) %v9917_v45, 64  ;;  %v9671_v32 = vpop.f32.mrf.mxu1 }
 0x5e8   : > { %v9918_v41 = vrot.slane %v9810_v60, 1  ;;  %v9027_v16 = vpop.f32.mrf.mxu0 }
 0x5e9   : > { %v9674_v43 = vpop.f32.mrf.mxu1  ;;  %v9028_v7 = vadd.f32 %v9027_v16, %v16571_v17 }
 0x5ea   : > { %v9919_v33 = vsel %vm9889_vm5, %v9916_v37, %v9918_v41  ;;  %v9811_v39 = vadd.f32 %v9674_v43, %v9017_v47  ;;  %v9029_v51 = vpop.f32.mrf.mxu0 }
 0x5eb   : > { %10013 = vxpose.xlu0.b32.cont [12/16] (narrow) %v9919_v33, 64  ;;  %v9676_v30 = vpop.f32.mrf.mxu1 }
 0x5ec   : > { %v9920_v27 = vrot.slane %v9811_v39, 1  ;;  %v9032_v6 = vpop.f32.mrf.mxu0 }
 0x5ed   : > { %v9677_v48 = vpop.f32.mrf.mxu1  ;;  %v9033_v44 = vadd.f32 %v9032_v6, %v16576_v21 }
 0x5ee   : > { %v9812_v50 = vadd.f32 %v9677_v48, %v9020_v26  ;;  %v9034_v38 = vpop.f32.mrf.mxu0 }
 0x5ef   : > { %v9679_v29 = vpop.f32.mrf.mxu1 }
 0x5f0   : > { %v9921_v54 = vrot.slane %v9812_v50, 1  ;;  %v9035_v63 = vpop.f32.mrf.mxu0 }
 0x5f1   : > { %v9682_v55 = vpop.f32.mrf.mxu1  ;;  %v9036_v45 = vadd.f32 %v9035_v63, %v16580_v34 }
 0x5f2   : > { %v9813_v58 = vadd.f32 %v9682_v55, %v9025_v23  ;;  %v9922_v49 = vsel %vm9889_vm5, %v9920_v27, %v9921_v54  ;;  %v9037_v31 = vpop.f32.mrf.mxu0 }
 0x5f3   : > { %10014 = vxpose.xlu0.b32.cont [13/16] (narrow) %v9922_v49, 64  ;;  %v9684_v0 = vpop.f32.mrf.mxu1 }
 0x5f4   : > { %v9923_v36 = vrot.slane %v9813_v58, 1  ;;  %v9040_v41 = vpop.f32.mrf.mxu0 }
 0x5f5   : > { %v9685_v57 = vpop.f32.mrf.mxu1  ;;  %v9041_v26 = vadd.f32 %v9040_v41, %v16583_v52 }
 0x5f6   : > { %v9924_v59 = vsel %vm9889_vm5, %v9921_v54, %v9923_v36  ;;  %v9814_v42 = vadd.f32 %v9685_v57, %v9028_v7  ;;  %v9042_v43 = vpop.f32.mrf.mxu0 }
 0x5f7   : > { %10015 = vxpose.xlu0.b32.cont [14/16] (narrow) %v9924_v59, 64  ;;  %v9687_v19 = vpop.f32.mrf.mxu1 }
 0x5f8   : > { %v9925_v53 = vrot.slane %v9814_v42, 1  ;;  %v9043_v21 = vpop.f32.mrf.mxu0 }
 0x5f9   : > { %v9690_v37 = vpop.f32.mrf.mxu1  ;;  %v9044_v34 = vadd.f32 %v9043_v21, %v16586_v9 }
 0x5fa   : > { %v9815_v3 = vadd.f32 %v9690_v37, %v9033_v44  ;;  %v9045_v39 = vpop.f32.mrf.mxu0 }
 0x5fb   : > { %v9692_v60 = vpop.f32.mrf.mxu1 }
 0x5fc   : > { %v9926_v32 = vrot.slane %v9815_v3, 1  ;;  %v9048_v56 = vpop.f32.mrf.mxu0 }
 0x5fd   : > { %v9693_v20 = vpop.f32.mrf.mxu1  ;;  %v9049_v55 = vadd.f32 %v9048_v56, %v16589_v1 }
 0x5fe   : > { %v9816_v17 = vadd.f32 %v9693_v20, %v9036_v45  ;;  %v9927_v47 = vsel %vm9889_vm5, %v9925_v53, %v9926_v32  ;;  %v9050_v23 = vpop.f32.mrf.mxu0 }
 0x5ff   : > { %10016 = vxpose.xlu0.b32.cont [15/16] (narrow) %v9927_v47, 64  ;;  %v9695_v4 = vpop.f32.mrf.mxu1 }
 0x600   : > { %v9928_v33 = vrot.slane %v9816_v17, 1  ;;  %v9051_v51 = vpop.f32.mrf.mxu0 }
 0x601   : > { %v9698_v30 = vpop.f32.mrf.mxu1  ;;  %v9052_v38 = vadd.f32 %v9051_v51, %v16592_v35 }
 0x602   : > { %v9929_v10 = vsel %vm9889_vm5, %v9926_v32, %v9928_v33  ;;  %v9817_v50 = vadd.f32 %v9698_v30, %v9041_v26  ;;  %v9053_v0 = vpop.f32.mrf.mxu0 }
 0x603   : > { %10017 = vxpose.xlu0.b32.end [16/16] (narrow) %v9929_v10, 64  ;;  %v9700_v48 = vpop.f32.mrf.mxu1 }
 0x604   : > { %v9930_v16 = vrot.slane %v9817_v50, 1  ;;  %v9056_v9 = vpop.f32.mrf.mxu0 }
 0x605   : > { %v9701_v29 = vpop.f32.mrf.mxu1  ;;  %v9057_v1 = vadd.f32 %v9056_v9, %v16595_v28 }
 0x606   : > { %v9818_v27 = vadd.f32 %v9701_v29, %v9044_v34  ;;  %v9058_v59 = vpop.f32.mrf.mxu0 }
 0x607   : > { %v9703_v54 = vpop.f32.mrf.mxu1 }
 0x608   : > { %v9931_v58 = vrot.slane %v9818_v27, 1  ;;  %v9059_v63 = vpop.f32.mrf.mxu0 }
 0x609   : > { %v9706_v49 = vpop.f32.mrf.mxu1  ;;  %v9060_v45 = vadd.f32 %v9059_v63, %v16598_v25 }
 0x60a   : > { %v9819_v52 = vadd.f32 %v9706_v49, %v9049_v55  ;;  %v9932_v36 = vsel %vm9889_vm5, %v9930_v16, %v9931_v58  ;;  %v9061_v31 = vpop.f32.mrf.mxu0 }
 0x60b   : > { %10034 = vxpose.xlu1.b32.start [1/16] (narrow) %v9932_v36, 64  ;;  %v9708_v6 = vpop.f32.mrf.mxu1 }
 0x60c   : > { %v9933_v57 = vrot.slane %v9819_v52, 1  ;;  %v9064_v41 = vpop.f32.mrf.mxu0 }
 0x60d   : > { %v9709_v7 = vpop.f32.mrf.mxu1  ;;  %v9065_v21 = vadd.f32 %v9064_v41, %v16601_v15 }
 0x60e   : > { %v9934_v19 = vsel %vm9889_vm5, %v9931_v58, %v9933_v57  ;;  %v9820_v42 = vadd.f32 %v9709_v7, %v9052_v38  ;;  %v9066_v17 = vpop.f32.mrf.mxu0 }
 0x60f   : > { %10035 = vxpose.xlu1.b32.cont [2/16] (narrow) %v9934_v19, 64  ;;  %v9711_v44 = vpop.f32.mrf.mxu1 }
 0x610   : > { %v9935_v53 = vrot.slane %v9820_v42, 1  ;;  %v9067_v28 = vpop.f32.mrf.mxu0 }
 0x611   : > { %v9714_v37 = vpop.f32.mrf.mxu1  ;;  %v9068_v25 = vadd.f32 %v9067_v28, %v16604_v13 }
 0x612   : > { %v9821_v3 = vadd.f32 %v9714_v37, %v9057_v1  ;;  %v9069_v30 = vpop.f32.mrf.mxu0 }
 0x613   : > { %v9716_v60 = vpop.f32.mrf.mxu1 }
 0x614   : > { %v9936_v32 = vrot.slane %v9821_v3, 1  ;;  %v9072_v48 = vpop.f32.mrf.mxu0 }
 0x615   : > { %v9717_v20 = vpop.f32.mrf.mxu1  ;;  %v9073_v23 = vadd.f32 %v9072_v48, %v16607_v2 }
 0x616   : > { %v9822_v35 = vadd.f32 %v9717_v20, %v9060_v45  ;;  %v9937_v43 = vsel %vm9889_vm5, %v9935_v53, %v9936_v32  ;;  %v9074_v56 = vpop.f32.mrf.mxu0 }
 0x617   : > { %10036 = vxpose.xlu1.b32.cont [3/16] (narrow) %v9937_v43, 64  ;;  %v9719_v47 = vpop.f32.mrf.mxu1 }
 0x618   : > { %v9938_v4 = vrot.slane %v9822_v35, 1  ;;  %v9075_v16 = vpop.f32.mrf.mxu0 }
 0x619   : > { %v9722_v33 = vpop.f32.mrf.mxu1  ;;  %v9076_v36 = vadd.f32 %v9075_v16, %v16610_v24 }
 0x61a   : > { %v9939_v26 = vsel %vm9889_vm5, %v9936_v32, %v9938_v4  ;;  %v9823_v10 = vadd.f32 %v9722_v33, %v9065_v21  ;;  %v9077_v58 = vpop.f32.mrf.mxu0 }
 0x61b   : > { %10037 = vxpose.xlu1.b32.cont [4/16] (narrow) %v9939_v26, 64  ;;  %v9724_v39 = vpop.f32.mrf.mxu1 }
 0x61c   : > { %v9940_v27 = vrot.slane %v9823_v10, 1  ;;  %v9080_v13 = vpop.f32.mrf.mxu0 }
 0x61d   : > { %v9725_v34 = vpop.f32.mrf.mxu1  ;;  %v9081_v2 = vadd.f32 %v9080_v13, %v16613_v18 }
 0x61e   : > { %v9824_v50 = vadd.f32 %v9725_v34, %v9068_v25  ;;  %v9082_v6 = vpop.f32.mrf.mxu0 }
 0x61f   : > { %v9727_v29 = vpop.f32.mrf.mxu1 }
 0x620   : > { %v9941_v54 = vrot.slane %v9824_v50, 1  ;;  %v9083_v38 = vpop.f32.mrf.mxu0 }
 0x621   : > { %v9730_v55 = vpop.f32.mrf.mxu1  ;;  %v9084_v63 = vadd.f32 %v9083_v38, %v16616_v11 }
 0x622   : > { %v9825_v15 = vadd.f32 %v9730_v55, %v9073_v23  ;;  %v9942_v51 = vsel %vm9889_vm5, %v9940_v27, %v9941_v54  ;;  %v9085_v44 = vpop.f32.mrf.mxu0 }
 0x623   : > { %10038 = vxpose.xlu1.b32.cont [5/16] (narrow) %v9942_v51, 64  ;;  %v9732_v49 = vpop.f32.mrf.mxu1 }
 0x624   : > { %v9943_v52 = vrot.slane %v9825_v15, 1  ;;  %v9088_v3 = vpop.f32.mrf.mxu0 }
 0x625   : > { %v9733_v0 = vpop.f32.mrf.mxu1  ;;  %v9089_v20 = vadd.f32 %v9088_v3, %v16619_v22 }
 0x626   : > { %v9944_v57 = vsel %vm9889_vm5, %v9941_v54, %v9943_v52  ;;  %v9826_v7 = vadd.f32 %v9733_v0, %v9076_v36  ;;  %v9090_v60 = vpop.f32.mrf.mxu0 }
 0x627   : > { %10039 = vxpose.xlu1.b32.cont [6/16] (narrow) %v9944_v57, 64  ;;  %v9735_v9 = vpop.f32.mrf.mxu1 }
 0x628   : > { %v9945_v42 = vrot.slane %v9826_v7, 1  ;;  %v9091_v18 = vpop.f32.mrf.mxu0  ;;  %v12483_v9 = vld [vmem:[%s12698_s28] sm:$0xff] }
 0x629   : > { %v9738_v59 = vpop.f32.mrf.mxu1  ;;  %v9092_v11 = vadd.f32 %v9091_v18, %v16622_v46 }
 0x62a   : > { %v9827_v19 = vadd.f32 %v9738_v59, %v9081_v2  ;;  %v9093_v35 = vpop.f32.mrf.mxu0 }
 0x62b   : > { %v9740_v1 = vpop.f32.mrf.mxu1 }
 0x62c   : > { %v9946_v37 = vrot.slane %v9827_v19, 1  ;;  %v9096_v4 = vpop.f32.mrf.mxu0 }
 0x62d   : > { %v9741_v31 = vpop.f32.mrf.mxu1  ;;  %v9097_v39 = vadd.f32 %v9096_v4, %v16625_v61 }
 0x62e   : > { %v9828_v24 = vadd.f32 %v9741_v31, %v9084_v63  ;;  %v9947_v53 = vsel %vm9889_vm5, %v9945_v42, %v9946_v37  ;;  %v9098_v21 = vpop.f32.mrf.mxu0  ;;  %v12484_v42 = vld [vmem:[%s12698_s28 + $0x10] sm:$0xff] }
 0x62f   : > { %10040 = vxpose.xlu1.b32.cont [7/16] (narrow) %v9947_v53, 64  ;;  %v9743_v45 = vpop.f32.mrf.mxu1  ;;  %v12486_v21 = vld [vmem:[%s12698_s28 + $0x30] sm:$0xff] }
 0x630   : > { %v9948_v32 = vrot.slane %v9828_v24, 1  ;;  %v9099_v10 = vpop.f32.mrf.mxu0 }
 0x631   : > { %v9746_v41 = vpop.f32.mrf.mxu1  ;;  %v9100_v23 = vadd.f32 %v9099_v10, %v16628_v40 }
 0x632   : > { %v9949_v17 = vsel %vm9889_vm5, %v9946_v37, %v9948_v32  ;;  %v9829_v47 = vadd.f32 %v9746_v41, %v9089_v20  ;;  %v9101_v34 = vpop.f32.mrf.mxu0  ;;  %v12485_v41 = vld [vmem:[%s12698_s28 + $0x20] sm:$0xff] }
 0x633   : > { %10041 = vxpose.xlu1.b32.cont [8/16] (narrow) %v9949_v17, 64  ;;  %v9748_v43 = vpop.f32.mrf.mxu1 }
 0x634   : > { %v9950_v26 = vrot.slane %v9829_v47, 1  ;;  %v9104_v29 = vpop.f32.mrf.mxu0 }
 0x635   : > { %v9749_v28 = vpop.f32.mrf.mxu1  ;;  %v9105_v55 = vadd.f32 %v9104_v29, %v16631_v5 }
 0x636   : > { %v9830_v33 = vadd.f32 %v9749_v28, %v9092_v11  ;;  %v9106_v54 = vpop.f32.mrf.mxu0 }
 0x637   : > { %v9751_v30 = vpop.f32.mrf.mxu1 }
 0x638   : > { %v9951_v25 = vrot.slane %v9830_v33, 1  ;;  %v9107_v58 = vpop.f32.mrf.mxu0 }
 0x639   : > { %v9754_v22 = vpop.f32.mrf.mxu1  ;;  %v9108_v40 = vadd.f32 %v9107_v58, %v16634_v62 }
 0x63a   : > { %v9831_v48 = vadd.f32 %v9754_v22, %v9097_v39  ;;  %v9952_v50 = vsel %vm9889_vm5, %v9950_v26, %v9951_v25  ;;  %v9109_v52 = vpop.f32.mrf.mxu0 }
 0x63b   : > { %10042 = vxpose.xlu1.b32.cont [9/16] (narrow) %v9952_v50, 64  ;;  %v9756_v46 = vpop.f32.mrf.mxu1  ;;  %v12487_v50 = vld [vmem:[%s12698_s28 + $0x40] sm:$0xff] }
 0x63c   : > { %v9953_v56 = vrot.slane %v9831_v48, 1  ;;  %v9112_v57 = vpop.f32.mrf.mxu0 }
 0x63d   : > { %v9757_v27 = vpop.f32.mrf.mxu1  ;;  %v9113_v3 = vadd.f32 %v9112_v57, %v16637_v8  ;;  %v17492_v57 = vld [vmem:[#allocation10_spill] sm:$0xff] }
 0x63e   : > { %v9954_v16 = vsel %vm9889_vm5, %v9951_v25, %v9953_v56  ;;  %v9832_v15 = vadd.f32 %v9757_v27, %v9100_v23  ;;  %v9114_v5 = vpop.f32.mrf.mxu0  ;;  %v17490_v56 = vld [vmem:[#allocation8_spill] sm:$0xff] }
 0x63f   : > { %10043 = vxpose.xlu1.b32.cont [10/16] (narrow) %v9954_v16, 64  ;;  %v9759_v61 = vpop.f32.mrf.mxu1 }
 0x640   : > { %v9955_v36 = vrot.slane %v9832_v15, 1  ;;  %v9115_v1 = vpop.f32.mrf.mxu0  ;;  %v17491_v61 = vld [vmem:[#allocation9_spill] sm:$0xff] }
 0x641   : > { %v9762_v51 = vpop.f32.mrf.mxu1  ;;  %v9116_v45 = vadd.f32 %v9115_v1, %v16640_v12 }
 0x642   : > { %v9833_v49 = vadd.f32 %v9762_v51, %v9105_v55  ;;  %v9117_v31 = vpop.f32.mrf.mxu0  ;;  %v12488_v51 = vld [vmem:[%s12698_s28 + $0x50] sm:$0xff] }
 0x643   : > { %v9764_v13 = vpop.f32.mrf.mxu1  ;;  %v10018_v0 = vpop.trf.xlu0  ;;  %v12491_v31 = vld [vmem:[%s12698_s28 + $0x8] sm:$0xff] }
 0x644   : > { %v9956_v6 = vrot.slane %v9833_v49, 1  ;;  %v10066_v2 = vadd.f32 %v12483_v9, %v10018_v0  ;;  %v9120_v18 = vpop.f32.mrf.mxu0 }
 0x645   : > { %v9765_v7 = vpop.f32.mrf.mxu1  ;;  %v9121_v4 = vadd.f32 %v9120_v18, %v16643_v14  ;;  %v12493_v18 = vld [vmem:[%s12698_s28 + $0x28] sm:$0xff] }
 0x646   : > { %v9834_v38 = vadd.f32 %v9765_v7, %v9108_v40  ;;  %v9957_v59 = vsel %vm9889_vm5, %v9955_v36, %v9956_v6  ;;  %10082 = vst [vmem:[%s16725_s29] sm:$0xff] %v10066_v2  ;;  %v9122_v43 = vpop.f32.mrf.mxu0  ;;  %v12489_v7 = vld [vmem:[%s12698_s28 + $0x60] sm:$0xff] }
 0x647   : > { %10044 = vxpose.xlu1.b32.cont [11/16] (narrow) %v9957_v59, 64  ;;  %v9767_v19 = vpop.f32.mrf.mxu1  ;;  %v10019_v44 = vpop.trf.xlu0 }
 0x648   : > { %v9958_v62 = vrot.slane %v9834_v38, 1  ;;  %v10068_v63 = vadd.f32 %v12484_v42, %v10019_v44  ;;  %v9123_v33 = vpop.f32.mrf.mxu0  ;;  %v12490_v42 = vld [vmem:[%s12698_s28 + $0x70] sm:$0xff] }
 0x649   : > { %v9770_v37 = vpop.f32.mrf.mxu1  ;;  %v9124_v29 = vadd.f32 %v9123_v33, %v17490_v56 }
 0x64a   : > { %v9959_v24 = vsel %vm9889_vm5, %v9956_v6, %v9958_v62  ;;  %10084 = vst [vmem:[%s16725_s29 + $0x10] sm:$0xff] %v10068_v63  ;;  %v9835_v32 = vadd.f32 %v9770_v37, %v9113_v3  ;;  %v9125_v39 = vpop.f32.mrf.mxu0 }
 0x64b   : > { %10045 = vxpose.xlu1.b32.cont [12/16] (narrow) %v9959_v24, 64  ;;  %v9772_v60 = vpop.f32.mrf.mxu1  ;;  %v10020_v53 = vpop.trf.xlu0 }
 0x64c   : > { %v10070_v20 = vadd.f32 %v12485_v41, %v10020_v53  ;;  %v9960_v47 = vrot.slane %v9835_v32, 1  ;;  %v9128_v34 = vpop.f32.mrf.mxu0  ;;  %v12492_v53 = vld [vmem:[%s12698_s28 + $0x18] sm:$0xff] }
 0x64d   : > { %v9773_v35 = vpop.f32.mrf.mxu1  ;;  %v9129_v55 = vadd.f32 %v9128_v34, %v17491_v61 }
 0x64e   : > { %v9836_v17 = vadd.f32 %v9773_v35, %v9116_v45  ;;  %10086 = vst [vmem:[%s16725_s29 + $0x20] sm:$0xff] %v10070_v20  ;;  %v9130_v27 = vpop.f32.mrf.mxu0  ;;  %v12494_v35 = vld [vmem:[%s12698_s28 + $0x38] sm:$0xff] }
 0x64f   : > { %v9775_v8 = vpop.f32.mrf.mxu1  ;;  %v10021_v11 = vpop.trf.xlu0 }
 0x650   : > { %v9961_v28 = vrot.slane %v9836_v17, 1  ;;  %v10072_v30 = vadd.f32 %v12486_v21, %v10021_v11  ;;  %v9131_v58 = vpop.f32.mrf.mxu0  ;;  %v12495_v8 = vld [vmem:[%s12698_s28 + $0x48] sm:$0xff] }
 0x651   : > { %v9778_v12 = vpop.f32.mrf.mxu1  ;;  %v9132_v9 = vadd.f32 %v9131_v58, %v17492_v57  ;;  %v12497_v21 = vld [vmem:[%s12698_s28 + $0x68] sm:$0xff] }
 0x652   : > { %v9837_v26 = vadd.f32 %v9778_v12, %v9121_v4  ;;  %v9962_v25 = vsel %vm9889_vm5, %v9960_v47, %v9961_v28  ;;  %10088 = vst [vmem:[%s16725_s29 + $0x30] sm:$0xff] %v10072_v30  ;;  %v9133_v0 = vpop.f32.mrf.mxu0  ;;  %v12496_v4 = vld [vmem:[%s12698_s28 + $0x58] sm:$0xff] }
 0x653   : > { %10046 = vxpose.xlu1.b32.cont [13/16] (narrow) %v9962_v25, 64  ;;  %v9780_v10 = vpop.f32.mrf.mxu1  ;;  %v10022_v22 = vpop.trf.xlu0 }
 0x654   : > { %v9963_v48 = vrot.slane %v9837_v26, 1  ;;  %v10074_v46 = vadd.f32 %v12487_v50, %v10022_v22  ;;  %v12498_v26 = vld [vmem:[%s12698_s28 + $0x78] sm:$0xff] }
 0x655   : > { %v9781_v14 = vpop.f32.mrf.mxu1 }
 0x656   : > { %v9964_v23 = vsel %vm9889_vm5, %v9961_v28, %v9963_v48  ;;  %10090 = vst [vmem:[%s16725_s29 + $0x40] sm:$0xff] %v10074_v46  ;;  %v9838_v15 = vadd.f32 %v9781_v14, %v9124_v29 }
 0x657   : > { %10047 = vxpose.xlu1.b32.cont [14/16] (narrow) %v9964_v23, 64  ;;  %v9783_v54 = vpop.f32.mrf.mxu1  ;;  %v10023_v16 = vpop.trf.xlu0 }
 0x658   : > { %v10076_v49 = vadd.f32 %v12488_v51, %v10023_v16  ;;  %v9965_v6 = vrot.slane %v9838_v15, 1 }
 0x659   : > { %v9786_v52 = vpop.f32.mrf.mxu1 }
 0x65a   : > { %v9839_v13 = vadd.f32 %v9786_v52, %v9129_v55  ;;  %10092 = vst [vmem:[%s16725_s29 + $0x50] sm:$0xff] %v10076_v49 }
 0x65b   : > { %v9788_v36 = vpop.f32.mrf.mxu1  ;;  %v10024_v40 = vpop.trf.xlu0 }
 0x65c   : > { %v9966_v2 = vrot.slane %v9839_v13, 1  ;;  %v10078_v38 = vadd.f32 %v12489_v7, %v10024_v40 }
 0x65d   : > { %v9789_v5 = vpop.f32.mrf.mxu1 }
 0x65e   : > { %v9840_v59 = vadd.f32 %v9789_v5, %v9132_v9  ;;  %v9967_v19 = vsel %vm9889_vm5, %v9965_v6, %v9966_v2  ;;  %10094 = vst [vmem:[%s16725_s29 + $0x60] sm:$0xff] %v10078_v38 }
 0x65f   : > { %10048 = vxpose.xlu1.b32.cont [15/16] (narrow) %v9967_v19, 64  ;;  %v9791_v44 = vpop.f32.mrf.mxu1  ;;  %v10025_v62 = vpop.trf.xlu0 }
 0x660   : > { %v9968_v1 = vrot.slane %v9840_v59, 1  ;;  %v10080_v63 = vadd.f32 %v12490_v42, %v10025_v62 }
 0x662   : > { %v9969_v37 = vsel %vm9889_vm5, %v9966_v2, %v9968_v1  ;;  %10096 = vst [vmem:[%s16725_s29 + $0x70] sm:$0xff] %v10080_v63 }
 0x663   : > { %10049 = vxpose.xlu1.b32.end [16/16] (narrow) %v9969_v37, 64 }
 0x6a3   : > { %v10050_v3 = vpop.trf.xlu1 }
 0x6a4   : > { %v10067_v24 = vadd.f32 %v12491_v31, %v10050_v3 }
 0x6a6   : > { %10083 = vst [vmem:[%s16725_s29 + $0x8] sm:$0xff] %v10067_v24 }
 0x6a7   : > { %v10051_v60 = vpop.trf.xlu1 }
 0x6a8   : > { %v10069_v45 = vadd.f32 %v12492_v53, %v10051_v60 }
 0x6aa   : > { %10085 = vst [vmem:[%s16725_s29 + $0x18] sm:$0xff] %v10069_v45 }
 0x6ab   : > { %v10052_v32 = vpop.trf.xlu1 }
 0x6ac   : > { %v10071_v41 = vadd.f32 %v12493_v18, %v10052_v32 }
 0x6ae   : > { %10087 = vst [vmem:[%s16725_s29 + $0x28] sm:$0xff] %v10071_v41 }
 0x6af   : > { %v10053_v20 = vpop.trf.xlu1 }
 0x6b0   : > { %v10073_v17 = vadd.f32 %v12494_v35, %v10053_v20 }
 0x6b2   : > { %10089 = vst [vmem:[%s16725_s29 + $0x38] sm:$0xff] %v10073_v17 }
 0x6b3   : > { %v10054_v43 = vpop.trf.xlu1 }
 0x6b4   : > { %v10075_v11 = vadd.f32 %v12495_v8, %v10054_v43 }
 0x6b6   : > { %10091 = vst [vmem:[%s16725_s29 + $0x48] sm:$0xff] %v10075_v11 }
 0x6b7   : > { %v10055_v47 = vpop.trf.xlu1 }
 0x6b8   : > { %v10077_v28 = vadd.f32 %v12496_v4, %v10055_v47 }
 0x6ba   : > { %10093 = vst [vmem:[%s16725_s29 + $0x58] sm:$0xff] %v10077_v28 }
 0x6bb   : > { %v10056_v33 = vpop.trf.xlu1 }
 0x6bc   : > { %v10079_v30 = vadd.f32 %v12497_v21, %v10056_v33 }
 0x6be   : > { %10095 = vst [vmem:[%s16725_s29 + $0x68] sm:$0xff] %v10079_v30 }
 0x6bf   : > { %v10057_v12 = vpop.trf.xlu1 }
 0x6c0   : > { %v10081_v39 = vadd.f32 %v12498_v26, %v10057_v12 }
 0x6c2   : > { %10097 = vst [vmem:[%s16725_s29 + $0x78] sm:$0xff] %v10081_v39 }
 0x6c3   : > { %12512 = shalt.err (!%p12509_p3)
}
 0x6c4   : > { %s12513_s28 = scalar_lea.hbm %s16772_s7, 2048  ;;  %s12517_s24 = scalar_lea.hbm %s16823_s3, 4096 }
 0x6c5   : > { %p12514_p4 = scmp.ne.s32.totalorder %s16772_s7, %s12513_s28  ;;  %p12518_p9 = scmp.lt.s32.totalorder %s16772_s7, %s16823_s3 }
 0x6c6   : > { %p12519_p10 = scmp.lt.s32.totalorder %s12517_s24, %s12513_s28 }
 0x6c7   : > { %p12515_p7 = pnand %p12514_p4, %p12625_p5 }
 0x6c8   : > { %p12520_p11 = por %p12519_p10, %p12518_p9 }
 0x6c9   : > { %p12516_p8 = pneg %p12515_p7 }
 0x6cb   : > { %p12521_p12 = pnand %p12520_p11, %p12516_p8 }
 0x6cd   : > { %12524 = shalt.err (!%p12521_p12)
}
 0x6ce   : > { %s12565_s9 = smov 256   ;;  %s12566_s27 = smov 16  }
 0x6cf   : > { %12108 = dma.vmem_to_hbm [thread:$0]  (%p12625_p5), %s16774_s4, 2048, %s16772_s7, %s16780_s8, %s12565_s9, %s12565_s9, %s12566_s27  }
 0x6d0 PF: > { %p12114_p13 = scmp.ge.s32.totalorder %s12559_s15, 2  ;;  %s10127_s29 = sand.u32 1, %s12547_s12  }
 0x6d1   : > { %s10128_s30 = scalar_lea.sflag [#allocation6], %s10127_s29 }
 0x6d2   : > { %p12111_p0 = pnand %p12114_p13, %p12629_p6 }
 0x6d4   : > { %p12112_p1 = pneg %p12111_p0 }
 0x6d6   : > { %12542 = dma.done.wait (%p12112_p1), %s10128_s30, 2048  }
 0x6d7   : > { %12544 = vsyncadd (%p12112_p1), %s10128_s30, 4294965248  ;;  %p13_p2 = scmp.ge.s32.totalorder %s12612_s18, 4   ;;  %s17493_s12 = smov %s12551_s13 }
 0x6d8   : > { %s17494_s13 = smov %s12555_s14  ;;  %s17495_s14 = smov %s12623_s21 }
 0x6d9   : > { %s17496_s15 = smov %s12612_s18  ;;  %15 = sbr.rel (!%p13_p2) target bundleno = 3 (0x3), region = 71 }
 0x6de   :  { %10133 = vsyncpa [#allocation6], 1 }
 0x6df   :  { %10135 = vsyncpa [#allocation6 + $0x1], 1 }

</bundles_post_ra>
